<compile_context>
chip_gen: v7x
topology: tpu7x:2x2x1
jax: 0.10.0
libtpu: 0.0.40
codegen_flags: <defaults>
</compile_context>

<pallas_src>
import functools
import math

import jax
import jax.numpy as jnp
import numpy as np
from jax.experimental import pallas as pl
from jax.experimental.pallas import tpu as pltpu

BN_EPS = 1e-5
OC = 32                                          # all convs have 32 out-channels
LAYER_SPECS = [(8, 4), (4, 2), (4, 2), (2, 1)]   # (kernel, stride) per conv


def conv_out(dim, k, s):
    # floor((dim-k)/s)+1 == the module's round_up((dim-k+1)/s) for all ints.
    return (dim - k) // s + 1


def spatial_chain(h, w):
    """Per conv layer: (h_in, w_in, k, s, h_out, w_out)."""
    chain = []
    for k, s in LAYER_SPECS:
        oh, ow = conv_out(h, k, s), conv_out(w, k, s)
        chain.append((h, w, k, s, oh, ow))
        h, w = oh, ow
    return tuple(chain)


# ----------------------------- Pallas kernel --------------------------------

def _bn_relu(z, gamma, beta):
    """Training-mode BatchNorm2d (batch stats over rows = N*H*W) + ReLU.

    Single pass: sum and sum-of-squares reduced together (one walk over z),
    f32 accumulation, biased variance (matches PyTorch BN training forward).
    """
    r, c = z.shape
    s = jnp.sum(jnp.concatenate([z, z * z], axis=1), axis=0, keepdims=True)
    s = s * (1.0 / r)
    mean = s[:, :c]
    var = s[:, c:] - mean * mean
    inv = jax.lax.rsqrt(var + BN_EPS)
    return jnp.maximum(gamma * ((z - mean) * inv) + beta, 0.0)


def _gather_patch(src_ref, dst_ref, *, n, h, w, k, s, oh, ow):
    """In-kernel im2col for one conv layer.

    src_ref: (n*h*w, 32) previous activation, rows in (b, i, j)-major order,
             lanes = channels.
    dst_ref: (n*oh*ow, k*k*32) patch scratch; lane block p = ki*k+kj holds the
             32 input channels at kernel position (ki, kj).
    All indices are trace-time constants; the only non-unit stride is the
    width stride `s` along the row (sublane) axis of src_ref.
    """
    for b in range(n):
        for oi in range(oh):
            dst_row = (b * oh + oi) * ow
            for ki in range(k):
                src_base = (b * h + s * oi + ki) * w
                for kj in range(k):
                    if s > 1:
                        piece = src_ref[pl.ds(src_base + kj, ow, stride=s), :]
                    else:
                        piece = src_ref[pl.ds(src_base + kj, ow), :]
                    dst_ref[pl.ds(dst_row, ow),
                            pl.ds((ki * k + kj) * OC, OC)] = piece


def _fused_cnn_kernel(p1_ref, w1_ref, w2_ref, w3_ref, w4_ref, bn_ref,
                      hw_ref, hb_ref, out_ref,
                      a1_scr, p2_scr, a2_scr, p3_scr, a3_scr, p4_scr,
                      *, n, chain):
    # ---- conv1 + BN1 + ReLU : (R1, K1)bf16 @ (K1, 32)bf16 -> f32 acc -------
    # (conv biases omitted on purpose: training-mode BN subtracts the batch
    #  mean, which cancels a per-channel bias exactly.)
    z = jnp.dot(p1_ref[...], w1_ref[...], preferred_element_type=jnp.float32)
    a1_scr[...] = _bn_relu(z, bn_ref[0:1, :], bn_ref[1:2, :])

    # ---- conv2..conv4: in-kernel im2col (static strided row gathers) + ONE
    #      packed (rows, k*k*32) @ (k*k*32, 32) bf16 matmul per layer, fused
    #      with single-pass batch-stat BN + ReLU. ------------------------------
    stages = ((a1_scr, p2_scr, a2_scr, w2_ref, chain[1]),
              (a2_scr, p3_scr, a3_scr, w3_ref, chain[2]),
              (a3_scr, p4_scr, None, w4_ref, chain[3]))
    act = None
    for li, (src, patch, dst, w_ref, (h, w, k, s, oh, ow)) in enumerate(
            stages, start=1):
        _gather_patch(src, patch, n=n, h=h, w=w, k=k, s=s, oh=oh, ow=ow)
        z = jnp.dot(patch[...].astype(jnp.bfloat16), w_ref[...],
                    preferred_element_type=jnp.float32)
        act = _bn_relu(z, bn_ref[2 * li:2 * li + 1, :],
                       bn_ref[2 * li + 1:2 * li + 2, :])
        if dst is not None:
            dst[...] = act

    # ---- head: final spatial is 1x1, so act is (N, 32) and the NCHW flatten
    #      order is baked into hw_ref at prep time. ---------------------------
    out_ref[...] = (jnp.dot(act.astype(jnp.bfloat16), hw_ref[...],
                            preferred_element_type=jnp.float32)
                    + hb_ref[...])


# --------------------------- static operand prep ----------------------------

def prepare_operands(params, input_dims):
    """One-time (static) transform of module parameters into kernel operands.
    Batch-independent (no selection matrices anymore)."""
    c, h, w = input_dims
    chain = spatial_chain(h, w)
    prep = {}

    _, _, k1, _, _, _ = chain[0]
    # conv weight OIHW -> (ki,kj,ci,co) -> (K1, 32): matches the (ki,kj,c)
    # column order of the wrapper-side conv1 im2col.
    prep["w1"] = (jnp.transpose(params["conv1_w"], (2, 3, 1, 0))
                  .reshape(k1 * k1 * c, OC).astype(jnp.bfloat16))

    for i, (_, _, k, _, _, _) in enumerate(chain[1:], start=2):
        # Packed (k*k*32, 32): row order (ki, kj, ci) matches the patch lane
        # order produced by _gather_patch -> ONE matmul per conv layer.
        prep[f"w{i}"] = (jnp.transpose(params[f"conv{i}_w"], (2, 3, 1, 0))
                         .reshape(k * k * OC, OC).astype(jnp.bfloat16))

    # Conv biases intentionally NOT packed (cancelled by training-mode BN).
    prep["bn"] = jnp.stack(
        [params["bn1_g"], params["bn1_b"], params["bn2_g"], params["bn2_b"],
         params["bn3_g"], params["bn3_b"], params["bn4_g"], params["bn4_b"]],
        axis=0).astype(jnp.float32)                              # (8, 32)

    hh, ww = chain[-1][4], chain[-1][5]
    # TODO(synk): fused head assumes 1x1 final spatial (true for this
    # architecture at 64x64 input); general sizes need an in-kernel
    # (N*P,32)->(N,P*32) flatten.
    assert hh * ww == 1, "fused head assumes 1x1 final conv output"

    emb = params["head_w"].shape[0]
    # Absorb PyTorch's NCHW flatten (c, oh, ow) into a static permutation of
    # the head-weight columns, pre-transposed to (feat, E), bf16 operand.
    prep["hw"] = (jnp.transpose(params["head_w"].reshape(emb, OC, hh, ww),
                                (2, 3, 1, 0))
                  .reshape(hh * ww * OC, emb).astype(jnp.bfloat16))
    prep["hb"] = params["head_b"].reshape(1, emb).astype(jnp.float32)
    return prep


# ------------------------------- forward ------------------------------------

@functools.partial(jax.jit, static_argnums=(2,))
def image_cnn_emnlp_forward(x, prep, input_dims):
    n = x.shape[0]
    c, h, w = input_dims
    chain = spatial_chain(h, w)
    _, _, k1, s1, oh1, ow1 = chain[0]
    _, _, k2, _, oh2, ow2 = chain[1]
    _, _, k3, _, oh3, ow3 = chain[2]
    _, _, k4, _, oh4, ow4 = chain[3]

    # conv1 im2col in (ki,kj,c) column order; static strided slices + one
    # minor-axis concat (XLA side).
    # TODO(synk): conv1's im2col stays wrapper-side; an in-kernel build needs
    # lane-strided gathers on the C=3 NHWC input (no clean Mosaic path).
    # Cost: ~150 KB of extra HBM traffic at this size.
    xi = jnp.transpose(x.reshape(n, c, h, w), (0, 2, 3, 1))      # NHWC, once
    blocks = [xi[:, ki:ki + s1 * (oh1 - 1) + 1:s1,
                 kj:kj + s1 * (ow1 - 1) + 1:s1, :]
              for ki in range(k1) for kj in range(k1)]
    p1 = (jnp.concatenate(blocks, axis=-1)
          .reshape(n * oh1 * ow1, k1 * k1 * c).astype(jnp.bfloat16))

    emb = prep["hb"].shape[1]
    f32 = jnp.float32
    scratch_shapes = [
        pltpu.VMEM((n * oh1 * ow1, OC), f32),                # act1
        pltpu.VMEM((n * oh2 * ow2, k2 * k2 * OC), f32),      # patch2
        pltpu.VMEM((n * oh2 * ow2, OC), f32),                # act2
        pltpu.VMEM((n * oh3 * ow3, k3 * k3 * OC), f32),      # patch3
        pltpu.VMEM((n * oh3 * ow3, OC), f32),                # act3
        pltpu.VMEM((n * oh4 * ow4, k4 * k4 * OC), f32),      # patch4
    ]

    # TODO(synk): before scaling batch, add a row-tiled grid over N*OH*OW with
    # a two-pass BN (sum/sumsq accumulated across an 'arbitrary' axis) and
    # dimension_semantics=('parallel', ...) — needed first on v7x (64 MiB
    # VMEM, 2 TensorCores).  At batch=2 everything is whole-array resident.
    kernel = functools.partial(_fused_cnn_kernel, n=n, chain=chain)
    return pl.pallas_call(
        kernel,
        out_shape=jax.ShapeDtypeStruct((n, emb), jnp.float32),
        in_specs=[pl.BlockSpec(memory_space=pltpu.MemorySpace.VMEM)
                  for _ in range(8)],
        out_specs=pl.BlockSpec(memory_space=pltpu.MemorySpace.VMEM),
        scratch_shapes=scratch_shapes,
    )(p1, prep["w1"], prep["w2"], prep["w3"], prep["w4"],
      prep["bn"], prep["hw"], prep["hb"])


# --------------------------- pure-JAX reference ------------------------------

def reference_forward(x, params, input_dims):
    n = x.shape[0]
    x = x.reshape((n,) + input_dims)
    for i, (_, s) in enumerate(LAYER_SPECS, start=1):
        w = params[f"conv{i}_w"]
        y = jax.lax.conv_general_dilated(
            x, w, (s, s), "VALID",
            dimension_numbers=("NCHW", "OIHW", "NCHW"))
        y = y + params[f"conv{i}_b"].reshape(1, -1, 1, 1)
        mean = jnp.mean(y, axis=(0, 2, 3), keepdims=True)
        var = jnp.mean((y - mean) ** 2, axis=(0, 2, 3), keepdims=True)
        g = params[f"bn{i}_g"].reshape(1, -1, 1, 1)
        bt = params[f"bn{i}_b"].reshape(1, -1, 1, 1)
        x = jnp.maximum(g * (y - mean) / jnp.sqrt(var + BN_EPS) + bt, 0.0)
    x = x.reshape(n, -1)
    return x @ params["head_w"].T + params["head_b"]


# ---------------------------------- init -------------------------------------

def init_params(key, image_emb_size, in_ch, img_h, img_w):
    params = {}
    h, w = img_h, img_w
    c_in = in_ch
    for i, (k, s) in enumerate(LAYER_SPECS, start=1):
        key, kw_key, kb_key = jax.random.split(key, 3)
        fan_in = c_in * k * k
        bound = 1.0 / math.sqrt(fan_in)
        params[f"conv{i}_w"] = jax.random.uniform(
            kw_key, (OC, c_in, k, k), jnp.float32, -bound, bound)
        params[f"conv{i}_b"] = jax.random.uniform(
            kb_key, (OC,), jnp.float32, -bound, bound)
        params[f"bn{i}_g"] = jnp.ones((OC,), jnp.float32)   # PyTorch BN defaults
        params[f"bn{i}_b"] = jnp.zeros((OC,), jnp.float32)
        h, w = conv_out(h, k, s), conv_out(w, k, s)
        c_in = OC
    feat = h * w * OC
    key, kw_key, kb_key = jax.random.split(key, 3)
    bound = 1.0 / math.sqrt(feat)
    params["head_w"] = jax.random.uniform(
        kw_key, (image_emb_size, feat), jnp.float32, -bound, bound)
    params["head_b"] = jax.random.uniform(
        kb_key, (image_emb_size,), jnp.float32, -bound, bound)
    return params


# ---------------------------------- main -------------------------------------

if __name__ == "__main__":
    image_emb_size = 32
    in_ch, img_h, img_w = 3, 64, 64     # small, but deep enough for all 4 convs
    batch = 2
    input_dims = (in_ch, img_h, img_w)

    key = jax.random.PRNGKey(0)
    key, x_key = jax.random.split(key)
    params = init_params(key, image_emb_size, in_ch, img_h, img_w)
    # Forward accepts flat input and views it to (N, C, H, W), like the module.
    x = jax.random.normal(x_key, (batch, in_ch * img_h * img_w), jnp.float32)

    prep = prepare_operands(params, input_dims)
    out = image_cnn_emnlp_forward(x, prep, input_dims)
    out = jax.block_until_ready(out)

    ref = reference_forward(x, params, input_dims)
    assert out.shape == (batch, image_emb_size)
    # bf16 MXU operands -> modest tolerance (tightened vs. 3e-2 after the
    # single-pass BN change; f32 accumulation throughout).
    np.testing.assert_allclose(np.asarray(out), np.asarray(ref),
                               rtol=2e-2, atol=2e-2)
    print("KERNEL_OK")
</pallas_src>

<mosaic_0001>
module attributes {stable_mosaic.version = 11 : i64} {
  func.func @_fused_cnn_kernel(%arg0: memref<450x192xbf16, #tpu.memory_space<vmem>>, %arg1: memref<192x32xbf16, #tpu.memory_space<vmem>>, %arg2: memref<512x32xbf16, #tpu.memory_space<vmem>>, %arg3: memref<512x32xbf16, #tpu.memory_space<vmem>>, %arg4: memref<128x32xbf16, #tpu.memory_space<vmem>>, %arg5: memref<8x32xf32, #tpu.memory_space<vmem>>, %arg6: memref<32x32xbf16, #tpu.memory_space<vmem>>, %arg7: memref<1x32xf32, #tpu.memory_space<vmem>>, %arg8: memref<2x32xf32, #tpu.memory_space<vmem>>, %arg9: memref<450x32xf32, #tpu.memory_space<vmem>>, %arg10: memref<72x512xf32, #tpu.memory_space<vmem>>, %arg11: memref<72x32xf32, #tpu.memory_space<vmem>>, %arg12: memref<8x512xf32, #tpu.memory_space<vmem>>, %arg13: memref<8x32xf32, #tpu.memory_space<vmem>>, %arg14: memref<2x128xf32, #tpu.memory_space<vmem>>) attributes {dimension_semantics = [], scalar_prefetch = 0 : i64, scratch_operands = 6 : i64, tpu.core_type = #tpu.core_type<tc>} {
    %c0 = arith.constant 0 : index
    %c0_0 = arith.constant 0 : index
    %0 = vector.load %arg0[%c0, %c0_0] : memref<450x192xbf16, #tpu.memory_space<vmem>>, vector<450x192xbf16>
    %c0_1 = arith.constant 0 : index
    %c0_2 = arith.constant 0 : index
    %1 = vector.load %arg1[%c0_1, %c0_2] : memref<192x32xbf16, #tpu.memory_space<vmem>>, vector<192x32xbf16>
    %cst = arith.constant dense<0.000000e+00> : vector<450x32xf32>
    %2 = tpu.matmul %0, %1, %cst {dimension_numbers = #tpu.dot_dimension_numbers<[1], [0], [0], [1], [0, 0, 1, 1], [], []>} : vector<450x192xbf16>, vector<192x32xbf16>, vector<450x32xf32> -> vector<450x32xf32>
    %c0_3 = arith.constant 0 : index
    %c0_4 = arith.constant 0 : index
    %3 = vector.load %arg5[%c0_3, %c0_4] : memref<8x32xf32, #tpu.memory_space<vmem>>, vector<1x32xf32>
    %c1 = arith.constant 1 : index
    %c0_5 = arith.constant 0 : index
    %4 = vector.load %arg5[%c1, %c0_5] : memref<8x32xf32, #tpu.memory_space<vmem>>, vector<1x32xf32>
    %5 = arith.mulf %2, %2 : vector<450x32xf32>
    %6 = tpu.concatenate %2, %5 in 1 : vector<450x32xf32>, vector<450x32xf32> -> vector<450x64xf32>
    %cst_6 = arith.constant dense<0.000000e+00> : vector<64xf32>
    %7 = vector.multi_reduction <add>, %6, %cst_6 [0] : vector<450x64xf32> to vector<64xf32>
    %8 = vector.shape_cast %7 : vector<64xf32> to vector<1x64xf32>
    %cst_7 = arith.constant 0.00222222228 : f32
    %9 = vector.broadcast %cst_7 : f32 to vector<1x64xf32>
    %10 = arith.mulf %8, %9 : vector<1x64xf32>
    %11 = vector.extract_strided_slice %10 {offsets = [0, 0], sizes = [1, 32], strides = [1, 1]} : vector<1x64xf32> to vector<1x32xf32>
    %12 = vector.extract_strided_slice %10 {offsets = [0, 32], sizes = [1, 32], strides = [1, 1]} : vector<1x64xf32> to vector<1x32xf32>
    %13 = arith.mulf %11, %11 : vector<1x32xf32>
    %14 = arith.subf %12, %13 : vector<1x32xf32>
    %cst_8 = arith.constant 9.99999974E-6 : f32
    %15 = vector.broadcast %cst_8 : f32 to vector<1x32xf32>
    %16 = arith.addf %14, %15 : vector<1x32xf32>
    %17 = math.rsqrt %16 : vector<1x32xf32>
    %18 = vector.broadcast %11 : vector<1x32xf32> to vector<450x32xf32>
    %19 = arith.subf %2, %18 : vector<450x32xf32>
    %20 = vector.broadcast %17 : vector<1x32xf32> to vector<450x32xf32>
    %21 = arith.mulf %19, %20 : vector<450x32xf32>
    %22 = vector.broadcast %3 : vector<1x32xf32> to vector<450x32xf32>
    %23 = arith.mulf %22, %21 : vector<450x32xf32>
    %24 = vector.broadcast %4 : vector<1x32xf32> to vector<450x32xf32>
    %25 = arith.addf %23, %24 : vector<450x32xf32>
    %cst_9 = arith.constant 0.000000e+00 : f32
    %26 = vector.broadcast %cst_9 : f32 to vector<450x32xf32>
    %27 = arith.maximumf %25, %26 : vector<450x32xf32>
    %c0_10 = arith.constant 0 : index
    %c0_11 = arith.constant 0 : index
    %28 = vector.load %arg9[%c0_10, %c0_11] : memref<450x32xf32, #tpu.memory_space<vmem>>, vector<450x32xf32>
    tpu.vector_store %arg9[%c0_10, %c0_11], %27 {strides = array<i32>} : memref<450x32xf32, #tpu.memory_space<vmem>>, vector<450x32xf32>,
    %c0_12 = arith.constant 0 : index
    %c0_13 = arith.constant 0 : index
    %29 = tpu.strided_load %arg9[%c0_12, %c0_13] {strides = array<i32: 2, 1>} : memref<450x32xf32, #tpu.memory_space<vmem>>, vector<6x32xf32>
    %c0_14 = arith.constant 0 : index
    %c0_15 = arith.constant 0 : index
    %30 = vector.load %arg10[%c0_14, %c0_15] : memref<72x512xf32, #tpu.memory_space<vmem>>, vector<6x32xf32>
    tpu.vector_store %arg10[%c0_14, %c0_15], %29 {strides = array<i32>} : memref<72x512xf32, #tpu.memory_space<vmem>>, vector<6x32xf32>,
    %c1_16 = arith.constant 1 : index
    %c0_17 = arith.constant 0 : index
    %31 = tpu.strided_load %arg9[%c1_16, %c0_17] {strides = array<i32: 2, 1>} : memref<450x32xf32, #tpu.memory_space<vmem>>, vector<6x32xf32>
    %c0_18 = arith.constant 0 : index
    %c32 = arith.constant 32 : index
    %32 = vector.load %arg10[%c0_18, %c32] : memref<72x512xf32, #tpu.memory_space<vmem>>, vector<6x32xf32>
    tpu.vector_store %arg10[%c0_18, %c32], %31 {strides = array<i32>} : memref<72x512xf32, #tpu.memory_space<vmem>>, vector<6x32xf32>,
    %c2 = arith.constant 2 : index
    %c0_19 = arith.constant 0 : index
    %33 = tpu.strided_load %arg9[%c2, %c0_19] {strides = array<i32: 2, 1>} : memref<450x32xf32, #tpu.memory_space<vmem>>, vector<6x32xf32>
    %c0_20 = arith.constant 0 : index
    %c64 = arith.constant 64 : index
    %34 = vector.load %arg10[%c0_20, %c64] : memref<72x512xf32, #tpu.memory_space<vmem>>, vector<6x32xf32>
    tpu.vector_store %arg10[%c0_20, %c64], %33 {strides = array<i32>} : memref<72x512xf32, #tpu.memory_space<vmem>>, vector<6x32xf32>,
    %c3 = arith.constant 3 : index
    %c0_21 = arith.constant 0 : index
    %35 = tpu.strided_load %arg9[%c3, %c0_21] {strides = array<i32: 2, 1>} : memref<450x32xf32, #tpu.memory_space<vmem>>, vector<6x32xf32>
    %c0_22 = arith.constant 0 : index
    %c96 = arith.constant 96 : index
    %36 = vector.load %arg10[%c0_22, %c96] : memref<72x512xf32, #tpu.memory_space<vmem>>, vector<6x32xf32>
    tpu.vector_store %arg10[%c0_22, %c96], %35 {strides = array<i32>} : memref<72x512xf32, #tpu.memory_space<vmem>>, vector<6x32xf32>,
    %c15 = arith.constant 15 : index
    %c0_23 = arith.constant 0 : index
    %37 = tpu.strided_load %arg9[%c15, %c0_23] {strides = array<i32: 2, 1>} : memref<450x32xf32, #tpu.memory_space<vmem>>, vector<6x32xf32>
    %c0_24 = arith.constant 0 : index
    %c128 = arith.constant 128 : index
    %38 = vector.load %arg10[%c0_24, %c128] : memref<72x512xf32, #tpu.memory_space<vmem>>, vector<6x32xf32>
    tpu.vector_store %arg10[%c0_24, %c128], %37 {strides = array<i32>} : memref<72x512xf32, #tpu.memory_space<vmem>>, vector<6x32xf32>,
    %c16 = arith.constant 16 : index
    %c0_25 = arith.constant 0 : index
    %39 = tpu.strided_load %arg9[%c16, %c0_25] {strides = array<i32: 2, 1>} : memref<450x32xf32, #tpu.memory_space<vmem>>, vector<6x32xf32>
    %c0_26 = arith.constant 0 : index
    %c160 = arith.constant 160 : index
    %40 = vector.load %arg10[%c0_26, %c160] : memref<72x512xf32, #tpu.memory_space<vmem>>, vector<6x32xf32>
    tpu.vector_store %arg10[%c0_26, %c160], %39 {strides = array<i32>} : memref<72x512xf32, #tpu.memory_space<vmem>>, vector<6x32xf32>,
    %c17 = arith.constant 17 : index
    %c0_27 = arith.constant 0 : index
    %41 = tpu.strided_load %arg9[%c17, %c0_27] {strides = array<i32: 2, 1>} : memref<450x32xf32, #tpu.memory_space<vmem>>, vector<6x32xf32>
    %c0_28 = arith.constant 0 : index
    %c192 = arith.constant 192 : index
    %42 = vector.load %arg10[%c0_28, %c192] : memref<72x512xf32, #tpu.memory_space<vmem>>, vector<6x32xf32>
    tpu.vector_store %arg10[%c0_28, %c192], %41 {strides = array<i32>} : memref<72x512xf32, #tpu.memory_space<vmem>>, vector<6x32xf32>,
    %c18 = arith.constant 18 : index
    %c0_29 = arith.constant 0 : index
    %43 = tpu.strided_load %arg9[%c18, %c0_29] {strides = array<i32: 2, 1>} : memref<450x32xf32, #tpu.memory_space<vmem>>, vector<6x32xf32>
    %c0_30 = arith.constant 0 : index
    %c224 = arith.constant 224 : index
    %44 = vector.load %arg10[%c0_30, %c224] : memref<72x512xf32, #tpu.memory_space<vmem>>, vector<6x32xf32>
    tpu.vector_store %arg10[%c0_30, %c224], %43 {strides = array<i32>} : memref<72x512xf32, #tpu.memory_space<vmem>>, vector<6x32xf32>,
    %c30 = arith.constant 30 : index
    %c0_31 = arith.constant 0 : index
    %45 = tpu.strided_load %arg9[%c30, %c0_31] {strides = array<i32: 2, 1>} : memref<450x32xf32, #tpu.memory_space<vmem>>, vector<6x32xf32>
    %c0_32 = arith.constant 0 : index
    %c256 = arith.constant 256 : index
    %46 = vector.load %arg10[%c0_32, %c256] : memref<72x512xf32, #tpu.memory_space<vmem>>, vector<6x32xf32>
    tpu.vector_store %arg10[%c0_32, %c256], %45 {strides = array<i32>} : memref<72x512xf32, #tpu.memory_space<vmem>>, vector<6x32xf32>,
    %c31 = arith.constant 31 : index
    %c0_33 = arith.constant 0 : index
    %47 = tpu.strided_load %arg9[%c31, %c0_33] {strides = array<i32: 2, 1>} : memref<450x32xf32, #tpu.memory_space<vmem>>, vector<6x32xf32>
    %c0_34 = arith.constant 0 : index
    %c288 = arith.constant 288 : index
    %48 = vector.load %arg10[%c0_34, %c288] : memref<72x512xf32, #tpu.memory_space<vmem>>, vector<6x32xf32>
    tpu.vector_store %arg10[%c0_34, %c288], %47 {strides = array<i32>} : memref<72x512xf32, #tpu.memory_space<vmem>>, vector<6x32xf32>,
    %c32_35 = arith.constant 32 : index
    %c0_36 = arith.constant 0 : index
    %49 = tpu.strided_load %arg9[%c32_35, %c0_36] {strides = array<i32: 2, 1>} : memref<450x32xf32, #tpu.memory_space<vmem>>, vector<6x32xf32>
    %c0_37 = arith.constant 0 : index
    %c320 = arith.constant 320 : index
    %50 = vector.load %arg10[%c0_37, %c320] : memref<72x512xf32, #tpu.memory_space<vmem>>, vector<6x32xf32>
    tpu.vector_store %arg10[%c0_37, %c320], %49 {strides = array<i32>} : memref<72x512xf32, #tpu.memory_space<vmem>>, vector<6x32xf32>,
    %c33 = arith.constant 33 : index
    %c0_38 = arith.constant 0 : index
    %51 = tpu.strided_load %arg9[%c33, %c0_38] {strides = array<i32: 2, 1>} : memref<450x32xf32, #tpu.memory_space<vmem>>, vector<6x32xf32>
    %c0_39 = arith.constant 0 : index
    %c352 = arith.constant 352 : index
    %52 = vector.load %arg10[%c0_39, %c352] : memref<72x512xf32, #tpu.memory_space<vmem>>, vector<6x32xf32>
    tpu.vector_store %arg10[%c0_39, %c352], %51 {strides = array<i32>} : memref<72x512xf32, #tpu.memory_space<vmem>>, vector<6x32xf32>,
    %c45 = arith.constant 45 : index
    %c0_40 = arith.constant 0 : index
    %53 = tpu.strided_load %arg9[%c45, %c0_40] {strides = array<i32: 2, 1>} : memref<450x32xf32, #tpu.memory_space<vmem>>, vector<6x32xf32>
    %c0_41 = arith.constant 0 : index
    %c384 = arith.constant 384 : index
    %54 = vector.load %arg10[%c0_41, %c384] : memref<72x512xf32, #tpu.memory_space<vmem>>, vector<6x32xf32>
    tpu.vector_store %arg10[%c0_41, %c384], %53 {strides = array<i32>} : memref<72x512xf32, #tpu.memory_space<vmem>>, vector<6x32xf32>,
    %c46 = arith.constant 46 : index
    %c0_42 = arith.constant 0 : index
    %55 = tpu.strided_load %arg9[%c46, %c0_42] {strides = array<i32: 2, 1>} : memref<450x32xf32, #tpu.memory_space<vmem>>, vector<6x32xf32>
    %c0_43 = arith.constant 0 : index
    %c416 = arith.constant 416 : index
    %56 = vector.load %arg10[%c0_43, %c416] : memref<72x512xf32, #tpu.memory_space<vmem>>, vector<6x32xf32>
    tpu.vector_store %arg10[%c0_43, %c416], %55 {strides = array<i32>} : memref<72x512xf32, #tpu.memory_space<vmem>>, vector<6x32xf32>,
    %c47 = arith.constant 47 : index
    %c0_44 = arith.constant 0 : index
    %57 = tpu.strided_load %arg9[%c47, %c0_44] {strides = array<i32: 2, 1>} : memref<450x32xf32, #tpu.memory_space<vmem>>, vector<6x32xf32>
    %c0_45 = arith.constant 0 : index
    %c448 = arith.constant 448 : index
    %58 = vector.load %arg10[%c0_45, %c448] : memref<72x512xf32, #tpu.memory_space<vmem>>, vector<6x32xf32>
    tpu.vector_store %arg10[%c0_45, %c448], %57 {strides = array<i32>} : memref<72x512xf32, #tpu.memory_space<vmem>>, vector<6x32xf32>,
    %c48 = arith.constant 48 : index
    %c0_46 = arith.constant 0 : index
    %59 = tpu.strided_load %arg9[%c48, %c0_46] {strides = array<i32: 2, 1>} : memref<450x32xf32, #tpu.memory_space<vmem>>, vector<6x32xf32>
    %c0_47 = arith.constant 0 : index
    %c480 = arith.constant 480 : index
    %60 = vector.load %arg10[%c0_47, %c480] : memref<72x512xf32, #tpu.memory_space<vmem>>, vector<6x32xf32>
    tpu.vector_store %arg10[%c0_47, %c480], %59 {strides = array<i32>} : memref<72x512xf32, #tpu.memory_space<vmem>>, vector<6x32xf32>,
    %c30_48 = arith.constant 30 : index
    %c0_49 = arith.constant 0 : index
    %61 = tpu.strided_load %arg9[%c30_48, %c0_49] {strides = array<i32: 2, 1>} : memref<450x32xf32, #tpu.memory_space<vmem>>, vector<6x32xf32>
    %c6 = arith.constant 6 : index
    %c0_50 = arith.constant 0 : index
    %62 = vector.load %arg10[%c6, %c0_50] : memref<72x512xf32, #tpu.memory_space<vmem>>, vector<6x32xf32>
    tpu.vector_store %arg10[%c6, %c0_50], %61 {strides = array<i32>} : memref<72x512xf32, #tpu.memory_space<vmem>>, vector<6x32xf32>,
    %c31_51 = arith.constant 31 : index
    %c0_52 = arith.constant 0 : index
    %63 = tpu.strided_load %arg9[%c31_51, %c0_52] {strides = array<i32: 2, 1>} : memref<450x32xf32, #tpu.memory_space<vmem>>, vector<6x32xf32>
    %c6_53 = arith.constant 6 : index
    %c32_54 = arith.constant 32 : index
    %64 = vector.load %arg10[%c6_53, %c32_54] : memref<72x512xf32, #tpu.memory_space<vmem>>, vector<6x32xf32>
    tpu.vector_store %arg10[%c6_53, %c32_54], %63 {strides = array<i32>} : memref<72x512xf32, #tpu.memory_space<vmem>>, vector<6x32xf32>,
    %c32_55 = arith.constant 32 : index
    %c0_56 = arith.constant 0 : index
    %65 = tpu.strided_load %arg9[%c32_55, %c0_56] {strides = array<i32: 2, 1>} : memref<450x32xf32, #tpu.memory_space<vmem>>, vector<6x32xf32>
    %c6_57 = arith.constant 6 : index
    %c64_58 = arith.constant 64 : index
    %66 = vector.load %arg10[%c6_57, %c64_58] : memref<72x512xf32, #tpu.memory_space<vmem>>, vector<6x32xf32>
    tpu.vector_store %arg10[%c6_57, %c64_58], %65 {strides = array<i32>} : memref<72x512xf32, #tpu.memory_space<vmem>>, vector<6x32xf32>,
    %c33_59 = arith.constant 33 : index
    %c0_60 = arith.constant 0 : index
    %67 = tpu.strided_load %arg9[%c33_59, %c0_60] {strides = array<i32: 2, 1>} : memref<450x32xf32, #tpu.memory_space<vmem>>, vector<6x32xf32>
    %c6_61 = arith.constant 6 : index
    %c96_62 = arith.constant 96 : index
    %68 = vector.load %arg10[%c6_61, %c96_62] : memref<72x512xf32, #tpu.memory_space<vmem>>, vector<6x32xf32>
    tpu.vector_store %arg10[%c6_61, %c96_62], %67 {strides = array<i32>} : memref<72x512xf32, #tpu.memory_space<vmem>>, vector<6x32xf32>,
    %c45_63 = arith.constant 45 : index
    %c0_64 = arith.constant 0 : index
    %69 = tpu.strided_load %arg9[%c45_63, %c0_64] {strides = array<i32: 2, 1>} : memref<450x32xf32, #tpu.memory_space<vmem>>, vector<6x32xf32>
    %c6_65 = arith.constant 6 : index
    %c128_66 = arith.constant 128 : index
    %70 = vector.load %arg10[%c6_65, %c128_66] : memref<72x512xf32, #tpu.memory_space<vmem>>, vector<6x32xf32>
    tpu.vector_store %arg10[%c6_65, %c128_66], %69 {strides = array<i32>} : memref<72x512xf32, #tpu.memory_space<vmem>>, vector<6x32xf32>,
    %c46_67 = arith.constant 46 : index
    %c0_68 = arith.constant 0 : index
    %71 = tpu.strided_load %arg9[%c46_67, %c0_68] {strides = array<i32: 2, 1>} : memref<450x32xf32, #tpu.memory_space<vmem>>, vector<6x32xf32>
    %c6_69 = arith.constant 6 : index
    %c160_70 = arith.constant 160 : index
    %72 = vector.load %arg10[%c6_69, %c160_70] : memref<72x512xf32, #tpu.memory_space<vmem>>, vector<6x32xf32>
    tpu.vector_store %arg10[%c6_69, %c160_70], %71 {strides = array<i32>} : memref<72x512xf32, #tpu.memory_space<vmem>>, vector<6x32xf32>,
    %c47_71 = arith.constant 47 : index
    %c0_72 = arith.constant 0 : index
    %73 = tpu.strided_load %arg9[%c47_71, %c0_72] {strides = array<i32: 2, 1>} : memref<450x32xf32, #tpu.memory_space<vmem>>, vector<6x32xf32>
    %c6_73 = arith.constant 6 : index
    %c192_74 = arith.constant 192 : index
    %74 = vector.load %arg10[%c6_73, %c192_74] : memref<72x512xf32, #tpu.memory_space<vmem>>, vector<6x32xf32>
    tpu.vector_store %arg10[%c6_73, %c192_74], %73 {strides = array<i32>} : memref<72x512xf32, #tpu.memory_space<vmem>>, vector<6x32xf32>,
    %c48_75 = arith.constant 48 : index
    %c0_76 = arith.constant 0 : index
    %75 = tpu.strided_load %arg9[%c48_75, %c0_76] {strides = array<i32: 2, 1>} : memref<450x32xf32, #tpu.memory_space<vmem>>, vector<6x32xf32>
    %c6_77 = arith.constant 6 : index
    %c224_78 = arith.constant 224 : index
    %76 = vector.load %arg10[%c6_77, %c224_78] : memref<72x512xf32, #tpu.memory_space<vmem>>, vector<6x32xf32>
    tpu.vector_store %arg10[%c6_77, %c224_78], %75 {strides = array<i32>} : memref<72x512xf32, #tpu.memory_space<vmem>>, vector<6x32xf32>,
    %c60 = arith.constant 60 : index
    %c0_79 = arith.constant 0 : index
    %77 = tpu.strided_load %arg9[%c60, %c0_79] {strides = array<i32: 2, 1>} : memref<450x32xf32, #tpu.memory_space<vmem>>, vector<6x32xf32>
    %c6_80 = arith.constant 6 : index
    %c256_81 = arith.constant 256 : index
    %78 = vector.load %arg10[%c6_80, %c256_81] : memref<72x512xf32, #tpu.memory_space<vmem>>, vector<6x32xf32>
    tpu.vector_store %arg10[%c6_80, %c256_81], %77 {strides = array<i32>} : memref<72x512xf32, #tpu.memory_space<vmem>>, vector<6x32xf32>,
    %c61 = arith.constant 61 : index
    %c0_82 = arith.constant 0 : index
    %79 = tpu.strided_load %arg9[%c61, %c0_82] {strides = array<i32: 2, 1>} : memref<450x32xf32, #tpu.memory_space<vmem>>, vector<6x32xf32>
    %c6_83 = arith.constant 6 : index
    %c288_84 = arith.constant 288 : index
    %80 = vector.load %arg10[%c6_83, %c288_84] : memref<72x512xf32, #tpu.memory_space<vmem>>, vector<6x32xf32>
    tpu.vector_store %arg10[%c6_83, %c288_84], %79 {strides = array<i32>} : memref<72x512xf32, #tpu.memory_space<vmem>>, vector<6x32xf32>,
    %c62 = arith.constant 62 : index
    %c0_85 = arith.constant 0 : index
    %81 = tpu.strided_load %arg9[%c62, %c0_85] {strides = array<i32: 2, 1>} : memref<450x32xf32, #tpu.memory_space<vmem>>, vector<6x32xf32>
    %c6_86 = arith.constant 6 : index
    %c320_87 = arith.constant 320 : index
    %82 = vector.load %arg10[%c6_86, %c320_87] : memref<72x512xf32, #tpu.memory_space<vmem>>, vector<6x32xf32>
    tpu.vector_store %arg10[%c6_86, %c320_87], %81 {strides = array<i32>} : memref<72x512xf32, #tpu.memory_space<vmem>>, vector<6x32xf32>,
    %c63 = arith.constant 63 : index
    %c0_88 = arith.constant 0 : index
    %83 = tpu.strided_load %arg9[%c63, %c0_88] {strides = array<i32: 2, 1>} : memref<450x32xf32, #tpu.memory_space<vmem>>, vector<6x32xf32>
    %c6_89 = arith.constant 6 : index
    %c352_90 = arith.constant 352 : index
    %84 = vector.load %arg10[%c6_89, %c352_90] : memref<72x512xf32, #tpu.memory_space<vmem>>, vector<6x32xf32>
    tpu.vector_store %arg10[%c6_89, %c352_90], %83 {strides = array<i32>} : memref<72x512xf32, #tpu.memory_space<vmem>>, vector<6x32xf32>,
    %c75 = arith.constant 75 : index
    %c0_91 = arith.constant 0 : index
    %85 = tpu.strided_load %arg9[%c75, %c0_91] {strides = array<i32: 2, 1>} : memref<450x32xf32, #tpu.memory_space<vmem>>, vector<6x32xf32>
    %c6_92 = arith.constant 6 : index
    %c384_93 = arith.constant 384 : index
    %86 = vector.load %arg10[%c6_92, %c384_93] : memref<72x512xf32, #tpu.memory_space<vmem>>, vector<6x32xf32>
    tpu.vector_store %arg10[%c6_92, %c384_93], %85 {strides = array<i32>} : memref<72x512xf32, #tpu.memory_space<vmem>>, vector<6x32xf32>,
    %c76 = arith.constant 76 : index
    %c0_94 = arith.constant 0 : index
    %87 = tpu.strided_load %arg9[%c76, %c0_94] {strides = array<i32: 2, 1>} : memref<450x32xf32, #tpu.memory_space<vmem>>, vector<6x32xf32>
    %c6_95 = arith.constant 6 : index
    %c416_96 = arith.constant 416 : index
    %88 = vector.load %arg10[%c6_95, %c416_96] : memref<72x512xf32, #tpu.memory_space<vmem>>, vector<6x32xf32>
    tpu.vector_store %arg10[%c6_95, %c416_96], %87 {strides = array<i32>} : memref<72x512xf32, #tpu.memory_space<vmem>>, vector<6x32xf32>,
    %c77 = arith.constant 77 : index
    %c0_97 = arith.constant 0 : index
    %89 = tpu.strided_load %arg9[%c77, %c0_97] {strides = array<i32: 2, 1>} : memref<450x32xf32, #tpu.memory_space<vmem>>, vector<6x32xf32>
    %c6_98 = arith.constant 6 : index
    %c448_99 = arith.constant 448 : index
    %90 = vector.load %arg10[%c6_98, %c448_99] : memref<72x512xf32, #tpu.memory_space<vmem>>, vector<6x32xf32>
    tpu.vector_store %arg10[%c6_98, %c448_99], %89 {strides = array<i32>} : memref<72x512xf32, #tpu.memory_space<vmem>>, vector<6x32xf32>,
    %c78 = arith.constant 78 : index
    %c0_100 = arith.constant 0 : index
    %91 = tpu.strided_load %arg9[%c78, %c0_100] {strides = array<i32: 2, 1>} : memref<450x32xf32, #tpu.memory_space<vmem>>, vector<6x32xf32>
    %c6_101 = arith.constant 6 : index
    %c480_102 = arith.constant 480 : index
    %92 = vector.load %arg10[%c6_101, %c480_102] : memref<72x512xf32, #tpu.memory_space<vmem>>, vector<6x32xf32>
    tpu.vector_store %arg10[%c6_101, %c480_102], %91 {strides = array<i32>} : memref<72x512xf32, #tpu.memory_space<vmem>>, vector<6x32xf32>,
    %c60_103 = arith.constant 60 : index
    %c0_104 = arith.constant 0 : index
    %93 = tpu.strided_load %arg9[%c60_103, %c0_104] {strides = array<i32: 2, 1>} : memref<450x32xf32, #tpu.memory_space<vmem>>, vector<6x32xf32>
    %c12 = arith.constant 12 : index
    %c0_105 = arith.constant 0 : index
    %94 = vector.load %arg10[%c12, %c0_105] : memref<72x512xf32, #tpu.memory_space<vmem>>, vector<6x32xf32>
    tpu.vector_store %arg10[%c12, %c0_105], %93 {strides = array<i32>} : memref<72x512xf32, #tpu.memory_space<vmem>>, vector<6x32xf32>,
    %c61_106 = arith.constant 61 : index
    %c0_107 = arith.constant 0 : index
    %95 = tpu.strided_load %arg9[%c61_106, %c0_107] {strides = array<i32: 2, 1>} : memref<450x32xf32, #tpu.memory_space<vmem>>, vector<6x32xf32>
    %c12_108 = arith.constant 12 : index
    %c32_109 = arith.constant 32 : index
    %96 = vector.load %arg10[%c12_108, %c32_109] : memref<72x512xf32, #tpu.memory_space<vmem>>, vector<6x32xf32>
    tpu.vector_store %arg10[%c12_108, %c32_109], %95 {strides = array<i32>} : memref<72x512xf32, #tpu.memory_space<vmem>>, vector<6x32xf32>,
    %c62_110 = arith.constant 62 : index
    %c0_111 = arith.constant 0 : index
    %97 = tpu.strided_load %arg9[%c62_110, %c0_111] {strides = array<i32: 2, 1>} : memref<450x32xf32, #tpu.memory_space<vmem>>, vector<6x32xf32>
    %c12_112 = arith.constant 12 : index
    %c64_113 = arith.constant 64 : index
    %98 = vector.load %arg10[%c12_112, %c64_113] : memref<72x512xf32, #tpu.memory_space<vmem>>, vector<6x32xf32>
    tpu.vector_store %arg10[%c12_112, %c64_113], %97 {strides = array<i32>} : memref<72x512xf32, #tpu.memory_space<vmem>>, vector<6x32xf32>,
    %c63_114 = arith.constant 63 : index
    %c0_115 = arith.constant 0 : index
    %99 = tpu.strided_load %arg9[%c63_114, %c0_115] {strides = array<i32: 2, 1>} : memref<450x32xf32, #tpu.memory_space<vmem>>, vector<6x32xf32>
    %c12_116 = arith.constant 12 : index
    %c96_117 = arith.constant 96 : index
    %100 = vector.load %arg10[%c12_116, %c96_117] : memref<72x512xf32, #tpu.memory_space<vmem>>, vector<6x32xf32>
    tpu.vector_store %arg10[%c12_116, %c96_117], %99 {strides = array<i32>} : memref<72x512xf32, #tpu.memory_space<vmem>>, vector<6x32xf32>,
    %c75_118 = arith.constant 75 : index
    %c0_119 = arith.constant 0 : index
    %101 = tpu.strided_load %arg9[%c75_118, %c0_119] {strides = array<i32: 2, 1>} : memref<450x32xf32, #tpu.memory_space<vmem>>, vector<6x32xf32>
    %c12_120 = arith.constant 12 : index
    %c128_121 = arith.constant 128 : index
    %102 = vector.load %arg10[%c12_120, %c128_121] : memref<72x512xf32, #tpu.memory_space<vmem>>, vector<6x32xf32>
    tpu.vector_store %arg10[%c12_120, %c128_121], %101 {strides = array<i32>} : memref<72x512xf32, #tpu.memory_space<vmem>>, vector<6x32xf32>,
    %c76_122 = arith.constant 76 : index
    %c0_123 = arith.constant 0 : index
    %103 = tpu.strided_load %arg9[%c76_122, %c0_123] {strides = array<i32: 2, 1>} : memref<450x32xf32, #tpu.memory_space<vmem>>, vector<6x32xf32>
    %c12_124 = arith.constant 12 : index
    %c160_125 = arith.constant 160 : index
    %104 = vector.load %arg10[%c12_124, %c160_125] : memref<72x512xf32, #tpu.memory_space<vmem>>, vector<6x32xf32>
    tpu.vector_store %arg10[%c12_124, %c160_125], %103 {strides = array<i32>} : memref<72x512xf32, #tpu.memory_space<vmem>>, vector<6x32xf32>,
    %c77_126 = arith.constant 77 : index
    %c0_127 = arith.constant 0 : index
    %105 = tpu.strided_load %arg9[%c77_126, %c0_127] {strides = array<i32: 2, 1>} : memref<450x32xf32, #tpu.memory_space<vmem>>, vector<6x32xf32>
    %c12_128 = arith.constant 12 : index
    %c192_129 = arith.constant 192 : index
    %106 = vector.load %arg10[%c12_128, %c192_129] : memref<72x512xf32, #tpu.memory_space<vmem>>, vector<6x32xf32>
    tpu.vector_store %arg10[%c12_128, %c192_129], %105 {strides = array<i32>} : memref<72x512xf32, #tpu.memory_space<vmem>>, vector<6x32xf32>,
    %c78_130 = arith.constant 78 : index
    %c0_131 = arith.constant 0 : index
    %107 = tpu.strided_load %arg9[%c78_130, %c0_131] {strides = array<i32: 2, 1>} : memref<450x32xf32, #tpu.memory_space<vmem>>, vector<6x32xf32>
    %c12_132 = arith.constant 12 : index
    %c224_133 = arith.constant 224 : index
    %108 = vector.load %arg10[%c12_132, %c224_133] : memref<72x512xf32, #tpu.memory_space<vmem>>, vector<6x32xf32>
    tpu.vector_store %arg10[%c12_132, %c224_133], %107 {strides = array<i32>} : memref<72x512xf32, #tpu.memory_space<vmem>>, vector<6x32xf32>,
    %c90 = arith.constant 90 : index
    %c0_134 = arith.constant 0 : index
    %109 = tpu.strided_load %arg9[%c90, %c0_134] {strides = array<i32: 2, 1>} : memref<450x32xf32, #tpu.memory_space<vmem>>, vector<6x32xf32>
    %c12_135 = arith.constant 12 : index
    %c256_136 = arith.constant 256 : index
    %110 = vector.load %arg10[%c12_135, %c256_136] : memref<72x512xf32, #tpu.memory_space<vmem>>, vector<6x32xf32>
    tpu.vector_store %arg10[%c12_135, %c256_136], %109 {strides = array<i32>} : memref<72x512xf32, #tpu.memory_space<vmem>>, vector<6x32xf32>,
    %c91 = arith.constant 91 : index
    %c0_137 = arith.constant 0 : index
    %111 = tpu.strided_load %arg9[%c91, %c0_137] {strides = array<i32: 2, 1>} : memref<450x32xf32, #tpu.memory_space<vmem>>, vector<6x32xf32>
    %c12_138 = arith.constant 12 : index
    %c288_139 = arith.constant 288 : index
    %112 = vector.load %arg10[%c12_138, %c288_139] : memref<72x512xf32, #tpu.memory_space<vmem>>, vector<6x32xf32>
    tpu.vector_store %arg10[%c12_138, %c288_139], %111 {strides = array<i32>} : memref<72x512xf32, #tpu.memory_space<vmem>>, vector<6x32xf32>,
    %c92 = arith.constant 92 : index
    %c0_140 = arith.constant 0 : index
    %113 = tpu.strided_load %arg9[%c92, %c0_140] {strides = array<i32: 2, 1>} : memref<450x32xf32, #tpu.memory_space<vmem>>, vector<6x32xf32>
    %c12_141 = arith.constant 12 : index
    %c320_142 = arith.constant 320 : index
    %114 = vector.load %arg10[%c12_141, %c320_142] : memref<72x512xf32, #tpu.memory_space<vmem>>, vector<6x32xf32>
    tpu.vector_store %arg10[%c12_141, %c320_142], %113 {strides = array<i32>} : memref<72x512xf32, #tpu.memory_space<vmem>>, vector<6x32xf32>,
    %c93 = arith.constant 93 : index
    %c0_143 = arith.constant 0 : index
    %115 = tpu.strided_load %arg9[%c93, %c0_143] {strides = array<i32: 2, 1>} : memref<450x32xf32, #tpu.memory_space<vmem>>, vector<6x32xf32>
    %c12_144 = arith.constant 12 : index
    %c352_145 = arith.constant 352 : index
    %116 = vector.load %arg10[%c12_144, %c352_145] : memref<72x512xf32, #tpu.memory_space<vmem>>, vector<6x32xf32>
    tpu.vector_store %arg10[%c12_144, %c352_145], %115 {strides = array<i32>} : memref<72x512xf32, #tpu.memory_space<vmem>>, vector<6x32xf32>,
    %c105 = arith.constant 105 : index
    %c0_146 = arith.constant 0 : index
    %117 = tpu.strided_load %arg9[%c105, %c0_146] {strides = array<i32: 2, 1>} : memref<450x32xf32, #tpu.memory_space<vmem>>, vector<6x32xf32>
    %c12_147 = arith.constant 12 : index
    %c384_148 = arith.constant 384 : index
    %118 = vector.load %arg10[%c12_147, %c384_148] : memref<72x512xf32, #tpu.memory_space<vmem>>, vector<6x32xf32>
    tpu.vector_store %arg10[%c12_147, %c384_148], %117 {strides = array<i32>} : memref<72x512xf32, #tpu.memory_space<vmem>>, vector<6x32xf32>,
    %c106 = arith.constant 106 : index
    %c0_149 = arith.constant 0 : index
    %119 = tpu.strided_load %arg9[%c106, %c0_149] {strides = array<i32: 2, 1>} : memref<450x32xf32, #tpu.memory_space<vmem>>, vector<6x32xf32>
    %c12_150 = arith.constant 12 : index
    %c416_151 = arith.constant 416 : index
    %120 = vector.load %arg10[%c12_150, %c416_151] : memref<72x512xf32, #tpu.memory_space<vmem>>, vector<6x32xf32>
    tpu.vector_store %arg10[%c12_150, %c416_151], %119 {strides = array<i32>} : memref<72x512xf32, #tpu.memory_space<vmem>>, vector<6x32xf32>,
    %c107 = arith.constant 107 : index
    %c0_152 = arith.constant 0 : index
    %121 = tpu.strided_load %arg9[%c107, %c0_152] {strides = array<i32: 2, 1>} : memref<450x32xf32, #tpu.memory_space<vmem>>, vector<6x32xf32>
    %c12_153 = arith.constant 12 : index
    %c448_154 = arith.constant 448 : index
    %122 = vector.load %arg10[%c12_153, %c448_154] : memref<72x512xf32, #tpu.memory_space<vmem>>, vector<6x32xf32>
    tpu.vector_store %arg10[%c12_153, %c448_154], %121 {strides = array<i32>} : memref<72x512xf32, #tpu.memory_space<vmem>>, vector<6x32xf32>,
    %c108 = arith.constant 108 : index
    %c0_155 = arith.constant 0 : index
    %123 = tpu.strided_load %arg9[%c108, %c0_155] {strides = array<i32: 2, 1>} : memref<450x32xf32, #tpu.memory_space<vmem>>, vector<6x32xf32>
    %c12_156 = arith.constant 12 : index
    %c480_157 = arith.constant 480 : index
    %124 = vector.load %arg10[%c12_156, %c480_157] : memref<72x512xf32, #tpu.memory_space<vmem>>, vector<6x32xf32>
    tpu.vector_store %arg10[%c12_156, %c480_157], %123 {strides = array<i32>} : memref<72x512xf32, #tpu.memory_space<vmem>>, vector<6x32xf32>,
    %c90_158 = arith.constant 90 : index
    %c0_159 = arith.constant 0 : index
    %125 = tpu.strided_load %arg9[%c90_158, %c0_159] {strides = array<i32: 2, 1>} : memref<450x32xf32, #tpu.memory_space<vmem>>, vector<6x32xf32>
    %c18_160 = arith.constant 18 : index
    %c0_161 = arith.constant 0 : index
    %126 = vector.load %arg10[%c18_160, %c0_161] : memref<72x512xf32, #tpu.memory_space<vmem>>, vector<6x32xf32>
    tpu.vector_store %arg10[%c18_160, %c0_161], %125 {strides = array<i32>} : memref<72x512xf32, #tpu.memory_space<vmem>>, vector<6x32xf32>,
    %c91_162 = arith.constant 91 : index
    %c0_163 = arith.constant 0 : index
    %127 = tpu.strided_load %arg9[%c91_162, %c0_163] {strides = array<i32: 2, 1>} : memref<450x32xf32, #tpu.memory_space<vmem>>, vector<6x32xf32>
    %c18_164 = arith.constant 18 : index
    %c32_165 = arith.constant 32 : index
    %128 = vector.load %arg10[%c18_164, %c32_165] : memref<72x512xf32, #tpu.memory_space<vmem>>, vector<6x32xf32>
    tpu.vector_store %arg10[%c18_164, %c32_165], %127 {strides = array<i32>} : memref<72x512xf32, #tpu.memory_space<vmem>>, vector<6x32xf32>,
    %c92_166 = arith.constant 92 : index
    %c0_167 = arith.constant 0 : index
    %129 = tpu.strided_load %arg9[%c92_166, %c0_167] {strides = array<i32: 2, 1>} : memref<450x32xf32, #tpu.memory_space<vmem>>, vector<6x32xf32>
    %c18_168 = arith.constant 18 : index
    %c64_169 = arith.constant 64 : index
    %130 = vector.load %arg10[%c18_168, %c64_169] : memref<72x512xf32, #tpu.memory_space<vmem>>, vector<6x32xf32>
    tpu.vector_store %arg10[%c18_168, %c64_169], %129 {strides = array<i32>} : memref<72x512xf32, #tpu.memory_space<vmem>>, vector<6x32xf32>,
    %c93_170 = arith.constant 93 : index
    %c0_171 = arith.constant 0 : index
    %131 = tpu.strided_load %arg9[%c93_170, %c0_171] {strides = array<i32: 2, 1>} : memref<450x32xf32, #tpu.memory_space<vmem>>, vector<6x32xf32>
    %c18_172 = arith.constant 18 : index
    %c96_173 = arith.constant 96 : index
    %132 = vector.load %arg10[%c18_172, %c96_173] : memref<72x512xf32, #tpu.memory_space<vmem>>, vector<6x32xf32>
    tpu.vector_store %arg10[%c18_172, %c96_173], %131 {strides = array<i32>} : memref<72x512xf32, #tpu.memory_space<vmem>>, vector<6x32xf32>,
    %c105_174 = arith.constant 105 : index
    %c0_175 = arith.constant 0 : index
    %133 = tpu.strided_load %arg9[%c105_174, %c0_175] {strides = array<i32: 2, 1>} : memref<450x32xf32, #tpu.memory_space<vmem>>, vector<6x32xf32>
    %c18_176 = arith.constant 18 : index
    %c128_177 = arith.constant 128 : index
    %134 = vector.load %arg10[%c18_176, %c128_177] : memref<72x512xf32, #tpu.memory_space<vmem>>, vector<6x32xf32>
    tpu.vector_store %arg10[%c18_176, %c128_177], %133 {strides = array<i32>} : memref<72x512xf32, #tpu.memory_space<vmem>>, vector<6x32xf32>,
    %c106_178 = arith.constant 106 : index
    %c0_179 = arith.constant 0 : index
    %135 = tpu.strided_load %arg9[%c106_178, %c0_179] {strides = array<i32: 2, 1>} : memref<450x32xf32, #tpu.memory_space<vmem>>, vector<6x32xf32>
    %c18_180 = arith.constant 18 : index
    %c160_181 = arith.constant 160 : index
    %136 = vector.load %arg10[%c18_180, %c160_181] : memref<72x512xf32, #tpu.memory_space<vmem>>, vector<6x32xf32>
    tpu.vector_store %arg10[%c18_180, %c160_181], %135 {strides = array<i32>} : memref<72x512xf32, #tpu.memory_space<vmem>>, vector<6x32xf32>,
    %c107_182 = arith.constant 107 : index
    %c0_183 = arith.constant 0 : index
    %137 = tpu.strided_load %arg9[%c107_182, %c0_183] {strides = array<i32: 2, 1>} : memref<450x32xf32, #tpu.memory_space<vmem>>, vector<6x32xf32>
    %c18_184 = arith.constant 18 : index
    %c192_185 = arith.constant 192 : index
    %138 = vector.load %arg10[%c18_184, %c192_185] : memref<72x512xf32, #tpu.memory_space<vmem>>, vector<6x32xf32>
    tpu.vector_store %arg10[%c18_184, %c192_185], %137 {strides = array<i32>} : memref<72x512xf32, #tpu.memory_space<vmem>>, vector<6x32xf32>,
    %c108_186 = arith.constant 108 : index
    %c0_187 = arith.constant 0 : index
    %139 = tpu.strided_load %arg9[%c108_186, %c0_187] {strides = array<i32: 2, 1>} : memref<450x32xf32, #tpu.memory_space<vmem>>, vector<6x32xf32>
    %c18_188 = arith.constant 18 : index
    %c224_189 = arith.constant 224 : index
    %140 = vector.load %arg10[%c18_188, %c224_189] : memref<72x512xf32, #tpu.memory_space<vmem>>, vector<6x32xf32>
    tpu.vector_store %arg10[%c18_188, %c224_189], %139 {strides = array<i32>} : memref<72x512xf32, #tpu.memory_space<vmem>>, vector<6x32xf32>,
    %c120 = arith.constant 120 : index
    %c0_190 = arith.constant 0 : index
    %141 = tpu.strided_load %arg9[%c120, %c0_190] {strides = array<i32: 2, 1>} : memref<450x32xf32, #tpu.memory_space<vmem>>, vector<6x32xf32>
    %c18_191 = arith.constant 18 : index
    %c256_192 = arith.constant 256 : index
    %142 = vector.load %arg10[%c18_191, %c256_192] : memref<72x512xf32, #tpu.memory_space<vmem>>, vector<6x32xf32>
    tpu.vector_store %arg10[%c18_191, %c256_192], %141 {strides = array<i32>} : memref<72x512xf32, #tpu.memory_space<vmem>>, vector<6x32xf32>,
    %c121 = arith.constant 121 : index
    %c0_193 = arith.constant 0 : index
    %143 = tpu.strided_load %arg9[%c121, %c0_193] {strides = array<i32: 2, 1>} : memref<450x32xf32, #tpu.memory_space<vmem>>, vector<6x32xf32>
    %c18_194 = arith.constant 18 : index
    %c288_195 = arith.constant 288 : index
    %144 = vector.load %arg10[%c18_194, %c288_195] : memref<72x512xf32, #tpu.memory_space<vmem>>, vector<6x32xf32>
    tpu.vector_store %arg10[%c18_194, %c288_195], %143 {strides = array<i32>} : memref<72x512xf32, #tpu.memory_space<vmem>>, vector<6x32xf32>,
    %c122 = arith.constant 122 : index
    %c0_196 = arith.constant 0 : index
    %145 = tpu.strided_load %arg9[%c122, %c0_196] {strides = array<i32: 2, 1>} : memref<450x32xf32, #tpu.memory_space<vmem>>, vector<6x32xf32>
    %c18_197 = arith.constant 18 : index
    %c320_198 = arith.constant 320 : index
    %146 = vector.load %arg10[%c18_197, %c320_198] : memref<72x512xf32, #tpu.memory_space<vmem>>, vector<6x32xf32>
    tpu.vector_store %arg10[%c18_197, %c320_198], %145 {strides = array<i32>} : memref<72x512xf32, #tpu.memory_space<vmem>>, vector<6x32xf32>,
    %c123 = arith.constant 123 : index
    %c0_199 = arith.constant 0 : index
    %147 = tpu.strided_load %arg9[%c123, %c0_199] {strides = array<i32: 2, 1>} : memref<450x32xf32, #tpu.memory_space<vmem>>, vector<6x32xf32>
    %c18_200 = arith.constant 18 : index
    %c352_201 = arith.constant 352 : index
    %148 = vector.load %arg10[%c18_200, %c352_201] : memref<72x512xf32, #tpu.memory_space<vmem>>, vector<6x32xf32>
    tpu.vector_store %arg10[%c18_200, %c352_201], %147 {strides = array<i32>} : memref<72x512xf32, #tpu.memory_space<vmem>>, vector<6x32xf32>,
    %c135 = arith.constant 135 : index
    %c0_202 = arith.constant 0 : index
    %149 = tpu.strided_load %arg9[%c135, %c0_202] {strides = array<i32: 2, 1>} : memref<450x32xf32, #tpu.memory_space<vmem>>, vector<6x32xf32>
    %c18_203 = arith.constant 18 : index
    %c384_204 = arith.constant 384 : index
    %150 = vector.load %arg10[%c18_203, %c384_204] : memref<72x512xf32, #tpu.memory_space<vmem>>, vector<6x32xf32>
    tpu.vector_store %arg10[%c18_203, %c384_204], %149 {strides = array<i32>} : memref<72x512xf32, #tpu.memory_space<vmem>>, vector<6x32xf32>,
    %c136 = arith.constant 136 : index
    %c0_205 = arith.constant 0 : index
    %151 = tpu.strided_load %arg9[%c136, %c0_205] {strides = array<i32: 2, 1>} : memref<450x32xf32, #tpu.memory_space<vmem>>, vector<6x32xf32>
    %c18_206 = arith.constant 18 : index
    %c416_207 = arith.constant 416 : index
    %152 = vector.load %arg10[%c18_206, %c416_207] : memref<72x512xf32, #tpu.memory_space<vmem>>, vector<6x32xf32>
    tpu.vector_store %arg10[%c18_206, %c416_207], %151 {strides = array<i32>} : memref<72x512xf32, #tpu.memory_space<vmem>>, vector<6x32xf32>,
    %c137 = arith.constant 137 : index
    %c0_208 = arith.constant 0 : index
    %153 = tpu.strided_load %arg9[%c137, %c0_208] {strides = array<i32: 2, 1>} : memref<450x32xf32, #tpu.memory_space<vmem>>, vector<6x32xf32>
    %c18_209 = arith.constant 18 : index
    %c448_210 = arith.constant 448 : index
    %154 = vector.load %arg10[%c18_209, %c448_210] : memref<72x512xf32, #tpu.memory_space<vmem>>, vector<6x32xf32>
    tpu.vector_store %arg10[%c18_209, %c448_210], %153 {strides = array<i32>} : memref<72x512xf32, #tpu.memory_space<vmem>>, vector<6x32xf32>,
    %c138 = arith.constant 138 : index
    %c0_211 = arith.constant 0 : index
    %155 = tpu.strided_load %arg9[%c138, %c0_211] {strides = array<i32: 2, 1>} : memref<450x32xf32, #tpu.memory_space<vmem>>, vector<6x32xf32>
    %c18_212 = arith.constant 18 : index
    %c480_213 = arith.constant 480 : index
    %156 = vector.load %arg10[%c18_212, %c480_213] : memref<72x512xf32, #tpu.memory_space<vmem>>, vector<6x32xf32>
    tpu.vector_store %arg10[%c18_212, %c480_213], %155 {strides = array<i32>} : memref<72x512xf32, #tpu.memory_space<vmem>>, vector<6x32xf32>,
    %c120_214 = arith.constant 120 : index
    %c0_215 = arith.constant 0 : index
    %157 = tpu.strided_load %arg9[%c120_214, %c0_215] {strides = array<i32: 2, 1>} : memref<450x32xf32, #tpu.memory_space<vmem>>, vector<6x32xf32>
    %c24 = arith.constant 24 : index
    %c0_216 = arith.constant 0 : index
    %158 = vector.load %arg10[%c24, %c0_216] : memref<72x512xf32, #tpu.memory_space<vmem>>, vector<6x32xf32>
    tpu.vector_store %arg10[%c24, %c0_216], %157 {strides = array<i32>} : memref<72x512xf32, #tpu.memory_space<vmem>>, vector<6x32xf32>,
    %c121_217 = arith.constant 121 : index
    %c0_218 = arith.constant 0 : index
    %159 = tpu.strided_load %arg9[%c121_217, %c0_218] {strides = array<i32: 2, 1>} : memref<450x32xf32, #tpu.memory_space<vmem>>, vector<6x32xf32>
    %c24_219 = arith.constant 24 : index
    %c32_220 = arith.constant 32 : index
    %160 = vector.load %arg10[%c24_219, %c32_220] : memref<72x512xf32, #tpu.memory_space<vmem>>, vector<6x32xf32>
    tpu.vector_store %arg10[%c24_219, %c32_220], %159 {strides = array<i32>} : memref<72x512xf32, #tpu.memory_space<vmem>>, vector<6x32xf32>,
    %c122_221 = arith.constant 122 : index
    %c0_222 = arith.constant 0 : index
    %161 = tpu.strided_load %arg9[%c122_221, %c0_222] {strides = array<i32: 2, 1>} : memref<450x32xf32, #tpu.memory_space<vmem>>, vector<6x32xf32>
    %c24_223 = arith.constant 24 : index
    %c64_224 = arith.constant 64 : index
    %162 = vector.load %arg10[%c24_223, %c64_224] : memref<72x512xf32, #tpu.memory_space<vmem>>, vector<6x32xf32>
    tpu.vector_store %arg10[%c24_223, %c64_224], %161 {strides = array<i32>} : memref<72x512xf32, #tpu.memory_space<vmem>>, vector<6x32xf32>,
    %c123_225 = arith.constant 123 : index
    %c0_226 = arith.constant 0 : index
    %163 = tpu.strided_load %arg9[%c123_225, %c0_226] {strides = array<i32: 2, 1>} : memref<450x32xf32, #tpu.memory_space<vmem>>, vector<6x32xf32>
    %c24_227 = arith.constant 24 : index
    %c96_228 = arith.constant 96 : index
    %164 = vector.load %arg10[%c24_227, %c96_228] : memref<72x512xf32, #tpu.memory_space<vmem>>, vector<6x32xf32>
    tpu.vector_store %arg10[%c24_227, %c96_228], %163 {strides = array<i32>} : memref<72x512xf32, #tpu.memory_space<vmem>>, vector<6x32xf32>,
    %c135_229 = arith.constant 135 : index
    %c0_230 = arith.constant 0 : index
    %165 = tpu.strided_load %arg9[%c135_229, %c0_230] {strides = array<i32: 2, 1>} : memref<450x32xf32, #tpu.memory_space<vmem>>, vector<6x32xf32>
    %c24_231 = arith.constant 24 : index
    %c128_232 = arith.constant 128 : index
    %166 = vector.load %arg10[%c24_231, %c128_232] : memref<72x512xf32, #tpu.memory_space<vmem>>, vector<6x32xf32>
    tpu.vector_store %arg10[%c24_231, %c128_232], %165 {strides = array<i32>} : memref<72x512xf32, #tpu.memory_space<vmem>>, vector<6x32xf32>,
    %c136_233 = arith.constant 136 : index
    %c0_234 = arith.constant 0 : index
    %167 = tpu.strided_load %arg9[%c136_233, %c0_234] {strides = array<i32: 2, 1>} : memref<450x32xf32, #tpu.memory_space<vmem>>, vector<6x32xf32>
    %c24_235 = arith.constant 24 : index
    %c160_236 = arith.constant 160 : index
    %168 = vector.load %arg10[%c24_235, %c160_236] : memref<72x512xf32, #tpu.memory_space<vmem>>, vector<6x32xf32>
    tpu.vector_store %arg10[%c24_235, %c160_236], %167 {strides = array<i32>} : memref<72x512xf32, #tpu.memory_space<vmem>>, vector<6x32xf32>,
    %c137_237 = arith.constant 137 : index
    %c0_238 = arith.constant 0 : index
    %169 = tpu.strided_load %arg9[%c137_237, %c0_238] {strides = array<i32: 2, 1>} : memref<450x32xf32, #tpu.memory_space<vmem>>, vector<6x32xf32>
    %c24_239 = arith.constant 24 : index
    %c192_240 = arith.constant 192 : index
    %170 = vector.load %arg10[%c24_239, %c192_240] : memref<72x512xf32, #tpu.memory_space<vmem>>, vector<6x32xf32>
    tpu.vector_store %arg10[%c24_239, %c192_240], %169 {strides = array<i32>} : memref<72x512xf32, #tpu.memory_space<vmem>>, vector<6x32xf32>,
    %c138_241 = arith.constant 138 : index
    %c0_242 = arith.constant 0 : index
    %171 = tpu.strided_load %arg9[%c138_241, %c0_242] {strides = array<i32: 2, 1>} : memref<450x32xf32, #tpu.memory_space<vmem>>, vector<6x32xf32>
    %c24_243 = arith.constant 24 : index
    %c224_244 = arith.constant 224 : index
    %172 = vector.load %arg10[%c24_243, %c224_244] : memref<72x512xf32, #tpu.memory_space<vmem>>, vector<6x32xf32>
    tpu.vector_store %arg10[%c24_243, %c224_244], %171 {strides = array<i32>} : memref<72x512xf32, #tpu.memory_space<vmem>>, vector<6x32xf32>,
    %c150 = arith.constant 150 : index
    %c0_245 = arith.constant 0 : index
    %173 = tpu.strided_load %arg9[%c150, %c0_245] {strides = array<i32: 2, 1>} : memref<450x32xf32, #tpu.memory_space<vmem>>, vector<6x32xf32>
    %c24_246 = arith.constant 24 : index
    %c256_247 = arith.constant 256 : index
    %174 = vector.load %arg10[%c24_246, %c256_247] : memref<72x512xf32, #tpu.memory_space<vmem>>, vector<6x32xf32>
    tpu.vector_store %arg10[%c24_246, %c256_247], %173 {strides = array<i32>} : memref<72x512xf32, #tpu.memory_space<vmem>>, vector<6x32xf32>,
    %c151 = arith.constant 151 : index
    %c0_248 = arith.constant 0 : index
    %175 = tpu.strided_load %arg9[%c151, %c0_248] {strides = array<i32: 2, 1>} : memref<450x32xf32, #tpu.memory_space<vmem>>, vector<6x32xf32>
    %c24_249 = arith.constant 24 : index
    %c288_250 = arith.constant 288 : index
    %176 = vector.load %arg10[%c24_249, %c288_250] : memref<72x512xf32, #tpu.memory_space<vmem>>, vector<6x32xf32>
    tpu.vector_store %arg10[%c24_249, %c288_250], %175 {strides = array<i32>} : memref<72x512xf32, #tpu.memory_space<vmem>>, vector<6x32xf32>,
    %c152 = arith.constant 152 : index
    %c0_251 = arith.constant 0 : index
    %177 = tpu.strided_load %arg9[%c152, %c0_251] {strides = array<i32: 2, 1>} : memref<450x32xf32, #tpu.memory_space<vmem>>, vector<6x32xf32>
    %c24_252 = arith.constant 24 : index
    %c320_253 = arith.constant 320 : index
    %178 = vector.load %arg10[%c24_252, %c320_253] : memref<72x512xf32, #tpu.memory_space<vmem>>, vector<6x32xf32>
    tpu.vector_store %arg10[%c24_252, %c320_253], %177 {strides = array<i32>} : memref<72x512xf32, #tpu.memory_space<vmem>>, vector<6x32xf32>,
    %c153 = arith.constant 153 : index
    %c0_254 = arith.constant 0 : index
    %179 = tpu.strided_load %arg9[%c153, %c0_254] {strides = array<i32: 2, 1>} : memref<450x32xf32, #tpu.memory_space<vmem>>, vector<6x32xf32>
    %c24_255 = arith.constant 24 : index
    %c352_256 = arith.constant 352 : index
    %180 = vector.load %arg10[%c24_255, %c352_256] : memref<72x512xf32, #tpu.memory_space<vmem>>, vector<6x32xf32>
    tpu.vector_store %arg10[%c24_255, %c352_256], %179 {strides = array<i32>} : memref<72x512xf32, #tpu.memory_space<vmem>>, vector<6x32xf32>,
    %c165 = arith.constant 165 : index
    %c0_257 = arith.constant 0 : index
    %181 = tpu.strided_load %arg9[%c165, %c0_257] {strides = array<i32: 2, 1>} : memref<450x32xf32, #tpu.memory_space<vmem>>, vector<6x32xf32>
    %c24_258 = arith.constant 24 : index
    %c384_259 = arith.constant 384 : index
    %182 = vector.load %arg10[%c24_258, %c384_259] : memref<72x512xf32, #tpu.memory_space<vmem>>, vector<6x32xf32>
    tpu.vector_store %arg10[%c24_258, %c384_259], %181 {strides = array<i32>} : memref<72x512xf32, #tpu.memory_space<vmem>>, vector<6x32xf32>,
    %c166 = arith.constant 166 : index
    %c0_260 = arith.constant 0 : index
    %183 = tpu.strided_load %arg9[%c166, %c0_260] {strides = array<i32: 2, 1>} : memref<450x32xf32, #tpu.memory_space<vmem>>, vector<6x32xf32>
    %c24_261 = arith.constant 24 : index
    %c416_262 = arith.constant 416 : index
    %184 = vector.load %arg10[%c24_261, %c416_262] : memref<72x512xf32, #tpu.memory_space<vmem>>, vector<6x32xf32>
    tpu.vector_store %arg10[%c24_261, %c416_262], %183 {strides = array<i32>} : memref<72x512xf32, #tpu.memory_space<vmem>>, vector<6x32xf32>,
    %c167 = arith.constant 167 : index
    %c0_263 = arith.constant 0 : index
    %185 = tpu.strided_load %arg9[%c167, %c0_263] {strides = array<i32: 2, 1>} : memref<450x32xf32, #tpu.memory_space<vmem>>, vector<6x32xf32>
    %c24_264 = arith.constant 24 : index
    %c448_265 = arith.constant 448 : index
    %186 = vector.load %arg10[%c24_264, %c448_265] : memref<72x512xf32, #tpu.memory_space<vmem>>, vector<6x32xf32>
    tpu.vector_store %arg10[%c24_264, %c448_265], %185 {strides = array<i32>} : memref<72x512xf32, #tpu.memory_space<vmem>>, vector<6x32xf32>,
    %c168 = arith.constant 168 : index
    %c0_266 = arith.constant 0 : index
    %187 = tpu.strided_load %arg9[%c168, %c0_266] {strides = array<i32: 2, 1>} : memref<450x32xf32, #tpu.memory_space<vmem>>, vector<6x32xf32>
    %c24_267 = arith.constant 24 : index
    %c480_268 = arith.constant 480 : index
    %188 = vector.load %arg10[%c24_267, %c480_268] : memref<72x512xf32, #tpu.memory_space<vmem>>, vector<6x32xf32>
    tpu.vector_store %arg10[%c24_267, %c480_268], %187 {strides = array<i32>} : memref<72x512xf32, #tpu.memory_space<vmem>>, vector<6x32xf32>,
    %c150_269 = arith.constant 150 : index
    %c0_270 = arith.constant 0 : index
    %189 = tpu.strided_load %arg9[%c150_269, %c0_270] {strides = array<i32: 2, 1>} : memref<450x32xf32, #tpu.memory_space<vmem>>, vector<6x32xf32>
    %c30_271 = arith.constant 30 : index
    %c0_272 = arith.constant 0 : index
    %190 = vector.load %arg10[%c30_271, %c0_272] : memref<72x512xf32, #tpu.memory_space<vmem>>, vector<6x32xf32>
    tpu.vector_store %arg10[%c30_271, %c0_272], %189 {strides = array<i32>} : memref<72x512xf32, #tpu.memory_space<vmem>>, vector<6x32xf32>,
    %c151_273 = arith.constant 151 : index
    %c0_274 = arith.constant 0 : index
    %191 = tpu.strided_load %arg9[%c151_273, %c0_274] {strides = array<i32: 2, 1>} : memref<450x32xf32, #tpu.memory_space<vmem>>, vector<6x32xf32>
    %c30_275 = arith.constant 30 : index
    %c32_276 = arith.constant 32 : index
    %192 = vector.load %arg10[%c30_275, %c32_276] : memref<72x512xf32, #tpu.memory_space<vmem>>, vector<6x32xf32>
    tpu.vector_store %arg10[%c30_275, %c32_276], %191 {strides = array<i32>} : memref<72x512xf32, #tpu.memory_space<vmem>>, vector<6x32xf32>,
    %c152_277 = arith.constant 152 : index
    %c0_278 = arith.constant 0 : index
    %193 = tpu.strided_load %arg9[%c152_277, %c0_278] {strides = array<i32: 2, 1>} : memref<450x32xf32, #tpu.memory_space<vmem>>, vector<6x32xf32>
    %c30_279 = arith.constant 30 : index
    %c64_280 = arith.constant 64 : index
    %194 = vector.load %arg10[%c30_279, %c64_280] : memref<72x512xf32, #tpu.memory_space<vmem>>, vector<6x32xf32>
    tpu.vector_store %arg10[%c30_279, %c64_280], %193 {strides = array<i32>} : memref<72x512xf32, #tpu.memory_space<vmem>>, vector<6x32xf32>,
    %c153_281 = arith.constant 153 : index
    %c0_282 = arith.constant 0 : index
    %195 = tpu.strided_load %arg9[%c153_281, %c0_282] {strides = array<i32: 2, 1>} : memref<450x32xf32, #tpu.memory_space<vmem>>, vector<6x32xf32>
    %c30_283 = arith.constant 30 : index
    %c96_284 = arith.constant 96 : index
    %196 = vector.load %arg10[%c30_283, %c96_284] : memref<72x512xf32, #tpu.memory_space<vmem>>, vector<6x32xf32>
    tpu.vector_store %arg10[%c30_283, %c96_284], %195 {strides = array<i32>} : memref<72x512xf32, #tpu.memory_space<vmem>>, vector<6x32xf32>,
    %c165_285 = arith.constant 165 : index
    %c0_286 = arith.constant 0 : index
    %197 = tpu.strided_load %arg9[%c165_285, %c0_286] {strides = array<i32: 2, 1>} : memref<450x32xf32, #tpu.memory_space<vmem>>, vector<6x32xf32>
    %c30_287 = arith.constant 30 : index
    %c128_288 = arith.constant 128 : index
    %198 = vector.load %arg10[%c30_287, %c128_288] : memref<72x512xf32, #tpu.memory_space<vmem>>, vector<6x32xf32>
    tpu.vector_store %arg10[%c30_287, %c128_288], %197 {strides = array<i32>} : memref<72x512xf32, #tpu.memory_space<vmem>>, vector<6x32xf32>,
    %c166_289 = arith.constant 166 : index
    %c0_290 = arith.constant 0 : index
    %199 = tpu.strided_load %arg9[%c166_289, %c0_290] {strides = array<i32: 2, 1>} : memref<450x32xf32, #tpu.memory_space<vmem>>, vector<6x32xf32>
    %c30_291 = arith.constant 30 : index
    %c160_292 = arith.constant 160 : index
    %200 = vector.load %arg10[%c30_291, %c160_292] : memref<72x512xf32, #tpu.memory_space<vmem>>, vector<6x32xf32>
    tpu.vector_store %arg10[%c30_291, %c160_292], %199 {strides = array<i32>} : memref<72x512xf32, #tpu.memory_space<vmem>>, vector<6x32xf32>,
    %c167_293 = arith.constant 167 : index
    %c0_294 = arith.constant 0 : index
    %201 = tpu.strided_load %arg9[%c167_293, %c0_294] {strides = array<i32: 2, 1>} : memref<450x32xf32, #tpu.memory_space<vmem>>, vector<6x32xf32>
    %c30_295 = arith.constant 30 : index
    %c192_296 = arith.constant 192 : index
    %202 = vector.load %arg10[%c30_295, %c192_296] : memref<72x512xf32, #tpu.memory_space<vmem>>, vector<6x32xf32>
    tpu.vector_store %arg10[%c30_295, %c192_296], %201 {strides = array<i32>} : memref<72x512xf32, #tpu.memory_space<vmem>>, vector<6x32xf32>,
    %c168_297 = arith.constant 168 : index
    %c0_298 = arith.constant 0 : index
    %203 = tpu.strided_load %arg9[%c168_297, %c0_298] {strides = array<i32: 2, 1>} : memref<450x32xf32, #tpu.memory_space<vmem>>, vector<6x32xf32>
    %c30_299 = arith.constant 30 : index
    %c224_300 = arith.constant 224 : index
    %204 = vector.load %arg10[%c30_299, %c224_300] : memref<72x512xf32, #tpu.memory_space<vmem>>, vector<6x32xf32>
    tpu.vector_store %arg10[%c30_299, %c224_300], %203 {strides = array<i32>} : memref<72x512xf32, #tpu.memory_space<vmem>>, vector<6x32xf32>,
    %c180 = arith.constant 180 : index
    %c0_301 = arith.constant 0 : index
    %205 = tpu.strided_load %arg9[%c180, %c0_301] {strides = array<i32: 2, 1>} : memref<450x32xf32, #tpu.memory_space<vmem>>, vector<6x32xf32>
    %c30_302 = arith.constant 30 : index
    %c256_303 = arith.constant 256 : index
    %206 = vector.load %arg10[%c30_302, %c256_303] : memref<72x512xf32, #tpu.memory_space<vmem>>, vector<6x32xf32>
    tpu.vector_store %arg10[%c30_302, %c256_303], %205 {strides = array<i32>} : memref<72x512xf32, #tpu.memory_space<vmem>>, vector<6x32xf32>,
    %c181 = arith.constant 181 : index
    %c0_304 = arith.constant 0 : index
    %207 = tpu.strided_load %arg9[%c181, %c0_304] {strides = array<i32: 2, 1>} : memref<450x32xf32, #tpu.memory_space<vmem>>, vector<6x32xf32>
    %c30_305 = arith.constant 30 : index
    %c288_306 = arith.constant 288 : index
    %208 = vector.load %arg10[%c30_305, %c288_306] : memref<72x512xf32, #tpu.memory_space<vmem>>, vector<6x32xf32>
    tpu.vector_store %arg10[%c30_305, %c288_306], %207 {strides = array<i32>} : memref<72x512xf32, #tpu.memory_space<vmem>>, vector<6x32xf32>,
    %c182 = arith.constant 182 : index
    %c0_307 = arith.constant 0 : index
    %209 = tpu.strided_load %arg9[%c182, %c0_307] {strides = array<i32: 2, 1>} : memref<450x32xf32, #tpu.memory_space<vmem>>, vector<6x32xf32>
    %c30_308 = arith.constant 30 : index
    %c320_309 = arith.constant 320 : index
    %210 = vector.load %arg10[%c30_308, %c320_309] : memref<72x512xf32, #tpu.memory_space<vmem>>, vector<6x32xf32>
    tpu.vector_store %arg10[%c30_308, %c320_309], %209 {strides = array<i32>} : memref<72x512xf32, #tpu.memory_space<vmem>>, vector<6x32xf32>,
    %c183 = arith.constant 183 : index
    %c0_310 = arith.constant 0 : index
    %211 = tpu.strided_load %arg9[%c183, %c0_310] {strides = array<i32: 2, 1>} : memref<450x32xf32, #tpu.memory_space<vmem>>, vector<6x32xf32>
    %c30_311 = arith.constant 30 : index
    %c352_312 = arith.constant 352 : index
    %212 = vector.load %arg10[%c30_311, %c352_312] : memref<72x512xf32, #tpu.memory_space<vmem>>, vector<6x32xf32>
    tpu.vector_store %arg10[%c30_311, %c352_312], %211 {strides = array<i32>} : memref<72x512xf32, #tpu.memory_space<vmem>>, vector<6x32xf32>,
    %c195 = arith.constant 195 : index
    %c0_313 = arith.constant 0 : index
    %213 = tpu.strided_load %arg9[%c195, %c0_313] {strides = array<i32: 2, 1>} : memref<450x32xf32, #tpu.memory_space<vmem>>, vector<6x32xf32>
    %c30_314 = arith.constant 30 : index
    %c384_315 = arith.constant 384 : index
    %214 = vector.load %arg10[%c30_314, %c384_315] : memref<72x512xf32, #tpu.memory_space<vmem>>, vector<6x32xf32>
    tpu.vector_store %arg10[%c30_314, %c384_315], %213 {strides = array<i32>} : memref<72x512xf32, #tpu.memory_space<vmem>>, vector<6x32xf32>,
    %c196 = arith.constant 196 : index
    %c0_316 = arith.constant 0 : index
    %215 = tpu.strided_load %arg9[%c196, %c0_316] {strides = array<i32: 2, 1>} : memref<450x32xf32, #tpu.memory_space<vmem>>, vector<6x32xf32>
    %c30_317 = arith.constant 30 : index
    %c416_318 = arith.constant 416 : index
    %216 = vector.load %arg10[%c30_317, %c416_318] : memref<72x512xf32, #tpu.memory_space<vmem>>, vector<6x32xf32>
    tpu.vector_store %arg10[%c30_317, %c416_318], %215 {strides = array<i32>} : memref<72x512xf32, #tpu.memory_space<vmem>>, vector<6x32xf32>,
    %c197 = arith.constant 197 : index
    %c0_319 = arith.constant 0 : index
    %217 = tpu.strided_load %arg9[%c197, %c0_319] {strides = array<i32: 2, 1>} : memref<450x32xf32, #tpu.memory_space<vmem>>, vector<6x32xf32>
    %c30_320 = arith.constant 30 : index
    %c448_321 = arith.constant 448 : index
    %218 = vector.load %arg10[%c30_320, %c448_321] : memref<72x512xf32, #tpu.memory_space<vmem>>, vector<6x32xf32>
    tpu.vector_store %arg10[%c30_320, %c448_321], %217 {strides = array<i32>} : memref<72x512xf32, #tpu.memory_space<vmem>>, vector<6x32xf32>,
    %c198 = arith.constant 198 : index
    %c0_322 = arith.constant 0 : index
    %219 = tpu.strided_load %arg9[%c198, %c0_322] {strides = array<i32: 2, 1>} : memref<450x32xf32, #tpu.memory_space<vmem>>, vector<6x32xf32>
    %c30_323 = arith.constant 30 : index
    %c480_324 = arith.constant 480 : index
    %220 = vector.load %arg10[%c30_323, %c480_324] : memref<72x512xf32, #tpu.memory_space<vmem>>, vector<6x32xf32>
    tpu.vector_store %arg10[%c30_323, %c480_324], %219 {strides = array<i32>} : memref<72x512xf32, #tpu.memory_space<vmem>>, vector<6x32xf32>,
    %c225 = arith.constant 225 : index
    %c0_325 = arith.constant 0 : index
    %221 = tpu.strided_load %arg9[%c225, %c0_325] {strides = array<i32: 2, 1>} : memref<450x32xf32, #tpu.memory_space<vmem>>, vector<6x32xf32>
    %c36 = arith.constant 36 : index
    %c0_326 = arith.constant 0 : index
    %222 = vector.load %arg10[%c36, %c0_326] : memref<72x512xf32, #tpu.memory_space<vmem>>, vector<6x32xf32>
    tpu.vector_store %arg10[%c36, %c0_326], %221 {strides = array<i32>} : memref<72x512xf32, #tpu.memory_space<vmem>>, vector<6x32xf32>,
    %c226 = arith.constant 226 : index
    %c0_327 = arith.constant 0 : index
    %223 = tpu.strided_load %arg9[%c226, %c0_327] {strides = array<i32: 2, 1>} : memref<450x32xf32, #tpu.memory_space<vmem>>, vector<6x32xf32>
    %c36_328 = arith.constant 36 : index
    %c32_329 = arith.constant 32 : index
    %224 = vector.load %arg10[%c36_328, %c32_329] : memref<72x512xf32, #tpu.memory_space<vmem>>, vector<6x32xf32>
    tpu.vector_store %arg10[%c36_328, %c32_329], %223 {strides = array<i32>} : memref<72x512xf32, #tpu.memory_space<vmem>>, vector<6x32xf32>,
    %c227 = arith.constant 227 : index
    %c0_330 = arith.constant 0 : index
    %225 = tpu.strided_load %arg9[%c227, %c0_330] {strides = array<i32: 2, 1>} : memref<450x32xf32, #tpu.memory_space<vmem>>, vector<6x32xf32>
    %c36_331 = arith.constant 36 : index
    %c64_332 = arith.constant 64 : index
    %226 = vector.load %arg10[%c36_331, %c64_332] : memref<72x512xf32, #tpu.memory_space<vmem>>, vector<6x32xf32>
    tpu.vector_store %arg10[%c36_331, %c64_332], %225 {strides = array<i32>} : memref<72x512xf32, #tpu.memory_space<vmem>>, vector<6x32xf32>,
    %c228 = arith.constant 228 : index
    %c0_333 = arith.constant 0 : index
    %227 = tpu.strided_load %arg9[%c228, %c0_333] {strides = array<i32: 2, 1>} : memref<450x32xf32, #tpu.memory_space<vmem>>, vector<6x32xf32>
    %c36_334 = arith.constant 36 : index
    %c96_335 = arith.constant 96 : index
    %228 = vector.load %arg10[%c36_334, %c96_335] : memref<72x512xf32, #tpu.memory_space<vmem>>, vector<6x32xf32>
    tpu.vector_store %arg10[%c36_334, %c96_335], %227 {strides = array<i32>} : memref<72x512xf32, #tpu.memory_space<vmem>>, vector<6x32xf32>,
    %c240 = arith.constant 240 : index
    %c0_336 = arith.constant 0 : index
    %229 = tpu.strided_load %arg9[%c240, %c0_336] {strides = array<i32: 2, 1>} : memref<450x32xf32, #tpu.memory_space<vmem>>, vector<6x32xf32>
    %c36_337 = arith.constant 36 : index
    %c128_338 = arith.constant 128 : index
    %230 = vector.load %arg10[%c36_337, %c128_338] : memref<72x512xf32, #tpu.memory_space<vmem>>, vector<6x32xf32>
    tpu.vector_store %arg10[%c36_337, %c128_338], %229 {strides = array<i32>} : memref<72x512xf32, #tpu.memory_space<vmem>>, vector<6x32xf32>,
    %c241 = arith.constant 241 : index
    %c0_339 = arith.constant 0 : index
    %231 = tpu.strided_load %arg9[%c241, %c0_339] {strides = array<i32: 2, 1>} : memref<450x32xf32, #tpu.memory_space<vmem>>, vector<6x32xf32>
    %c36_340 = arith.constant 36 : index
    %c160_341 = arith.constant 160 : index
    %232 = vector.load %arg10[%c36_340, %c160_341] : memref<72x512xf32, #tpu.memory_space<vmem>>, vector<6x32xf32>
    tpu.vector_store %arg10[%c36_340, %c160_341], %231 {strides = array<i32>} : memref<72x512xf32, #tpu.memory_space<vmem>>, vector<6x32xf32>,
    %c242 = arith.constant 242 : index
    %c0_342 = arith.constant 0 : index
    %233 = tpu.strided_load %arg9[%c242, %c0_342] {strides = array<i32: 2, 1>} : memref<450x32xf32, #tpu.memory_space<vmem>>, vector<6x32xf32>
    %c36_343 = arith.constant 36 : index
    %c192_344 = arith.constant 192 : index
    %234 = vector.load %arg10[%c36_343, %c192_344] : memref<72x512xf32, #tpu.memory_space<vmem>>, vector<6x32xf32>
    tpu.vector_store %arg10[%c36_343, %c192_344], %233 {strides = array<i32>} : memref<72x512xf32, #tpu.memory_space<vmem>>, vector<6x32xf32>,
    %c243 = arith.constant 243 : index
    %c0_345 = arith.constant 0 : index
    %235 = tpu.strided_load %arg9[%c243, %c0_345] {strides = array<i32: 2, 1>} : memref<450x32xf32, #tpu.memory_space<vmem>>, vector<6x32xf32>
    %c36_346 = arith.constant 36 : index
    %c224_347 = arith.constant 224 : index
    %236 = vector.load %arg10[%c36_346, %c224_347] : memref<72x512xf32, #tpu.memory_space<vmem>>, vector<6x32xf32>
    tpu.vector_store %arg10[%c36_346, %c224_347], %235 {strides = array<i32>} : memref<72x512xf32, #tpu.memory_space<vmem>>, vector<6x32xf32>,
    %c255 = arith.constant 255 : index
    %c0_348 = arith.constant 0 : index
    %237 = tpu.strided_load %arg9[%c255, %c0_348] {strides = array<i32: 2, 1>} : memref<450x32xf32, #tpu.memory_space<vmem>>, vector<6x32xf32>
    %c36_349 = arith.constant 36 : index
    %c256_350 = arith.constant 256 : index
    %238 = vector.load %arg10[%c36_349, %c256_350] : memref<72x512xf32, #tpu.memory_space<vmem>>, vector<6x32xf32>
    tpu.vector_store %arg10[%c36_349, %c256_350], %237 {strides = array<i32>} : memref<72x512xf32, #tpu.memory_space<vmem>>, vector<6x32xf32>,
    %c256_351 = arith.constant 256 : index
    %c0_352 = arith.constant 0 : index
    %239 = tpu.strided_load %arg9[%c256_351, %c0_352] {strides = array<i32: 2, 1>} : memref<450x32xf32, #tpu.memory_space<vmem>>, vector<6x32xf32>
    %c36_353 = arith.constant 36 : index
    %c288_354 = arith.constant 288 : index
    %240 = vector.load %arg10[%c36_353, %c288_354] : memref<72x512xf32, #tpu.memory_space<vmem>>, vector<6x32xf32>
    tpu.vector_store %arg10[%c36_353, %c288_354], %239 {strides = array<i32>} : memref<72x512xf32, #tpu.memory_space<vmem>>, vector<6x32xf32>,
    %c257 = arith.constant 257 : index
    %c0_355 = arith.constant 0 : index
    %241 = tpu.strided_load %arg9[%c257, %c0_355] {strides = array<i32: 2, 1>} : memref<450x32xf32, #tpu.memory_space<vmem>>, vector<6x32xf32>
    %c36_356 = arith.constant 36 : index
    %c320_357 = arith.constant 320 : index
    %242 = vector.load %arg10[%c36_356, %c320_357] : memref<72x512xf32, #tpu.memory_space<vmem>>, vector<6x32xf32>
    tpu.vector_store %arg10[%c36_356, %c320_357], %241 {strides = array<i32>} : memref<72x512xf32, #tpu.memory_space<vmem>>, vector<6x32xf32>,
    %c258 = arith.constant 258 : index
    %c0_358 = arith.constant 0 : index
    %243 = tpu.strided_load %arg9[%c258, %c0_358] {strides = array<i32: 2, 1>} : memref<450x32xf32, #tpu.memory_space<vmem>>, vector<6x32xf32>
    %c36_359 = arith.constant 36 : index
    %c352_360 = arith.constant 352 : index
    %244 = vector.load %arg10[%c36_359, %c352_360] : memref<72x512xf32, #tpu.memory_space<vmem>>, vector<6x32xf32>
    tpu.vector_store %arg10[%c36_359, %c352_360], %243 {strides = array<i32>} : memref<72x512xf32, #tpu.memory_space<vmem>>, vector<6x32xf32>,
    %c270 = arith.constant 270 : index
    %c0_361 = arith.constant 0 : index
    %245 = tpu.strided_load %arg9[%c270, %c0_361] {strides = array<i32: 2, 1>} : memref<450x32xf32, #tpu.memory_space<vmem>>, vector<6x32xf32>
    %c36_362 = arith.constant 36 : index
    %c384_363 = arith.constant 384 : index
    %246 = vector.load %arg10[%c36_362, %c384_363] : memref<72x512xf32, #tpu.memory_space<vmem>>, vector<6x32xf32>
    tpu.vector_store %arg10[%c36_362, %c384_363], %245 {strides = array<i32>} : memref<72x512xf32, #tpu.memory_space<vmem>>, vector<6x32xf32>,
    %c271 = arith.constant 271 : index
    %c0_364 = arith.constant 0 : index
    %247 = tpu.strided_load %arg9[%c271, %c0_364] {strides = array<i32: 2, 1>} : memref<450x32xf32, #tpu.memory_space<vmem>>, vector<6x32xf32>
    %c36_365 = arith.constant 36 : index
    %c416_366 = arith.constant 416 : index
    %248 = vector.load %arg10[%c36_365, %c416_366] : memref<72x512xf32, #tpu.memory_space<vmem>>, vector<6x32xf32>
    tpu.vector_store %arg10[%c36_365, %c416_366], %247 {strides = array<i32>} : memref<72x512xf32, #tpu.memory_space<vmem>>, vector<6x32xf32>,
    %c272 = arith.constant 272 : index
    %c0_367 = arith.constant 0 : index
    %249 = tpu.strided_load %arg9[%c272, %c0_367] {strides = array<i32: 2, 1>} : memref<450x32xf32, #tpu.memory_space<vmem>>, vector<6x32xf32>
    %c36_368 = arith.constant 36 : index
    %c448_369 = arith.constant 448 : index
    %250 = vector.load %arg10[%c36_368, %c448_369] : memref<72x512xf32, #tpu.memory_space<vmem>>, vector<6x32xf32>
    tpu.vector_store %arg10[%c36_368, %c448_369], %249 {strides = array<i32>} : memref<72x512xf32, #tpu.memory_space<vmem>>, vector<6x32xf32>,
    %c273 = arith.constant 273 : index
    %c0_370 = arith.constant 0 : index
    %251 = tpu.strided_load %arg9[%c273, %c0_370] {strides = array<i32: 2, 1>} : memref<450x32xf32, #tpu.memory_space<vmem>>, vector<6x32xf32>
    %c36_371 = arith.constant 36 : index
    %c480_372 = arith.constant 480 : index
    %252 = vector.load %arg10[%c36_371, %c480_372] : memref<72x512xf32, #tpu.memory_space<vmem>>, vector<6x32xf32>
    tpu.vector_store %arg10[%c36_371, %c480_372], %251 {strides = array<i32>} : memref<72x512xf32, #tpu.memory_space<vmem>>, vector<6x32xf32>,
    %c255_373 = arith.constant 255 : index
    %c0_374 = arith.constant 0 : index
    %253 = tpu.strided_load %arg9[%c255_373, %c0_374] {strides = array<i32: 2, 1>} : memref<450x32xf32, #tpu.memory_space<vmem>>, vector<6x32xf32>
    %c42 = arith.constant 42 : index
    %c0_375 = arith.constant 0 : index
    %254 = vector.load %arg10[%c42, %c0_375] : memref<72x512xf32, #tpu.memory_space<vmem>>, vector<6x32xf32>
    tpu.vector_store %arg10[%c42, %c0_375], %253 {strides = array<i32>} : memref<72x512xf32, #tpu.memory_space<vmem>>, vector<6x32xf32>,
    %c256_376 = arith.constant 256 : index
    %c0_377 = arith.constant 0 : index
    %255 = tpu.strided_load %arg9[%c256_376, %c0_377] {strides = array<i32: 2, 1>} : memref<450x32xf32, #tpu.memory_space<vmem>>, vector<6x32xf32>
    %c42_378 = arith.constant 42 : index
    %c32_379 = arith.constant 32 : index
    %256 = vector.load %arg10[%c42_378, %c32_379] : memref<72x512xf32, #tpu.memory_space<vmem>>, vector<6x32xf32>
    tpu.vector_store %arg10[%c42_378, %c32_379], %255 {strides = array<i32>} : memref<72x512xf32, #tpu.memory_space<vmem>>, vector<6x32xf32>,
    %c257_380 = arith.constant 257 : index
    %c0_381 = arith.constant 0 : index
    %257 = tpu.strided_load %arg9[%c257_380, %c0_381] {strides = array<i32: 2, 1>} : memref<450x32xf32, #tpu.memory_space<vmem>>, vector<6x32xf32>
    %c42_382 = arith.constant 42 : index
    %c64_383 = arith.constant 64 : index
    %258 = vector.load %arg10[%c42_382, %c64_383] : memref<72x512xf32, #tpu.memory_space<vmem>>, vector<6x32xf32>
    tpu.vector_store %arg10[%c42_382, %c64_383], %257 {strides = array<i32>} : memref<72x512xf32, #tpu.memory_space<vmem>>, vector<6x32xf32>,
    %c258_384 = arith.constant 258 : index
    %c0_385 = arith.constant 0 : index
    %259 = tpu.strided_load %arg9[%c258_384, %c0_385] {strides = array<i32: 2, 1>} : memref<450x32xf32, #tpu.memory_space<vmem>>, vector<6x32xf32>
    %c42_386 = arith.constant 42 : index
    %c96_387 = arith.constant 96 : index
    %260 = vector.load %arg10[%c42_386, %c96_387] : memref<72x512xf32, #tpu.memory_space<vmem>>, vector<6x32xf32>
    tpu.vector_store %arg10[%c42_386, %c96_387], %259 {strides = array<i32>} : memref<72x512xf32, #tpu.memory_space<vmem>>, vector<6x32xf32>,
    %c270_388 = arith.constant 270 : index
    %c0_389 = arith.constant 0 : index
    %261 = tpu.strided_load %arg9[%c270_388, %c0_389] {strides = array<i32: 2, 1>} : memref<450x32xf32, #tpu.memory_space<vmem>>, vector<6x32xf32>
    %c42_390 = arith.constant 42 : index
    %c128_391 = arith.constant 128 : index
    %262 = vector.load %arg10[%c42_390, %c128_391] : memref<72x512xf32, #tpu.memory_space<vmem>>, vector<6x32xf32>
    tpu.vector_store %arg10[%c42_390, %c128_391], %261 {strides = array<i32>} : memref<72x512xf32, #tpu.memory_space<vmem>>, vector<6x32xf32>,
    %c271_392 = arith.constant 271 : index
    %c0_393 = arith.constant 0 : index
    %263 = tpu.strided_load %arg9[%c271_392, %c0_393] {strides = array<i32: 2, 1>} : memref<450x32xf32, #tpu.memory_space<vmem>>, vector<6x32xf32>
    %c42_394 = arith.constant 42 : index
    %c160_395 = arith.constant 160 : index
    %264 = vector.load %arg10[%c42_394, %c160_395] : memref<72x512xf32, #tpu.memory_space<vmem>>, vector<6x32xf32>
    tpu.vector_store %arg10[%c42_394, %c160_395], %263 {strides = array<i32>} : memref<72x512xf32, #tpu.memory_space<vmem>>, vector<6x32xf32>,
    %c272_396 = arith.constant 272 : index
    %c0_397 = arith.constant 0 : index
    %265 = tpu.strided_load %arg9[%c272_396, %c0_397] {strides = array<i32: 2, 1>} : memref<450x32xf32, #tpu.memory_space<vmem>>, vector<6x32xf32>
    %c42_398 = arith.constant 42 : index
    %c192_399 = arith.constant 192 : index
    %266 = vector.load %arg10[%c42_398, %c192_399] : memref<72x512xf32, #tpu.memory_space<vmem>>, vector<6x32xf32>
    tpu.vector_store %arg10[%c42_398, %c192_399], %265 {strides = array<i32>} : memref<72x512xf32, #tpu.memory_space<vmem>>, vector<6x32xf32>,
    %c273_400 = arith.constant 273 : index
    %c0_401 = arith.constant 0 : index
    %267 = tpu.strided_load %arg9[%c273_400, %c0_401] {strides = array<i32: 2, 1>} : memref<450x32xf32, #tpu.memory_space<vmem>>, vector<6x32xf32>
    %c42_402 = arith.constant 42 : index
    %c224_403 = arith.constant 224 : index
    %268 = vector.load %arg10[%c42_402, %c224_403] : memref<72x512xf32, #tpu.memory_space<vmem>>, vector<6x32xf32>
    tpu.vector_store %arg10[%c42_402, %c224_403], %267 {strides = array<i32>} : memref<72x512xf32, #tpu.memory_space<vmem>>, vector<6x32xf32>,
    %c285 = arith.constant 285 : index
    %c0_404 = arith.constant 0 : index
    %269 = tpu.strided_load %arg9[%c285, %c0_404] {strides = array<i32: 2, 1>} : memref<450x32xf32, #tpu.memory_space<vmem>>, vector<6x32xf32>
    %c42_405 = arith.constant 42 : index
    %c256_406 = arith.constant 256 : index
    %270 = vector.load %arg10[%c42_405, %c256_406] : memref<72x512xf32, #tpu.memory_space<vmem>>, vector<6x32xf32>
    tpu.vector_store %arg10[%c42_405, %c256_406], %269 {strides = array<i32>} : memref<72x512xf32, #tpu.memory_space<vmem>>, vector<6x32xf32>,
    %c286 = arith.constant 286 : index
    %c0_407 = arith.constant 0 : index
    %271 = tpu.strided_load %arg9[%c286, %c0_407] {strides = array<i32: 2, 1>} : memref<450x32xf32, #tpu.memory_space<vmem>>, vector<6x32xf32>
    %c42_408 = arith.constant 42 : index
    %c288_409 = arith.constant 288 : index
    %272 = vector.load %arg10[%c42_408, %c288_409] : memref<72x512xf32, #tpu.memory_space<vmem>>, vector<6x32xf32>
    tpu.vector_store %arg10[%c42_408, %c288_409], %271 {strides = array<i32>} : memref<72x512xf32, #tpu.memory_space<vmem>>, vector<6x32xf32>,
    %c287 = arith.constant 287 : index
    %c0_410 = arith.constant 0 : index
    %273 = tpu.strided_load %arg9[%c287, %c0_410] {strides = array<i32: 2, 1>} : memref<450x32xf32, #tpu.memory_space<vmem>>, vector<6x32xf32>
    %c42_411 = arith.constant 42 : index
    %c320_412 = arith.constant 320 : index
    %274 = vector.load %arg10[%c42_411, %c320_412] : memref<72x512xf32, #tpu.memory_space<vmem>>, vector<6x32xf32>
    tpu.vector_store %arg10[%c42_411, %c320_412], %273 {strides = array<i32>} : memref<72x512xf32, #tpu.memory_space<vmem>>, vector<6x32xf32>,
    %c288_413 = arith.constant 288 : index
    %c0_414 = arith.constant 0 : index
    %275 = tpu.strided_load %arg9[%c288_413, %c0_414] {strides = array<i32: 2, 1>} : memref<450x32xf32, #tpu.memory_space<vmem>>, vector<6x32xf32>
    %c42_415 = arith.constant 42 : index
    %c352_416 = arith.constant 352 : index
    %276 = vector.load %arg10[%c42_415, %c352_416] : memref<72x512xf32, #tpu.memory_space<vmem>>, vector<6x32xf32>
    tpu.vector_store %arg10[%c42_415, %c352_416], %275 {strides = array<i32>} : memref<72x512xf32, #tpu.memory_space<vmem>>, vector<6x32xf32>,
    %c300 = arith.constant 300 : index
    %c0_417 = arith.constant 0 : index
    %277 = tpu.strided_load %arg9[%c300, %c0_417] {strides = array<i32: 2, 1>} : memref<450x32xf32, #tpu.memory_space<vmem>>, vector<6x32xf32>
    %c42_418 = arith.constant 42 : index
    %c384_419 = arith.constant 384 : index
    %278 = vector.load %arg10[%c42_418, %c384_419] : memref<72x512xf32, #tpu.memory_space<vmem>>, vector<6x32xf32>
    tpu.vector_store %arg10[%c42_418, %c384_419], %277 {strides = array<i32>} : memref<72x512xf32, #tpu.memory_space<vmem>>, vector<6x32xf32>,
    %c301 = arith.constant 301 : index
    %c0_420 = arith.constant 0 : index
    %279 = tpu.strided_load %arg9[%c301, %c0_420] {strides = array<i32: 2, 1>} : memref<450x32xf32, #tpu.memory_space<vmem>>, vector<6x32xf32>
    %c42_421 = arith.constant 42 : index
    %c416_422 = arith.constant 416 : index
    %280 = vector.load %arg10[%c42_421, %c416_422] : memref<72x512xf32, #tpu.memory_space<vmem>>, vector<6x32xf32>
    tpu.vector_store %arg10[%c42_421, %c416_422], %279 {strides = array<i32>} : memref<72x512xf32, #tpu.memory_space<vmem>>, vector<6x32xf32>,
    %c302 = arith.constant 302 : index
    %c0_423 = arith.constant 0 : index
    %281 = tpu.strided_load %arg9[%c302, %c0_423] {strides = array<i32: 2, 1>} : memref<450x32xf32, #tpu.memory_space<vmem>>, vector<6x32xf32>
    %c42_424 = arith.constant 42 : index
    %c448_425 = arith.constant 448 : index
    %282 = vector.load %arg10[%c42_424, %c448_425] : memref<72x512xf32, #tpu.memory_space<vmem>>, vector<6x32xf32>
    tpu.vector_store %arg10[%c42_424, %c448_425], %281 {strides = array<i32>} : memref<72x512xf32, #tpu.memory_space<vmem>>, vector<6x32xf32>,
    %c303 = arith.constant 303 : index
    %c0_426 = arith.constant 0 : index
    %283 = tpu.strided_load %arg9[%c303, %c0_426] {strides = array<i32: 2, 1>} : memref<450x32xf32, #tpu.memory_space<vmem>>, vector<6x32xf32>
    %c42_427 = arith.constant 42 : index
    %c480_428 = arith.constant 480 : index
    %284 = vector.load %arg10[%c42_427, %c480_428] : memref<72x512xf32, #tpu.memory_space<vmem>>, vector<6x32xf32>
    tpu.vector_store %arg10[%c42_427, %c480_428], %283 {strides = array<i32>} : memref<72x512xf32, #tpu.memory_space<vmem>>, vector<6x32xf32>,
    %c285_429 = arith.constant 285 : index
    %c0_430 = arith.constant 0 : index
    %285 = tpu.strided_load %arg9[%c285_429, %c0_430] {strides = array<i32: 2, 1>} : memref<450x32xf32, #tpu.memory_space<vmem>>, vector<6x32xf32>
    %c48_431 = arith.constant 48 : index
    %c0_432 = arith.constant 0 : index
    %286 = vector.load %arg10[%c48_431, %c0_432] : memref<72x512xf32, #tpu.memory_space<vmem>>, vector<6x32xf32>
    tpu.vector_store %arg10[%c48_431, %c0_432], %285 {strides = array<i32>} : memref<72x512xf32, #tpu.memory_space<vmem>>, vector<6x32xf32>,
    %c286_433 = arith.constant 286 : index
    %c0_434 = arith.constant 0 : index
    %287 = tpu.strided_load %arg9[%c286_433, %c0_434] {strides = array<i32: 2, 1>} : memref<450x32xf32, #tpu.memory_space<vmem>>, vector<6x32xf32>
    %c48_435 = arith.constant 48 : index
    %c32_436 = arith.constant 32 : index
    %288 = vector.load %arg10[%c48_435, %c32_436] : memref<72x512xf32, #tpu.memory_space<vmem>>, vector<6x32xf32>
    tpu.vector_store %arg10[%c48_435, %c32_436], %287 {strides = array<i32>} : memref<72x512xf32, #tpu.memory_space<vmem>>, vector<6x32xf32>,
    %c287_437 = arith.constant 287 : index
    %c0_438 = arith.constant 0 : index
    %289 = tpu.strided_load %arg9[%c287_437, %c0_438] {strides = array<i32: 2, 1>} : memref<450x32xf32, #tpu.memory_space<vmem>>, vector<6x32xf32>
    %c48_439 = arith.constant 48 : index
    %c64_440 = arith.constant 64 : index
    %290 = vector.load %arg10[%c48_439, %c64_440] : memref<72x512xf32, #tpu.memory_space<vmem>>, vector<6x32xf32>
    tpu.vector_store %arg10[%c48_439, %c64_440], %289 {strides = array<i32>} : memref<72x512xf32, #tpu.memory_space<vmem>>, vector<6x32xf32>,
    %c288_441 = arith.constant 288 : index
    %c0_442 = arith.constant 0 : index
    %291 = tpu.strided_load %arg9[%c288_441, %c0_442] {strides = array<i32: 2, 1>} : memref<450x32xf32, #tpu.memory_space<vmem>>, vector<6x32xf32>
    %c48_443 = arith.constant 48 : index
    %c96_444 = arith.constant 96 : index
    %292 = vector.load %arg10[%c48_443, %c96_444] : memref<72x512xf32, #tpu.memory_space<vmem>>, vector<6x32xf32>
    tpu.vector_store %arg10[%c48_443, %c96_444], %291 {strides = array<i32>} : memref<72x512xf32, #tpu.memory_space<vmem>>, vector<6x32xf32>,
    %c300_445 = arith.constant 300 : index
    %c0_446 = arith.constant 0 : index
    %293 = tpu.strided_load %arg9[%c300_445, %c0_446] {strides = array<i32: 2, 1>} : memref<450x32xf32, #tpu.memory_space<vmem>>, vector<6x32xf32>
    %c48_447 = arith.constant 48 : index
    %c128_448 = arith.constant 128 : index
    %294 = vector.load %arg10[%c48_447, %c128_448] : memref<72x512xf32, #tpu.memory_space<vmem>>, vector<6x32xf32>
    tpu.vector_store %arg10[%c48_447, %c128_448], %293 {strides = array<i32>} : memref<72x512xf32, #tpu.memory_space<vmem>>, vector<6x32xf32>,
    %c301_449 = arith.constant 301 : index
    %c0_450 = arith.constant 0 : index
    %295 = tpu.strided_load %arg9[%c301_449, %c0_450] {strides = array<i32: 2, 1>} : memref<450x32xf32, #tpu.memory_space<vmem>>, vector<6x32xf32>
    %c48_451 = arith.constant 48 : index
    %c160_452 = arith.constant 160 : index
    %296 = vector.load %arg10[%c48_451, %c160_452] : memref<72x512xf32, #tpu.memory_space<vmem>>, vector<6x32xf32>
    tpu.vector_store %arg10[%c48_451, %c160_452], %295 {strides = array<i32>} : memref<72x512xf32, #tpu.memory_space<vmem>>, vector<6x32xf32>,
    %c302_453 = arith.constant 302 : index
    %c0_454 = arith.constant 0 : index
    %297 = tpu.strided_load %arg9[%c302_453, %c0_454] {strides = array<i32: 2, 1>} : memref<450x32xf32, #tpu.memory_space<vmem>>, vector<6x32xf32>
    %c48_455 = arith.constant 48 : index
    %c192_456 = arith.constant 192 : index
    %298 = vector.load %arg10[%c48_455, %c192_456] : memref<72x512xf32, #tpu.memory_space<vmem>>, vector<6x32xf32>
    tpu.vector_store %arg10[%c48_455, %c192_456], %297 {strides = array<i32>} : memref<72x512xf32, #tpu.memory_space<vmem>>, vector<6x32xf32>,
    %c303_457 = arith.constant 303 : index
    %c0_458 = arith.constant 0 : index
    %299 = tpu.strided_load %arg9[%c303_457, %c0_458] {strides = array<i32: 2, 1>} : memref<450x32xf32, #tpu.memory_space<vmem>>, vector<6x32xf32>
    %c48_459 = arith.constant 48 : index
    %c224_460 = arith.constant 224 : index
    %300 = vector.load %arg10[%c48_459, %c224_460] : memref<72x512xf32, #tpu.memory_space<vmem>>, vector<6x32xf32>
    tpu.vector_store %arg10[%c48_459, %c224_460], %299 {strides = array<i32>} : memref<72x512xf32, #tpu.memory_space<vmem>>, vector<6x32xf32>,
    %c315 = arith.constant 315 : index
    %c0_461 = arith.constant 0 : index
    %301 = tpu.strided_load %arg9[%c315, %c0_461] {strides = array<i32: 2, 1>} : memref<450x32xf32, #tpu.memory_space<vmem>>, vector<6x32xf32>
    %c48_462 = arith.constant 48 : index
    %c256_463 = arith.constant 256 : index
    %302 = vector.load %arg10[%c48_462, %c256_463] : memref<72x512xf32, #tpu.memory_space<vmem>>, vector<6x32xf32>
    tpu.vector_store %arg10[%c48_462, %c256_463], %301 {strides = array<i32>} : memref<72x512xf32, #tpu.memory_space<vmem>>, vector<6x32xf32>,
    %c316 = arith.constant 316 : index
    %c0_464 = arith.constant 0 : index
    %303 = tpu.strided_load %arg9[%c316, %c0_464] {strides = array<i32: 2, 1>} : memref<450x32xf32, #tpu.memory_space<vmem>>, vector<6x32xf32>
    %c48_465 = arith.constant 48 : index
    %c288_466 = arith.constant 288 : index
    %304 = vector.load %arg10[%c48_465, %c288_466] : memref<72x512xf32, #tpu.memory_space<vmem>>, vector<6x32xf32>
    tpu.vector_store %arg10[%c48_465, %c288_466], %303 {strides = array<i32>} : memref<72x512xf32, #tpu.memory_space<vmem>>, vector<6x32xf32>,
    %c317 = arith.constant 317 : index
    %c0_467 = arith.constant 0 : index
    %305 = tpu.strided_load %arg9[%c317, %c0_467] {strides = array<i32: 2, 1>} : memref<450x32xf32, #tpu.memory_space<vmem>>, vector<6x32xf32>
    %c48_468 = arith.constant 48 : index
    %c320_469 = arith.constant 320 : index
    %306 = vector.load %arg10[%c48_468, %c320_469] : memref<72x512xf32, #tpu.memory_space<vmem>>, vector<6x32xf32>
    tpu.vector_store %arg10[%c48_468, %c320_469], %305 {strides = array<i32>} : memref<72x512xf32, #tpu.memory_space<vmem>>, vector<6x32xf32>,
    %c318 = arith.constant 318 : index
    %c0_470 = arith.constant 0 : index
    %307 = tpu.strided_load %arg9[%c318, %c0_470] {strides = array<i32: 2, 1>} : memref<450x32xf32, #tpu.memory_space<vmem>>, vector<6x32xf32>
    %c48_471 = arith.constant 48 : index
    %c352_472 = arith.constant 352 : index
    %308 = vector.load %arg10[%c48_471, %c352_472] : memref<72x512xf32, #tpu.memory_space<vmem>>, vector<6x32xf32>
    tpu.vector_store %arg10[%c48_471, %c352_472], %307 {strides = array<i32>} : memref<72x512xf32, #tpu.memory_space<vmem>>, vector<6x32xf32>,
    %c330 = arith.constant 330 : index
    %c0_473 = arith.constant 0 : index
    %309 = tpu.strided_load %arg9[%c330, %c0_473] {strides = array<i32: 2, 1>} : memref<450x32xf32, #tpu.memory_space<vmem>>, vector<6x32xf32>
    %c48_474 = arith.constant 48 : index
    %c384_475 = arith.constant 384 : index
    %310 = vector.load %arg10[%c48_474, %c384_475] : memref<72x512xf32, #tpu.memory_space<vmem>>, vector<6x32xf32>
    tpu.vector_store %arg10[%c48_474, %c384_475], %309 {strides = array<i32>} : memref<72x512xf32, #tpu.memory_space<vmem>>, vector<6x32xf32>,
    %c331 = arith.constant 331 : index
    %c0_476 = arith.constant 0 : index
    %311 = tpu.strided_load %arg9[%c331, %c0_476] {strides = array<i32: 2, 1>} : memref<450x32xf32, #tpu.memory_space<vmem>>, vector<6x32xf32>
    %c48_477 = arith.constant 48 : index
    %c416_478 = arith.constant 416 : index
    %312 = vector.load %arg10[%c48_477, %c416_478] : memref<72x512xf32, #tpu.memory_space<vmem>>, vector<6x32xf32>
    tpu.vector_store %arg10[%c48_477, %c416_478], %311 {strides = array<i32>} : memref<72x512xf32, #tpu.memory_space<vmem>>, vector<6x32xf32>,
    %c332 = arith.constant 332 : index
    %c0_479 = arith.constant 0 : index
    %313 = tpu.strided_load %arg9[%c332, %c0_479] {strides = array<i32: 2, 1>} : memref<450x32xf32, #tpu.memory_space<vmem>>, vector<6x32xf32>
    %c48_480 = arith.constant 48 : index
    %c448_481 = arith.constant 448 : index
    %314 = vector.load %arg10[%c48_480, %c448_481] : memref<72x512xf32, #tpu.memory_space<vmem>>, vector<6x32xf32>
    tpu.vector_store %arg10[%c48_480, %c448_481], %313 {strides = array<i32>} : memref<72x512xf32, #tpu.memory_space<vmem>>, vector<6x32xf32>,
    %c333 = arith.constant 333 : index
    %c0_482 = arith.constant 0 : index
    %315 = tpu.strided_load %arg9[%c333, %c0_482] {strides = array<i32: 2, 1>} : memref<450x32xf32, #tpu.memory_space<vmem>>, vector<6x32xf32>
    %c48_483 = arith.constant 48 : index
    %c480_484 = arith.constant 480 : index
    %316 = vector.load %arg10[%c48_483, %c480_484] : memref<72x512xf32, #tpu.memory_space<vmem>>, vector<6x32xf32>
    tpu.vector_store %arg10[%c48_483, %c480_484], %315 {strides = array<i32>} : memref<72x512xf32, #tpu.memory_space<vmem>>, vector<6x32xf32>,
    %c315_485 = arith.constant 315 : index
    %c0_486 = arith.constant 0 : index
    %317 = tpu.strided_load %arg9[%c315_485, %c0_486] {strides = array<i32: 2, 1>} : memref<450x32xf32, #tpu.memory_space<vmem>>, vector<6x32xf32>
    %c54 = arith.constant 54 : index
    %c0_487 = arith.constant 0 : index
    %318 = vector.load %arg10[%c54, %c0_487] : memref<72x512xf32, #tpu.memory_space<vmem>>, vector<6x32xf32>
    tpu.vector_store %arg10[%c54, %c0_487], %317 {strides = array<i32>} : memref<72x512xf32, #tpu.memory_space<vmem>>, vector<6x32xf32>,
    %c316_488 = arith.constant 316 : index
    %c0_489 = arith.constant 0 : index
    %319 = tpu.strided_load %arg9[%c316_488, %c0_489] {strides = array<i32: 2, 1>} : memref<450x32xf32, #tpu.memory_space<vmem>>, vector<6x32xf32>
    %c54_490 = arith.constant 54 : index
    %c32_491 = arith.constant 32 : index
    %320 = vector.load %arg10[%c54_490, %c32_491] : memref<72x512xf32, #tpu.memory_space<vmem>>, vector<6x32xf32>
    tpu.vector_store %arg10[%c54_490, %c32_491], %319 {strides = array<i32>} : memref<72x512xf32, #tpu.memory_space<vmem>>, vector<6x32xf32>,
    %c317_492 = arith.constant 317 : index
    %c0_493 = arith.constant 0 : index
    %321 = tpu.strided_load %arg9[%c317_492, %c0_493] {strides = array<i32: 2, 1>} : memref<450x32xf32, #tpu.memory_space<vmem>>, vector<6x32xf32>
    %c54_494 = arith.constant 54 : index
    %c64_495 = arith.constant 64 : index
    %322 = vector.load %arg10[%c54_494, %c64_495] : memref<72x512xf32, #tpu.memory_space<vmem>>, vector<6x32xf32>
    tpu.vector_store %arg10[%c54_494, %c64_495], %321 {strides = array<i32>} : memref<72x512xf32, #tpu.memory_space<vmem>>, vector<6x32xf32>,
    %c318_496 = arith.constant 318 : index
    %c0_497 = arith.constant 0 : index
    %323 = tpu.strided_load %arg9[%c318_496, %c0_497] {strides = array<i32: 2, 1>} : memref<450x32xf32, #tpu.memory_space<vmem>>, vector<6x32xf32>
    %c54_498 = arith.constant 54 : index
    %c96_499 = arith.constant 96 : index
    %324 = vector.load %arg10[%c54_498, %c96_499] : memref<72x512xf32, #tpu.memory_space<vmem>>, vector<6x32xf32>
    tpu.vector_store %arg10[%c54_498, %c96_499], %323 {strides = array<i32>} : memref<72x512xf32, #tpu.memory_space<vmem>>, vector<6x32xf32>,
    %c330_500 = arith.constant 330 : index
    %c0_501 = arith.constant 0 : index
    %325 = tpu.strided_load %arg9[%c330_500, %c0_501] {strides = array<i32: 2, 1>} : memref<450x32xf32, #tpu.memory_space<vmem>>, vector<6x32xf32>
    %c54_502 = arith.constant 54 : index
    %c128_503 = arith.constant 128 : index
    %326 = vector.load %arg10[%c54_502, %c128_503] : memref<72x512xf32, #tpu.memory_space<vmem>>, vector<6x32xf32>
    tpu.vector_store %arg10[%c54_502, %c128_503], %325 {strides = array<i32>} : memref<72x512xf32, #tpu.memory_space<vmem>>, vector<6x32xf32>,
    %c331_504 = arith.constant 331 : index
    %c0_505 = arith.constant 0 : index
    %327 = tpu.strided_load %arg9[%c331_504, %c0_505] {strides = array<i32: 2, 1>} : memref<450x32xf32, #tpu.memory_space<vmem>>, vector<6x32xf32>
    %c54_506 = arith.constant 54 : index
    %c160_507 = arith.constant 160 : index
    %328 = vector.load %arg10[%c54_506, %c160_507] : memref<72x512xf32, #tpu.memory_space<vmem>>, vector<6x32xf32>
    tpu.vector_store %arg10[%c54_506, %c160_507], %327 {strides = array<i32>} : memref<72x512xf32, #tpu.memory_space<vmem>>, vector<6x32xf32>,
    %c332_508 = arith.constant 332 : index
    %c0_509 = arith.constant 0 : index
    %329 = tpu.strided_load %arg9[%c332_508, %c0_509] {strides = array<i32: 2, 1>} : memref<450x32xf32, #tpu.memory_space<vmem>>, vector<6x32xf32>
    %c54_510 = arith.constant 54 : index
    %c192_511 = arith.constant 192 : index
    %330 = vector.load %arg10[%c54_510, %c192_511] : memref<72x512xf32, #tpu.memory_space<vmem>>, vector<6x32xf32>
    tpu.vector_store %arg10[%c54_510, %c192_511], %329 {strides = array<i32>} : memref<72x512xf32, #tpu.memory_space<vmem>>, vector<6x32xf32>,
    %c333_512 = arith.constant 333 : index
    %c0_513 = arith.constant 0 : index
    %331 = tpu.strided_load %arg9[%c333_512, %c0_513] {strides = array<i32: 2, 1>} : memref<450x32xf32, #tpu.memory_space<vmem>>, vector<6x32xf32>
    %c54_514 = arith.constant 54 : index
    %c224_515 = arith.constant 224 : index
    %332 = vector.load %arg10[%c54_514, %c224_515] : memref<72x512xf32, #tpu.memory_space<vmem>>, vector<6x32xf32>
    tpu.vector_store %arg10[%c54_514, %c224_515], %331 {strides = array<i32>} : memref<72x512xf32, #tpu.memory_space<vmem>>, vector<6x32xf32>,
    %c345 = arith.constant 345 : index
    %c0_516 = arith.constant 0 : index
    %333 = tpu.strided_load %arg9[%c345, %c0_516] {strides = array<i32: 2, 1>} : memref<450x32xf32, #tpu.memory_space<vmem>>, vector<6x32xf32>
    %c54_517 = arith.constant 54 : index
    %c256_518 = arith.constant 256 : index
    %334 = vector.load %arg10[%c54_517, %c256_518] : memref<72x512xf32, #tpu.memory_space<vmem>>, vector<6x32xf32>
    tpu.vector_store %arg10[%c54_517, %c256_518], %333 {strides = array<i32>} : memref<72x512xf32, #tpu.memory_space<vmem>>, vector<6x32xf32>,
    %c346 = arith.constant 346 : index
    %c0_519 = arith.constant 0 : index
    %335 = tpu.strided_load %arg9[%c346, %c0_519] {strides = array<i32: 2, 1>} : memref<450x32xf32, #tpu.memory_space<vmem>>, vector<6x32xf32>
    %c54_520 = arith.constant 54 : index
    %c288_521 = arith.constant 288 : index
    %336 = vector.load %arg10[%c54_520, %c288_521] : memref<72x512xf32, #tpu.memory_space<vmem>>, vector<6x32xf32>
    tpu.vector_store %arg10[%c54_520, %c288_521], %335 {strides = array<i32>} : memref<72x512xf32, #tpu.memory_space<vmem>>, vector<6x32xf32>,
    %c347 = arith.constant 347 : index
    %c0_522 = arith.constant 0 : index
    %337 = tpu.strided_load %arg9[%c347, %c0_522] {strides = array<i32: 2, 1>} : memref<450x32xf32, #tpu.memory_space<vmem>>, vector<6x32xf32>
    %c54_523 = arith.constant 54 : index
    %c320_524 = arith.constant 320 : index
    %338 = vector.load %arg10[%c54_523, %c320_524] : memref<72x512xf32, #tpu.memory_space<vmem>>, vector<6x32xf32>
    tpu.vector_store %arg10[%c54_523, %c320_524], %337 {strides = array<i32>} : memref<72x512xf32, #tpu.memory_space<vmem>>, vector<6x32xf32>,
    %c348 = arith.constant 348 : index
    %c0_525 = arith.constant 0 : index
    %339 = tpu.strided_load %arg9[%c348, %c0_525] {strides = array<i32: 2, 1>} : memref<450x32xf32, #tpu.memory_space<vmem>>, vector<6x32xf32>
    %c54_526 = arith.constant 54 : index
    %c352_527 = arith.constant 352 : index
    %340 = vector.load %arg10[%c54_526, %c352_527] : memref<72x512xf32, #tpu.memory_space<vmem>>, vector<6x32xf32>
    tpu.vector_store %arg10[%c54_526, %c352_527], %339 {strides = array<i32>} : memref<72x512xf32, #tpu.memory_space<vmem>>, vector<6x32xf32>,
    %c360 = arith.constant 360 : index
    %c0_528 = arith.constant 0 : index
    %341 = tpu.strided_load %arg9[%c360, %c0_528] {strides = array<i32: 2, 1>} : memref<450x32xf32, #tpu.memory_space<vmem>>, vector<6x32xf32>
    %c54_529 = arith.constant 54 : index
    %c384_530 = arith.constant 384 : index
    %342 = vector.load %arg10[%c54_529, %c384_530] : memref<72x512xf32, #tpu.memory_space<vmem>>, vector<6x32xf32>
    tpu.vector_store %arg10[%c54_529, %c384_530], %341 {strides = array<i32>} : memref<72x512xf32, #tpu.memory_space<vmem>>, vector<6x32xf32>,
    %c361 = arith.constant 361 : index
    %c0_531 = arith.constant 0 : index
    %343 = tpu.strided_load %arg9[%c361, %c0_531] {strides = array<i32: 2, 1>} : memref<450x32xf32, #tpu.memory_space<vmem>>, vector<6x32xf32>
    %c54_532 = arith.constant 54 : index
    %c416_533 = arith.constant 416 : index
    %344 = vector.load %arg10[%c54_532, %c416_533] : memref<72x512xf32, #tpu.memory_space<vmem>>, vector<6x32xf32>
    tpu.vector_store %arg10[%c54_532, %c416_533], %343 {strides = array<i32>} : memref<72x512xf32, #tpu.memory_space<vmem>>, vector<6x32xf32>,
    %c362 = arith.constant 362 : index
    %c0_534 = arith.constant 0 : index
    %345 = tpu.strided_load %arg9[%c362, %c0_534] {strides = array<i32: 2, 1>} : memref<450x32xf32, #tpu.memory_space<vmem>>, vector<6x32xf32>
    %c54_535 = arith.constant 54 : index
    %c448_536 = arith.constant 448 : index
    %346 = vector.load %arg10[%c54_535, %c448_536] : memref<72x512xf32, #tpu.memory_space<vmem>>, vector<6x32xf32>
    tpu.vector_store %arg10[%c54_535, %c448_536], %345 {strides = array<i32>} : memref<72x512xf32, #tpu.memory_space<vmem>>, vector<6x32xf32>,
    %c363 = arith.constant 363 : index
    %c0_537 = arith.constant 0 : index
    %347 = tpu.strided_load %arg9[%c363, %c0_537] {strides = array<i32: 2, 1>} : memref<450x32xf32, #tpu.memory_space<vmem>>, vector<6x32xf32>
    %c54_538 = arith.constant 54 : index
    %c480_539 = arith.constant 480 : index
    %348 = vector.load %arg10[%c54_538, %c480_539] : memref<72x512xf32, #tpu.memory_space<vmem>>, vector<6x32xf32>
    tpu.vector_store %arg10[%c54_538, %c480_539], %347 {strides = array<i32>} : memref<72x512xf32, #tpu.memory_space<vmem>>, vector<6x32xf32>,
    %c345_540 = arith.constant 345 : index
    %c0_541 = arith.constant 0 : index
    %349 = tpu.strided_load %arg9[%c345_540, %c0_541] {strides = array<i32: 2, 1>} : memref<450x32xf32, #tpu.memory_space<vmem>>, vector<6x32xf32>
    %c60_542 = arith.constant 60 : index
    %c0_543 = arith.constant 0 : index
    %350 = vector.load %arg10[%c60_542, %c0_543] : memref<72x512xf32, #tpu.memory_space<vmem>>, vector<6x32xf32>
    tpu.vector_store %arg10[%c60_542, %c0_543], %349 {strides = array<i32>} : memref<72x512xf32, #tpu.memory_space<vmem>>, vector<6x32xf32>,
    %c346_544 = arith.constant 346 : index
    %c0_545 = arith.constant 0 : index
    %351 = tpu.strided_load %arg9[%c346_544, %c0_545] {strides = array<i32: 2, 1>} : memref<450x32xf32, #tpu.memory_space<vmem>>, vector<6x32xf32>
    %c60_546 = arith.constant 60 : index
    %c32_547 = arith.constant 32 : index
    %352 = vector.load %arg10[%c60_546, %c32_547] : memref<72x512xf32, #tpu.memory_space<vmem>>, vector<6x32xf32>
    tpu.vector_store %arg10[%c60_546, %c32_547], %351 {strides = array<i32>} : memref<72x512xf32, #tpu.memory_space<vmem>>, vector<6x32xf32>,
    %c347_548 = arith.constant 347 : index
    %c0_549 = arith.constant 0 : index
    %353 = tpu.strided_load %arg9[%c347_548, %c0_549] {strides = array<i32: 2, 1>} : memref<450x32xf32, #tpu.memory_space<vmem>>, vector<6x32xf32>
    %c60_550 = arith.constant 60 : index
    %c64_551 = arith.constant 64 : index
    %354 = vector.load %arg10[%c60_550, %c64_551] : memref<72x512xf32, #tpu.memory_space<vmem>>, vector<6x32xf32>
    tpu.vector_store %arg10[%c60_550, %c64_551], %353 {strides = array<i32>} : memref<72x512xf32, #tpu.memory_space<vmem>>, vector<6x32xf32>,
    %c348_552 = arith.constant 348 : index
    %c0_553 = arith.constant 0 : index
    %355 = tpu.strided_load %arg9[%c348_552, %c0_553] {strides = array<i32: 2, 1>} : memref<450x32xf32, #tpu.memory_space<vmem>>, vector<6x32xf32>
    %c60_554 = arith.constant 60 : index
    %c96_555 = arith.constant 96 : index
    %356 = vector.load %arg10[%c60_554, %c96_555] : memref<72x512xf32, #tpu.memory_space<vmem>>, vector<6x32xf32>
    tpu.vector_store %arg10[%c60_554, %c96_555], %355 {strides = array<i32>} : memref<72x512xf32, #tpu.memory_space<vmem>>, vector<6x32xf32>,
    %c360_556 = arith.constant 360 : index
    %c0_557 = arith.constant 0 : index
    %357 = tpu.strided_load %arg9[%c360_556, %c0_557] {strides = array<i32: 2, 1>} : memref<450x32xf32, #tpu.memory_space<vmem>>, vector<6x32xf32>
    %c60_558 = arith.constant 60 : index
    %c128_559 = arith.constant 128 : index
    %358 = vector.load %arg10[%c60_558, %c128_559] : memref<72x512xf32, #tpu.memory_space<vmem>>, vector<6x32xf32>
    tpu.vector_store %arg10[%c60_558, %c128_559], %357 {strides = array<i32>} : memref<72x512xf32, #tpu.memory_space<vmem>>, vector<6x32xf32>,
    %c361_560 = arith.constant 361 : index
    %c0_561 = arith.constant 0 : index
    %359 = tpu.strided_load %arg9[%c361_560, %c0_561] {strides = array<i32: 2, 1>} : memref<450x32xf32, #tpu.memory_space<vmem>>, vector<6x32xf32>
    %c60_562 = arith.constant 60 : index
    %c160_563 = arith.constant 160 : index
    %360 = vector.load %arg10[%c60_562, %c160_563] : memref<72x512xf32, #tpu.memory_space<vmem>>, vector<6x32xf32>
    tpu.vector_store %arg10[%c60_562, %c160_563], %359 {strides = array<i32>} : memref<72x512xf32, #tpu.memory_space<vmem>>, vector<6x32xf32>,
    %c362_564 = arith.constant 362 : index
    %c0_565 = arith.constant 0 : index
    %361 = tpu.strided_load %arg9[%c362_564, %c0_565] {strides = array<i32: 2, 1>} : memref<450x32xf32, #tpu.memory_space<vmem>>, vector<6x32xf32>
    %c60_566 = arith.constant 60 : index
    %c192_567 = arith.constant 192 : index
    %362 = vector.load %arg10[%c60_566, %c192_567] : memref<72x512xf32, #tpu.memory_space<vmem>>, vector<6x32xf32>
    tpu.vector_store %arg10[%c60_566, %c192_567], %361 {strides = array<i32>} : memref<72x512xf32, #tpu.memory_space<vmem>>, vector<6x32xf32>,
    %c363_568 = arith.constant 363 : index
    %c0_569 = arith.constant 0 : index
    %363 = tpu.strided_load %arg9[%c363_568, %c0_569] {strides = array<i32: 2, 1>} : memref<450x32xf32, #tpu.memory_space<vmem>>, vector<6x32xf32>
    %c60_570 = arith.constant 60 : index
    %c224_571 = arith.constant 224 : index
    %364 = vector.load %arg10[%c60_570, %c224_571] : memref<72x512xf32, #tpu.memory_space<vmem>>, vector<6x32xf32>
    tpu.vector_store %arg10[%c60_570, %c224_571], %363 {strides = array<i32>} : memref<72x512xf32, #tpu.memory_space<vmem>>, vector<6x32xf32>,
    %c375 = arith.constant 375 : index
    %c0_572 = arith.constant 0 : index
    %365 = tpu.strided_load %arg9[%c375, %c0_572] {strides = array<i32: 2, 1>} : memref<450x32xf32, #tpu.memory_space<vmem>>, vector<6x32xf32>
    %c60_573 = arith.constant 60 : index
    %c256_574 = arith.constant 256 : index
    %366 = vector.load %arg10[%c60_573, %c256_574] : memref<72x512xf32, #tpu.memory_space<vmem>>, vector<6x32xf32>
    tpu.vector_store %arg10[%c60_573, %c256_574], %365 {strides = array<i32>} : memref<72x512xf32, #tpu.memory_space<vmem>>, vector<6x32xf32>,
    %c376 = arith.constant 376 : index
    %c0_575 = arith.constant 0 : index
    %367 = tpu.strided_load %arg9[%c376, %c0_575] {strides = array<i32: 2, 1>} : memref<450x32xf32, #tpu.memory_space<vmem>>, vector<6x32xf32>
    %c60_576 = arith.constant 60 : index
    %c288_577 = arith.constant 288 : index
    %368 = vector.load %arg10[%c60_576, %c288_577] : memref<72x512xf32, #tpu.memory_space<vmem>>, vector<6x32xf32>
    tpu.vector_store %arg10[%c60_576, %c288_577], %367 {strides = array<i32>} : memref<72x512xf32, #tpu.memory_space<vmem>>, vector<6x32xf32>,
    %c377 = arith.constant 377 : index
    %c0_578 = arith.constant 0 : index
    %369 = tpu.strided_load %arg9[%c377, %c0_578] {strides = array<i32: 2, 1>} : memref<450x32xf32, #tpu.memory_space<vmem>>, vector<6x32xf32>
    %c60_579 = arith.constant 60 : index
    %c320_580 = arith.constant 320 : index
    %370 = vector.load %arg10[%c60_579, %c320_580] : memref<72x512xf32, #tpu.memory_space<vmem>>, vector<6x32xf32>
    tpu.vector_store %arg10[%c60_579, %c320_580], %369 {strides = array<i32>} : memref<72x512xf32, #tpu.memory_space<vmem>>, vector<6x32xf32>,
    %c378 = arith.constant 378 : index
    %c0_581 = arith.constant 0 : index
    %371 = tpu.strided_load %arg9[%c378, %c0_581] {strides = array<i32: 2, 1>} : memref<450x32xf32, #tpu.memory_space<vmem>>, vector<6x32xf32>
    %c60_582 = arith.constant 60 : index
    %c352_583 = arith.constant 352 : index
    %372 = vector.load %arg10[%c60_582, %c352_583] : memref<72x512xf32, #tpu.memory_space<vmem>>, vector<6x32xf32>
    tpu.vector_store %arg10[%c60_582, %c352_583], %371 {strides = array<i32>} : memref<72x512xf32, #tpu.memory_space<vmem>>, vector<6x32xf32>,
    %c390 = arith.constant 390 : index
    %c0_584 = arith.constant 0 : index
    %373 = tpu.strided_load %arg9[%c390, %c0_584] {strides = array<i32: 2, 1>} : memref<450x32xf32, #tpu.memory_space<vmem>>, vector<6x32xf32>
    %c60_585 = arith.constant 60 : index
    %c384_586 = arith.constant 384 : index
    %374 = vector.load %arg10[%c60_585, %c384_586] : memref<72x512xf32, #tpu.memory_space<vmem>>, vector<6x32xf32>
    tpu.vector_store %arg10[%c60_585, %c384_586], %373 {strides = array<i32>} : memref<72x512xf32, #tpu.memory_space<vmem>>, vector<6x32xf32>,
    %c391 = arith.constant 391 : index
    %c0_587 = arith.constant 0 : index
    %375 = tpu.strided_load %arg9[%c391, %c0_587] {strides = array<i32: 2, 1>} : memref<450x32xf32, #tpu.memory_space<vmem>>, vector<6x32xf32>
    %c60_588 = arith.constant 60 : index
    %c416_589 = arith.constant 416 : index
    %376 = vector.load %arg10[%c60_588, %c416_589] : memref<72x512xf32, #tpu.memory_space<vmem>>, vector<6x32xf32>
    tpu.vector_store %arg10[%c60_588, %c416_589], %375 {strides = array<i32>} : memref<72x512xf32, #tpu.memory_space<vmem>>, vector<6x32xf32>,
    %c392 = arith.constant 392 : index
    %c0_590 = arith.constant 0 : index
    %377 = tpu.strided_load %arg9[%c392, %c0_590] {strides = array<i32: 2, 1>} : memref<450x32xf32, #tpu.memory_space<vmem>>, vector<6x32xf32>
    %c60_591 = arith.constant 60 : index
    %c448_592 = arith.constant 448 : index
    %378 = vector.load %arg10[%c60_591, %c448_592] : memref<72x512xf32, #tpu.memory_space<vmem>>, vector<6x32xf32>
    tpu.vector_store %arg10[%c60_591, %c448_592], %377 {strides = array<i32>} : memref<72x512xf32, #tpu.memory_space<vmem>>, vector<6x32xf32>,
    %c393 = arith.constant 393 : index
    %c0_593 = arith.constant 0 : index
    %379 = tpu.strided_load %arg9[%c393, %c0_593] {strides = array<i32: 2, 1>} : memref<450x32xf32, #tpu.memory_space<vmem>>, vector<6x32xf32>
    %c60_594 = arith.constant 60 : index
    %c480_595 = arith.constant 480 : index
    %380 = vector.load %arg10[%c60_594, %c480_595] : memref<72x512xf32, #tpu.memory_space<vmem>>, vector<6x32xf32>
    tpu.vector_store %arg10[%c60_594, %c480_595], %379 {strides = array<i32>} : memref<72x512xf32, #tpu.memory_space<vmem>>, vector<6x32xf32>,
    %c375_596 = arith.constant 375 : index
    %c0_597 = arith.constant 0 : index
    %381 = tpu.strided_load %arg9[%c375_596, %c0_597] {strides = array<i32: 2, 1>} : memref<450x32xf32, #tpu.memory_space<vmem>>, vector<6x32xf32>
    %c66 = arith.constant 66 : index
    %c0_598 = arith.constant 0 : index
    %382 = vector.load %arg10[%c66, %c0_598] : memref<72x512xf32, #tpu.memory_space<vmem>>, vector<6x32xf32>
    tpu.vector_store %arg10[%c66, %c0_598], %381 {strides = array<i32>} : memref<72x512xf32, #tpu.memory_space<vmem>>, vector<6x32xf32>,
    %c376_599 = arith.constant 376 : index
    %c0_600 = arith.constant 0 : index
    %383 = tpu.strided_load %arg9[%c376_599, %c0_600] {strides = array<i32: 2, 1>} : memref<450x32xf32, #tpu.memory_space<vmem>>, vector<6x32xf32>
    %c66_601 = arith.constant 66 : index
    %c32_602 = arith.constant 32 : index
    %384 = vector.load %arg10[%c66_601, %c32_602] : memref<72x512xf32, #tpu.memory_space<vmem>>, vector<6x32xf32>
    tpu.vector_store %arg10[%c66_601, %c32_602], %383 {strides = array<i32>} : memref<72x512xf32, #tpu.memory_space<vmem>>, vector<6x32xf32>,
    %c377_603 = arith.constant 377 : index
    %c0_604 = arith.constant 0 : index
    %385 = tpu.strided_load %arg9[%c377_603, %c0_604] {strides = array<i32: 2, 1>} : memref<450x32xf32, #tpu.memory_space<vmem>>, vector<6x32xf32>
    %c66_605 = arith.constant 66 : index
    %c64_606 = arith.constant 64 : index
    %386 = vector.load %arg10[%c66_605, %c64_606] : memref<72x512xf32, #tpu.memory_space<vmem>>, vector<6x32xf32>
    tpu.vector_store %arg10[%c66_605, %c64_606], %385 {strides = array<i32>} : memref<72x512xf32, #tpu.memory_space<vmem>>, vector<6x32xf32>,
    %c378_607 = arith.constant 378 : index
    %c0_608 = arith.constant 0 : index
    %387 = tpu.strided_load %arg9[%c378_607, %c0_608] {strides = array<i32: 2, 1>} : memref<450x32xf32, #tpu.memory_space<vmem>>, vector<6x32xf32>
    %c66_609 = arith.constant 66 : index
    %c96_610 = arith.constant 96 : index
    %388 = vector.load %arg10[%c66_609, %c96_610] : memref<72x512xf32, #tpu.memory_space<vmem>>, vector<6x32xf32>
    tpu.vector_store %arg10[%c66_609, %c96_610], %387 {strides = array<i32>} : memref<72x512xf32, #tpu.memory_space<vmem>>, vector<6x32xf32>,
    %c390_611 = arith.constant 390 : index
    %c0_612 = arith.constant 0 : index
    %389 = tpu.strided_load %arg9[%c390_611, %c0_612] {strides = array<i32: 2, 1>} : memref<450x32xf32, #tpu.memory_space<vmem>>, vector<6x32xf32>
    %c66_613 = arith.constant 66 : index
    %c128_614 = arith.constant 128 : index
    %390 = vector.load %arg10[%c66_613, %c128_614] : memref<72x512xf32, #tpu.memory_space<vmem>>, vector<6x32xf32>
    tpu.vector_store %arg10[%c66_613, %c128_614], %389 {strides = array<i32>} : memref<72x512xf32, #tpu.memory_space<vmem>>, vector<6x32xf32>,
    %c391_615 = arith.constant 391 : index
    %c0_616 = arith.constant 0 : index
    %391 = tpu.strided_load %arg9[%c391_615, %c0_616] {strides = array<i32: 2, 1>} : memref<450x32xf32, #tpu.memory_space<vmem>>, vector<6x32xf32>
    %c66_617 = arith.constant 66 : index
    %c160_618 = arith.constant 160 : index
    %392 = vector.load %arg10[%c66_617, %c160_618] : memref<72x512xf32, #tpu.memory_space<vmem>>, vector<6x32xf32>
    tpu.vector_store %arg10[%c66_617, %c160_618], %391 {strides = array<i32>} : memref<72x512xf32, #tpu.memory_space<vmem>>, vector<6x32xf32>,
    %c392_619 = arith.constant 392 : index
    %c0_620 = arith.constant 0 : index
    %393 = tpu.strided_load %arg9[%c392_619, %c0_620] {strides = array<i32: 2, 1>} : memref<450x32xf32, #tpu.memory_space<vmem>>, vector<6x32xf32>
    %c66_621 = arith.constant 66 : index
    %c192_622 = arith.constant 192 : index
    %394 = vector.load %arg10[%c66_621, %c192_622] : memref<72x512xf32, #tpu.memory_space<vmem>>, vector<6x32xf32>
    tpu.vector_store %arg10[%c66_621, %c192_622], %393 {strides = array<i32>} : memref<72x512xf32, #tpu.memory_space<vmem>>, vector<6x32xf32>,
    %c393_623 = arith.constant 393 : index
    %c0_624 = arith.constant 0 : index
    %395 = tpu.strided_load %arg9[%c393_623, %c0_624] {strides = array<i32: 2, 1>} : memref<450x32xf32, #tpu.memory_space<vmem>>, vector<6x32xf32>
    %c66_625 = arith.constant 66 : index
    %c224_626 = arith.constant 224 : index
    %396 = vector.load %arg10[%c66_625, %c224_626] : memref<72x512xf32, #tpu.memory_space<vmem>>, vector<6x32xf32>
    tpu.vector_store %arg10[%c66_625, %c224_626], %395 {strides = array<i32>} : memref<72x512xf32, #tpu.memory_space<vmem>>, vector<6x32xf32>,
    %c405 = arith.constant 405 : index
    %c0_627 = arith.constant 0 : index
    %397 = tpu.strided_load %arg9[%c405, %c0_627] {strides = array<i32: 2, 1>} : memref<450x32xf32, #tpu.memory_space<vmem>>, vector<6x32xf32>
    %c66_628 = arith.constant 66 : index
    %c256_629 = arith.constant 256 : index
    %398 = vector.load %arg10[%c66_628, %c256_629] : memref<72x512xf32, #tpu.memory_space<vmem>>, vector<6x32xf32>
    tpu.vector_store %arg10[%c66_628, %c256_629], %397 {strides = array<i32>} : memref<72x512xf32, #tpu.memory_space<vmem>>, vector<6x32xf32>,
    %c406 = arith.constant 406 : index
    %c0_630 = arith.constant 0 : index
    %399 = tpu.strided_load %arg9[%c406, %c0_630] {strides = array<i32: 2, 1>} : memref<450x32xf32, #tpu.memory_space<vmem>>, vector<6x32xf32>
    %c66_631 = arith.constant 66 : index
    %c288_632 = arith.constant 288 : index
    %400 = vector.load %arg10[%c66_631, %c288_632] : memref<72x512xf32, #tpu.memory_space<vmem>>, vector<6x32xf32>
    tpu.vector_store %arg10[%c66_631, %c288_632], %399 {strides = array<i32>} : memref<72x512xf32, #tpu.memory_space<vmem>>, vector<6x32xf32>,
    %c407 = arith.constant 407 : index
    %c0_633 = arith.constant 0 : index
    %401 = tpu.strided_load %arg9[%c407, %c0_633] {strides = array<i32: 2, 1>} : memref<450x32xf32, #tpu.memory_space<vmem>>, vector<6x32xf32>
    %c66_634 = arith.constant 66 : index
    %c320_635 = arith.constant 320 : index
    %402 = vector.load %arg10[%c66_634, %c320_635] : memref<72x512xf32, #tpu.memory_space<vmem>>, vector<6x32xf32>
    tpu.vector_store %arg10[%c66_634, %c320_635], %401 {strides = array<i32>} : memref<72x512xf32, #tpu.memory_space<vmem>>, vector<6x32xf32>,
    %c408 = arith.constant 408 : index
    %c0_636 = arith.constant 0 : index
    %403 = tpu.strided_load %arg9[%c408, %c0_636] {strides = array<i32: 2, 1>} : memref<450x32xf32, #tpu.memory_space<vmem>>, vector<6x32xf32>
    %c66_637 = arith.constant 66 : index
    %c352_638 = arith.constant 352 : index
    %404 = vector.load %arg10[%c66_637, %c352_638] : memref<72x512xf32, #tpu.memory_space<vmem>>, vector<6x32xf32>
    tpu.vector_store %arg10[%c66_637, %c352_638], %403 {strides = array<i32>} : memref<72x512xf32, #tpu.memory_space<vmem>>, vector<6x32xf32>,
    %c420 = arith.constant 420 : index
    %c0_639 = arith.constant 0 : index
    %405 = tpu.strided_load %arg9[%c420, %c0_639] {strides = array<i32: 2, 1>} : memref<450x32xf32, #tpu.memory_space<vmem>>, vector<6x32xf32>
    %c66_640 = arith.constant 66 : index
    %c384_641 = arith.constant 384 : index
    %406 = vector.load %arg10[%c66_640, %c384_641] : memref<72x512xf32, #tpu.memory_space<vmem>>, vector<6x32xf32>
    tpu.vector_store %arg10[%c66_640, %c384_641], %405 {strides = array<i32>} : memref<72x512xf32, #tpu.memory_space<vmem>>, vector<6x32xf32>,
    %c421 = arith.constant 421 : index
    %c0_642 = arith.constant 0 : index
    %407 = tpu.strided_load %arg9[%c421, %c0_642] {strides = array<i32: 2, 1>} : memref<450x32xf32, #tpu.memory_space<vmem>>, vector<6x32xf32>
    %c66_643 = arith.constant 66 : index
    %c416_644 = arith.constant 416 : index
    %408 = vector.load %arg10[%c66_643, %c416_644] : memref<72x512xf32, #tpu.memory_space<vmem>>, vector<6x32xf32>
    tpu.vector_store %arg10[%c66_643, %c416_644], %407 {strides = array<i32>} : memref<72x512xf32, #tpu.memory_space<vmem>>, vector<6x32xf32>,
    %c422 = arith.constant 422 : index
    %c0_645 = arith.constant 0 : index
    %409 = tpu.strided_load %arg9[%c422, %c0_645] {strides = array<i32: 2, 1>} : memref<450x32xf32, #tpu.memory_space<vmem>>, vector<6x32xf32>
    %c66_646 = arith.constant 66 : index
    %c448_647 = arith.constant 448 : index
    %410 = vector.load %arg10[%c66_646, %c448_647] : memref<72x512xf32, #tpu.memory_space<vmem>>, vector<6x32xf32>
    tpu.vector_store %arg10[%c66_646, %c448_647], %409 {strides = array<i32>} : memref<72x512xf32, #tpu.memory_space<vmem>>, vector<6x32xf32>,
    %c423 = arith.constant 423 : index
    %c0_648 = arith.constant 0 : index
    %411 = tpu.strided_load %arg9[%c423, %c0_648] {strides = array<i32: 2, 1>} : memref<450x32xf32, #tpu.memory_space<vmem>>, vector<6x32xf32>
    %c66_649 = arith.constant 66 : index
    %c480_650 = arith.constant 480 : index
    %412 = vector.load %arg10[%c66_649, %c480_650] : memref<72x512xf32, #tpu.memory_space<vmem>>, vector<6x32xf32>
    tpu.vector_store %arg10[%c66_649, %c480_650], %411 {strides = array<i32>} : memref<72x512xf32, #tpu.memory_space<vmem>>, vector<6x32xf32>,
    %c0_651 = arith.constant 0 : index
    %c0_652 = arith.constant 0 : index
    %413 = vector.load %arg10[%c0_651, %c0_652] : memref<72x512xf32, #tpu.memory_space<vmem>>, vector<72x512xf32>
    %414 = arith.truncf %413 : vector<72x512xf32> to vector<72x512xbf16>
    %c0_653 = arith.constant 0 : index
    %c0_654 = arith.constant 0 : index
    %415 = vector.load %arg2[%c0_653, %c0_654] : memref<512x32xbf16, #tpu.memory_space<vmem>>, vector<512x32xbf16>
    %cst_655 = arith.constant dense<0.000000e+00> : vector<72x32xf32>
    %416 = tpu.matmul %414, %415, %cst_655 {dimension_numbers = #tpu.dot_dimension_numbers<[1], [0], [0], [1], [0, 0, 1, 1], [], []>} : vector<72x512xbf16>, vector<512x32xbf16>, vector<72x32xf32> -> vector<72x32xf32>
    %c2_656 = arith.constant 2 : index
    %c0_657 = arith.constant 0 : index
    %417 = vector.load %arg5[%c2_656, %c0_657] : memref<8x32xf32, #tpu.memory_space<vmem>>, vector<1x32xf32>
    %c3_658 = arith.constant 3 : index
    %c0_659 = arith.constant 0 : index
    %418 = vector.load %arg5[%c3_658, %c0_659] : memref<8x32xf32, #tpu.memory_space<vmem>>, vector<1x32xf32>
    %419 = arith.mulf %416, %416 : vector<72x32xf32>
    %420 = tpu.concatenate %416, %419 in 1 : vector<72x32xf32>, vector<72x32xf32> -> vector<72x64xf32>
    %cst_660 = arith.constant dense<0.000000e+00> : vector<64xf32>
    %421 = vector.multi_reduction <add>, %420, %cst_660 [0] : vector<72x64xf32> to vector<64xf32>
    %422 = vector.shape_cast %421 : vector<64xf32> to vector<1x64xf32>
    %cst_661 = arith.constant 0.013888889 : f32
    %423 = vector.broadcast %cst_661 : f32 to vector<1x64xf32>
    %424 = arith.mulf %422, %423 : vector<1x64xf32>
    %425 = vector.extract_strided_slice %424 {offsets = [0, 0], sizes = [1, 32], strides = [1, 1]} : vector<1x64xf32> to vector<1x32xf32>
    %426 = vector.extract_strided_slice %424 {offsets = [0, 32], sizes = [1, 32], strides = [1, 1]} : vector<1x64xf32> to vector<1x32xf32>
    %427 = arith.mulf %425, %425 : vector<1x32xf32>
    %428 = arith.subf %426, %427 : vector<1x32xf32>
    %cst_662 = arith.constant 9.99999974E-6 : f32
    %429 = vector.broadcast %cst_662 : f32 to vector<1x32xf32>
    %430 = arith.addf %428, %429 : vector<1x32xf32>
    %431 = math.rsqrt %430 : vector<1x32xf32>
    %432 = vector.broadcast %425 : vector<1x32xf32> to vector<72x32xf32>
    %433 = arith.subf %416, %432 : vector<72x32xf32>
    %434 = vector.broadcast %431 : vector<1x32xf32> to vector<72x32xf32>
    %435 = arith.mulf %433, %434 : vector<72x32xf32>
    %436 = vector.broadcast %417 : vector<1x32xf32> to vector<72x32xf32>
    %437 = arith.mulf %436, %435 : vector<72x32xf32>
    %438 = vector.broadcast %418 : vector<1x32xf32> to vector<72x32xf32>
    %439 = arith.addf %437, %438 : vector<72x32xf32>
    %cst_663 = arith.constant 0.000000e+00 : f32
    %440 = vector.broadcast %cst_663 : f32 to vector<72x32xf32>
    %441 = arith.maximumf %439, %440 : vector<72x32xf32>
    %c0_664 = arith.constant 0 : index
    %c0_665 = arith.constant 0 : index
    %442 = vector.load %arg11[%c0_664, %c0_665] : memref<72x32xf32, #tpu.memory_space<vmem>>, vector<72x32xf32>
    tpu.vector_store %arg11[%c0_664, %c0_665], %441 {strides = array<i32>} : memref<72x32xf32, #tpu.memory_space<vmem>>, vector<72x32xf32>,
    %c0_666 = arith.constant 0 : index
    %c0_667 = arith.constant 0 : index
    %443 = tpu.strided_load %arg11[%c0_666, %c0_667] {strides = array<i32: 2, 1>} : memref<72x32xf32, #tpu.memory_space<vmem>>, vector<2x32xf32>
    %c0_668 = arith.constant 0 : index
    %c0_669 = arith.constant 0 : index
    %444 = vector.load %arg12[%c0_668, %c0_669] : memref<8x512xf32, #tpu.memory_space<vmem>>, vector<2x32xf32>
    tpu.vector_store %arg12[%c0_668, %c0_669], %443 {strides = array<i32>} : memref<8x512xf32, #tpu.memory_space<vmem>>, vector<2x32xf32>,
    %c1_670 = arith.constant 1 : index
    %c0_671 = arith.constant 0 : index
    %445 = tpu.strided_load %arg11[%c1_670, %c0_671] {strides = array<i32: 2, 1>} : memref<72x32xf32, #tpu.memory_space<vmem>>, vector<2x32xf32>
    %c0_672 = arith.constant 0 : index
    %c32_673 = arith.constant 32 : index
    %446 = vector.load %arg12[%c0_672, %c32_673] : memref<8x512xf32, #tpu.memory_space<vmem>>, vector<2x32xf32>
    tpu.vector_store %arg12[%c0_672, %c32_673], %445 {strides = array<i32>} : memref<8x512xf32, #tpu.memory_space<vmem>>, vector<2x32xf32>,
    %c2_674 = arith.constant 2 : index
    %c0_675 = arith.constant 0 : index
    %447 = tpu.strided_load %arg11[%c2_674, %c0_675] {strides = array<i32: 2, 1>} : memref<72x32xf32, #tpu.memory_space<vmem>>, vector<2x32xf32>
    %c0_676 = arith.constant 0 : index
    %c64_677 = arith.constant 64 : index
    %448 = vector.load %arg12[%c0_676, %c64_677] : memref<8x512xf32, #tpu.memory_space<vmem>>, vector<2x32xf32>
    tpu.vector_store %arg12[%c0_676, %c64_677], %447 {strides = array<i32>} : memref<8x512xf32, #tpu.memory_space<vmem>>, vector<2x32xf32>,
    %c3_678 = arith.constant 3 : index
    %c0_679 = arith.constant 0 : index
    %449 = tpu.strided_load %arg11[%c3_678, %c0_679] {strides = array<i32: 2, 1>} : memref<72x32xf32, #tpu.memory_space<vmem>>, vector<2x32xf32>
    %c0_680 = arith.constant 0 : index
    %c96_681 = arith.constant 96 : index
    %450 = vector.load %arg12[%c0_680, %c96_681] : memref<8x512xf32, #tpu.memory_space<vmem>>, vector<2x32xf32>
    tpu.vector_store %arg12[%c0_680, %c96_681], %449 {strides = array<i32>} : memref<8x512xf32, #tpu.memory_space<vmem>>, vector<2x32xf32>,
    %c6_682 = arith.constant 6 : index
    %c0_683 = arith.constant 0 : index
    %451 = tpu.strided_load %arg11[%c6_682, %c0_683] {strides = array<i32: 2, 1>} : memref<72x32xf32, #tpu.memory_space<vmem>>, vector<2x32xf32>
    %c0_684 = arith.constant 0 : index
    %c128_685 = arith.constant 128 : index
    %452 = vector.load %arg12[%c0_684, %c128_685] : memref<8x512xf32, #tpu.memory_space<vmem>>, vector<2x32xf32>
    tpu.vector_store %arg12[%c0_684, %c128_685], %451 {strides = array<i32>} : memref<8x512xf32, #tpu.memory_space<vmem>>, vector<2x32xf32>,
    %c7 = arith.constant 7 : index
    %c0_686 = arith.constant 0 : index
    %453 = tpu.strided_load %arg11[%c7, %c0_686] {strides = array<i32: 2, 1>} : memref<72x32xf32, #tpu.memory_space<vmem>>, vector<2x32xf32>
    %c0_687 = arith.constant 0 : index
    %c160_688 = arith.constant 160 : index
    %454 = vector.load %arg12[%c0_687, %c160_688] : memref<8x512xf32, #tpu.memory_space<vmem>>, vector<2x32xf32>
    tpu.vector_store %arg12[%c0_687, %c160_688], %453 {strides = array<i32>} : memref<8x512xf32, #tpu.memory_space<vmem>>, vector<2x32xf32>,
    %c8 = arith.constant 8 : index
    %c0_689 = arith.constant 0 : index
    %455 = tpu.strided_load %arg11[%c8, %c0_689] {strides = array<i32: 2, 1>} : memref<72x32xf32, #tpu.memory_space<vmem>>, vector<2x32xf32>
    %c0_690 = arith.constant 0 : index
    %c192_691 = arith.constant 192 : index
    %456 = vector.load %arg12[%c0_690, %c192_691] : memref<8x512xf32, #tpu.memory_space<vmem>>, vector<2x32xf32>
    tpu.vector_store %arg12[%c0_690, %c192_691], %455 {strides = array<i32>} : memref<8x512xf32, #tpu.memory_space<vmem>>, vector<2x32xf32>,
    %c9 = arith.constant 9 : index
    %c0_692 = arith.constant 0 : index
    %457 = tpu.strided_load %arg11[%c9, %c0_692] {strides = array<i32: 2, 1>} : memref<72x32xf32, #tpu.memory_space<vmem>>, vector<2x32xf32>
    %c0_693 = arith.constant 0 : index
    %c224_694 = arith.constant 224 : index
    %458 = vector.load %arg12[%c0_693, %c224_694] : memref<8x512xf32, #tpu.memory_space<vmem>>, vector<2x32xf32>
    tpu.vector_store %arg12[%c0_693, %c224_694], %457 {strides = array<i32>} : memref<8x512xf32, #tpu.memory_space<vmem>>, vector<2x32xf32>,
    %c12_695 = arith.constant 12 : index
    %c0_696 = arith.constant 0 : index
    %459 = tpu.strided_load %arg11[%c12_695, %c0_696] {strides = array<i32: 2, 1>} : memref<72x32xf32, #tpu.memory_space<vmem>>, vector<2x32xf32>
    %c0_697 = arith.constant 0 : index
    %c256_698 = arith.constant 256 : index
    %460 = vector.load %arg12[%c0_697, %c256_698] : memref<8x512xf32, #tpu.memory_space<vmem>>, vector<2x32xf32>
    tpu.vector_store %arg12[%c0_697, %c256_698], %459 {strides = array<i32>} : memref<8x512xf32, #tpu.memory_space<vmem>>, vector<2x32xf32>,
    %c13 = arith.constant 13 : index
    %c0_699 = arith.constant 0 : index
    %461 = tpu.strided_load %arg11[%c13, %c0_699] {strides = array<i32: 2, 1>} : memref<72x32xf32, #tpu.memory_space<vmem>>, vector<2x32xf32>
    %c0_700 = arith.constant 0 : index
    %c288_701 = arith.constant 288 : index
    %462 = vector.load %arg12[%c0_700, %c288_701] : memref<8x512xf32, #tpu.memory_space<vmem>>, vector<2x32xf32>
    tpu.vector_store %arg12[%c0_700, %c288_701], %461 {strides = array<i32>} : memref<8x512xf32, #tpu.memory_space<vmem>>, vector<2x32xf32>,
    %c14 = arith.constant 14 : index
    %c0_702 = arith.constant 0 : index
    %463 = tpu.strided_load %arg11[%c14, %c0_702] {strides = array<i32: 2, 1>} : memref<72x32xf32, #tpu.memory_space<vmem>>, vector<2x32xf32>
    %c0_703 = arith.constant 0 : index
    %c320_704 = arith.constant 320 : index
    %464 = vector.load %arg12[%c0_703, %c320_704] : memref<8x512xf32, #tpu.memory_space<vmem>>, vector<2x32xf32>
    tpu.vector_store %arg12[%c0_703, %c320_704], %463 {strides = array<i32>} : memref<8x512xf32, #tpu.memory_space<vmem>>, vector<2x32xf32>,
    %c15_705 = arith.constant 15 : index
    %c0_706 = arith.constant 0 : index
    %465 = tpu.strided_load %arg11[%c15_705, %c0_706] {strides = array<i32: 2, 1>} : memref<72x32xf32, #tpu.memory_space<vmem>>, vector<2x32xf32>
    %c0_707 = arith.constant 0 : index
    %c352_708 = arith.constant 352 : index
    %466 = vector.load %arg12[%c0_707, %c352_708] : memref<8x512xf32, #tpu.memory_space<vmem>>, vector<2x32xf32>
    tpu.vector_store %arg12[%c0_707, %c352_708], %465 {strides = array<i32>} : memref<8x512xf32, #tpu.memory_space<vmem>>, vector<2x32xf32>,
    %c18_709 = arith.constant 18 : index
    %c0_710 = arith.constant 0 : index
    %467 = tpu.strided_load %arg11[%c18_709, %c0_710] {strides = array<i32: 2, 1>} : memref<72x32xf32, #tpu.memory_space<vmem>>, vector<2x32xf32>
    %c0_711 = arith.constant 0 : index
    %c384_712 = arith.constant 384 : index
    %468 = vector.load %arg12[%c0_711, %c384_712] : memref<8x512xf32, #tpu.memory_space<vmem>>, vector<2x32xf32>
    tpu.vector_store %arg12[%c0_711, %c384_712], %467 {strides = array<i32>} : memref<8x512xf32, #tpu.memory_space<vmem>>, vector<2x32xf32>,
    %c19 = arith.constant 19 : index
    %c0_713 = arith.constant 0 : index
    %469 = tpu.strided_load %arg11[%c19, %c0_713] {strides = array<i32: 2, 1>} : memref<72x32xf32, #tpu.memory_space<vmem>>, vector<2x32xf32>
    %c0_714 = arith.constant 0 : index
    %c416_715 = arith.constant 416 : index
    %470 = vector.load %arg12[%c0_714, %c416_715] : memref<8x512xf32, #tpu.memory_space<vmem>>, vector<2x32xf32>
    tpu.vector_store %arg12[%c0_714, %c416_715], %469 {strides = array<i32>} : memref<8x512xf32, #tpu.memory_space<vmem>>, vector<2x32xf32>,
    %c20 = arith.constant 20 : index
    %c0_716 = arith.constant 0 : index
    %471 = tpu.strided_load %arg11[%c20, %c0_716] {strides = array<i32: 2, 1>} : memref<72x32xf32, #tpu.memory_space<vmem>>, vector<2x32xf32>
    %c0_717 = arith.constant 0 : index
    %c448_718 = arith.constant 448 : index
    %472 = vector.load %arg12[%c0_717, %c448_718] : memref<8x512xf32, #tpu.memory_space<vmem>>, vector<2x32xf32>
    tpu.vector_store %arg12[%c0_717, %c448_718], %471 {strides = array<i32>} : memref<8x512xf32, #tpu.memory_space<vmem>>, vector<2x32xf32>,
    %c21 = arith.constant 21 : index
    %c0_719 = arith.constant 0 : index
    %473 = tpu.strided_load %arg11[%c21, %c0_719] {strides = array<i32: 2, 1>} : memref<72x32xf32, #tpu.memory_space<vmem>>, vector<2x32xf32>
    %c0_720 = arith.constant 0 : index
    %c480_721 = arith.constant 480 : index
    %474 = vector.load %arg12[%c0_720, %c480_721] : memref<8x512xf32, #tpu.memory_space<vmem>>, vector<2x32xf32>
    tpu.vector_store %arg12[%c0_720, %c480_721], %473 {strides = array<i32>} : memref<8x512xf32, #tpu.memory_space<vmem>>, vector<2x32xf32>,
    %c12_722 = arith.constant 12 : index
    %c0_723 = arith.constant 0 : index
    %475 = tpu.strided_load %arg11[%c12_722, %c0_723] {strides = array<i32: 2, 1>} : memref<72x32xf32, #tpu.memory_space<vmem>>, vector<2x32xf32>
    %c2_724 = arith.constant 2 : index
    %c0_725 = arith.constant 0 : index
    %476 = vector.load %arg12[%c2_724, %c0_725] : memref<8x512xf32, #tpu.memory_space<vmem>>, vector<2x32xf32>
    tpu.vector_store %arg12[%c2_724, %c0_725], %475 {strides = array<i32>} : memref<8x512xf32, #tpu.memory_space<vmem>>, vector<2x32xf32>,
    %c13_726 = arith.constant 13 : index
    %c0_727 = arith.constant 0 : index
    %477 = tpu.strided_load %arg11[%c13_726, %c0_727] {strides = array<i32: 2, 1>} : memref<72x32xf32, #tpu.memory_space<vmem>>, vector<2x32xf32>
    %c2_728 = arith.constant 2 : index
    %c32_729 = arith.constant 32 : index
    %478 = vector.load %arg12[%c2_728, %c32_729] : memref<8x512xf32, #tpu.memory_space<vmem>>, vector<2x32xf32>
    tpu.vector_store %arg12[%c2_728, %c32_729], %477 {strides = array<i32>} : memref<8x512xf32, #tpu.memory_space<vmem>>, vector<2x32xf32>,
    %c14_730 = arith.constant 14 : index
    %c0_731 = arith.constant 0 : index
    %479 = tpu.strided_load %arg11[%c14_730, %c0_731] {strides = array<i32: 2, 1>} : memref<72x32xf32, #tpu.memory_space<vmem>>, vector<2x32xf32>
    %c2_732 = arith.constant 2 : index
    %c64_733 = arith.constant 64 : index
    %480 = vector.load %arg12[%c2_732, %c64_733] : memref<8x512xf32, #tpu.memory_space<vmem>>, vector<2x32xf32>
    tpu.vector_store %arg12[%c2_732, %c64_733], %479 {strides = array<i32>} : memref<8x512xf32, #tpu.memory_space<vmem>>, vector<2x32xf32>,
    %c15_734 = arith.constant 15 : index
    %c0_735 = arith.constant 0 : index
    %481 = tpu.strided_load %arg11[%c15_734, %c0_735] {strides = array<i32: 2, 1>} : memref<72x32xf32, #tpu.memory_space<vmem>>, vector<2x32xf32>
    %c2_736 = arith.constant 2 : index
    %c96_737 = arith.constant 96 : index
    %482 = vector.load %arg12[%c2_736, %c96_737] : memref<8x512xf32, #tpu.memory_space<vmem>>, vector<2x32xf32>
    tpu.vector_store %arg12[%c2_736, %c96_737], %481 {strides = array<i32>} : memref<8x512xf32, #tpu.memory_space<vmem>>, vector<2x32xf32>,
    %c18_738 = arith.constant 18 : index
    %c0_739 = arith.constant 0 : index
    %483 = tpu.strided_load %arg11[%c18_738, %c0_739] {strides = array<i32: 2, 1>} : memref<72x32xf32, #tpu.memory_space<vmem>>, vector<2x32xf32>
    %c2_740 = arith.constant 2 : index
    %c128_741 = arith.constant 128 : index
    %484 = vector.load %arg12[%c2_740, %c128_741] : memref<8x512xf32, #tpu.memory_space<vmem>>, vector<2x32xf32>
    tpu.vector_store %arg12[%c2_740, %c128_741], %483 {strides = array<i32>} : memref<8x512xf32, #tpu.memory_space<vmem>>, vector<2x32xf32>,
    %c19_742 = arith.constant 19 : index
    %c0_743 = arith.constant 0 : index
    %485 = tpu.strided_load %arg11[%c19_742, %c0_743] {strides = array<i32: 2, 1>} : memref<72x32xf32, #tpu.memory_space<vmem>>, vector<2x32xf32>
    %c2_744 = arith.constant 2 : index
    %c160_745 = arith.constant 160 : index
    %486 = vector.load %arg12[%c2_744, %c160_745] : memref<8x512xf32, #tpu.memory_space<vmem>>, vector<2x32xf32>
    tpu.vector_store %arg12[%c2_744, %c160_745], %485 {strides = array<i32>} : memref<8x512xf32, #tpu.memory_space<vmem>>, vector<2x32xf32>,
    %c20_746 = arith.constant 20 : index
    %c0_747 = arith.constant 0 : index
    %487 = tpu.strided_load %arg11[%c20_746, %c0_747] {strides = array<i32: 2, 1>} : memref<72x32xf32, #tpu.memory_space<vmem>>, vector<2x32xf32>
    %c2_748 = arith.constant 2 : index
    %c192_749 = arith.constant 192 : index
    %488 = vector.load %arg12[%c2_748, %c192_749] : memref<8x512xf32, #tpu.memory_space<vmem>>, vector<2x32xf32>
    tpu.vector_store %arg12[%c2_748, %c192_749], %487 {strides = array<i32>} : memref<8x512xf32, #tpu.memory_space<vmem>>, vector<2x32xf32>,
    %c21_750 = arith.constant 21 : index
    %c0_751 = arith.constant 0 : index
    %489 = tpu.strided_load %arg11[%c21_750, %c0_751] {strides = array<i32: 2, 1>} : memref<72x32xf32, #tpu.memory_space<vmem>>, vector<2x32xf32>
    %c2_752 = arith.constant 2 : index
    %c224_753 = arith.constant 224 : index
    %490 = vector.load %arg12[%c2_752, %c224_753] : memref<8x512xf32, #tpu.memory_space<vmem>>, vector<2x32xf32>
    tpu.vector_store %arg12[%c2_752, %c224_753], %489 {strides = array<i32>} : memref<8x512xf32, #tpu.memory_space<vmem>>, vector<2x32xf32>,
    %c24_754 = arith.constant 24 : index
    %c0_755 = arith.constant 0 : index
    %491 = tpu.strided_load %arg11[%c24_754, %c0_755] {strides = array<i32: 2, 1>} : memref<72x32xf32, #tpu.memory_space<vmem>>, vector<2x32xf32>
    %c2_756 = arith.constant 2 : index
    %c256_757 = arith.constant 256 : index
    %492 = vector.load %arg12[%c2_756, %c256_757] : memref<8x512xf32, #tpu.memory_space<vmem>>, vector<2x32xf32>
    tpu.vector_store %arg12[%c2_756, %c256_757], %491 {strides = array<i32>} : memref<8x512xf32, #tpu.memory_space<vmem>>, vector<2x32xf32>,
    %c25 = arith.constant 25 : index
    %c0_758 = arith.constant 0 : index
    %493 = tpu.strided_load %arg11[%c25, %c0_758] {strides = array<i32: 2, 1>} : memref<72x32xf32, #tpu.memory_space<vmem>>, vector<2x32xf32>
    %c2_759 = arith.constant 2 : index
    %c288_760 = arith.constant 288 : index
    %494 = vector.load %arg12[%c2_759, %c288_760] : memref<8x512xf32, #tpu.memory_space<vmem>>, vector<2x32xf32>
    tpu.vector_store %arg12[%c2_759, %c288_760], %493 {strides = array<i32>} : memref<8x512xf32, #tpu.memory_space<vmem>>, vector<2x32xf32>,
    %c26 = arith.constant 26 : index
    %c0_761 = arith.constant 0 : index
    %495 = tpu.strided_load %arg11[%c26, %c0_761] {strides = array<i32: 2, 1>} : memref<72x32xf32, #tpu.memory_space<vmem>>, vector<2x32xf32>
    %c2_762 = arith.constant 2 : index
    %c320_763 = arith.constant 320 : index
    %496 = vector.load %arg12[%c2_762, %c320_763] : memref<8x512xf32, #tpu.memory_space<vmem>>, vector<2x32xf32>
    tpu.vector_store %arg12[%c2_762, %c320_763], %495 {strides = array<i32>} : memref<8x512xf32, #tpu.memory_space<vmem>>, vector<2x32xf32>,
    %c27 = arith.constant 27 : index
    %c0_764 = arith.constant 0 : index
    %497 = tpu.strided_load %arg11[%c27, %c0_764] {strides = array<i32: 2, 1>} : memref<72x32xf32, #tpu.memory_space<vmem>>, vector<2x32xf32>
    %c2_765 = arith.constant 2 : index
    %c352_766 = arith.constant 352 : index
    %498 = vector.load %arg12[%c2_765, %c352_766] : memref<8x512xf32, #tpu.memory_space<vmem>>, vector<2x32xf32>
    tpu.vector_store %arg12[%c2_765, %c352_766], %497 {strides = array<i32>} : memref<8x512xf32, #tpu.memory_space<vmem>>, vector<2x32xf32>,
    %c30_767 = arith.constant 30 : index
    %c0_768 = arith.constant 0 : index
    %499 = tpu.strided_load %arg11[%c30_767, %c0_768] {strides = array<i32: 2, 1>} : memref<72x32xf32, #tpu.memory_space<vmem>>, vector<2x32xf32>
    %c2_769 = arith.constant 2 : index
    %c384_770 = arith.constant 384 : index
    %500 = vector.load %arg12[%c2_769, %c384_770] : memref<8x512xf32, #tpu.memory_space<vmem>>, vector<2x32xf32>
    tpu.vector_store %arg12[%c2_769, %c384_770], %499 {strides = array<i32>} : memref<8x512xf32, #tpu.memory_space<vmem>>, vector<2x32xf32>,
    %c31_771 = arith.constant 31 : index
    %c0_772 = arith.constant 0 : index
    %501 = tpu.strided_load %arg11[%c31_771, %c0_772] {strides = array<i32: 2, 1>} : memref<72x32xf32, #tpu.memory_space<vmem>>, vector<2x32xf32>
    %c2_773 = arith.constant 2 : index
    %c416_774 = arith.constant 416 : index
    %502 = vector.load %arg12[%c2_773, %c416_774] : memref<8x512xf32, #tpu.memory_space<vmem>>, vector<2x32xf32>
    tpu.vector_store %arg12[%c2_773, %c416_774], %501 {strides = array<i32>} : memref<8x512xf32, #tpu.memory_space<vmem>>, vector<2x32xf32>,
    %c32_775 = arith.constant 32 : index
    %c0_776 = arith.constant 0 : index
    %503 = tpu.strided_load %arg11[%c32_775, %c0_776] {strides = array<i32: 2, 1>} : memref<72x32xf32, #tpu.memory_space<vmem>>, vector<2x32xf32>
    %c2_777 = arith.constant 2 : index
    %c448_778 = arith.constant 448 : index
    %504 = vector.load %arg12[%c2_777, %c448_778] : memref<8x512xf32, #tpu.memory_space<vmem>>, vector<2x32xf32>
    tpu.vector_store %arg12[%c2_777, %c448_778], %503 {strides = array<i32>} : memref<8x512xf32, #tpu.memory_space<vmem>>, vector<2x32xf32>,
    %c33_779 = arith.constant 33 : index
    %c0_780 = arith.constant 0 : index
    %505 = tpu.strided_load %arg11[%c33_779, %c0_780] {strides = array<i32: 2, 1>} : memref<72x32xf32, #tpu.memory_space<vmem>>, vector<2x32xf32>
    %c2_781 = arith.constant 2 : index
    %c480_782 = arith.constant 480 : index
    %506 = vector.load %arg12[%c2_781, %c480_782] : memref<8x512xf32, #tpu.memory_space<vmem>>, vector<2x32xf32>
    tpu.vector_store %arg12[%c2_781, %c480_782], %505 {strides = array<i32>} : memref<8x512xf32, #tpu.memory_space<vmem>>, vector<2x32xf32>,
    %c36_783 = arith.constant 36 : index
    %c0_784 = arith.constant 0 : index
    %507 = tpu.strided_load %arg11[%c36_783, %c0_784] {strides = array<i32: 2, 1>} : memref<72x32xf32, #tpu.memory_space<vmem>>, vector<2x32xf32>
    %c4 = arith.constant 4 : index
    %c0_785 = arith.constant 0 : index
    %508 = vector.load %arg12[%c4, %c0_785] : memref<8x512xf32, #tpu.memory_space<vmem>>, vector<2x32xf32>
    tpu.vector_store %arg12[%c4, %c0_785], %507 {strides = array<i32>} : memref<8x512xf32, #tpu.memory_space<vmem>>, vector<2x32xf32>,
    %c37 = arith.constant 37 : index
    %c0_786 = arith.constant 0 : index
    %509 = tpu.strided_load %arg11[%c37, %c0_786] {strides = array<i32: 2, 1>} : memref<72x32xf32, #tpu.memory_space<vmem>>, vector<2x32xf32>
    %c4_787 = arith.constant 4 : index
    %c32_788 = arith.constant 32 : index
    %510 = vector.load %arg12[%c4_787, %c32_788] : memref<8x512xf32, #tpu.memory_space<vmem>>, vector<2x32xf32>
    tpu.vector_store %arg12[%c4_787, %c32_788], %509 {strides = array<i32>} : memref<8x512xf32, #tpu.memory_space<vmem>>, vector<2x32xf32>,
    %c38 = arith.constant 38 : index
    %c0_789 = arith.constant 0 : index
    %511 = tpu.strided_load %arg11[%c38, %c0_789] {strides = array<i32: 2, 1>} : memref<72x32xf32, #tpu.memory_space<vmem>>, vector<2x32xf32>
    %c4_790 = arith.constant 4 : index
    %c64_791 = arith.constant 64 : index
    %512 = vector.load %arg12[%c4_790, %c64_791] : memref<8x512xf32, #tpu.memory_space<vmem>>, vector<2x32xf32>
    tpu.vector_store %arg12[%c4_790, %c64_791], %511 {strides = array<i32>} : memref<8x512xf32, #tpu.memory_space<vmem>>, vector<2x32xf32>,
    %c39 = arith.constant 39 : index
    %c0_792 = arith.constant 0 : index
    %513 = tpu.strided_load %arg11[%c39, %c0_792] {strides = array<i32: 2, 1>} : memref<72x32xf32, #tpu.memory_space<vmem>>, vector<2x32xf32>
    %c4_793 = arith.constant 4 : index
    %c96_794 = arith.constant 96 : index
    %514 = vector.load %arg12[%c4_793, %c96_794] : memref<8x512xf32, #tpu.memory_space<vmem>>, vector<2x32xf32>
    tpu.vector_store %arg12[%c4_793, %c96_794], %513 {strides = array<i32>} : memref<8x512xf32, #tpu.memory_space<vmem>>, vector<2x32xf32>,
    %c42_795 = arith.constant 42 : index
    %c0_796 = arith.constant 0 : index
    %515 = tpu.strided_load %arg11[%c42_795, %c0_796] {strides = array<i32: 2, 1>} : memref<72x32xf32, #tpu.memory_space<vmem>>, vector<2x32xf32>
    %c4_797 = arith.constant 4 : index
    %c128_798 = arith.constant 128 : index
    %516 = vector.load %arg12[%c4_797, %c128_798] : memref<8x512xf32, #tpu.memory_space<vmem>>, vector<2x32xf32>
    tpu.vector_store %arg12[%c4_797, %c128_798], %515 {strides = array<i32>} : memref<8x512xf32, #tpu.memory_space<vmem>>, vector<2x32xf32>,
    %c43 = arith.constant 43 : index
    %c0_799 = arith.constant 0 : index
    %517 = tpu.strided_load %arg11[%c43, %c0_799] {strides = array<i32: 2, 1>} : memref<72x32xf32, #tpu.memory_space<vmem>>, vector<2x32xf32>
    %c4_800 = arith.constant 4 : index
    %c160_801 = arith.constant 160 : index
    %518 = vector.load %arg12[%c4_800, %c160_801] : memref<8x512xf32, #tpu.memory_space<vmem>>, vector<2x32xf32>
    tpu.vector_store %arg12[%c4_800, %c160_801], %517 {strides = array<i32>} : memref<8x512xf32, #tpu.memory_space<vmem>>, vector<2x32xf32>,
    %c44 = arith.constant 44 : index
    %c0_802 = arith.constant 0 : index
    %519 = tpu.strided_load %arg11[%c44, %c0_802] {strides = array<i32: 2, 1>} : memref<72x32xf32, #tpu.memory_space<vmem>>, vector<2x32xf32>
    %c4_803 = arith.constant 4 : index
    %c192_804 = arith.constant 192 : index
    %520 = vector.load %arg12[%c4_803, %c192_804] : memref<8x512xf32, #tpu.memory_space<vmem>>, vector<2x32xf32>
    tpu.vector_store %arg12[%c4_803, %c192_804], %519 {strides = array<i32>} : memref<8x512xf32, #tpu.memory_space<vmem>>, vector<2x32xf32>,
    %c45_805 = arith.constant 45 : index
    %c0_806 = arith.constant 0 : index
    %521 = tpu.strided_load %arg11[%c45_805, %c0_806] {strides = array<i32: 2, 1>} : memref<72x32xf32, #tpu.memory_space<vmem>>, vector<2x32xf32>
    %c4_807 = arith.constant 4 : index
    %c224_808 = arith.constant 224 : index
    %522 = vector.load %arg12[%c4_807, %c224_808] : memref<8x512xf32, #tpu.memory_space<vmem>>, vector<2x32xf32>
    tpu.vector_store %arg12[%c4_807, %c224_808], %521 {strides = array<i32>} : memref<8x512xf32, #tpu.memory_space<vmem>>, vector<2x32xf32>,
    %c48_809 = arith.constant 48 : index
    %c0_810 = arith.constant 0 : index
    %523 = tpu.strided_load %arg11[%c48_809, %c0_810] {strides = array<i32: 2, 1>} : memref<72x32xf32, #tpu.memory_space<vmem>>, vector<2x32xf32>
    %c4_811 = arith.constant 4 : index
    %c256_812 = arith.constant 256 : index
    %524 = vector.load %arg12[%c4_811, %c256_812] : memref<8x512xf32, #tpu.memory_space<vmem>>, vector<2x32xf32>
    tpu.vector_store %arg12[%c4_811, %c256_812], %523 {strides = array<i32>} : memref<8x512xf32, #tpu.memory_space<vmem>>, vector<2x32xf32>,
    %c49 = arith.constant 49 : index
    %c0_813 = arith.constant 0 : index
    %525 = tpu.strided_load %arg11[%c49, %c0_813] {strides = array<i32: 2, 1>} : memref<72x32xf32, #tpu.memory_space<vmem>>, vector<2x32xf32>
    %c4_814 = arith.constant 4 : index
    %c288_815 = arith.constant 288 : index
    %526 = vector.load %arg12[%c4_814, %c288_815] : memref<8x512xf32, #tpu.memory_space<vmem>>, vector<2x32xf32>
    tpu.vector_store %arg12[%c4_814, %c288_815], %525 {strides = array<i32>} : memref<8x512xf32, #tpu.memory_space<vmem>>, vector<2x32xf32>,
    %c50 = arith.constant 50 : index
    %c0_816 = arith.constant 0 : index
    %527 = tpu.strided_load %arg11[%c50, %c0_816] {strides = array<i32: 2, 1>} : memref<72x32xf32, #tpu.memory_space<vmem>>, vector<2x32xf32>
    %c4_817 = arith.constant 4 : index
    %c320_818 = arith.constant 320 : index
    %528 = vector.load %arg12[%c4_817, %c320_818] : memref<8x512xf32, #tpu.memory_space<vmem>>, vector<2x32xf32>
    tpu.vector_store %arg12[%c4_817, %c320_818], %527 {strides = array<i32>} : memref<8x512xf32, #tpu.memory_space<vmem>>, vector<2x32xf32>,
    %c51 = arith.constant 51 : index
    %c0_819 = arith.constant 0 : index
    %529 = tpu.strided_load %arg11[%c51, %c0_819] {strides = array<i32: 2, 1>} : memref<72x32xf32, #tpu.memory_space<vmem>>, vector<2x32xf32>
    %c4_820 = arith.constant 4 : index
    %c352_821 = arith.constant 352 : index
    %530 = vector.load %arg12[%c4_820, %c352_821] : memref<8x512xf32, #tpu.memory_space<vmem>>, vector<2x32xf32>
    tpu.vector_store %arg12[%c4_820, %c352_821], %529 {strides = array<i32>} : memref<8x512xf32, #tpu.memory_space<vmem>>, vector<2x32xf32>,
    %c54_822 = arith.constant 54 : index
    %c0_823 = arith.constant 0 : index
    %531 = tpu.strided_load %arg11[%c54_822, %c0_823] {strides = array<i32: 2, 1>} : memref<72x32xf32, #tpu.memory_space<vmem>>, vector<2x32xf32>
    %c4_824 = arith.constant 4 : index
    %c384_825 = arith.constant 384 : index
    %532 = vector.load %arg12[%c4_824, %c384_825] : memref<8x512xf32, #tpu.memory_space<vmem>>, vector<2x32xf32>
    tpu.vector_store %arg12[%c4_824, %c384_825], %531 {strides = array<i32>} : memref<8x512xf32, #tpu.memory_space<vmem>>, vector<2x32xf32>,
    %c55 = arith.constant 55 : index
    %c0_826 = arith.constant 0 : index
    %533 = tpu.strided_load %arg11[%c55, %c0_826] {strides = array<i32: 2, 1>} : memref<72x32xf32, #tpu.memory_space<vmem>>, vector<2x32xf32>
    %c4_827 = arith.constant 4 : index
    %c416_828 = arith.constant 416 : index
    %534 = vector.load %arg12[%c4_827, %c416_828] : memref<8x512xf32, #tpu.memory_space<vmem>>, vector<2x32xf32>
    tpu.vector_store %arg12[%c4_827, %c416_828], %533 {strides = array<i32>} : memref<8x512xf32, #tpu.memory_space<vmem>>, vector<2x32xf32>,
    %c56 = arith.constant 56 : index
    %c0_829 = arith.constant 0 : index
    %535 = tpu.strided_load %arg11[%c56, %c0_829] {strides = array<i32: 2, 1>} : memref<72x32xf32, #tpu.memory_space<vmem>>, vector<2x32xf32>
    %c4_830 = arith.constant 4 : index
    %c448_831 = arith.constant 448 : index
    %536 = vector.load %arg12[%c4_830, %c448_831] : memref<8x512xf32, #tpu.memory_space<vmem>>, vector<2x32xf32>
    tpu.vector_store %arg12[%c4_830, %c448_831], %535 {strides = array<i32>} : memref<8x512xf32, #tpu.memory_space<vmem>>, vector<2x32xf32>,
    %c57 = arith.constant 57 : index
    %c0_832 = arith.constant 0 : index
    %537 = tpu.strided_load %arg11[%c57, %c0_832] {strides = array<i32: 2, 1>} : memref<72x32xf32, #tpu.memory_space<vmem>>, vector<2x32xf32>
    %c4_833 = arith.constant 4 : index
    %c480_834 = arith.constant 480 : index
    %538 = vector.load %arg12[%c4_833, %c480_834] : memref<8x512xf32, #tpu.memory_space<vmem>>, vector<2x32xf32>
    tpu.vector_store %arg12[%c4_833, %c480_834], %537 {strides = array<i32>} : memref<8x512xf32, #tpu.memory_space<vmem>>, vector<2x32xf32>,
    %c48_835 = arith.constant 48 : index
    %c0_836 = arith.constant 0 : index
    %539 = tpu.strided_load %arg11[%c48_835, %c0_836] {strides = array<i32: 2, 1>} : memref<72x32xf32, #tpu.memory_space<vmem>>, vector<2x32xf32>
    %c6_837 = arith.constant 6 : index
    %c0_838 = arith.constant 0 : index
    %540 = vector.load %arg12[%c6_837, %c0_838] : memref<8x512xf32, #tpu.memory_space<vmem>>, vector<2x32xf32>
    tpu.vector_store %arg12[%c6_837, %c0_838], %539 {strides = array<i32>} : memref<8x512xf32, #tpu.memory_space<vmem>>, vector<2x32xf32>,
    %c49_839 = arith.constant 49 : index
    %c0_840 = arith.constant 0 : index
    %541 = tpu.strided_load %arg11[%c49_839, %c0_840] {strides = array<i32: 2, 1>} : memref<72x32xf32, #tpu.memory_space<vmem>>, vector<2x32xf32>
    %c6_841 = arith.constant 6 : index
    %c32_842 = arith.constant 32 : index
    %542 = vector.load %arg12[%c6_841, %c32_842] : memref<8x512xf32, #tpu.memory_space<vmem>>, vector<2x32xf32>
    tpu.vector_store %arg12[%c6_841, %c32_842], %541 {strides = array<i32>} : memref<8x512xf32, #tpu.memory_space<vmem>>, vector<2x32xf32>,
    %c50_843 = arith.constant 50 : index
    %c0_844 = arith.constant 0 : index
    %543 = tpu.strided_load %arg11[%c50_843, %c0_844] {strides = array<i32: 2, 1>} : memref<72x32xf32, #tpu.memory_space<vmem>>, vector<2x32xf32>
    %c6_845 = arith.constant 6 : index
    %c64_846 = arith.constant 64 : index
    %544 = vector.load %arg12[%c6_845, %c64_846] : memref<8x512xf32, #tpu.memory_space<vmem>>, vector<2x32xf32>
    tpu.vector_store %arg12[%c6_845, %c64_846], %543 {strides = array<i32>} : memref<8x512xf32, #tpu.memory_space<vmem>>, vector<2x32xf32>,
    %c51_847 = arith.constant 51 : index
    %c0_848 = arith.constant 0 : index
    %545 = tpu.strided_load %arg11[%c51_847, %c0_848] {strides = array<i32: 2, 1>} : memref<72x32xf32, #tpu.memory_space<vmem>>, vector<2x32xf32>
    %c6_849 = arith.constant 6 : index
    %c96_850 = arith.constant 96 : index
    %546 = vector.load %arg12[%c6_849, %c96_850] : memref<8x512xf32, #tpu.memory_space<vmem>>, vector<2x32xf32>
    tpu.vector_store %arg12[%c6_849, %c96_850], %545 {strides = array<i32>} : memref<8x512xf32, #tpu.memory_space<vmem>>, vector<2x32xf32>,
    %c54_851 = arith.constant 54 : index
    %c0_852 = arith.constant 0 : index
    %547 = tpu.strided_load %arg11[%c54_851, %c0_852] {strides = array<i32: 2, 1>} : memref<72x32xf32, #tpu.memory_space<vmem>>, vector<2x32xf32>
    %c6_853 = arith.constant 6 : index
    %c128_854 = arith.constant 128 : index
    %548 = vector.load %arg12[%c6_853, %c128_854] : memref<8x512xf32, #tpu.memory_space<vmem>>, vector<2x32xf32>
    tpu.vector_store %arg12[%c6_853, %c128_854], %547 {strides = array<i32>} : memref<8x512xf32, #tpu.memory_space<vmem>>, vector<2x32xf32>,
    %c55_855 = arith.constant 55 : index
    %c0_856 = arith.constant 0 : index
    %549 = tpu.strided_load %arg11[%c55_855, %c0_856] {strides = array<i32: 2, 1>} : memref<72x32xf32, #tpu.memory_space<vmem>>, vector<2x32xf32>
    %c6_857 = arith.constant 6 : index
    %c160_858 = arith.constant 160 : index
    %550 = vector.load %arg12[%c6_857, %c160_858] : memref<8x512xf32, #tpu.memory_space<vmem>>, vector<2x32xf32>
    tpu.vector_store %arg12[%c6_857, %c160_858], %549 {strides = array<i32>} : memref<8x512xf32, #tpu.memory_space<vmem>>, vector<2x32xf32>,
    %c56_859 = arith.constant 56 : index
    %c0_860 = arith.constant 0 : index
    %551 = tpu.strided_load %arg11[%c56_859, %c0_860] {strides = array<i32: 2, 1>} : memref<72x32xf32, #tpu.memory_space<vmem>>, vector<2x32xf32>
    %c6_861 = arith.constant 6 : index
    %c192_862 = arith.constant 192 : index
    %552 = vector.load %arg12[%c6_861, %c192_862] : memref<8x512xf32, #tpu.memory_space<vmem>>, vector<2x32xf32>
    tpu.vector_store %arg12[%c6_861, %c192_862], %551 {strides = array<i32>} : memref<8x512xf32, #tpu.memory_space<vmem>>, vector<2x32xf32>,
    %c57_863 = arith.constant 57 : index
    %c0_864 = arith.constant 0 : index
    %553 = tpu.strided_load %arg11[%c57_863, %c0_864] {strides = array<i32: 2, 1>} : memref<72x32xf32, #tpu.memory_space<vmem>>, vector<2x32xf32>
    %c6_865 = arith.constant 6 : index
    %c224_866 = arith.constant 224 : index
    %554 = vector.load %arg12[%c6_865, %c224_866] : memref<8x512xf32, #tpu.memory_space<vmem>>, vector<2x32xf32>
    tpu.vector_store %arg12[%c6_865, %c224_866], %553 {strides = array<i32>} : memref<8x512xf32, #tpu.memory_space<vmem>>, vector<2x32xf32>,
    %c60_867 = arith.constant 60 : index
    %c0_868 = arith.constant 0 : index
    %555 = tpu.strided_load %arg11[%c60_867, %c0_868] {strides = array<i32: 2, 1>} : memref<72x32xf32, #tpu.memory_space<vmem>>, vector<2x32xf32>
    %c6_869 = arith.constant 6 : index
    %c256_870 = arith.constant 256 : index
    %556 = vector.load %arg12[%c6_869, %c256_870] : memref<8x512xf32, #tpu.memory_space<vmem>>, vector<2x32xf32>
    tpu.vector_store %arg12[%c6_869, %c256_870], %555 {strides = array<i32>} : memref<8x512xf32, #tpu.memory_space<vmem>>, vector<2x32xf32>,
    %c61_871 = arith.constant 61 : index
    %c0_872 = arith.constant 0 : index
    %557 = tpu.strided_load %arg11[%c61_871, %c0_872] {strides = array<i32: 2, 1>} : memref<72x32xf32, #tpu.memory_space<vmem>>, vector<2x32xf32>
    %c6_873 = arith.constant 6 : index
    %c288_874 = arith.constant 288 : index
    %558 = vector.load %arg12[%c6_873, %c288_874] : memref<8x512xf32, #tpu.memory_space<vmem>>, vector<2x32xf32>
    tpu.vector_store %arg12[%c6_873, %c288_874], %557 {strides = array<i32>} : memref<8x512xf32, #tpu.memory_space<vmem>>, vector<2x32xf32>,
    %c62_875 = arith.constant 62 : index
    %c0_876 = arith.constant 0 : index
    %559 = tpu.strided_load %arg11[%c62_875, %c0_876] {strides = array<i32: 2, 1>} : memref<72x32xf32, #tpu.memory_space<vmem>>, vector<2x32xf32>
    %c6_877 = arith.constant 6 : index
    %c320_878 = arith.constant 320 : index
    %560 = vector.load %arg12[%c6_877, %c320_878] : memref<8x512xf32, #tpu.memory_space<vmem>>, vector<2x32xf32>
    tpu.vector_store %arg12[%c6_877, %c320_878], %559 {strides = array<i32>} : memref<8x512xf32, #tpu.memory_space<vmem>>, vector<2x32xf32>,
    %c63_879 = arith.constant 63 : index
    %c0_880 = arith.constant 0 : index
    %561 = tpu.strided_load %arg11[%c63_879, %c0_880] {strides = array<i32: 2, 1>} : memref<72x32xf32, #tpu.memory_space<vmem>>, vector<2x32xf32>
    %c6_881 = arith.constant 6 : index
    %c352_882 = arith.constant 352 : index
    %562 = vector.load %arg12[%c6_881, %c352_882] : memref<8x512xf32, #tpu.memory_space<vmem>>, vector<2x32xf32>
    tpu.vector_store %arg12[%c6_881, %c352_882], %561 {strides = array<i32>} : memref<8x512xf32, #tpu.memory_space<vmem>>, vector<2x32xf32>,
    %c66_883 = arith.constant 66 : index
    %c0_884 = arith.constant 0 : index
    %563 = tpu.strided_load %arg11[%c66_883, %c0_884] {strides = array<i32: 2, 1>} : memref<72x32xf32, #tpu.memory_space<vmem>>, vector<2x32xf32>
    %c6_885 = arith.constant 6 : index
    %c384_886 = arith.constant 384 : index
    %564 = vector.load %arg12[%c6_885, %c384_886] : memref<8x512xf32, #tpu.memory_space<vmem>>, vector<2x32xf32>
    tpu.vector_store %arg12[%c6_885, %c384_886], %563 {strides = array<i32>} : memref<8x512xf32, #tpu.memory_space<vmem>>, vector<2x32xf32>,
    %c67 = arith.constant 67 : index
    %c0_887 = arith.constant 0 : index
    %565 = tpu.strided_load %arg11[%c67, %c0_887] {strides = array<i32: 2, 1>} : memref<72x32xf32, #tpu.memory_space<vmem>>, vector<2x32xf32>
    %c6_888 = arith.constant 6 : index
    %c416_889 = arith.constant 416 : index
    %566 = vector.load %arg12[%c6_888, %c416_889] : memref<8x512xf32, #tpu.memory_space<vmem>>, vector<2x32xf32>
    tpu.vector_store %arg12[%c6_888, %c416_889], %565 {strides = array<i32>} : memref<8x512xf32, #tpu.memory_space<vmem>>, vector<2x32xf32>,
    %c68 = arith.constant 68 : index
    %c0_890 = arith.constant 0 : index
    %567 = tpu.strided_load %arg11[%c68, %c0_890] {strides = array<i32: 2, 1>} : memref<72x32xf32, #tpu.memory_space<vmem>>, vector<2x32xf32>
    %c6_891 = arith.constant 6 : index
    %c448_892 = arith.constant 448 : index
    %568 = vector.load %arg12[%c6_891, %c448_892] : memref<8x512xf32, #tpu.memory_space<vmem>>, vector<2x32xf32>
    tpu.vector_store %arg12[%c6_891, %c448_892], %567 {strides = array<i32>} : memref<8x512xf32, #tpu.memory_space<vmem>>, vector<2x32xf32>,
    %c69 = arith.constant 69 : index
    %c0_893 = arith.constant 0 : index
    %569 = tpu.strided_load %arg11[%c69, %c0_893] {strides = array<i32: 2, 1>} : memref<72x32xf32, #tpu.memory_space<vmem>>, vector<2x32xf32>
    %c6_894 = arith.constant 6 : index
    %c480_895 = arith.constant 480 : index
    %570 = vector.load %arg12[%c6_894, %c480_895] : memref<8x512xf32, #tpu.memory_space<vmem>>, vector<2x32xf32>
    tpu.vector_store %arg12[%c6_894, %c480_895], %569 {strides = array<i32>} : memref<8x512xf32, #tpu.memory_space<vmem>>, vector<2x32xf32>,
    %c0_896 = arith.constant 0 : index
    %c0_897 = arith.constant 0 : index
    %571 = vector.load %arg12[%c0_896, %c0_897] : memref<8x512xf32, #tpu.memory_space<vmem>>, vector<8x512xf32>
    %572 = arith.truncf %571 : vector<8x512xf32> to vector<8x512xbf16>
    %c0_898 = arith.constant 0 : index
    %c0_899 = arith.constant 0 : index
    %573 = vector.load %arg3[%c0_898, %c0_899] : memref<512x32xbf16, #tpu.memory_space<vmem>>, vector<512x32xbf16>
    %cst_900 = arith.constant dense<0.000000e+00> : vector<8x32xf32>
    %574 = tpu.matmul %572, %573, %cst_900 {dimension_numbers = #tpu.dot_dimension_numbers<[1], [0], [0], [1], [0, 0, 1, 1], [], []>} : vector<8x512xbf16>, vector<512x32xbf16>, vector<8x32xf32> -> vector<8x32xf32>
    %c4_901 = arith.constant 4 : index
    %c0_902 = arith.constant 0 : index
    %575 = vector.load %arg5[%c4_901, %c0_902] : memref<8x32xf32, #tpu.memory_space<vmem>>, vector<1x32xf32>
    %c5 = arith.constant 5 : index
    %c0_903 = arith.constant 0 : index
    %576 = vector.load %arg5[%c5, %c0_903] : memref<8x32xf32, #tpu.memory_space<vmem>>, vector<1x32xf32>
    %577 = arith.mulf %574, %574 : vector<8x32xf32>
    %578 = tpu.concatenate %574, %577 in 1 : vector<8x32xf32>, vector<8x32xf32> -> vector<8x64xf32>
    %cst_904 = arith.constant dense<0.000000e+00> : vector<64xf32>
    %579 = vector.multi_reduction <add>, %578, %cst_904 [0] : vector<8x64xf32> to vector<64xf32>
    %580 = vector.shape_cast %579 : vector<64xf32> to vector<1x64xf32>
    %cst_905 = arith.constant 1.250000e-01 : f32
    %581 = vector.broadcast %cst_905 : f32 to vector<1x64xf32>
    %582 = arith.mulf %580, %581 : vector<1x64xf32>
    %583 = vector.extract_strided_slice %582 {offsets = [0, 0], sizes = [1, 32], strides = [1, 1]} : vector<1x64xf32> to vector<1x32xf32>
    %584 = vector.extract_strided_slice %582 {offsets = [0, 32], sizes = [1, 32], strides = [1, 1]} : vector<1x64xf32> to vector<1x32xf32>
    %585 = arith.mulf %583, %583 : vector<1x32xf32>
    %586 = arith.subf %584, %585 : vector<1x32xf32>
    %cst_906 = arith.constant 9.99999974E-6 : f32
    %587 = vector.broadcast %cst_906 : f32 to vector<1x32xf32>
    %588 = arith.addf %586, %587 : vector<1x32xf32>
    %589 = math.rsqrt %588 : vector<1x32xf32>
    %590 = vector.broadcast %583 : vector<1x32xf32> to vector<8x32xf32>
    %591 = arith.subf %574, %590 : vector<8x32xf32>
    %592 = vector.broadcast %589 : vector<1x32xf32> to vector<8x32xf32>
    %593 = arith.mulf %591, %592 : vector<8x32xf32>
    %594 = vector.broadcast %575 : vector<1x32xf32> to vector<8x32xf32>
    %595 = arith.mulf %594, %593 : vector<8x32xf32>
    %596 = vector.broadcast %576 : vector<1x32xf32> to vector<8x32xf32>
    %597 = arith.addf %595, %596 : vector<8x32xf32>
    %cst_907 = arith.constant 0.000000e+00 : f32
    %598 = vector.broadcast %cst_907 : f32 to vector<8x32xf32>
    %599 = arith.maximumf %597, %598 : vector<8x32xf32>
    %c0_908 = arith.constant 0 : index
    %c0_909 = arith.constant 0 : index
    %600 = vector.load %arg13[%c0_908, %c0_909] : memref<8x32xf32, #tpu.memory_space<vmem>>, vector<8x32xf32>
    tpu.vector_store %arg13[%c0_908, %c0_909], %599 {strides = array<i32>} : memref<8x32xf32, #tpu.memory_space<vmem>>, vector<8x32xf32>,
    %c0_910 = arith.constant 0 : index
    %c0_911 = arith.constant 0 : index
    %601 = vector.load %arg13[%c0_910, %c0_911] : memref<8x32xf32, #tpu.memory_space<vmem>>, vector<1x32xf32>
    %c0_912 = arith.constant 0 : index
    %c0_913 = arith.constant 0 : index
    %602 = vector.load %arg14[%c0_912, %c0_913] : memref<2x128xf32, #tpu.memory_space<vmem>>, vector<1x32xf32>
    tpu.vector_store %arg14[%c0_912, %c0_913], %601 {strides = array<i32>} : memref<2x128xf32, #tpu.memory_space<vmem>>, vector<1x32xf32>,
    %c1_914 = arith.constant 1 : index
    %c0_915 = arith.constant 0 : index
    %603 = vector.load %arg13[%c1_914, %c0_915] : memref<8x32xf32, #tpu.memory_space<vmem>>, vector<1x32xf32>
    %c0_916 = arith.constant 0 : index
    %c32_917 = arith.constant 32 : index
    %604 = vector.load %arg14[%c0_916, %c32_917] : memref<2x128xf32, #tpu.memory_space<vmem>>, vector<1x32xf32>
    tpu.vector_store %arg14[%c0_916, %c32_917], %603 {strides = array<i32>} : memref<2x128xf32, #tpu.memory_space<vmem>>, vector<1x32xf32>,
    %c2_918 = arith.constant 2 : index
    %c0_919 = arith.constant 0 : index
    %605 = vector.load %arg13[%c2_918, %c0_919] : memref<8x32xf32, #tpu.memory_space<vmem>>, vector<1x32xf32>
    %c0_920 = arith.constant 0 : index
    %c64_921 = arith.constant 64 : index
    %606 = vector.load %arg14[%c0_920, %c64_921] : memref<2x128xf32, #tpu.memory_space<vmem>>, vector<1x32xf32>
    tpu.vector_store %arg14[%c0_920, %c64_921], %605 {strides = array<i32>} : memref<2x128xf32, #tpu.memory_space<vmem>>, vector<1x32xf32>,
    %c3_922 = arith.constant 3 : index
    %c0_923 = arith.constant 0 : index
    %607 = vector.load %arg13[%c3_922, %c0_923] : memref<8x32xf32, #tpu.memory_space<vmem>>, vector<1x32xf32>
    %c0_924 = arith.constant 0 : index
    %c96_925 = arith.constant 96 : index
    %608 = vector.load %arg14[%c0_924, %c96_925] : memref<2x128xf32, #tpu.memory_space<vmem>>, vector<1x32xf32>
    tpu.vector_store %arg14[%c0_924, %c96_925], %607 {strides = array<i32>} : memref<2x128xf32, #tpu.memory_space<vmem>>, vector<1x32xf32>,
    %c4_926 = arith.constant 4 : index
    %c0_927 = arith.constant 0 : index
    %609 = vector.load %arg13[%c4_926, %c0_927] : memref<8x32xf32, #tpu.memory_space<vmem>>, vector<1x32xf32>
    %c1_928 = arith.constant 1 : index
    %c0_929 = arith.constant 0 : index
    %610 = vector.load %arg14[%c1_928, %c0_929] : memref<2x128xf32, #tpu.memory_space<vmem>>, vector<1x32xf32>
    tpu.vector_store %arg14[%c1_928, %c0_929], %609 {strides = array<i32>} : memref<2x128xf32, #tpu.memory_space<vmem>>, vector<1x32xf32>,
    %c5_930 = arith.constant 5 : index
    %c0_931 = arith.constant 0 : index
    %611 = vector.load %arg13[%c5_930, %c0_931] : memref<8x32xf32, #tpu.memory_space<vmem>>, vector<1x32xf32>
    %c1_932 = arith.constant 1 : index
    %c32_933 = arith.constant 32 : index
    %612 = vector.load %arg14[%c1_932, %c32_933] : memref<2x128xf32, #tpu.memory_space<vmem>>, vector<1x32xf32>
    tpu.vector_store %arg14[%c1_932, %c32_933], %611 {strides = array<i32>} : memref<2x128xf32, #tpu.memory_space<vmem>>, vector<1x32xf32>,
    %c6_934 = arith.constant 6 : index
    %c0_935 = arith.constant 0 : index
    %613 = vector.load %arg13[%c6_934, %c0_935] : memref<8x32xf32, #tpu.memory_space<vmem>>, vector<1x32xf32>
    %c1_936 = arith.constant 1 : index
    %c64_937 = arith.constant 64 : index
    %614 = vector.load %arg14[%c1_936, %c64_937] : memref<2x128xf32, #tpu.memory_space<vmem>>, vector<1x32xf32>
    tpu.vector_store %arg14[%c1_936, %c64_937], %613 {strides = array<i32>} : memref<2x128xf32, #tpu.memory_space<vmem>>, vector<1x32xf32>,
    %c7_938 = arith.constant 7 : index
    %c0_939 = arith.constant 0 : index
    %615 = vector.load %arg13[%c7_938, %c0_939] : memref<8x32xf32, #tpu.memory_space<vmem>>, vector<1x32xf32>
    %c1_940 = arith.constant 1 : index
    %c96_941 = arith.constant 96 : index
    %616 = vector.load %arg14[%c1_940, %c96_941] : memref<2x128xf32, #tpu.memory_space<vmem>>, vector<1x32xf32>
    tpu.vector_store %arg14[%c1_940, %c96_941], %615 {strides = array<i32>} : memref<2x128xf32, #tpu.memory_space<vmem>>, vector<1x32xf32>,
    %c0_942 = arith.constant 0 : index
    %c0_943 = arith.constant 0 : index
    %617 = vector.load %arg14[%c0_942, %c0_943] : memref<2x128xf32, #tpu.memory_space<vmem>>, vector<2x128xf32>
    %618 = arith.truncf %617 : vector<2x128xf32> to vector<2x128xbf16>
    %c0_944 = arith.constant 0 : index
    %c0_945 = arith.constant 0 : index
    %619 = vector.load %arg4[%c0_944, %c0_945] : memref<128x32xbf16, #tpu.memory_space<vmem>>, vector<128x32xbf16>
    %cst_946 = arith.constant dense<0.000000e+00> : vector<2x32xf32>
    %620 = tpu.matmul %618, %619, %cst_946 {dimension_numbers = #tpu.dot_dimension_numbers<[1], [0], [0], [1], [0, 0, 1, 1], [], []>} : vector<2x128xbf16>, vector<128x32xbf16>, vector<2x32xf32> -> vector<2x32xf32>
    %c6_947 = arith.constant 6 : index
    %c0_948 = arith.constant 0 : index
    %621 = vector.load %arg5[%c6_947, %c0_948] : memref<8x32xf32, #tpu.memory_space<vmem>>, vector<1x32xf32>
    %c7_949 = arith.constant 7 : index
    %c0_950 = arith.constant 0 : index
    %622 = vector.load %arg5[%c7_949, %c0_950] : memref<8x32xf32, #tpu.memory_space<vmem>>, vector<1x32xf32>
    %623 = arith.mulf %620, %620 : vector<2x32xf32>
    %624 = tpu.concatenate %620, %623 in 1 : vector<2x32xf32>, vector<2x32xf32> -> vector<2x64xf32>
    %cst_951 = arith.constant dense<0.000000e+00> : vector<64xf32>
    %625 = vector.multi_reduction <add>, %624, %cst_951 [0] : vector<2x64xf32> to vector<64xf32>
    %626 = vector.shape_cast %625 : vector<64xf32> to vector<1x64xf32>
    %cst_952 = arith.constant 5.000000e-01 : f32
    %627 = vector.broadcast %cst_952 : f32 to vector<1x64xf32>
    %628 = arith.mulf %626, %627 : vector<1x64xf32>
    %629 = vector.extract_strided_slice %628 {offsets = [0, 0], sizes = [1, 32], strides = [1, 1]} : vector<1x64xf32> to vector<1x32xf32>
    %630 = vector.extract_strided_slice %628 {offsets = [0, 32], sizes = [1, 32], strides = [1, 1]} : vector<1x64xf32> to vector<1x32xf32>
    %631 = arith.mulf %629, %629 : vector<1x32xf32>
    %632 = arith.subf %630, %631 : vector<1x32xf32>
    %cst_953 = arith.constant 9.99999974E-6 : f32
    %633 = vector.broadcast %cst_953 : f32 to vector<1x32xf32>
    %634 = arith.addf %632, %633 : vector<1x32xf32>
    %635 = math.rsqrt %634 : vector<1x32xf32>
    %636 = vector.broadcast %629 : vector<1x32xf32> to vector<2x32xf32>
    %637 = arith.subf %620, %636 : vector<2x32xf32>
    %638 = vector.broadcast %635 : vector<1x32xf32> to vector<2x32xf32>
    %639 = arith.mulf %637, %638 : vector<2x32xf32>
    %640 = vector.broadcast %621 : vector<1x32xf32> to vector<2x32xf32>
    %641 = arith.mulf %640, %639 : vector<2x32xf32>
    %642 = vector.broadcast %622 : vector<1x32xf32> to vector<2x32xf32>
    %643 = arith.addf %641, %642 : vector<2x32xf32>
    %cst_954 = arith.constant 0.000000e+00 : f32
    %644 = vector.broadcast %cst_954 : f32 to vector<2x32xf32>
    %645 = arith.maximumf %643, %644 : vector<2x32xf32>
    %646 = arith.truncf %645 : vector<2x32xf32> to vector<2x32xbf16>
    %c0_955 = arith.constant 0 : index
    %c0_956 = arith.constant 0 : index
    %647 = vector.load %arg6[%c0_955, %c0_956] : memref<32x32xbf16, #tpu.memory_space<vmem>>, vector<32x32xbf16>
    %cst_957 = arith.constant dense<0.000000e+00> : vector<2x32xf32>
    %648 = tpu.matmul %646, %647, %cst_957 {dimension_numbers = #tpu.dot_dimension_numbers<[1], [0], [0], [1], [0, 0, 1, 1], [], []>} : vector<2x32xbf16>, vector<32x32xbf16>, vector<2x32xf32> -> vector<2x32xf32>
    %c0_958 = arith.constant 0 : index
    %c0_959 = arith.constant 0 : index
    %649 = vector.load %arg7[%c0_958, %c0_959] : memref<1x32xf32, #tpu.memory_space<vmem>>, vector<1x32xf32>
    %650 = vector.broadcast %649 : vector<1x32xf32> to vector<2x32xf32>
    %651 = arith.addf %648, %650 : vector<2x32xf32>
    %c0_960 = arith.constant 0 : index
    %c0_961 = arith.constant 0 : index
    %652 = vector.load %arg8[%c0_960, %c0_961] : memref<2x32xf32, #tpu.memory_space<vmem>>, vector<2x32xf32>
    tpu.vector_store %arg8[%c0_960, %c0_961], %651 {strides = array<i32>} : memref<2x32xf32, #tpu.memory_space<vmem>>, vector<2x32xf32>,
    return
  }
}

</mosaic_0001>

<bundles_post_ra>
// kernel: image_cnn_emnlp_forward.1
= control target key start
LH: loop header
LB: loop body
LE: loop exit
PB: predicated region body
PF: predicated region fallthrough
CT: control target
= control target key end

     0   :  { %v5355_v1 = vmov 0   ;;  %vm7477_vm0 = vcmask 523264   ;;  %s7444_s0 = inlined_call_operand.vmem [shape: bf16[450,192], index: 0, kind: input, shape index: {}]   ;;  %s7445_s1 = inlined_call_operand.vmem [shape: bf16[192,32], index: 1, kind: input, shape index: {}]   ;;  %s7446_s2 = inlined_call_operand.vmem [shape: bf16[512,32], index: 2, kind: input, shape index: {}]   ;;  %s7447_s3 = inlined_call_operand.vmem [shape: bf16[512,32], index: 3, kind: input, shape index: {}]   ;;  %s7448_s4 = inlined_call_operand.vmem [shape: bf16[128,32], index: 4, kind: input, shape index: {}]   ;;  %s7449_s5 = inlined_call_operand.vmem [shape: f32[8,32], index: 5, kind: input, shape index: {}]   ;;  %s7450_s6 = inlined_call_operand.vmem [shape: bf16[32,32], index: 6, kind: input, shape index: {}]   ;;  %s7451_s7 = inlined_call_operand.vmem [shape: f32[1,32], index: 7, kind: input, shape index: {}]   ;;  %s7452_s8 = inlined_call_operand.hbm [shape: f32[2,32], index: 8, kind: output, shape index: {}]  }
   0x1   :  { %v5151_v0 = vld [vmem:[%s7445_s1] sm:$0xff]   ;;  %530 = vmatprep.subr.bf16.mxu0 %v5355_v1  ;;  %5120 = vmatprep.subr.bf16.mxu1 %v5355_v1  ;;  %v5152_v2 = vld [vmem:[%s7445_s1 + $0x8] sm:$0xff]   ;;  %v5153_v3 = vld [vmem:[%s7445_s1 + $0x10] sm:$0xff]  }
   0x2   :  { %531 = vmatpush1.bf16.msra.mxu0 %v5151_v0  ;;  %5132 = vmatpush1.bf16.msra.mxu1 %v5151_v0  ;;  %v5154_v4 = vld [vmem:[%s7445_s1 + $0x18] sm:$0xff]   ;;  %v5165_v5 = vld [vmem:[%s7444_s0 + $0x4] ss:$8 sps:$4 sm:$0xff]   ;;  %v5157_v8 = vld [vmem:[%s7445_s1 + $0x30] sm:$0xff]  }
   0x3   :  { %532 = vmatprep.subr.bf16.mxu0 %v5355_v1  ;;  %5121 = vmatprep.subr.bf16.mxu1 %v5355_v1  ;;  %v5155_v6 = vld [vmem:[%s7445_s1 + $0x20] sm:$0xff]   ;;  %v5156_v7 = vld [vmem:[%s7445_s1 + $0x28] sm:$0xff]   ;;  %v5158_v9 = vld [vmem:[%s7445_s1 + $0x38] sm:$0xff]  }
   0x4   :  { %4831 = vmatprep.mubr.msk.bf16.mxu0 %vm7477_vm0, %v5165_v5  ;;  %v5159_v10 = vld [vmem:[%s7445_s1 + $0x40] sm:$0xff]   ;;  %v5160_v11 = vld [vmem:[%s7445_s1 + $0x48] sm:$0xff]   ;;  %v5161_v12 = vld [vmem:[%s7445_s1 + $0x50] sm:$0xff]  }
   0x5   :  { %v5162_v13 = vld [vmem:[%s7445_s1 + $0x58] sm:$0xff]   ;;  %v5163_v14 = vld [vmem:[%s7444_s0] ss:$8 sps:$4 sm:$0xff]   ;;  %v5169_v17 = vld [vmem:[%s7444_s0 + $0x24] ss:$8 sps:$4 sm:$0xff]  }
   0x6   :  { %533 = vmatpush1.bf16.msra.mxu0 %v5152_v2  ;;  %5133 = vmatpush1.bf16.msra.mxu1 %v5152_v2  ;;  %v5166_v15 = vld [vmem:[%s7444_s0 + $0x14] ss:$8 sps:$4 sm:$0xff]   ;;  %v5168_v16 = vld [vmem:[%s7444_s0 + $0x10] ss:$8 sps:$4 sm:$0xff]   ;;  %v5171_v18 = vld [vmem:[%s7444_s0 + $0x20] ss:$8 sps:$4 sm:$0xff]  }
   0x7   :  { %534 = vmatprep.subr.bf16.mxu0 %v5355_v1  ;;  %5122 = vmatprep.subr.bf16.mxu1 %v5355_v1  ;;  %v5172_v19 = vld [vmem:[%s7444_s0 + $0x34] ss:$8 sps:$4 sm:$0xff]   ;;  %v5174_v20 = vld [vmem:[%s7444_s0 + $0x30] ss:$8 sps:$4 sm:$0xff]   ;;  %v5175_v21 = vld [vmem:[%s7444_s0 + $0x44] ss:$8 sps:$4 sm:$0xff]  }
   0x8   :  { %v5177_v22 = vld [vmem:[%s7444_s0 + $0x40] ss:$8 sps:$4 sm:$0xff]   ;;  %v5178_v23 = vld [vmem:[%s7444_s0 + $0x54] ss:$8 sps:$4 sm:$0xff]   ;;  %v5180_v24 = vld [vmem:[%s7444_s0 + $0x50] ss:$8 sps:$4 sm:$0xff]  }
   0x9   :  { %v5181_v25 = vld [vmem:[%s7444_s0 + $0x64] ss:$8 sps:$4 sm:$0xff]   ;;  %v5183_v26 = vld [vmem:[%s7444_s0 + $0x60] ss:$8 sps:$4 sm:$0xff]   ;;  %v5184_v27 = vld [vmem:[%s7444_s0 + $0x74] ss:$8 sps:$4 sm:$0xff]  }
   0xa   :  { %535 = vmatpush1.bf16.msra.mxu0 %v5153_v3  ;;  %5134 = vmatpush1.bf16.msra.mxu1 %v5153_v3 }
   0xb   :  { %536 = vmatprep.subr.bf16.mxu0 %v5355_v1  ;;  %5123 = vmatprep.subr.bf16.mxu1 %v5355_v1 }
   0xe   :  { %537 = vmatpush1.bf16.msra.mxu0 %v5154_v4  ;;  %5135 = vmatpush1.bf16.msra.mxu1 %v5154_v4 }
   0xf   :  { %538 = vmatprep.subr.bf16.mxu0 %v5355_v1  ;;  %5124 = vmatprep.subr.bf16.mxu1 %v5355_v1 }
  0x12   :  { %539 = vmatpush1.bf16.msra.mxu0 %v5155_v6  ;;  %5136 = vmatpush1.bf16.msra.mxu1 %v5155_v6 }
  0x13   :  { %540 = vmatprep.subr.bf16.mxu0 %v5355_v1  ;;  %5125 = vmatprep.subr.bf16.mxu1 %v5355_v1 }
  0x16   :  { %541 = vmatpush1.bf16.msra.mxu0 %v5156_v7  ;;  %5137 = vmatpush1.bf16.msra.mxu1 %v5156_v7 }
  0x17   :  { %542 = vmatprep.subr.bf16.mxu0 %v5355_v1  ;;  %5126 = vmatprep.subr.bf16.mxu1 %v5355_v1 }
  0x1a   :  { %543 = vmatpush1.bf16.msra.mxu0 %v5157_v8  ;;  %5138 = vmatpush1.bf16.msra.mxu1 %v5157_v8 }
  0x1b   :  { %544 = vmatprep.subr.bf16.mxu0 %v5355_v1  ;;  %5127 = vmatprep.subr.bf16.mxu1 %v5355_v1 }
  0x1e   :  { %545 = vmatpush1.bf16.msra.mxu0 %v5158_v9  ;;  %5139 = vmatpush1.bf16.msra.mxu1 %v5158_v9 }
  0x1f   :  { %546 = vmatprep.subr.bf16.mxu0 %v5355_v1  ;;  %5128 = vmatprep.subr.bf16.mxu1 %v5355_v1 }
  0x22   :  { %547 = vmatpush1.bf16.msra.mxu0 %v5159_v10  ;;  %5140 = vmatpush1.bf16.msra.mxu1 %v5159_v10 }
  0x23   :  { %548 = vmatprep.subr.bf16.mxu0 %v5355_v1  ;;  %5129 = vmatprep.subr.bf16.mxu1 %v5355_v1 }
  0x26   :  { %549 = vmatpush1.bf16.msra.mxu0 %v5160_v11  ;;  %5141 = vmatpush1.bf16.msra.mxu1 %v5160_v11 }
  0x27   :  { %550 = vmatprep.subr.bf16.mxu0 %v5355_v1  ;;  %5130 = vmatprep.subr.bf16.mxu1 %v5355_v1 }
  0x2a   :  { %551 = vmatpush1.bf16.msra.mxu0 %v5161_v12  ;;  %5142 = vmatpush1.bf16.msra.mxu1 %v5161_v12 }
  0x2b   :  { %552 = vmatprep.subr.bf16.mxu0 %v5355_v1  ;;  %5131 = vmatprep.subr.bf16.mxu1 %v5355_v1 }
  0x2e   :  { %553 = vmatpush1.bf16.msra.mxu0 %v5162_v13  ;;  %5143 = vmatpush1.bf16.msra.mxu1 %v5162_v13 }
  0x31   :  { %563 = vmatmul.mubr.bf16.vlgmr.msra.gmra.mrb[0].mxu0 %v5163_v14 }
  0x32   :  { %4832 = vmatprep.mubr.msk.bf16.mxu0 %vm7477_vm0, %v5166_v15 }
  0x39   :  { %571 = vmatmul.mubr.bf16.gmra.mrb[4].mxu0 %v5168_v16 }
  0x3a   :  { %4833 = vmatprep.mubr.msk.bf16.mxu0 %vm7477_vm0, %v5169_v17 }
  0x41   :  { %579 = vmatmul.mubr.bf16.gmra.mrb[8].mxu0 %v5171_v18 }
  0x42   :  { %4834 = vmatprep.mubr.msk.bf16.mxu0 %vm7477_vm0, %v5172_v19 }
  0x49   :  { %587 = vmatmul.mubr.bf16.gmra.mrb[12].mxu0 %v5174_v20 }
  0x4a   :  { %4835 = vmatprep.mubr.msk.bf16.mxu0 %vm7477_vm0, %v5175_v21 }
  0x51   :  { %595 = vmatmul.mubr.bf16.gmra.mrb[16].mxu0 %v5177_v22 }
  0x52   :  { %4836 = vmatprep.mubr.msk.bf16.mxu0 %vm7477_vm0, %v5178_v23 }
  0x59   :  { %603 = vmatmul.mubr.bf16.gmra.mrb[20].mxu0 %v5180_v24 }
  0x5a   :  { %4837 = vmatprep.mubr.msk.bf16.mxu0 %vm7477_vm0, %v5181_v25 }
  0x5b   :  { %13 = vsyncpa [#allocation9], 0  ;;  %v5232_v28 = vld [vmem:[%s7444_s0 + $0x190] ss:$8 sps:$4 sm:$0xff]   ;;  %v5234_v29 = vld [vmem:[%s7444_s0 + $0x194] ss:$8 sps:$4 sm:$0xff]  }
  0x5c   :  { %4856 = vmatprep.mubr.msk.bf16.mxu1 %vm7477_vm0, %v5234_v29  ;;  %v5186_v30 = vld [vmem:[%s7444_s0 + $0x70] ss:$8 sps:$4 sm:$0xff]   ;;  %v5187_v31 = vld [vmem:[%s7444_s0 + $0x84] ss:$8 sps:$4 sm:$0xff]   ;;  %v5240_v33 = vld [vmem:[%s7444_s0 + $0x1a0] ss:$8 sps:$4 sm:$0xff]  }
  0x5d   :  { %763 = vmatmul.mubr.bf16.vlgmr.msra.gmra.mrb[0].mxu1 %v5232_v28  ;;  %v5238_v32 = vld [vmem:[%s7444_s0 + $0x1a4] ss:$8 sps:$4 sm:$0xff]   ;;  %v5189_v34 = vld [vmem:[%s7444_s0 + $0x80] ss:$8 sps:$4 sm:$0xff]   ;;  %v5190_v35 = vld [vmem:[%s7444_s0 + $0x94] ss:$8 sps:$4 sm:$0xff]  }
  0x5e   :  { %4857 = vmatprep.mubr.msk.bf16.mxu1 %vm7477_vm0, %v5238_v32  ;;  %v5244_v36 = vld [vmem:[%s7444_s0 + $0x1b4] ss:$8 sps:$4 sm:$0xff]   ;;  %v5246_v37 = vld [vmem:[%s7444_s0 + $0x1b0] ss:$8 sps:$4 sm:$0xff]   ;;  %v87_v38 = vld [vmem:[%s7444_s0 + $0x1c0] sm:$0x11] }
  0x5f   :  { %v4818_v39 = vcombine.high %v87_v38, %v87_v38  ;;  %v5192_v40 = vld [vmem:[%s7444_s0 + $0x90] ss:$8 sps:$4 sm:$0xff]   ;;  %v5193_v41 = vld [vmem:[%s7444_s0 + $0xa4] ss:$8 sps:$4 sm:$0xff]   ;;  %v4817_v42 = vcombine.low %v87_v38, %v87_v38  ;;  %v5195_v43 = vld [vmem:[%s7444_s0 + $0xa0] ss:$8 sps:$4 sm:$0xff]  }
  0x60   :  { %v5196_v44 = vld [vmem:[%s7444_s0 + $0xb4] ss:$8 sps:$4 sm:$0xff]   ;;  %v5198_v45 = vld [vmem:[%s7444_s0 + $0xb0] ss:$8 sps:$4 sm:$0xff]   ;;  %v5199_v46 = vld [vmem:[%s7444_s0 + $0xc4] ss:$8 sps:$4 sm:$0xff]  }
  0x61   :  { %611 = vmatmul.mubr.bf16.gmra.mrb[24].mxu0 %v5183_v26  ;;  %v5201_v47 = vld [vmem:[%s7444_s0 + $0xc0] ss:$8 sps:$4 sm:$0xff]   ;;  %v5202_v48 = vld [vmem:[%s7444_s0 + $0xd4] ss:$8 sps:$4 sm:$0xff]   ;;  %v5204_v49 = vld [vmem:[%s7444_s0 + $0xd0] ss:$8 sps:$4 sm:$0xff]  }
  0x62   :  { %4838 = vmatprep.mubr.msk.bf16.mxu0 %vm7477_vm0, %v5184_v27  ;;  %v5205_v50 = vld [vmem:[%s7444_s0 + $0xe4] ss:$8 sps:$4 sm:$0xff]   ;;  %v5207_v51 = vld [vmem:[%s7444_s0 + $0xe0] ss:$8 sps:$4 sm:$0xff]   ;;  %v5208_v52 = vld [vmem:[%s7444_s0 + $0xf4] ss:$8 sps:$4 sm:$0xff]  }
  0x63   :  { %v5210_v53 = vld [vmem:[%s7444_s0 + $0xf0] ss:$8 sps:$4 sm:$0xff]   ;;  %v5211_v54 = vld [vmem:[%s7444_s0 + $0x104] ss:$8 sps:$4 sm:$0xff]   ;;  %v5213_v55 = vld [vmem:[%s7444_s0 + $0x100] ss:$8 sps:$4 sm:$0xff]  }
  0x64   :  { %v5214_v56 = vld [vmem:[%s7444_s0 + $0x114] ss:$8 sps:$4 sm:$0xff]   ;;  %v5216_v57 = vld [vmem:[%s7444_s0 + $0x110] ss:$8 sps:$4 sm:$0xff]   ;;  %v5217_v58 = vld [vmem:[%s7444_s0 + $0x124] ss:$8 sps:$4 sm:$0xff]  }
  0x65   :  { %771 = vmatmul.mubr.bf16.gmra.mrb[4].mxu1 %v5240_v33  ;;  %v5219_v59 = vld [vmem:[%s7444_s0 + $0x120] ss:$8 sps:$4 sm:$0xff]   ;;  %v5220_v60 = vld [vmem:[%s7444_s0 + $0x134] ss:$8 sps:$4 sm:$0xff]   ;;  %v5222_v61 = vld [vmem:[%s7444_s0 + $0x130] ss:$8 sps:$4 sm:$0xff]  }
  0x66   :  { %4858 = vmatprep.mubr.msk.bf16.mxu1 %vm7477_vm0, %v5244_v36  ;;  %v5223_v62 = vld [vmem:[%s7444_s0 + $0x144] ss:$8 sps:$4 sm:$0xff]   ;;  %v5225_v63 = vld [vmem:[%s7444_s0 + $0x140] ss:$8 sps:$4 sm:$0xff]   ;;  %v5226_v0 = vld [vmem:[%s7444_s0 + $0x154] ss:$8 sps:$4 sm:$0xff]  }
  0x67   :  { %v5228_v1 = vld [vmem:[%s7444_s0 + $0x150] ss:$8 sps:$4 sm:$0xff]   ;;  %v5229_v2 = vld [vmem:[%s7444_s0 + $0x164] ss:$8 sps:$4 sm:$0xff]   ;;  %v5231_v3 = vld [vmem:[%s7444_s0 + $0x160] ss:$8 sps:$4 sm:$0xff]  }
  0x68   :  { %v5235_v4 = vld [vmem:[%s7444_s0 + $0x174] ss:$8 sps:$4 sm:$0xff]   ;;  %v5237_v5 = vld [vmem:[%s7444_s0 + $0x170] ss:$8 sps:$4 sm:$0xff]   ;;  %v5241_v6 = vld [vmem:[%s7444_s0 + $0x184] ss:$8 sps:$4 sm:$0xff]  }
  0x69   :  { %619 = vmatmul.mubr.bf16.gmra.mrb[28].mxu0 %v5186_v30  ;;  %v5243_v7 = vld [vmem:[%s7444_s0 + $0x180] ss:$8 sps:$4 sm:$0xff]   ;;  %s5356_s28 = smov 32   ;;  %vm1081_vm1 = vcmask 261120   ;;  %vm7474_vm2 = vcmask 517120   ;;  %s5357_s0 = smov 96  }
  0x6a   :  { %4839 = vmatprep.mubr.msk.bf16.mxu0 %vm7477_vm0, %v5187_v31  ;;  %vm7476_vm3 = vcmask 254976   ;;  %vm1628_vm4 = vcmask 259072   ;;  %s5358_s11 = smov 64   ;;  %vm1866_vm5 = vcmask 261124   ;;  %vm7475_vm6 = vcmask 261126   ;;  %s5361_s1 = smov [#allocation8]  }
  0x6b   :  { %vm1732_vm7 = vcmask 257024   ;;  %vm2001_vm8 = vcmask 261122   ;;  %vm1636_vm9 = vcmask 521472   ;;  %vm1644_vm10 = vcmask 783872   ;;  %s4753_s15 = sshll.u32 %s5361_s1, 4  ;;  %s4754_s15 = int_to_ptr.vmem [resolvable:$true] %s4753_s15 }
  0x6c   :  { %vm1652_vm11 = vcmask 1046272   ;;  %vm1875_vm12 = vcmask 523524   ;;  %vm1877_vm13 = vcmask 517376   ;;  %vm1740_vm14 = vcmask 523526   ;;  %p5336_p1 = scmp.lt.s32.totalorder %s4754_s15, %s4754_s15 }
  0x6d   :  { %779 = vmatmul.mubr.bf16.gmra.mrb[8].mxu1 %v5246_v37  ;;  %vm1742_vm15 = vcmask 519424  }
  0x6e   :  { %4859 = vmatprep.mubr.msk.bf16.mxu1 %vm7477_vm0, %v4818_v39 }
  0x71   :  { %627 = vmatmul.mubr.bf16.gmra.mrb[32].mxu0 %v5189_v34 }
  0x72   :  { %4840 = vmatprep.mubr.msk.bf16.mxu0 %vm7477_vm0, %v5190_v35 }
  0x75   :  { %787 = vmatmul.mubr.bf16.gmra.mrb[12].mxu1 %v4817_v42 }
  0x79   :  { %635 = vmatmul.mubr.bf16.gmra.mrb[36].mxu0 %v5192_v40 }
  0x7a   :  { %4841 = vmatprep.mubr.msk.bf16.mxu0 %vm7477_vm0, %v5193_v41 }
  0x81   :  { %643 = vmatmul.mubr.bf16.gmra.mrb[40].mxu0 %v5195_v43 }
  0x82   :  { %4842 = vmatprep.mubr.msk.bf16.mxu0 %vm7477_vm0, %v5196_v44 }
  0x89   :  { %651 = vmatmul.mubr.bf16.gmra.mrb[44].mxu0 %v5198_v45 }
  0x8a   :  { %4843 = vmatprep.mubr.msk.bf16.mxu0 %vm7477_vm0, %v5199_v46 }
  0x91   :  { %659 = vmatmul.mubr.bf16.gmra.mrb[48].mxu0 %v5201_v47 }
  0x92   :  { %4844 = vmatprep.mubr.msk.bf16.mxu0 %vm7477_vm0, %v5202_v48 }
  0x99   :  { %667 = vmatmul.mubr.bf16.gmra.mrb[52].mxu0 %v5204_v49 }
  0x9a   :  { %4845 = vmatprep.mubr.msk.bf16.mxu0 %vm7477_vm0, %v5205_v50 }
  0xa1   :  { %675 = vmatmul.mubr.bf16.gmra.mrb[56].mxu0 %v5207_v51 }
  0xa2   :  { %4846 = vmatprep.mubr.msk.bf16.mxu0 %vm7477_vm0, %v5208_v52 }
  0xa9   :  { %683 = vmatmul.mubr.bf16.gmra.mrb[60].mxu0 %v5210_v53 }
  0xaa   :  { %4847 = vmatprep.mubr.msk.bf16.mxu0 %vm7477_vm0, %v5211_v54 }
  0xb1   :  { %691 = vmatmul.mubr.bf16.gmra.mrb[64].mxu0 %v5213_v55 }
  0xb2   :  { %4848 = vmatprep.mubr.msk.bf16.mxu0 %vm7477_vm0, %v5214_v56 }
  0xb9   :  { %699 = vmatmul.mubr.bf16.gmra.mrb[68].mxu0 %v5216_v57 }
  0xba   :  { %4849 = vmatprep.mubr.msk.bf16.mxu0 %vm7477_vm0, %v5217_v58 }
  0xc1   :  { %707 = vmatmul.mubr.bf16.gmra.mrb[72].mxu0 %v5219_v59 }
  0xc2   :  { %4850 = vmatprep.mubr.msk.bf16.mxu0 %vm7477_vm0, %v5220_v60 }
  0xc9   :  { %715 = vmatmul.mubr.bf16.gmra.mrb[76].mxu0 %v5222_v61 }
  0xca   :  { %4851 = vmatprep.mubr.msk.bf16.mxu0 %vm7477_vm0, %v5223_v62 }
  0xd1   :  { %723 = vmatmul.mubr.bf16.gmra.mrb[80].mxu0 %v5225_v63 }
  0xd2   :  { %4852 = vmatprep.mubr.msk.bf16.mxu0 %vm7477_vm0, %v5226_v0 }
  0xd9   :  { %731 = vmatmul.mubr.bf16.gmra.mrb[84].mxu0 %v5228_v1 }
  0xda   :  { %4853 = vmatprep.mubr.msk.bf16.mxu0 %vm7477_vm0, %v5229_v2 }
  0xe1   :  { %739 = vmatmul.mubr.bf16.gmra.mrb[88].mxu0 %v5231_v3 }
  0xe2   :  { %4854 = vmatprep.mubr.msk.bf16.mxu0 %vm7477_vm0, %v5235_v4 }
  0xe9   :  { %747 = vmatmul.mubr.bf16.gmra.mrb[92].mxu0 %v5237_v5 }
  0xea   :  { %4855 = vmatprep.mubr.msk.bf16.mxu0 %vm7477_vm0, %v5241_v6 }
  0xf1   :  { %755 = vmatmul.mubr.bf16.gmra.mrb[96].mxu0 %v5243_v7 }
 0x104   :  { %v5643_v8 = vpop.f32.mrb[0].mxu0 }
 0x105   :  { %v566_v9 = vpop.f32.mrb[1].mxu0  ;;  %v796_v10 = vmul.f32 %v5643_v8, %v5643_v8 }
 0x106   :  { %v5647_v11 = vpop.f32.mrb[2].mxu0 }
 0x107   :  { %910 = vrot.lane.b32.xlu0 %v796_v10, %s5356_s28  ;;  %v569_v12 = vpop.f32.mrb[3].mxu0  ;;  %v797_v13 = vmul.f32 %v5647_v11, %v5647_v11 }
 0x10b   :  { %912 = vrot.lane.b32.xlu0 %v797_v13, %s5356_s28 }
 0x10c   :  { %v5653_v14 = vpop.f32.mrb[4].mxu0 }
 0x10d   :  { %v574_v15 = vpop.f32.mrb[5].mxu0  ;;  %v798_v16 = vmul.f32 %v5653_v14, %v5653_v14 }
 0x10e   :  { %v5657_v17 = vpop.f32.mrb[6].mxu0 }
 0x10f   :  { %914 = vrot.lane.b32.xlu1 %v798_v16, %s5356_s28  ;;  %v577_v18 = vpop.f32.mrb[7].mxu0  ;;  %v799_v19 = vmul.f32 %v5657_v17, %v5657_v17 }
 0x113   :  { %916 = vrot.lane.b32.xlu1 %v799_v19, %s5356_s28 }
 0x114   :  { %v5663_v20 = vpop.f32.mrb[8].mxu0 }
 0x115   :  { %v800_v21 = vmul.f32 %v5663_v20, %v5663_v20  ;;  %v582_v22 = vpop.f32.mrb[9].mxu0 }
 0x116   :  { %v5667_v23 = vpop.f32.mrb[10].mxu0 }
 0x117   :  { %v801_v24 = vmul.f32 %v5667_v23, %v5667_v23  ;;  %918 = vrot.lane.b32.xlu0 %v800_v21, %s5356_s28  ;;  %v585_v25 = vpop.f32.mrb[11].mxu0 }
 0x119   :  { %920 = vrot.lane.b32.xlu1 %v801_v24, %s5356_s28 }
 0x11c   :  { %v5673_v26 = vpop.f32.mrb[12].mxu0 }
 0x11d   :  { %v802_v27 = vmul.f32 %v5673_v26, %v5673_v26  ;;  %v590_v28 = vpop.f32.mrb[13].mxu0 }
 0x11e   :  { %v5677_v29 = vpop.f32.mrb[14].mxu0 }
 0x11f   :  { %v803_v30 = vmul.f32 %v5677_v29, %v5677_v29  ;;  %922 = vrot.lane.b32.xlu0 %v802_v27, %s5356_s28  ;;  %v593_v31 = vpop.f32.mrb[15].mxu0 }
 0x121   :  { %924 = vrot.lane.b32.xlu1 %v803_v30, %s5356_s28 }
 0x124   :  { %v5683_v32 = vpop.f32.mrb[16].mxu0 }
 0x125   :  { %v804_v33 = vmul.f32 %v5683_v32, %v5683_v32  ;;  %v598_v34 = vpop.f32.mrb[17].mxu0 }
 0x126   :  { %v5687_v35 = vpop.f32.mrb[18].mxu0 }
 0x127   :  { %v805_v36 = vmul.f32 %v5687_v35, %v5687_v35  ;;  %926 = vrot.lane.b32.xlu0 %v804_v33, %s5356_s28  ;;  %v601_v37 = vpop.f32.mrb[19].mxu0 }
 0x129   :  { %928 = vrot.lane.b32.xlu1 %v805_v36, %s5356_s28 }
 0x12c   :  { %v5693_v38 = vpop.f32.mrb[20].mxu0 }
 0x12d   :  { %v806_v39 = vmul.f32 %v5693_v38, %v5693_v38  ;;  %v606_v40 = vpop.f32.mrb[21].mxu0 }
 0x12e   :  { %v5697_v41 = vpop.f32.mrb[22].mxu0 }
 0x12f   :  { %v807_v42 = vmul.f32 %v5697_v41, %v5697_v41  ;;  %930 = vrot.lane.b32.xlu0 %v806_v39, %s5356_s28  ;;  %v609_v43 = vpop.f32.mrb[23].mxu0 }
 0x130   :  { %v5712_v50 = vpop.f32.mrb[0].mxu1 }
 0x131   :  { %932 = vrot.lane.b32.xlu1 %v807_v42, %s5356_s28  ;;  %v766_v51 = vpop.f32.mrb[1].mxu1 }
 0x132   :  { %v5715_v52 = vpop.f32.mrb[2].mxu1 }
 0x133   :  { %7478 = vst [vmem:[#allocation11_spill] sm:$0xff] %v5715_v52  ;;  %v769_v54 = vpop.f32.mrb[3].mxu1 }
 0x134   :  { %v5703_v44 = vpop.f32.mrb[24].mxu0 }
 0x135   :  { %v808_v45 = vmul.f32 %v5703_v44, %v5703_v44  ;;  %v614_v46 = vpop.f32.mrb[25].mxu0 }
 0x136   :  { %v5707_v47 = vpop.f32.mrb[26].mxu0 }
 0x137   :  { %v809_v48 = vmul.f32 %v5707_v47, %v5707_v47  ;;  %934 = vrot.lane.b32.xlu0 %v808_v45, %s5356_s28  ;;  %v617_v49 = vpop.f32.mrb[27].mxu0 }
 0x138   :  { %v5726_v60 = vpop.f32.mrb[4].mxu1 }
 0x139   :  { %936 = vrot.lane.b32.xlu1 %v809_v48, %s5356_s28  ;;  %7481 = vst [vmem:[#allocation14_spill] sm:$0xff] %v5726_v60  ;;  %v774_v61 = vpop.f32.mrb[5].mxu1 }
 0x13a   :  { %v5729_v62 = vpop.f32.mrb[6].mxu1 }
 0x13b   :  { %7482 = vst [vmem:[#allocation15_spill] sm:$0xff] %v5729_v62  ;;  %v777_v0 = vpop.f32.mrb[7].mxu1 }
 0x13c   :  { %v5717_v53 = vpop.f32.mrb[28].mxu0 }
 0x13d   :  { %7479 = vst [vmem:[#allocation12_spill] sm:$0xff] %v5717_v53  ;;  %v810_v55 = vmul.f32 %v5717_v53, %v5717_v53  ;;  %v622_v56 = vpop.f32.mrb[29].mxu0 }
 0x13e   :  { %v5721_v57 = vpop.f32.mrb[30].mxu0 }
 0x13f   :  { %7480 = vst [vmem:[#allocation13_spill] sm:$0xff] %v5721_v57  ;;  %v811_v58 = vmul.f32 %v5721_v57, %v5721_v57  ;;  %938 = vrot.lane.b32.xlu0 %v810_v55, %s5356_s28  ;;  %v625_v59 = vpop.f32.mrb[31].mxu0 }
 0x140   :  { %v5740_v6 = vpop.f32.mrb[8].mxu1 }
 0x141   :  { %940 = vrot.lane.b32.xlu1 %v811_v58, %s5356_s28  ;;  %7485 = vst [vmem:[#allocation18_spill] sm:$0xff] %v5740_v6  ;;  %v782_v7 = vpop.f32.mrb[9].mxu1 }
 0x142   :  { %v5743_v9 = vpop.f32.mrb[10].mxu1 }
 0x143   :  { %v785_v12 = vpop.f32.mrb[11].mxu1 }
 0x144   :  { %v5731_v63 = vpop.f32.mrb[32].mxu0 }
 0x145   :  { %7483 = vst [vmem:[#allocation16_spill] sm:$0xff] %v5731_v63  ;;  %v812_v1 = vmul.f32 %v5731_v63, %v5731_v63  ;;  %v630_v2 = vpop.f32.mrb[33].mxu0 }
 0x146   :  { %v5735_v3 = vpop.f32.mrb[34].mxu0 }
 0x147   :  { %7484 = vst [vmem:[#allocation17_spill] sm:$0xff] %v5735_v3  ;;  %v813_v4 = vmul.f32 %v5735_v3, %v5735_v3  ;;  %942 = vrot.lane.b32.xlu0 %v812_v1, %s5356_s28  ;;  %v633_v5 = vpop.f32.mrb[35].mxu0 }
 0x148   :  { %v5754_v21 = vpop.f32.mrb[12].mxu1 }
 0x149   :  { %944 = vrot.lane.b32.xlu1 %v813_v4, %s5356_s28  ;;  %v790_v22 = vpop.f32.mrb[13].mxu1 }
 0x14a   :  { %v791_v24 = vpop.f32.mrb[14].mxu1 }
 0x14b   :  { %v792_v25 = vpop.f32.mrb[15].mxu1 }
 0x14c   :  { %v5745_v10 = vpop.f32.mrb[36].mxu0 }
 0x14d   :  { %v814_v13 = vmul.f32 %v5745_v10, %v5745_v10  ;;  %v638_v15 = vpop.f32.mrb[37].mxu0 }
 0x14e   :  { %v5749_v16 = vpop.f32.mrb[38].mxu0 }
 0x14f   :  { %7486 = vst [vmem:[#allocation19_spill] sm:$0xff] %v5749_v16  ;;  %v815_v18 = vmul.f32 %v5749_v16, %v5749_v16  ;;  %946 = vrot.lane.b32.xlu0 %v814_v13, %s5356_s28  ;;  %v641_v19 = vpop.f32.mrb[39].mxu0 }
 0x151   :  { %948 = vrot.lane.b32.xlu1 %v815_v18, %s5356_s28 }
 0x154   :  { %v5757_v27 = vpop.f32.mrb[40].mxu0 }
 0x155   :  { %7487 = vst [vmem:[#allocation20_spill] sm:$0xff] %v5757_v27  ;;  %v816_v28 = vmul.f32 %v5757_v27, %v5757_v27  ;;  %v646_v30 = vpop.f32.mrb[41].mxu0 }
 0x156   :  { %v5761_v31 = vpop.f32.mrb[42].mxu0 }
 0x157   :  { %7488 = vst [vmem:[#allocation21_spill] sm:$0xff] %v5761_v31  ;;  %v817_v33 = vmul.f32 %v5761_v31, %v5761_v31  ;;  %950 = vrot.lane.b32.xlu0 %v816_v28, %s5356_s28  ;;  %v649_v34 = vpop.f32.mrb[43].mxu0 }
 0x159   :  { %952 = vrot.lane.b32.xlu1 %v817_v33, %s5356_s28 }
 0x15c   :  { %v5767_v36 = vpop.f32.mrb[44].mxu0 }
 0x15d   :  { %7489 = vst [vmem:[#allocation22_spill] sm:$0xff] %v5767_v36  ;;  %v818_v37 = vmul.f32 %v5767_v36, %v5767_v36  ;;  %v654_v39 = vpop.f32.mrb[45].mxu0 }
 0x15e   :  { %v5771_v40 = vpop.f32.mrb[46].mxu0 }
 0x15f   :  { %7490 = vst [vmem:[#allocation23_spill] sm:$0xff] %v5771_v40  ;;  %v819_v42 = vmul.f32 %v5771_v40, %v5771_v40  ;;  %954 = vrot.lane.b32.xlu0 %v818_v37, %s5356_s28  ;;  %v657_v43 = vpop.f32.mrb[47].mxu0 }
 0x161   :  { %956 = vrot.lane.b32.xlu1 %v819_v42, %s5356_s28 }
 0x164   :  { %v5777_v45 = vpop.f32.mrb[48].mxu0 }
 0x165   :  { %v820_v46 = vmul.f32 %v5777_v45, %v5777_v45  ;;  %v662_v48 = vpop.f32.mrb[49].mxu0 }
 0x166   :  { %v5781_v49 = vpop.f32.mrb[50].mxu0 }
 0x167   :  { %v821_v51 = vmul.f32 %v5781_v49, %v5781_v49  ;;  %958 = vrot.lane.b32.xlu0 %v820_v46, %s5356_s28  ;;  %v665_v54 = vpop.f32.mrb[51].mxu0 }
 0x169   :  { %960 = vrot.lane.b32.xlu1 %v821_v51, %s5356_s28 }
 0x16c   :  { %v5787_v55 = vpop.f32.mrb[52].mxu0 }
 0x16d   :  { %7491 = vst [vmem:[#allocation24_spill] sm:$0xff] %v5787_v55  ;;  %v822_v56 = vmul.f32 %v5787_v55, %v5787_v55  ;;  %v670_v58 = vpop.f32.mrb[53].mxu0 }
 0x16e   :  { %v5791_v59 = vpop.f32.mrb[54].mxu0 }
 0x16f   :  { %v823_v61 = vmul.f32 %v5791_v59, %v5791_v59  ;;  %962 = vrot.lane.b32.xlu0 %v822_v56, %s5356_s28  ;;  %v673_v0 = vpop.f32.mrb[55].mxu0 }
 0x171   :  { %964 = vrot.lane.b32.xlu1 %v823_v61, %s5356_s28 }
 0x174   :  { %v5797_v1 = vpop.f32.mrb[56].mxu0 }
 0x175   :  { %v824_v2 = vmul.f32 %v5797_v1, %v5797_v1  ;;  %v678_v4 = vpop.f32.mrb[57].mxu0 }
 0x176   :  { %v5801_v5 = vpop.f32.mrb[58].mxu0 }
 0x177   :  { %v825_v7 = vmul.f32 %v5801_v5, %v5801_v5  ;;  %966 = vrot.lane.b32.xlu0 %v824_v2, %s5356_s28  ;;  %v681_v12 = vpop.f32.mrb[59].mxu0 }
 0x179   :  { %v911_v13 = vpop.permute.xlu0 %910  ;;  %968 = vrot.lane.b32.xlu1 %v825_v7, %s5356_s28 }
 0x17a   :  { %v1082_v15 = vsel %vm1081_vm1, %v5643_v8, %v911_v13 }
 0x17b   :  { %v1139_v30 = vsel %vm7477_vm0, %v1082_v15, 0.0 }
 0x17c   :  { %v5809_v18 = vpop.f32.mrb[60].mxu0 }
 0x17d   :  { %v826_v19 = vmul.f32 %v5809_v18, %v5809_v18  ;;  %v913_v22 = vpop.permute.xlu0 %912  ;;  %v686_v24 = vpop.f32.mrb[61].mxu0 }
 0x17e   :  { %v1083_v25 = vsel %vm1081_vm1, %v5647_v11, %v913_v22  ;;  %v5815_v28 = vpop.f32.mrb[62].mxu0 }
 0x17f   :  { %v1140_v33 = vsel %vm7477_vm0, %v1083_v25, 0.0  ;;  %v827_v34 = vmul.f32 %v5815_v28, %v5815_v28  ;;  %970 = vrot.lane.b32.xlu0 %v826_v19, %s5356_s28  ;;  %v689_v37 = vpop.f32.mrb[63].mxu0 }
 0x180   :  { %v1141_v39 = vadd.f32 %v1140_v33, %v1139_v30 }
 0x181   :  { %v915_v42 = vpop.permute.xlu1 %914  ;;  %972 = vrot.lane.b32.xlu1 %v827_v34, %s5356_s28 }
 0x182   :  { %v1084_v43 = vsel %vm1081_vm1, %v5653_v14, %v915_v42 }
 0x183   :  { %v1142_v46 = vsel %vm7477_vm0, %v1084_v43, 0.0 }
 0x184   :  { %v1143_v48 = vadd.f32 %v1142_v46, %v1141_v39  ;;  %v5826_v51 = vpop.f32.mrb[64].mxu0 }
 0x185   :  { %v828_v54 = vmul.f32 %v5826_v51, %v5826_v51  ;;  %v917_v56 = vpop.permute.xlu1 %916  ;;  %v694_v58 = vpop.f32.mrb[65].mxu0 }
 0x186   :  { %v1085_v61 = vsel %vm1081_vm1, %v5657_v17, %v917_v56  ;;  %v5832_v0 = vpop.f32.mrb[66].mxu0 }
 0x187   :  { %v1144_v2 = vsel %vm7477_vm0, %v1085_v61, 0.0  ;;  %v829_v4 = vmul.f32 %v5832_v0, %v5832_v0  ;;  %974 = vrot.lane.b32.xlu0 %v828_v54, %s5356_s28  ;;  %v697_v7 = vpop.f32.mrb[67].mxu0 }
 0x188   :  { %v1145_v12 = vadd.f32 %v1144_v2, %v1143_v48 }
 0x189   :  { %v919_v13 = vpop.permute.xlu0 %918  ;;  %976 = vrot.lane.b32.xlu1 %v829_v4, %s5356_s28 }
 0x18a   :  { %v1086_v15 = vsel %vm1081_vm1, %v5663_v20, %v919_v13 }
 0x18b   :  { %v1146_v19 = vsel %vm7477_vm0, %v1086_v15, 0.0  ;;  %v921_v22 = vpop.permute.xlu1 %920 }
 0x18c   :  { %v1147_v24 = vadd.f32 %v1146_v19, %v1145_v12  ;;  %v1087_v25 = vsel %vm1081_vm1, %v5667_v23, %v921_v22  ;;  %v5844_v30 = vpop.f32.mrb[68].mxu0 }
 0x18d   :  { %v1148_v33 = vsel %vm7477_vm0, %v1087_v25, 0.0  ;;  %v830_v34 = vmul.f32 %v5844_v30, %v5844_v30  ;;  %v702_v37 = vpop.f32.mrb[69].mxu0 }
 0x18e   :  { %v1149_v39 = vadd.f32 %v1148_v33, %v1147_v24  ;;  %v5849_v42 = vpop.f32.mrb[70].mxu0 }
 0x18f   :  { %v831_v43 = vmul.f32 %v5849_v42, %v5849_v42  ;;  %978 = vrot.lane.b32.xlu0 %v830_v34, %s5356_s28  ;;  %v705_v46 = vpop.f32.mrb[71].mxu0 }
 0x191   :  { %v923_v48 = vpop.permute.xlu0 %922  ;;  %980 = vrot.lane.b32.xlu1 %v831_v43, %s5356_s28 }
 0x192   :  { %v1088_v54 = vsel %vm1081_vm1, %v5673_v26, %v923_v48 }
 0x193   :  { %v1150_v56 = vsel %vm7477_vm0, %v1088_v54, 0.0  ;;  %v925_v58 = vpop.permute.xlu1 %924 }
 0x194   :  { %v1151_v61 = vadd.f32 %v1150_v56, %v1149_v39  ;;  %v1089_v2 = vsel %vm1081_vm1, %v5677_v29, %v925_v58  ;;  %v5860_v4 = vpop.f32.mrb[72].mxu0 }
 0x195   :  { %v1152_v7 = vsel %vm7477_vm0, %v1089_v2, 0.0  ;;  %v832_v12 = vmul.f32 %v5860_v4, %v5860_v4  ;;  %v710_v13 = vpop.f32.mrb[73].mxu0 }
 0x196   :  { %v1153_v15 = vadd.f32 %v1152_v7, %v1151_v61  ;;  %v5865_v19 = vpop.f32.mrb[74].mxu0 }
 0x197   :  { %v833_v22 = vmul.f32 %v5865_v19, %v5865_v19  ;;  %982 = vrot.lane.b32.xlu0 %v832_v12, %s5356_s28  ;;  %v713_v24 = vpop.f32.mrb[75].mxu0 }
 0x199   :  { %v927_v25 = vpop.permute.xlu0 %926  ;;  %984 = vrot.lane.b32.xlu1 %v833_v22, %s5356_s28 }
 0x19a   :  { %v1090_v33 = vsel %vm1081_vm1, %v5683_v32, %v927_v25 }
 0x19b   :  { %v1154_v34 = vsel %vm7477_vm0, %v1090_v33, 0.0  ;;  %v929_v37 = vpop.permute.xlu1 %928 }
 0x19c   :  { %v1155_v39 = vadd.f32 %v1154_v34, %v1153_v15  ;;  %v1091_v43 = vsel %vm1081_vm1, %v5687_v35, %v929_v37  ;;  %v5876_v46 = vpop.f32.mrb[76].mxu0 }
 0x19d   :  { %v1156_v48 = vsel %vm7477_vm0, %v1091_v43, 0.0  ;;  %v834_v54 = vmul.f32 %v5876_v46, %v5876_v46  ;;  %v718_v56 = vpop.f32.mrb[77].mxu0 }
 0x19e   :  { %v1157_v58 = vadd.f32 %v1156_v48, %v1155_v39  ;;  %v5881_v61 = vpop.f32.mrb[78].mxu0 }
 0x19f   :  { %v835_v2 = vmul.f32 %v5881_v61, %v5881_v61  ;;  %986 = vrot.lane.b32.xlu0 %v834_v54, %s5356_s28  ;;  %v721_v7 = vpop.f32.mrb[79].mxu0 }
 0x1a1   :  { %v931_v12 = vpop.permute.xlu0 %930  ;;  %988 = vrot.lane.b32.xlu1 %v835_v2, %s5356_s28 }
 0x1a2   :  { %v1092_v13 = vsel %vm1081_vm1, %v5693_v38, %v931_v12 }
 0x1a3   :  { %v1158_v15 = vsel %vm7477_vm0, %v1092_v13, 0.0  ;;  %v933_v22 = vpop.permute.xlu1 %932 }
 0x1a4   :  { %v1159_v24 = vadd.f32 %v1158_v15, %v1157_v58  ;;  %v1093_v25 = vsel %vm1081_vm1, %v5697_v41, %v933_v22  ;;  %v5892_v33 = vpop.f32.mrb[80].mxu0 }
 0x1a5   :  { %v1160_v34 = vsel %vm7477_vm0, %v1093_v25, 0.0  ;;  %v836_v37 = vmul.f32 %v5892_v33, %v5892_v33  ;;  %v726_v39 = vpop.f32.mrb[81].mxu0 }
 0x1a6   :  { %v1161_v43 = vadd.f32 %v1160_v34, %v1159_v24  ;;  %v5897_v48 = vpop.f32.mrb[82].mxu0 }
 0x1a7   :  { %v837_v54 = vmul.f32 %v5897_v48, %v5897_v48  ;;  %990 = vrot.lane.b32.xlu0 %v836_v37, %s5356_s28  ;;  %v729_v56 = vpop.f32.mrb[83].mxu0 }
 0x1a9   :  { %v935_v58 = vpop.permute.xlu0 %934  ;;  %992 = vrot.lane.b32.xlu1 %v837_v54, %s5356_s28 }
 0x1aa   :  { %v1094_v2 = vsel %vm1081_vm1, %v5703_v44, %v935_v58 }
 0x1ab   :  { %v1162_v7 = vsel %vm7477_vm0, %v1094_v2, 0.0  ;;  %v937_v12 = vpop.permute.xlu1 %936 }
 0x1ac   :  { %v1163_v13 = vadd.f32 %v1162_v7, %v1161_v43  ;;  %v1095_v15 = vsel %vm1081_vm1, %v5707_v47, %v937_v12  ;;  %v5908_v22 = vpop.f32.mrb[84].mxu0 }
 0x1ad   :  { %v1164_v24 = vsel %vm7477_vm0, %v1095_v15, 0.0  ;;  %v838_v25 = vmul.f32 %v5908_v22, %v5908_v22  ;;  %v734_v34 = vpop.f32.mrb[85].mxu0 }
 0x1ae   :  { %v1165_v37 = vadd.f32 %v1164_v24, %v1163_v13  ;;  %v5913_v39 = vpop.f32.mrb[86].mxu0 }
 0x1af   :  { %v839_v54 = vmul.f32 %v5913_v39, %v5913_v39  ;;  %994 = vrot.lane.b32.xlu0 %v838_v25, %s5356_s28  ;;  %v737_v43 = vpop.f32.mrb[87].mxu0 }
 0x1b1   :  { %v939_v56 = vpop.permute.xlu0 %938  ;;  %996 = vrot.lane.b32.xlu1 %v839_v54, %s5356_s28 }
 0x1b2   :  { %v1096_v58 = vsel %vm1081_vm1, %v5717_v53, %v939_v56 }
 0x1b3   :  { %v1166_v2 = vsel %vm7477_vm0, %v1096_v58, 0.0  ;;  %v941_v7 = vpop.permute.xlu1 %940 }
 0x1b4   :  { %v1167_v12 = vadd.f32 %v1166_v2, %v1165_v37  ;;  %v1097_v13 = vsel %vm1081_vm1, %v5721_v57, %v941_v7  ;;  %v5924_v15 = vpop.f32.mrb[88].mxu0 }
 0x1b5   :  { %v1168_v24 = vsel %vm7477_vm0, %v1097_v13, 0.0  ;;  %v840_v25 = vmul.f32 %v5924_v15, %v5924_v15  ;;  %v742_v34 = vpop.f32.mrb[89].mxu0 }
 0x1b6   :  { %v1169_v43 = vadd.f32 %v1168_v24, %v1167_v12  ;;  %v5929_v54 = vpop.f32.mrb[90].mxu0 }
 0x1b7   :  { %v841_v56 = vmul.f32 %v5929_v54, %v5929_v54  ;;  %998 = vrot.lane.b32.xlu0 %v840_v25, %s5356_s28  ;;  %v745_v37 = vpop.f32.mrb[91].mxu0 }
 0x1b9   :  { %v943_v58 = vpop.permute.xlu0 %942  ;;  %1000 = vrot.lane.b32.xlu1 %v841_v56, %s5356_s28 }
 0x1ba   :  { %v1098_v2 = vsel %vm1081_vm1, %v5731_v63, %v943_v58 }
 0x1bb   :  { %v1170_v7 = vsel %vm7477_vm0, %v1098_v2, 0.0  ;;  %v945_v13 = vpop.permute.xlu1 %944 }
 0x1bc   :  { %v1171_v57 = vadd.f32 %v1170_v7, %v1169_v43  ;;  %v1099_v12 = vsel %vm1081_vm1, %v5735_v3, %v945_v13  ;;  %v5940_v24 = vpop.f32.mrb[92].mxu0 }
 0x1bd   :  { %v1172_v34 = vsel %vm7477_vm0, %v1099_v12, 0.0  ;;  %v842_v25 = vmul.f32 %v5940_v24, %v5940_v24  ;;  %v750_v37 = vpop.f32.mrb[93].mxu0 }
 0x1be   :  { %v1173_v53 = vadd.f32 %v1172_v34, %v1171_v57  ;;  %v5945_v56 = vpop.f32.mrb[94].mxu0 }
 0x1bf   :  { %v843_v58 = vmul.f32 %v5945_v56, %v5945_v56  ;;  %1002 = vrot.lane.b32.xlu0 %v842_v25, %s5356_s28  ;;  %v753_v43 = vpop.f32.mrb[95].mxu0 }
 0x1c1   :  { %v947_v2 = vpop.permute.xlu0 %946  ;;  %1004 = vrot.lane.b32.xlu1 %v843_v58, %s5356_s28 }
 0x1c2   :  { %v1100_v7 = vsel %vm1081_vm1, %v5745_v10, %v947_v2 }
 0x1c3   :  { %v1174_v13 = vsel %vm7477_vm0, %v1100_v7, 0.0  ;;  %v949_v12 = vpop.permute.xlu1 %948  ;;  %v846_v7 = vmul.f32 %v5712_v50, %v5712_v50 }
 0x1c4   :  { %v1175_v3 = vadd.f32 %v1174_v13, %v1173_v53  ;;  %v1101_v57 = vsel %vm1081_vm1, %v5749_v16, %v949_v12  ;;  %v5956_v34 = vpop.f32.mrb[96].mxu0 }
 0x1c5   :  { %v1176_v37 = vsel %vm7477_vm0, %v1101_v57, 0.0  ;;  %v844_v25 = vmul.f32 %v5956_v34, %v5956_v34  ;;  %v758_v43 = vpop.f32.mrb[97].mxu0 }
 0x1c6   :  { %v1177_v63 = vadd.f32 %v1176_v37, %v1175_v3  ;;  %v5961_v58 = vpop.f32.mrb[98].mxu0  ;;  %v847_v3 = vmul.f32 %v5715_v52, %v5715_v52 }
 0x1c7   :  { %v845_v2 = vmul.f32 %v5961_v58, %v5961_v58  ;;  %1006 = vrot.lane.b32.xlu0 %v844_v25, %s5356_s28  ;;  %v761_v53 = vpop.f32.mrb[99].mxu0 }
 0x1c8   :  { %v848_v53 = vmul.f32 %v5726_v60, %v5726_v60 }
 0x1c9   :  { %v951_v13 = vpop.permute.xlu0 %950  ;;  %1008 = vrot.lane.b32.xlu1 %v845_v2, %s5356_s28 }
 0x1ca   :  { %v1102_v12 = vsel %vm1081_vm1, %v5757_v27, %v951_v13  ;;  %v849_v27 = vmul.f32 %v5729_v62, %v5729_v62 }
 0x1cb   :  { %v1178_v57 = vsel %vm7477_vm0, %v1102_v12, 0.0  ;;  %v953_v37 = vpop.permute.xlu1 %952  ;;  %1010 = vrot.lane.b32.xlu0 %v846_v7, %s5356_s28  ;;  %v850_v7 = vmul.f32 %v5740_v6, %v5740_v6 }
 0x1cc   :  { %v1179_v43 = vadd.f32 %v1178_v57, %v1177_v63  ;;  %v1103_v25 = vsel %vm1081_vm1, %v5761_v31, %v953_v37  ;;  %v851_v57 = vmul.f32 %v5743_v9, %v5743_v9 }
 0x1cd   :  { %v1180_v2 = vsel %vm7477_vm0, %v1103_v25, 0.0  ;;  %1012 = vrot.lane.b32.xlu1 %v847_v3, %s5356_s28  ;;  %v852_v3 = vmul.f32 %v5754_v21, %v5754_v21 }
 0x1ce   :  { %v1181_v13 = vadd.f32 %v1180_v2, %v1179_v43 }
 0x1cf   :  { %1014 = vrot.lane.b32.xlu0 %v848_v53, %s5356_s28 }
 0x1d1   :  { %v955_v63 = vpop.permute.xlu0 %954  ;;  %1016 = vrot.lane.b32.xlu1 %v849_v27, %s5356_s28 }
 0x1d2   :  { %v1104_v12 = vsel %vm1081_vm1, %v5767_v36, %v955_v63 }
 0x1d3   :  { %v1182_v37 = vsel %vm7477_vm0, %v1104_v12, 0.0  ;;  %v957_v43 = vpop.permute.xlu1 %956  ;;  %1018 = vrot.lane.b32.xlu0 %v850_v7, %s5356_s28 }
 0x1d4   :  { %v1183_v25 = vadd.f32 %v1182_v37, %v1181_v13  ;;  %v1105_v53 = vsel %vm1081_vm1, %v5771_v40, %v957_v43 }
 0x1d5   :  { %v1184_v27 = vsel %vm7477_vm0, %v1105_v53, 0.0  ;;  %1020 = vrot.lane.b32.xlu1 %v851_v57, %s5356_s28 }
 0x1d6   :  { %v1185_v2 = vadd.f32 %v1184_v27, %v1183_v25 }
 0x1d7   :  { %1022 = vrot.lane.b32.xlu0 %v852_v3, %s5356_s28 }
 0x1d9   :  { %v959_v63 = vpop.permute.xlu0 %958 }
 0x1da   :  { %v1106_v36 = vsel %vm1081_vm1, %v5777_v45, %v959_v63 }
 0x1db   :  { %v1186_v12 = vsel %vm7477_vm0, %v1106_v36, 0.0  ;;  %v961_v31 = vpop.permute.xlu1 %960 }
 0x1dc   :  { %v1187_v16 = vadd.f32 %v1186_v12, %v1185_v2  ;;  %v1107_v13 = vsel %vm1081_vm1, %v5781_v49, %v961_v31 }
 0x1dd   :  { %v1188_v7 = vsel %vm7477_vm0, %v1107_v13, 0.0 }
 0x1de   :  { %v1189_v37 = vadd.f32 %v1188_v7, %v1187_v16 }
 0x1e1   :  { %v963_v43 = vpop.permute.xlu0 %962 }
 0x1e2   :  { %v1108_v57 = vsel %vm1081_vm1, %v5787_v55, %v963_v43 }
 0x1e3   :  { %v1190_v3 = vsel %vm7477_vm0, %v1108_v57, 0.0  ;;  %v965_v25 = vpop.permute.xlu1 %964 }
 0x1e4   :  { %v1191_v53 = vadd.f32 %v1190_v3, %v1189_v37  ;;  %v1109_v27 = vsel %vm1081_vm1, %v5791_v59, %v965_v25 }
 0x1e5   :  { %v1192_v36 = vsel %vm7477_vm0, %v1109_v27, 0.0 }
 0x1e6   :  { %v1193_v2 = vadd.f32 %v1192_v36, %v1191_v53 }
 0x1e9   :  { %v967_v63 = vpop.permute.xlu0 %966 }
 0x1ea   :  { %v1110_v31 = vsel %vm1081_vm1, %v5797_v1, %v967_v63 }
 0x1eb   :  { %v1194_v16 = vsel %vm7477_vm0, %v1110_v31, 0.0  ;;  %v969_v12 = vpop.permute.xlu1 %968 }
 0x1ec   :  { %v1195_v13 = vadd.f32 %v1194_v16, %v1193_v2  ;;  %v1111_v7 = vsel %vm1081_vm1, %v5801_v5, %v969_v12 }
 0x1ed   :  { %v1196_v43 = vsel %vm7477_vm0, %v1111_v7, 0.0 }
 0x1ee   :  { %v1197_v37 = vadd.f32 %v1196_v43, %v1195_v13 }
 0x1f1   :  { %v971_v57 = vpop.permute.xlu0 %970 }
 0x1f2   :  { %v1112_v59 = vsel %vm1081_vm1, %v5809_v18, %v971_v57 }
 0x1f3   :  { %v1198_v3 = vsel %vm7477_vm0, %v1112_v59, 0.0  ;;  %v973_v25 = vpop.permute.xlu1 %972 }
 0x1f4   :  { %v1199_v53 = vadd.f32 %v1198_v3, %v1197_v37  ;;  %v1113_v27 = vsel %vm1081_vm1, %v5815_v28, %v973_v25 }
 0x1f5   :  { %v1200_v36 = vsel %vm7477_vm0, %v1113_v27, 0.0 }
 0x1f6   :  { %v1201_v2 = vadd.f32 %v1200_v36, %v1199_v53 }
 0x1f9   :  { %v975_v63 = vpop.permute.xlu0 %974 }
 0x1fa   :  { %v1114_v31 = vsel %vm1081_vm1, %v5826_v51, %v975_v63 }
 0x1fb   :  { %v1202_v16 = vsel %vm7477_vm0, %v1114_v31, 0.0  ;;  %v977_v12 = vpop.permute.xlu1 %976 }
 0x1fc   :  { %v1203_v13 = vadd.f32 %v1202_v16, %v1201_v2  ;;  %v1115_v7 = vsel %vm1081_vm1, %v5832_v0, %v977_v12 }
 0x1fd   :  { %v1204_v43 = vsel %vm7477_vm0, %v1115_v7, 0.0 }
 0x1fe   :  { %v1205_v37 = vadd.f32 %v1204_v43, %v1203_v13 }
 0x201   :  { %v979_v57 = vpop.permute.xlu0 %978 }
 0x202   :  { %v1116_v59 = vsel %vm1081_vm1, %v5844_v30, %v979_v57 }
 0x203   :  { %v1206_v3 = vsel %vm7477_vm0, %v1116_v59, 0.0  ;;  %v981_v25 = vpop.permute.xlu1 %980 }
 0x204   :  { %v1207_v53 = vadd.f32 %v1206_v3, %v1205_v37  ;;  %v1117_v27 = vsel %vm1081_vm1, %v5849_v42, %v981_v25 }
 0x205   :  { %v1208_v36 = vsel %vm7477_vm0, %v1117_v27, 0.0 }
 0x206   :  { %v1209_v2 = vadd.f32 %v1208_v36, %v1207_v53 }
 0x209   :  { %v983_v63 = vpop.permute.xlu0 %982 }
 0x20a   :  { %v1118_v31 = vsel %vm1081_vm1, %v5860_v4, %v983_v63 }
 0x20b   :  { %v1210_v16 = vsel %vm7477_vm0, %v1118_v31, 0.0  ;;  %v985_v12 = vpop.permute.xlu1 %984 }
 0x20c   :  { %v1211_v13 = vadd.f32 %v1210_v16, %v1209_v2  ;;  %v1119_v7 = vsel %vm1081_vm1, %v5865_v19, %v985_v12 }
 0x20d   :  { %v1212_v43 = vsel %vm7477_vm0, %v1119_v7, 0.0 }
 0x20e   :  { %v1213_v37 = vadd.f32 %v1212_v43, %v1211_v13 }
 0x211   :  { %v987_v57 = vpop.permute.xlu0 %986 }
 0x212   :  { %v1120_v59 = vsel %vm1081_vm1, %v5876_v46, %v987_v57 }
 0x213   :  { %v1214_v3 = vsel %vm7477_vm0, %v1120_v59, 0.0  ;;  %v989_v25 = vpop.permute.xlu1 %988 }
 0x214   :  { %v1215_v53 = vadd.f32 %v1214_v3, %v1213_v37  ;;  %v1121_v27 = vsel %vm1081_vm1, %v5881_v61, %v989_v25 }
 0x215   :  { %v1216_v36 = vsel %vm7477_vm0, %v1121_v27, 0.0 }
 0x216   :  { %v1217_v2 = vadd.f32 %v1216_v36, %v1215_v53 }
 0x219   :  { %v991_v63 = vpop.permute.xlu0 %990 }
 0x21a   :  { %v1122_v31 = vsel %vm1081_vm1, %v5892_v33, %v991_v63 }
 0x21b   :  { %v1218_v16 = vsel %vm7477_vm0, %v1122_v31, 0.0  ;;  %v993_v12 = vpop.permute.xlu1 %992 }
 0x21c   :  { %v1219_v13 = vadd.f32 %v1218_v16, %v1217_v2  ;;  %v1123_v7 = vsel %vm1081_vm1, %v5897_v48, %v993_v12 }
 0x21d   :  { %v1220_v43 = vsel %vm7477_vm0, %v1123_v7, 0.0 }
 0x21e   :  { %v1221_v37 = vadd.f32 %v1220_v43, %v1219_v13 }
 0x221   :  { %v995_v57 = vpop.permute.xlu0 %994 }
 0x222   :  { %v1124_v59 = vsel %vm1081_vm1, %v5908_v22, %v995_v57 }
 0x223   :  { %v1222_v3 = vsel %vm7477_vm0, %v1124_v59, 0.0  ;;  %v997_v25 = vpop.permute.xlu1 %996 }
 0x224   :  { %v1223_v53 = vadd.f32 %v1222_v3, %v1221_v37  ;;  %v1125_v27 = vsel %vm1081_vm1, %v5913_v39, %v997_v25 }
 0x225   :  { %v1224_v36 = vsel %vm7477_vm0, %v1125_v27, 0.0 }
 0x226   :  { %v1225_v2 = vadd.f32 %v1224_v36, %v1223_v53 }
 0x229   :  { %v999_v63 = vpop.permute.xlu0 %998 }
 0x22a   :  { %v1126_v31 = vsel %vm1081_vm1, %v5924_v15, %v999_v63 }
 0x22b   :  { %v1226_v16 = vsel %vm7477_vm0, %v1126_v31, 0.0  ;;  %v1001_v12 = vpop.permute.xlu1 %1000 }
 0x22c   :  { %v1227_v13 = vadd.f32 %v1226_v16, %v1225_v2  ;;  %v1127_v7 = vsel %vm1081_vm1, %v5929_v54, %v1001_v12 }
 0x22d   :  { %v1228_v43 = vsel %vm7477_vm0, %v1127_v7, 0.0 }
 0x22e   :  { %v1229_v37 = vadd.f32 %v1228_v43, %v1227_v13 }
 0x231   :  { %v1003_v57 = vpop.permute.xlu0 %1002 }
 0x232   :  { %v1128_v59 = vsel %vm1081_vm1, %v5940_v24, %v1003_v57 }
 0x233   :  { %v1230_v3 = vsel %vm7477_vm0, %v1128_v59, 0.0  ;;  %v1005_v25 = vpop.permute.xlu1 %1004 }
 0x234   :  { %v1231_v53 = vadd.f32 %v1230_v3, %v1229_v37  ;;  %v1129_v27 = vsel %vm1081_vm1, %v5945_v56, %v1005_v25 }
 0x235   :  { %v1232_v36 = vsel %vm7477_vm0, %v1129_v27, 0.0 }
 0x236   :  { %v1233_v2 = vadd.f32 %v1232_v36, %v1231_v53 }
 0x239   :  { %v1007_v63 = vpop.permute.xlu0 %1006 }
 0x23a   :  { %v1130_v31 = vsel %vm1081_vm1, %v5956_v34, %v1007_v63 }
 0x23b   :  { %v1234_v16 = vsel %vm7477_vm0, %v1130_v31, 0.0  ;;  %v1009_v12 = vpop.permute.xlu1 %1008 }
 0x23c   :  { %v1235_v13 = vadd.f32 %v1234_v16, %v1233_v2  ;;  %v1131_v7 = vsel %vm1081_vm1, %v5961_v58, %v1009_v12 }
 0x23d   :  { %v1236_v43 = vsel %vm7477_vm0, %v1131_v7, 0.0  ;;  %v1011_v37 = vpop.permute.xlu0 %1010 }
 0x23e   :  { %v1237_v57 = vadd.f32 %v1236_v43, %v1235_v13  ;;  %v1132_v59 = vsel %vm1081_vm1, %v5712_v50, %v1011_v37 }
 0x23f   :  { %v1238_v3 = vsel %vm7477_vm0, %v1132_v59, 0.0  ;;  %v1013_v25 = vpop.permute.xlu1 %1012 }
 0x240   :  { %v1239_v53 = vadd.f32 %v1238_v3, %v1237_v57  ;;  %v1133_v27 = vsel %vm1081_vm1, %v5715_v52, %v1013_v25 }
 0x241   :  { %v1240_v36 = vsel %vm7477_vm0, %v1133_v27, 0.0  ;;  %v1015_v2 = vpop.permute.xlu0 %1014 }
 0x242   :  { %v1241_v63 = vadd.f32 %v1240_v36, %v1239_v53  ;;  %v1134_v31 = vsel %vm1081_vm1, %v5726_v60, %v1015_v2 }
 0x243   :  { %v1242_v16 = vsel %vm7477_vm0, %v1134_v31, 0.0  ;;  %v1017_v12 = vpop.permute.xlu1 %1016 }
 0x244   :  { %v1243_v13 = vadd.f32 %v1242_v16, %v1241_v63  ;;  %v1135_v7 = vsel %vm1081_vm1, %v5729_v62, %v1017_v12 }
 0x245   :  { %v1244_v43 = vsel %vm7477_vm0, %v1135_v7, 0.0  ;;  %v1019_v37 = vpop.permute.xlu0 %1018 }
 0x246   :  { %v1245_v57 = vadd.f32 %v1244_v43, %v1243_v13  ;;  %v1136_v59 = vsel %vm1081_vm1, %v5740_v6, %v1019_v37 }
 0x247   :  { %v1246_v3 = vsel %vm7477_vm0, %v1136_v59, 0.0  ;;  %v1021_v25 = vpop.permute.xlu1 %1020 }
 0x248   :  { %v1247_v53 = vadd.f32 %v1246_v3, %v1245_v57  ;;  %v1137_v27 = vsel %vm1081_vm1, %v5743_v9, %v1021_v25 }
 0x249   :  { %v1248_v36 = vsel %vm7477_vm0, %v1137_v27, 0.0  ;;  %v1023_v2 = vpop.permute.xlu0 %1022  ;;  %v1325_v27 = vlaneseq  ;;  %vm2025_vm0 = vcmask 1048322  }
 0x24a   :  { %v1249_v63 = vadd.f32 %v1248_v36, %v1247_v53  ;;  %v1138_v31 = vsel %vm1081_vm1, %v5754_v21, %v1023_v2 }
 0x24b   :  { %v1251_v16 = vsel %vm7474_vm2, %v1138_v31, 0.0  ;;  %v1326_v36 = vshrl.u32 %v1325_v27, 7  ;;  %v7494_v27 = vld [vmem:[#allocation13_spill] sm:$0xff]  ;;  %vm1897_vm2 = vcmask 1042176  }
 0x24c   :  { %v1252_v12 = vadd.f32 %v1251_v16, %v1249_v63 }
 0x24d   :  { %v6105_v2 = vsub.s32 0, %v1326_v36 }
 0x24e   :  { %v1253_v13 = vrot.slane %v1252_v12, 4 }
 0x24f   :  { %7492 = vst [vmem:[#allocation25_spill] sm:$0xff] %v6105_v2 }
 0x250   :  { %v1254_v7 = vadd.f32 %v1253_v13, %v1252_v12 }
 0x252   :  { %v1255_v43 = vrot.slane %v1254_v7, 2 }
 0x254   :  { %v1256_v37 = vadd.f32 %v1255_v43, %v1254_v7 }
 0x256   :  { %v1257_v59 = vrot.slane %v1256_v37, 1 }
 0x258   :  { %v1258_v57 = vadd.f32 %v1257_v59, %v1256_v37 }
 0x25a   :  { %v6099_v3 = vmul.f32 0.0022222223, %v1258_v57 }
 0x25c   :  { %v1260_v9 = vmul.f32 %v6099_v3, %v6099_v3  ;;  %v1268_v16 = vsub.f32 %v5643_v8, %v6099_v3  ;;  %v1269_v12 = vsub.f32 %v5647_v11, %v6099_v3  ;;  %v1270_v13 = vsub.f32 %v5653_v14, %v6099_v3  ;;  %v7496_v11 = vld [vmem:[#allocation17_spill] sm:$0xff] }
 0x25d   :  { %v1271_v7 = vsub.f32 %v5657_v17, %v6099_v3  ;;  %v1283_v36 = vsub.f32 %v7494_v27, %v6099_v3  ;;  %v1285_v17 = vsub.f32 %v7496_v11, %v6099_v3  ;;  %v1286_v57 = vsub.f32 %v5745_v10, %v6099_v3  ;;  %v7500_v27 = vld [vmem:[#allocation22_spill] sm:$0xff] }
 0x25e   :  { %1262 = vrot.lane.b32.xlu1 %v1260_v9, %s5356_s28  ;;  %v7497_v9 = vld [vmem:[#allocation19_spill] sm:$0xff]  ;;  %v1303_v59 = vsub.f32 %v5849_v42, %v6099_v3  ;;  %v1305_v11 = vsub.f32 %v5865_v19, %v6099_v3  ;;  %v1306_v10 = vsub.f32 %v5876_v46, %v6099_v3  ;;  %v1307_v14 = vsub.f32 %v5881_v61, %v6099_v3 }
 0x25f   :  { %v6194_v61 = vld [vmem:[%s7449_s5 + $0x1] ss:$0 sm:$0xff] }
 0x2d0   :  { %v1263_v25 = vpop.permute.xlu1 %1262 }
 0x2d1   :  { %v1265_v53 = vsub.f32 %v6099_v3, %v1263_v25  ;;  %v7498_v25 = vld [vmem:[#allocation20_spill] sm:$0xff] }
 0x2d3   :  { %v1266_v21 = vadd.f32 1e-05, %v1265_v53  ;;  %v7493_v53 = vld [vmem:[#allocation12_spill] sm:$0xff] }
 0x2d5   :  { %5323 = vrsqrt.f32 %v1266_v21  ;;  %v7499_v21 = vld [vmem:[#allocation21_spill] sm:$0xff] }
 0x2df   :  { %v5324_v63 = vpop.eup %5323 }
 0x2e0   :  { %v1328_v31 = vrot.slane %v5324_v63, %v6105_v2  ;;  %v7495_v63 = vld [vmem:[#allocation16_spill] sm:$0xff] }
 0x2e2   :  { %1330 = vrot.lane.b32.xlu0 %v1328_v31, %s5357_s0  ;;  %v1284_v31 = vsub.f32 %v7495_v63, %v6099_v3  ;;  %v1304_v63 = vsub.f32 %v5860_v4, %v6099_v3  ;;  %v6186_v4 = vld [vmem:[%s7449_s5] ss:$0 sm:$0xff] }
 0x354   :  { %v6188_v19 = vpop.permute.xlu0 %1330 }
 0x355   :  { %v1335_v46 = vmul.f32 %v6188_v19, %v1270_v13  ;;  %v1336_v43 = vmul.f32 %v6188_v19, %v1271_v7  ;;  %v1333_v8 = vmul.f32 %v6188_v19, %v1268_v16  ;;  %v1334_v42 = vmul.f32 %v6188_v19, %v1269_v12 }
 0x356   :  { %v1350_v37 = vmul.f32 %v6188_v19, %v1285_v17  ;;  %v1351_v62 = vmul.f32 %v6188_v19, %v1286_v57 }
 0x357   :  { %v1396_v2 = vmul.f32 %v6186_v4, %v1335_v46  ;;  %v1397_v6 = vmul.f32 %v6186_v4, %v1336_v43  ;;  %v1394_v52 = vmul.f32 %v6186_v4, %v1333_v8  ;;  %v1395_v13 = vmul.f32 %v6186_v4, %v1334_v42 }
 0x358   :  { %v1411_v17 = vmul.f32 %v6186_v4, %v1350_v37  ;;  %v1412_v8 = vmul.f32 %v6186_v4, %v1351_v62  ;;  %v1371_v62 = vmul.f32 %v6188_v19, %v1306_v10  ;;  %v1369_v37 = vmul.f32 %v6188_v19, %v1304_v63 }
 0x359   :  { %v1457_v60 = vadd.f32 %v6194_v61, %v1396_v2  ;;  %v1458_v7 = vadd.f32 %v6194_v61, %v1397_v6  ;;  %v1455_v16 = vadd.f32 %v6194_v61, %v1394_v52  ;;  %v1456_v12 = vadd.f32 %v6194_v61, %v1395_v13 }
 0x35a   :  { %v1472_v57 = vadd.f32 %v6194_v61, %v1411_v17  ;;  %v1348_v2 = vmul.f32 %v6188_v19, %v1283_v36  ;;  %v1349_v6 = vmul.f32 %v6188_v19, %v1284_v31  ;;  %v1370_v52 = vmul.f32 %v6188_v19, %v1305_v11 }
 0x35b   :  { %v1514_v55 = vmax.f32 %v1457_v60, 0.0  ;;  %v1515_v46 = vmax.f32 %v1458_v7, 0.0  ;;  %v1512_v40 = vmax.f32 %v1455_v16, 0.0  ;;  %v1513_v43 = vmax.f32 %v1456_v12, 0.0 }
 0x35c   :  { %v1473_v60 = vadd.f32 %v6194_v61, %v1412_v8  ;;  %v1529_v42 = vmax.f32 %v1472_v57, 0.0  ;;  %v1409_v36 = vmul.f32 %v6186_v4, %v1348_v2  ;;  %v1410_v31 = vmul.f32 %v6186_v4, %v1349_v6 }
 0x35d   :  { %1571 = vst.msk [vmem:[#allocation2 + $0x10] sm:$0xff] %vm1081_vm1, %v1514_v55  ;;  %1572 = vst.msk [vmem:[#allocation2 + $0x18] sm:$0xff] %vm1081_vm1, %v1515_v46  ;;  %v1368_v55 = vmul.f32 %v6188_v19, %v1303_v59  ;;  %v1431_v11 = vmul.f32 %v6186_v4, %v1370_v52  ;;  %v1430_v16 = vmul.f32 %v6186_v4, %v1369_v37 }
 0x35e   :  { %1569 = vst.msk [vmem:[#allocation2] sm:$0xff] %vm1081_vm1, %v1512_v40  ;;  %1570 = vst.msk [vmem:[#allocation2 + $0x8] sm:$0xff] %vm1081_vm1, %v1513_v43  ;;  %v1530_v13 = vmax.f32 %v1473_v60, 0.0  ;;  %v1432_v40 = vmul.f32 %v6186_v4, %v1371_v62  ;;  %v1470_v59 = vadd.f32 %v6194_v61, %v1409_v36  ;;  %v1471_v63 = vadd.f32 %v6194_v61, %v1410_v31 }
 0x35f   :  { %v1429_v7 = vmul.f32 %v6186_v4, %v1368_v55  ;;  %1586 = vst.msk [vmem:[#allocation2 + $0x88] sm:$0xff] %vm1081_vm1, %v1529_v42  ;;  %v1492_v10 = vadd.f32 %v6194_v61, %v1431_v11  ;;  %v1372_v12 = vmul.f32 %v6188_v19, %v1307_v14  ;;  %v1491_v43 = vadd.f32 %v6194_v61, %v1430_v16 }
 0x360   :  { %1587 = vst.msk [vmem:[#allocation2 + $0x90] sm:$0xff] %vm1081_vm1, %v1530_v13  ;;  %v1493_v17 = vadd.f32 %v6194_v61, %v1432_v40  ;;  %v7501_v8 = vsub.f32 %v5667_v23, %v6099_v3  ;;  %v1527_v2 = vmax.f32 %v1470_v59, 0.0  ;;  %v1528_v6 = vmax.f32 %v1471_v63, 0.0 }
 0x361   :  { %v1490_v46 = vadd.f32 %v6194_v61, %v1429_v7  ;;  %v1549_v52 = vmax.f32 %v1492_v10, 0.0  ;;  %v1433_v60 = vmul.f32 %v6186_v4, %v1372_v12  ;;  %v1548_v55 = vmax.f32 %v1491_v43, 0.0 }
 0x362   :  { %v1338_v57 = vmul.f32 %v6188_v19, %v7501_v8  ;;  %v1550_v62 = vmax.f32 %v1493_v17, 0.0  ;;  %v7502_v37 = vsub.f32 %v5673_v26, %v6099_v3  ;;  %1584 = vst.msk [vmem:[#allocation2 + $0x78] sm:$0xff] %vm1081_vm1, %v1527_v2  ;;  %1585 = vst.msk [vmem:[#allocation2 + $0x80] sm:$0xff] %vm1081_vm1, %v1528_v6  ;;  %v7503_v11 = vsub.f32 %v5677_v29, %v6099_v3 }
 0x363   :  { %v1547_v14 = vmax.f32 %v1490_v46, 0.0  ;;  %1606 = vst.msk [vmem:[#allocation2 + $0x128] sm:$0xff] %vm1081_vm1, %v1549_v52  ;;  %v1494_v23 = vadd.f32 %v6194_v61, %v1433_v60  ;;  %v7504_v26 = vsub.f32 %v5663_v20, %v6099_v3  ;;  %1605 = vst.msk [vmem:[#allocation2 + $0x120] sm:$0xff] %vm1081_vm1, %v1548_v55  ;;  %v7505_v16 = vsub.f32 %v7498_v25, %v6099_v3 }
 0x364   :  { %v1339_v42 = vmul.f32 %v6188_v19, %v7502_v37  ;;  %v1658_v36 = vld [vmem:[#allocation2 + $0x10] ss:$2 sm:$0x3f]  ;;  %v1340_v13 = vmul.f32 %v6188_v19, %v7503_v11  ;;  %v1399_v40 = vmul.f32 %v6186_v4, %v1338_v57  ;;  %1607 = vst.msk [vmem:[#allocation2 + $0x130] sm:$0xff] %vm1081_vm1, %v1550_v62  ;;  %v7506_v20 = vsub.f32 %v7499_v21, %v6099_v3 }
 0x365   :  { %v1631_v31 = vld [vmem:[#allocation2 + $0x1] ss:$2 sm:$0x3f]  ;;  %v1337_v7 = vmul.f32 %v6188_v19, %v7504_v26  ;;  %1660 = vrot.lane.b32.xlu1 %v1658_v36, %s5356_s28  ;;  %1604 = vst.msk [vmem:[#allocation2 + $0x118] sm:$0xff] %vm1081_vm1, %v1547_v14  ;;  %v1353_v59 = vmul.f32 %v6188_v19, %v7505_v16  ;;  %v7507_v46 = vsub.f32 %v7500_v27, %v6099_v3  ;;  %v1551_v25 = vmax.f32 %v1494_v23, 0.0 }
 0x366   :  { %1633 = vrot.lane.b32.xlu0 %v1631_v31, %s5356_s28  ;;  %v1400_v29 = vmul.f32 %v6186_v4, %v1339_v42  ;;  %v1354_v63 = vmul.f32 %v6188_v19, %v7506_v20  ;;  %v1401_v10 = vmul.f32 %v6186_v4, %v1340_v13  ;;  %v1460_v12 = vadd.f32 %v6194_v61, %v1399_v40  ;;  %v1655_v2 = vld [vmem:[#allocation2 + $0xf] ss:$2 sm:$0x3f]  ;;  %v1639_v52 = vld [vmem:[#allocation2 + $0x2] ss:$2 sm:$0x3f] }
 0x367   :  { %v1398_v17 = vmul.f32 %v6186_v4, %v1337_v7  ;;  %v1355_v43 = vmul.f32 %v6188_v19, %v7507_v46  ;;  %v1414_v57 = vmul.f32 %v6186_v4, %v1353_v59  ;;  %v1665_v6 = vld [vmem:[#allocation2 + $0x11] ss:$2 sm:$0x3f]  ;;  %v7508_v27 = vsub.f32 %v7497_v9, %v6099_v3  ;;  %1656 = vst.msk [vmem:[#allocation3 + $0x8] sm:$0x3f] %vm1628_vm4, %v1655_v2 }
 0x368   :  { %v1461_v8 = vadd.f32 %v6194_v61, %v1400_v29  ;;  %v1415_v21 = vmul.f32 %v6186_v4, %v1354_v63  ;;  %v1462_v60 = vadd.f32 %v6194_v61, %v1401_v10  ;;  %1608 = vst.msk [vmem:[#allocation2 + $0x138] sm:$0xff] %vm1081_vm1, %v1551_v25  ;;  %v1517_v37 = vmax.f32 %v1460_v12, 0.0  ;;  %v1627_v40 = vld [vmem:[#allocation2] ss:$2 sm:$0x3f] }
 0x369   :  { %v1459_v62 = vadd.f32 %v6194_v61, %v1398_v17  ;;  %v1416_v14 = vmul.f32 %v6186_v4, %v1355_v43  ;;  %v1352_v55 = vmul.f32 %v6188_v19, %v7508_v27  ;;  %1667 = vrot.lane.b32.xlu1 %v1665_v6, %s5358_s11  ;;  %v1475_v36 = vadd.f32 %v6194_v61, %v1414_v57  ;;  %v1647_v12 = vld [vmem:[#allocation2 + $0x3] ss:$2 sm:$0x3f] }
 0x36a   :  { %1641 = vrot.lane.b32.xlu0 %v1639_v52, %s5358_s11  ;;  %v1518_v42 = vmax.f32 %v1461_v8, 0.0  ;;  %v1476_v31 = vadd.f32 %v6194_v61, %v1415_v21  ;;  %v1519_v23 = vmax.f32 %v1462_v60, 0.0  ;;  %1574 = vst.msk [vmem:[#allocation2 + $0x28] sm:$0xff] %vm1081_vm1, %v1517_v37  ;;  %v7509_v26 = vsub.f32 %v5897_v48, %v6099_v3  ;;  %v1672_v48 = vld [vmem:[#allocation2 + $0x12] ss:$2 sm:$0x3f] }
 0x36b   :  { %v1516_v11 = vmax.f32 %v1459_v62, 0.0  ;;  %v1477_v9 = vadd.f32 %v6194_v61, %v1416_v14  ;;  %v1413_v13 = vmul.f32 %v6186_v4, %v1352_v55  ;;  %v7510_v29 = vsub.f32 %v5908_v22, %v6099_v3  ;;  %1629 = vst.msk [vmem:[#allocation3] sm:$0x3f] %vm1628_vm4, %v1627_v40  ;;  %v2133_v14 = vld [vmem:[#allocation2 + $0x87] ss:$2 sm:$0x3f] }
 0x36c   :  { %1575 = vst.msk [vmem:[#allocation2 + $0x30] sm:$0xff] %vm1081_vm1, %v1518_v42  ;;  %v1374_v7 = vmul.f32 %v6188_v19, %v7509_v26  ;;  %v7511_v59 = vsub.f32 %v5892_v33, %v6099_v3  ;;  %v7512_v63 = vsub.f32 %v5687_v35, %v6099_v3  ;;  %1576 = vst.msk [vmem:[#allocation2 + $0x38] sm:$0xff] %vm1081_vm1, %v1519_v23  ;;  %v1532_v21 = vmax.f32 %v1475_v36, 0.0  ;;  %v2141_v27 = vld [vmem:[#allocation2 + $0x89] ss:$2 sm:$0x3f] }
 0x36d   :  { %v1375_v16 = vmul.f32 %v6188_v19, %v7510_v29  ;;  %1573 = vst.msk [vmem:[#allocation2 + $0x20] sm:$0xff] %vm1081_vm1, %v1516_v11  ;;  %v1474_v22 = vadd.f32 %v6194_v61, %v1413_v13  ;;  %v7513_v33 = vsub.f32 %v5693_v38, %v6099_v3  ;;  %v7514_v35 = vsub.f32 %v5683_v32, %v6099_v3  ;;  %v2135_v55 = vld [vmem:[#allocation2 + $0x88] ss:$2 sm:$0x3f] }
 0x36e   :  { %v1373_v20 = vmul.f32 %v6188_v19, %v7511_v59  ;;  %v1342_v10 = vmul.f32 %v6188_v19, %v7512_v63  ;;  %v7515_v43 = vsub.f32 %v5697_v41, %v6099_v3  ;;  %1674 = vrot.lane.b32.xlu1 %v1672_v48, %s5357_s0  ;;  %1649 = vrot.lane.b32.xlu0 %v1647_v12, %s5357_s0  ;;  %v1533_v2 = vmax.f32 %v1476_v31, 0.0  ;;  %v2113_v26 = vld [vmem:[#allocation2 + $0x78] ss:$2 sm:$0x3f] }
 0x36f   :  { %v1343_v17 = vmul.f32 %v6188_v19, %v7513_v33  ;;  %v1341_v46 = vmul.f32 %v6188_v19, %v7514_v35  ;;  %v1435_v8 = vmul.f32 %v6186_v4, %v1374_v7  ;;  %v1436_v38 = vmul.f32 %v6186_v4, %v1375_v16  ;;  %1589 = vst.msk [vmem:[#allocation2 + $0xa0] sm:$0xff] %vm1081_vm1, %v1532_v21  ;;  %v2115_v35 = vld [vmem:[#allocation2 + $0x79] ss:$2 sm:$0x3f] }
 0x370   :  { %v1344_v25 = vmul.f32 %v6188_v19, %v7515_v43  ;;  %v1434_v57 = vmul.f32 %v6186_v4, %v1373_v20  ;;  %v1534_v32 = vmax.f32 %v1477_v9, 0.0  ;;  %v1403_v6 = vmul.f32 %v6186_v4, %v1342_v10  ;;  %1590 = vst.msk [vmem:[#allocation2 + $0xa8] sm:$0xff] %vm1081_vm1, %v1533_v2  ;;  %v2597_v20 = vld [vmem:[#allocation2 + $0x12c] ss:$2 sm:$0x3f] }
 0x371   :  { %v1531_v52 = vmax.f32 %v1474_v22, 0.0  ;;  %v1496_v41 = vadd.f32 %v6194_v61, %v1435_v8  ;;  %v1497_v60 = vadd.f32 %v6194_v61, %v1436_v38  ;;  %v1404_v37 = vmul.f32 %v6186_v4, %v1343_v17  ;;  %2134 = vst.msk [vmem:[#allocation3 + $0x68] sm:$0x3f] %vm1628_vm4, %v2133_v14  ;;  %2114 = vst.msk [vmem:[#allocation3 + $0x60] sm:$0x3f] %vm1628_vm4, %v2113_v26 }
 0x372   :  { %v1495_v62 = vadd.f32 %v6194_v61, %v1434_v57  ;;  %1591 = vst.msk [vmem:[#allocation2 + $0xb0] sm:$0xff] %vm1081_vm1, %v1534_v32  ;;  %v1464_v42 = vadd.f32 %v6194_v61, %v1403_v6  ;;  %v1402_v36 = vmul.f32 %v6186_v4, %v1341_v46  ;;  %v1405_v31 = vmul.f32 %v6186_v4, %v1344_v25  ;;  %v2579_v26 = vld [vmem:[#allocation2 + $0x11e] ss:$2 sm:$0x3f] }
 0x373   :  { %2143 = vrot.lane.b32.xlu1 %v2141_v27, %s5358_s11  ;;  %2137 = vrot.lane.b32.xlu0 %v2135_v55, %s5356_s28  ;;  %1588 = vst.msk [vmem:[#allocation2 + $0x98] sm:$0xff] %vm1081_vm1, %v1531_v52  ;;  %v1553_v23 = vmax.f32 %v1496_v41, 0.0  ;;  %v1554_v11 = vmax.f32 %v1497_v60, 0.0  ;;  %v7516_v13 = vsub.f32 %v5707_v47, %v6099_v3  ;;  %v1465_v7 = vadd.f32 %v6194_v61, %v1404_v37  ;;  %v2127_v41 = vld [vmem:[#allocation2 + $0x7b] ss:$2 sm:$0x3f] }
 0x374   :  { %v1552_v9 = vmax.f32 %v1495_v62, 0.0  ;;  %v1521_v29 = vmax.f32 %v1464_v42, 0.0  ;;  %v1463_v16 = vadd.f32 %v6194_v61, %v1402_v36  ;;  %v1466_v59 = vadd.f32 %v6194_v61, %v1405_v31  ;;  %2598 = vst.msk [vmem:[#allocation3 + $0xc8] sm:$0x3f] %vm1628_vm4, %v2597_v20 }
 0x375   :  { %v1346_v40 = vmul.f32 %v6188_v19, %v7516_v13  ;;  %1610 = vst.msk [vmem:[#allocation2 + $0x148] sm:$0xff] %vm1081_vm1, %v1553_v23  ;;  %1611 = vst.msk [vmem:[#allocation2 + $0x150] sm:$0xff] %vm1081_vm1, %v1554_v11  ;;  %v7517_v47 = vsub.f32 %v7493_v53, %v6099_v3  ;;  %v7518_v48 = vsub.f32 %v5703_v44, %v6099_v3  ;;  %v2147_v53 = vld [vmem:[#allocation2 + $0x8a] ss:$2 sm:$0x3f]  ;;  %v1522_v57 = vmax.f32 %v1465_v7, 0.0 }
 0x376   :  { %1609 = vst.msk [vmem:[#allocation2 + $0x140] sm:$0xff] %vm1081_vm1, %v1552_v9  ;;  %v7519_v22 = vsub.f32 %v5809_v18, %v6099_v3  ;;  %v1300_v17 = vsub.f32 %v5826_v51, %v6099_v3  ;;  %1578 = vst.msk [vmem:[#allocation2 + $0x48] sm:$0xff] %vm1081_vm1, %v1521_v29  ;;  %v7520_v46 = vsub.f32 %v5815_v28, %v6099_v3  ;;  %v1520_v21 = vmax.f32 %v1463_v16, 0.0  ;;  %v2121_v60 = vld [vmem:[#allocation2 + $0x7a] ss:$2 sm:$0x3f] }
 0x377   :  { %v1347_v63 = vmul.f32 %v6188_v19, %v7517_v47  ;;  %v1407_v10 = vmul.f32 %v6186_v4, %v1346_v40  ;;  %v1345_v12 = vmul.f32 %v6188_v19, %v7518_v48  ;;  %v7521_v43 = vsub.f32 %v5832_v0, %v6099_v3  ;;  %2149 = vrot.lane.b32.xlu1 %v2147_v53, %s5357_s0  ;;  %v2599_v40 = vld [vmem:[#allocation2 + $0x12d] ss:$2 sm:$0x3f] }
 0x378   :  { %v1363_v33 = vmul.f32 %v6188_v19, %v7519_v22  ;;  %v1364_v44 = vmul.f32 %v6188_v19, %v7520_v46  ;;  %v7522_v25 = vsub.f32 %v5844_v30, %v6099_v3  ;;  %v1311_v51 = vsub.f32 %v5913_v39, %v6099_v3  ;;  %2117 = vrot.lane.b32.xlu0 %v2115_v35, %s5356_s28  ;;  %v2605_v46 = vld [vmem:[#allocation2 + $0x12e] ss:$2 sm:$0x3f] }
 0x379   :  { %v1366_v18 = vmul.f32 %v6188_v19, %v7521_v43  ;;  %v1408_v28 = vmul.f32 %v6186_v4, %v1347_v63  ;;  %v7523_v38 = vsub.f32 %v5797_v1, %v6099_v3  ;;  %v1523_v2 = vmax.f32 %v1466_v59, 0.0  ;;  %1579 = vst.msk [vmem:[#allocation2 + $0x50] sm:$0xff] %vm1081_vm1, %v1522_v57  ;;  %1577 = vst.msk [vmem:[#allocation2 + $0x40] sm:$0xff] %vm1081_vm1, %v1520_v21  ;;  %v2591_v21 = vld [vmem:[#allocation2 + $0x120] ss:$2 sm:$0x3f] }
 0x37a   :  { %v1367_v8 = vmul.f32 %v6188_v19, %v7522_v25  ;;  %v1406_v30 = vmul.f32 %v6186_v4, %v1345_v12  ;;  %v1313_v32 = vsub.f32 %v5929_v54, %v6099_v3  ;;  %v1314_v39 = vsub.f32 %v5940_v24, %v6099_v3 }
 0x37b   :  { %v1361_v0 = vmul.f32 %v6188_v19, %v7523_v38  ;;  %v1468_v6 = vadd.f32 %v6194_v61, %v1407_v10  ;;  %v1424_v52 = vmul.f32 %v6186_v4, %v1363_v33  ;;  %1580 = vst.msk [vmem:[#allocation2 + $0x58] sm:$0xff] %vm1081_vm1, %v1523_v2  ;;  %v1425_v1 = vmul.f32 %v6186_v4, %v1364_v44  ;;  %v2585_v33 = vld [vmem:[#allocation2 + $0x11f] ss:$2 sm:$0x3f] }
 0x37c   :  { %v1427_v62 = vmul.f32 %v6186_v4, %v1366_v18  ;;  %v1428_v54 = vmul.f32 %v6186_v4, %v1367_v8  ;;  %v7524_v24 = vsub.f32 %v5801_v5, %v6099_v3  ;;  %2129 = vrot.lane.b32.xlu1 %v2127_v41, %s5357_s0  ;;  %2123 = vrot.lane.b32.xlu0 %v2121_v60, %s5358_s11 }
 0x37d   :  { %v1469_v27 = vadd.f32 %v6194_v61, %v1408_v28  ;;  %v1422_v55 = vmul.f32 %v6186_v4, %v1361_v0  ;;  %v1365_v37 = vmul.f32 %v6188_v19, %v1300_v17  ;;  %v1312_v42 = vsub.f32 %v5924_v15, %v6099_v3 }
 0x37e   :  { %v1362_v14 = vmul.f32 %v6188_v19, %v7524_v24  ;;  %v1467_v36 = vadd.f32 %v6194_v61, %v1406_v30  ;;  %v1378_v5 = vmul.f32 %v6188_v19, %v1313_v32  ;;  %v1316_v23 = vsub.f32 %v5956_v34, %v6099_v3 }
 0x37f   :  { %v1485_v11 = vadd.f32 %v6194_v61, %v1424_v52  ;;  %v1426_v9 = vmul.f32 %v6186_v4, %v1365_v37  ;;  %v1379_v13 = vmul.f32 %v6188_v19, %v1314_v39  ;;  %v1486_v7 = vadd.f32 %v6194_v61, %v1425_v1 }
 0x380   :  { %v1423_v31 = vmul.f32 %v6186_v4, %v1362_v14  ;;  %v1488_v15 = vadd.f32 %v6194_v61, %v1427_v62  ;;  %v1489_v29 = vadd.f32 %v6194_v61, %v1428_v54  ;;  %v1439_v16 = vmul.f32 %v6186_v4, %v1378_v5  ;;  %2601 = vrot.lane.b32.xlu1 %v2599_v40, %s5356_s28 }
 0x381   :  { %2581 = vrot.lane.b32.xlu0 %v2579_v26, %s5356_s28  ;;  %v1525_v34 = vmax.f32 %v1468_v6, 0.0  ;;  %v1526_v59 = vmax.f32 %v1469_v27, 0.0  ;;  %v1483_v20 = vadd.f32 %v6194_v61, %v1422_v55  ;;  %v1376_v47 = vmul.f32 %v6188_v19, %v1311_v51  ;;  %v2611_v6 = vld [vmem:[#allocation2 + $0x12f] ss:$2 sm:$0x3f] }
 0x382   :  { %v1524_v63 = vmax.f32 %v1467_v36, 0.0  ;;  %v1484_v10 = vadd.f32 %v6194_v61, %v1423_v31  ;;  %v1440_v48 = vmul.f32 %v6186_v4, %v1379_v13  ;;  %v1377_v12 = vmul.f32 %v6188_v19, %v1312_v42  ;;  %v7525_v42 = vld [vmem:[#allocation23_spill] sm:$0xff]  ;;  %v1706_v31 = vld [vmem:[#allocation2 + $0x2e] ss:$2 sm:$0x3f] }
 0x383   :  { %v1317_v22 = vsub.f32 %v5961_v58, %v6099_v3  ;;  %1582 = vst.msk [vmem:[#allocation2 + $0x68] sm:$0xff] %vm1081_vm1, %v1525_v34  ;;  %1583 = vst.msk [vmem:[#allocation2 + $0x70] sm:$0xff] %vm1081_vm1, %v1526_v59  ;;  %v1542_v17 = vmax.f32 %v1485_v11, 0.0  ;;  %v1487_v53 = vadd.f32 %v6194_v61, %v1426_v9  ;;  %v1500_v35 = vadd.f32 %v6194_v61, %v1439_v16  ;;  %v7526_v9 = vld [vmem:[#allocation24_spill] sm:$0xff] }
 0x384   :  { %1581 = vst.msk [vmem:[#allocation2 + $0x60] sm:$0xff] %vm1081_vm1, %v1524_v63  ;;  %v1543_v44 = vmax.f32 %v1486_v7, 0.0  ;;  %v1545_v43 = vmax.f32 %v1488_v15, 0.0  ;;  %v1501_v18 = vadd.f32 %v6194_v61, %v1440_v48  ;;  %2607 = vrot.lane.b32.xlu1 %v2605_v46, %s5358_s11  ;;  %v1546_v58 = vmax.f32 %v1489_v29, 0.0  ;;  %v7527_v15 = vld [vmem:[#allocation14_spill] sm:$0xff]  ;;  %v7528_v48 = vld [vmem:[#allocation15_spill] sm:$0xff] }
 0x385   :  { %2587 = vrot.lane.b32.xlu0 %v2585_v33, %s5358_s11  ;;  %1599 = vst.msk [vmem:[#allocation2 + $0xf0] sm:$0xff] %vm1081_vm1, %v1542_v17  ;;  %v1437_v25 = vmul.f32 %v6186_v4, %v1376_v47  ;;  %v1381_v8 = vmul.f32 %v6188_v19, %v1316_v23  ;;  %v1382_v51 = vmul.f32 %v6188_v19, %v1317_v22  ;;  %v1540_v38 = vmax.f32 %v1483_v20, 0.0  ;;  %v1713_v20 = vld [vmem:[#allocation2 + $0x2f] ss:$2 sm:$0x3f] }
 0x386   :  { %v1318_v28 = vsub.f32 %v5712_v50, %v6099_v3  ;;  %1600 = vst.msk [vmem:[#allocation2 + $0xf8] sm:$0xff] %vm1081_vm1, %v1543_v44  ;;  %1602 = vst.msk [vmem:[#allocation2 + $0x108] sm:$0xff] %vm1081_vm1, %v1545_v43  ;;  %v1541_v0 = vmax.f32 %v1484_v10, 0.0  ;;  %v1438_v57 = vmul.f32 %v6186_v4, %v1377_v12  ;;  %v1544_v2 = vmax.f32 %v1487_v53, 0.0 }
 0x387   :  { %1603 = vst.msk [vmem:[#allocation2 + $0x110] sm:$0xff] %vm1081_vm1, %v1546_v58  ;;  %v1557_v30 = vmax.f32 %v1500_v35, 0.0  ;;  %v1498_v32 = vadd.f32 %v6194_v61, %v1437_v25  ;;  %v1315_v39 = vsub.f32 %v5945_v56, %v6099_v3  ;;  %1597 = vst.msk [vmem:[#allocation2 + $0xe0] sm:$0xff] %vm1081_vm1, %v1540_v38  ;;  %v1558_v50 = vmax.f32 %v1501_v18, 0.0  ;;  %v7529_v35 = vld [vmem:[#allocation11_spill] sm:$0xff]  ;;  %v7530_v58 = vld [vmem:[#allocation18_spill] sm:$0xff] }
 0x388   :  { %1598 = vst.msk [vmem:[#allocation2 + $0xe8] sm:$0xff] %vm1081_vm1, %v1541_v0  ;;  %v1499_v52 = vadd.f32 %v6194_v61, %v1438_v57  ;;  %v1383_v41 = vmul.f32 %v6188_v19, %v1318_v28  ;;  %v1292_v60 = vsub.f32 %v5777_v45, %v6099_v3  ;;  %2613 = vrot.lane.b32.xlu1 %v2611_v6, %s5357_s0  ;;  %1601 = vst.msk [vmem:[#allocation2 + $0x100] sm:$0xff] %vm1081_vm1, %v1544_v2  ;;  %v1689_v22 = vld [vmem:[#allocation2 + $0x20] ss:$2 sm:$0x3f] }
 0x389   :  { %2593 = vrot.lane.b32.xlu0 %v2591_v21, %s5357_s0  ;;  %1614 = vst.msk [vmem:[#allocation2 + $0x168] sm:$0xff] %vm1081_vm1, %v1557_v30  ;;  %v1555_v56 = vmax.f32 %v1498_v32, 0.0  ;;  %v1442_v1 = vmul.f32 %v6186_v4, %v1381_v8  ;;  %v1443_v62 = vmul.f32 %v6186_v4, %v1382_v51  ;;  %v1293_v54 = vsub.f32 %v5781_v49, %v6099_v3  ;;  %v1682_v49 = vld [vmem:[#allocation2 + $0x1f] ss:$2 sm:$0x3f] }
 0x38a   :  { %1615 = vst.msk [vmem:[#allocation2 + $0x170] sm:$0xff] %vm1081_vm1, %v1558_v50  ;;  %v1556_v24 = vmax.f32 %v1499_v52, 0.0  ;;  %v1444_v45 = vmul.f32 %v6186_v4, %v1383_v41  ;;  %v1380_v14 = vmul.f32 %v6188_v19, %v1315_v39  ;;  %v1357_v37 = vmul.f32 %v6188_v19, %v1292_v60  ;;  %v1720_v21 = vld [vmem:[#allocation2 + $0x30] ss:$2 sm:$0x3f] }
 0x38b   :  { %1612 = vst.msk [vmem:[#allocation2 + $0x158] sm:$0xff] %vm1081_vm1, %v1555_v56  ;;  %v1503_v27 = vadd.f32 %v6194_v61, %v1442_v1  ;;  %v1504_v55 = vadd.f32 %v6194_v61, %v1443_v62  ;;  %v1291_v36 = vsub.f32 %v7525_v42, %v6099_v3  ;;  %v1358_v11 = vmul.f32 %v6188_v19, %v1293_v54  ;;  %v1696_v2 = vld [vmem:[#allocation2 + $0x21] ss:$2 sm:$0x3f] }
 0x38c   :  { %1613 = vst.msk [vmem:[#allocation2 + $0x160] sm:$0xff] %vm1081_vm1, %v1556_v24  ;;  %v1505_v5 = vadd.f32 %v6194_v61, %v1444_v45  ;;  %v1441_v23 = vmul.f32 %v6186_v4, %v1380_v14  ;;  %v1294_v13 = vsub.f32 %v7526_v9, %v6099_v3  ;;  %1708 = vrot.lane.b32.xlu1 %v1706_v31, %s5356_s28  ;;  %v2188_v56 = vld [vmem:[#allocation2 + $0xa7] ss:$2 sm:$0x3f] }
 0x38d   :  { %1684 = vrot.lane.b32.xlu0 %v1682_v49, %s5356_s28  ;;  %v1560_v40 = vmax.f32 %v1503_v27, 0.0  ;;  %v1561_v26 = vmax.f32 %v1504_v55, 0.0  ;;  %v1418_v7 = vmul.f32 %v6186_v4, %v1357_v37  ;;  %v1320_v29 = vsub.f32 %v7527_v15, %v6099_v3  ;;  %v2181_v1 = vld [vmem:[#allocation2 + $0xa6] ss:$2 sm:$0x3f] }
 0x38e   :  { %v1562_v16 = vmax.f32 %v1505_v5, 0.0  ;;  %v1502_v34 = vadd.f32 %v6194_v61, %v1441_v23  ;;  %v1419_v59 = vmul.f32 %v6186_v4, %v1358_v11  ;;  %v1356_v63 = vmul.f32 %v6188_v19, %v1291_v36  ;;  %v2195_v45 = vld [vmem:[#allocation2 + $0xa8] ss:$2 sm:$0x3f]  ;;  %v5249_v55 = vld [vmem:[%s7446_s2 + $0x40] sm:$0xff]  }
 0x38f   :  { %1617 = vst.msk [vmem:[#allocation2 + $0x180] sm:$0xff] %vm1081_vm1, %v1560_v40  ;;  %1618 = vst.msk [vmem:[#allocation2 + $0x188] sm:$0xff] %vm1081_vm1, %v1561_v26  ;;  %v1479_v47 = vadd.f32 %v6194_v61, %v1418_v7  ;;  %v1359_v10 = vmul.f32 %v6188_v19, %v1294_v13  ;;  %v1321_v12 = vsub.f32 %v7528_v48, %v6099_v3  ;;  %v2157_v14 = vld [vmem:[#allocation2 + $0x97] ss:$2 sm:$0x3f]  ;;  %4944 = vmatprep.subr.bf16.mxu1 %v5249_v55  ;;  %v5251_v49 = vld [vmem:[%s7446_s2 + $0x48] sm:$0xff]  }
 0x390   :  { %1619 = vst.msk [vmem:[#allocation2 + $0x190] sm:$0xff] %vm1081_vm1, %v1562_v16  ;;  %v1559_v33 = vmax.f32 %v1502_v34, 0.0  ;;  %v1480_v17 = vadd.f32 %v6194_v61, %v1419_v59  ;;  %v1385_v53 = vmul.f32 %v6188_v19, %v1320_v29  ;;  %v1319_v46 = vsub.f32 %v7529_v35, %v6099_v3  ;;  %1715 = vrot.lane.b32.xlu1 %v1713_v20, %s5358_s11  ;;  %v2171_v27 = vld [vmem:[#allocation2 + $0x99] ss:$2 sm:$0x3f]  ;;  %v5252_v5 = vld [vmem:[%s7446_s2 + $0x8] sm:$0xff]  }
 0x391   :  { %1691 = vrot.lane.b32.xlu0 %v1689_v22, %s5358_s11  ;;  %v1536_v44 = vmax.f32 %v1479_v47, 0.0  ;;  %v1417_v43 = vmul.f32 %v6186_v4, %v1356_v63  ;;  %v1420_v18 = vmul.f32 %v6186_v4, %v1359_v10  ;;  %v1322_v25 = vsub.f32 %v7530_v58, %v6099_v3  ;;  %v5250_v37 = vld [vmem:[%s7446_s2] sm:$0xff]   ;;  %v2645_v36 = vld [vmem:[#allocation2 + $0x14b] ss:$2 sm:$0x3f]  ;;  %v5255_v34 = vld [vmem:[%s7446_s2 + $0x58] sm:$0xff]  }
 0x392   :  { %1616 = vst.msk [vmem:[#allocation2 + $0x178] sm:$0xff] %vm1081_vm1, %v1559_v33  ;;  %v1537_v8 = vmax.f32 %v1480_v17, 0.0  ;;  %v1386_v51 = vmul.f32 %v6188_v19, %v1321_v12  ;;  %v1446_v28 = vmul.f32 %v6186_v4, %v1385_v53  ;;  %v1384_v57 = vmul.f32 %v6188_v19, %v1319_v46  ;;  %v2577_v42 = vld [vmem:[#allocation2 + $0x11d] ss:$2 sm:$0x3f]  ;;  %4945 = vmatpush3.bf16.msra.mxu1 %v5250_v37  ;;  %v5253_v40 = vld [vmem:[%s7446_s2 + $0x50] sm:$0xff]  }
 0x393   :  { %1593 = vst.msk [vmem:[#allocation2 + $0xc0] sm:$0xff] %vm1081_vm1, %v1536_v44  ;;  %v1478_v38 = vadd.f32 %v6194_v61, %v1417_v43  ;;  %v1481_v0 = vadd.f32 %v6194_v61, %v1420_v18  ;;  %v1387_v32 = vmul.f32 %v6188_v19, %v1322_v25  ;;  %v2621_v31 = vld [vmem:[#allocation2 + $0x13c] ss:$2 sm:$0x3f]  ;;  %4946 = vmatprep.subr.bf16.mxu1 %v5251_v49  ;;  %v5254_v26 = vld [vmem:[%s7446_s2 + $0x10] sm:$0xff]   ;;  %v5259_v43 = vld [vmem:[%s7446_s2 + $0x68] sm:$0xff]  }
 0x394   :  { %1594 = vst.msk [vmem:[#allocation2 + $0xc8] sm:$0xff] %vm1081_vm1, %v1537_v8  ;;  %v1447_v3 = vmul.f32 %v6186_v4, %v1386_v51  ;;  %v1507_v30 = vadd.f32 %v6194_v61, %v1446_v28  ;;  %1722 = vrot.lane.b32.xlu1 %v1720_v21, %s5357_s0  ;;  %v1445_v50 = vmul.f32 %v6186_v4, %v1384_v57  ;;  %v2652_v23 = vld [vmem:[#allocation2 + $0x14c] ss:$2 sm:$0x3f]  ;;  %v5256_v59 = vld [vmem:[%s7446_s2 + $0x18] sm:$0xff]   ;;  %v5257_v22 = vld [vmem:[%s7446_s2 + $0x60] sm:$0xff]  }
 0x395   :  { %1698 = vrot.lane.b32.xlu0 %v1696_v2, %s5357_s0  ;;  %v1535_v39 = vmax.f32 %v1478_v38, 0.0  ;;  %v1538_v6 = vmax.f32 %v1481_v0, 0.0  ;;  %v1448_v60 = vmul.f32 %v6186_v4, %v1387_v32  ;;  %2578 = vst.msk [vmem:[#allocation3 + $0xc0] sm:$0x3f] %vm1628_vm4, %v2577_v42  ;;  %v5258_v46 = vld [vmem:[%s7446_s2 + $0x20] sm:$0xff]   ;;  %v5260_v8 = vld [vmem:[%s7446_s2 + $0x28] sm:$0xff]  }
 0x396   :  { %v1508_v52 = vadd.f32 %v6194_v61, %v1447_v3  ;;  %v1564_v41 = vmax.f32 %v1507_v30, 0.0  ;;  %v1506_v19 = vadd.f32 %v6194_v61, %v1445_v50  ;;  %v2628_v11 = vld [vmem:[#allocation2 + $0x13d] ss:$2 sm:$0x3f]  ;;  %4947 = vmatpush3.bf16.msra.mxu1 %v5252_v5  ;;  %v5261_v38 = vld [vmem:[%s7446_s2 + $0x70] sm:$0xff]  }
 0x397   :  { %1592 = vst.msk [vmem:[#allocation2 + $0xb8] sm:$0xff] %vm1081_vm1, %v1535_v39  ;;  %1595 = vst.msk [vmem:[#allocation2 + $0xd0] sm:$0xff] %vm1081_vm1, %v1538_v6  ;;  %v1509_v54 = vadd.f32 %v6194_v61, %v1448_v60  ;;  %v2164_v61 = vld [vmem:[#allocation2 + $0x98] ss:$2 sm:$0x3f]  ;;  %4948 = vmatprep.subr.bf16.mxu1 %v5253_v40  ;;  %v5262_v21 = vld [vmem:[%s7446_s2 + $0x30] sm:$0xff]  }
 0x398   :  { %v1565_v62 = vmax.f32 %v1508_v52, 0.0  ;;  %1621 = vst.msk [vmem:[#allocation2 + $0x1a0] sm:$0xff] %vm1081_vm1, %v1564_v41  ;;  %2190 = vrot.lane.b32.xlu1 %v2188_v56, %s5358_s11  ;;  %v1563_v24 = vmax.f32 %v1506_v19, 0.0  ;;  %v1703_v9 = vld [vmem:[#allocation2 + $0x2d] ss:$2 sm:$0x3f] }
 0x399   :  { %2183 = vrot.lane.b32.xlu0 %v2181_v1, %s5356_s28  ;;  %v1566_v4 = vmax.f32 %v1509_v54, 0.0  ;;  %1704 = vst.msk [vmem:[#allocation3 + $0x18] sm:$0x3f] %vm1628_vm4, %v1703_v9  ;;  %v1679_v13 = vld [vmem:[#allocation2 + $0x1e] ss:$2 sm:$0x3f] }
 0x39a   :  { %1622 = vst.msk [vmem:[#allocation2 + $0x1a8] sm:$0xff] %vm1081_vm1, %v1565_v62  ;;  %1620 = vst.msk [vmem:[#allocation2 + $0x198] sm:$0xff] %vm1081_vm1, %v1563_v24  ;;  %v2659_v7 = vld [vmem:[#allocation2 + $0x14d] ss:$2 sm:$0x3f]  ;;  %4949 = vmatpush3.bf16.msra.mxu1 %v5254_v26  ;;  %v5263_v6 = vld [vmem:[%s7446_s2 + $0x78] sm:$0xff]  }
 0x39b   :  { %1623 = vst.msk [vmem:[#allocation2 + $0x1b0] sm:$0xff] %vm1081_vm1, %v1566_v4  ;;  %v1770_v15 = vld [vmem:[#allocation2 + $0x2e] ss:$2 sm:$0x3f]  ;;  %4950 = vmatprep.subr.bf16.mxu1 %v5255_v34 }
 0x39c   :  { %2197 = vrot.lane.b32.xlu1 %v2195_v45, %s5357_s0  ;;  %1680 = vst.msk [vmem:[#allocation3 + $0x10] sm:$0x3f] %vm1628_vm4, %v1679_v13  ;;  %v2635_v29 = vld [vmem:[#allocation2 + $0x13e] ss:$2 sm:$0x3f]  ;;  %v1772_v47 = vrot.slane %v1770_v15, 2 }
 0x39d   :  { %2159 = vrot.lane.b32.xlu0 %v2157_v14, %s5356_s28  ;;  %v1905_v16 = vld [vmem:[#allocation2 + $0x4c] ss:$2 sm:$0x3f]  ;;  %v2178_v63 = vld [vmem:[#allocation2 + $0xa5] ss:$2 sm:$0x3f] }
 0x39e   :  { %v1907_v20 = vrot.slane %v1905_v16, 4  ;;  %v1778_v10 = vld [vmem:[#allocation2 + $0x2f] ss:$2 sm:$0x3f]  ;;  %2179 = vst.msk [vmem:[#allocation3 + $0x78] sm:$0x3f] %vm1628_vm4, %v2178_v63  ;;  %4951 = vmatpush3.bf16.msra.mxu1 %v5256_v59 }
 0x39f   :  { %v1734_v48 = vld [vmem:[#allocation2 + $0x1f] ss:$2 sm:$0x3f]  ;;  %v2154_v12 = vld [vmem:[#allocation2 + $0x96] ss:$2 sm:$0x3f]  ;;  %4952 = vmatprep.subr.bf16.mxu1 %v5257_v22 }
 0x3a0   :  { %2173 = vrot.lane.b32.xlu1 %v2171_v27, %s5357_s0  ;;  %v1913_v33 = vld [vmem:[#allocation2 + $0x4d] ss:$2 sm:$0x3f]  ;;  %2155 = vst.msk [vmem:[#allocation3 + $0x70] sm:$0x3f] %vm1628_vm4, %v2154_v12  ;;  %v1780_v17 = vrot.slane %v1778_v10, 2 }
 0x3a1   :  { %2166 = vrot.lane.b32.xlu0 %v2164_v61, %s5358_s11  ;;  %v1736_v53 = vrot.slane %v1734_v48, 2  ;;  %v1869_v35 = vld [vmem:[#allocation2 + $0x3d] ss:$2 sm:$0x3f]  ;;  %v1915_v18 = vrot.slane %v1913_v33, 4 }
 0x3a2   :  { %v2642_v44 = vld [vmem:[#allocation2 + $0x14a] ss:$2 sm:$0x3f]  ;;  %v1871_v58 = vrot.slane %v1869_v35, 4  ;;  %4953 = vmatpush3.bf16.msra.mxu1 %v5258_v46  ;;  %v5264_v60 = vld [vmem:[%s7446_s2 + $0x38] sm:$0xff]  }
 0x3a3   :  { %2643 = vst.msk [vmem:[#allocation3 + $0xd8] sm:$0x3f] %vm1628_vm4, %v2642_v44  ;;  %v2618_v25 = vld [vmem:[#allocation2 + $0x13b] ss:$2 sm:$0x3f]  ;;  %4954 = vmatprep.subr.bf16.mxu1 %v5259_v43 }
 0x3a4   :  { %2647 = vrot.lane.b32.xlu1 %v2645_v36, %s5356_s28  ;;  %v1786_v51 = vld [vmem:[#allocation2 + $0x30] ss:$2 sm:$0x3f]  ;;  %v1744_v28 = vld [vmem:[#allocation2 + $0x20] ss:$2 sm:$0x3f] }
 0x3a5   :  { %2623 = vrot.lane.b32.xlu0 %v2621_v31, %s5356_s28  ;;  %2619 = vst.msk [vmem:[#allocation3 + $0xd0] sm:$0x3f] %vm1628_vm4, %v2618_v25  ;;  %v1788_v0 = vrot.slane %v1786_v51, 2  ;;  %v1746_v57 = vrot.slane %v1744_v28, 2  ;;  %vm1750_vm4 = vcmask 785926  }
 0x3a6   :  { %4955 = vmatpush3.bf16.msra.mxu1 %v5260_v8  ;;  %v1921_v2 = vld [vmem:[#allocation2 + $0x4e] ss:$2 sm:$0x3f]  ;;  %v1879_v3 = vld [vmem:[#allocation2 + $0x3e] ss:$2 sm:$0x3f] }
 0x3a7   :  { %4956 = vmatprep.subr.bf16.mxu1 %v5261_v38  ;;  %v1899_v30 = vld [vmem:[#allocation2 + $0x4b] ss:$2 sm:$0x3f]  ;;  %v1923_v50 = vrot.slane %v1921_v2, 4  ;;  %v1881_v52 = vrot.slane %v1879_v3, 4 }
 0x3a8   :  { %2654 = vrot.lane.b32.xlu1 %v2652_v23, %s5358_s11  ;;  %v1901_v32 = vrot.slane %v1899_v30, 4  ;;  %v1764_v39 = vld [vmem:[#allocation2 + $0x2d] ss:$2 sm:$0x3f] }
 0x3a9   :  { %2630 = vrot.lane.b32.xlu0 %v2628_v11, %s5358_s11  ;;  %v1766_v41 = vrot.slane %v1764_v39, 2  ;;  %v1754_v56 = vld [vmem:[#allocation2 + $0x21] ss:$2 sm:$0x3f] }
 0x3aa   :  { %4957 = vmatpush3.bf16.msra.mxu1 %v5262_v21  ;;  %v1889_v19 = vld [vmem:[#allocation2 + $0x3f] ss:$2 sm:$0x3f]  ;;  %1903 = vst.msk [vmem:[#allocation3 + $0x28] sm:$0xf0] %vm1866_vm5, %v1901_v32  ;;  %v1756_v54 = vrot.slane %v1754_v56, 2 }
 0x3ab   :  { %1904 = vst.msk [vmem:[#allocation3 + $0x48] sm:$0x3] %vm7476_vm3, %v1901_v32  ;;  %4958 = vmatprep.subr.bf16.mxu1 %v5263_v6  ;;  %v1726_v1 = vld [vmem:[#allocation2 + $0x1e] ss:$2 sm:$0x3f]  ;;  %v1891_v24 = vrot.slane %v1889_v19, 4 }
 0x3ac   :  { %2661 = vrot.lane.b32.xlu1 %v2659_v7, %s5357_s0  ;;  %1768 = vst.msk [vmem:[#allocation3 + $0x8] sm:$0xc0] %vm7475_vm6, %v1766_v41  ;;  %v1728_v62 = vrot.slane %v1726_v1, 2  ;;  %v2032_v4 = vld [vmem:[#allocation2 + $0x6a] ss:$2 sm:$0x3f] }
 0x3ad   :  { %2637 = vrot.lane.b32.xlu0 %v2635_v29, %s5357_s0  ;;  %1769 = vst.msk [vmem:[#allocation3 + $0x28] sm:$0xf] %vm1732_vm7, %v1766_v41  ;;  %v2003_v45 = vld [vmem:[#allocation2 + $0x5b] ss:$2 sm:$0x3f]  ;;  %v2034_v61 = vrot.slane %v2032_v4, 6 }
 0x3ae   :  { %4959 = vmatpush3.bf16.msra.mxu1 %v5264_v60  ;;  %1731 = vst.msk [vmem:[#allocation3] sm:$0xc0] %vm7475_vm6, %v1728_v62  ;;  %v1862_v14 = vld [vmem:[#allocation2 + $0x3c] ss:$2 sm:$0x3f]  ;;  %v2005_v55 = vrot.slane %v2003_v45, 6 }
 0x3af   :  { %1733 = vst.msk [vmem:[#allocation3 + $0x20] sm:$0xf] %vm1732_vm7, %v1728_v62  ;;  %v1864_v27 = vrot.slane %v1862_v14, 4  ;;  %v2237_v37 = vld [vmem:[#allocation2 + $0xa6] ss:$2 sm:$0x3f] }
 0x3b0   :  { %1908 = vrot.lane.b32.xlu1 %v1907_v20, %s5356_s28  ;;  %v2207_v42 = vld [vmem:[#allocation2 + $0x97] ss:$2 sm:$0x3f]  ;;  %v2239_v36 = vrot.slane %v2237_v37, 2 }
 0x3b1   :  { %1773 = vrot.lane.b32.xlu0 %v1772_v47, %s5356_s28  ;;  %1867 = vst.msk [vmem:[#allocation3 + $0x20] sm:$0xf0] %vm1866_vm5, %v1864_v27  ;;  %v2209_v31 = vrot.slane %v2207_v42, 2  ;;  %v2039_v49 = vld [vmem:[#allocation2 + $0x6b] ss:$2 sm:$0x3f] }
 0x3b2   :  { %1868 = vst.msk [vmem:[#allocation3 + $0x40] sm:$0x3] %vm7476_vm3, %v1864_v27  ;;  %v2011_v5 = vld [vmem:[#allocation2 + $0x5c] ss:$2 sm:$0x3f]  ;;  %v2041_v13 = vrot.slane %v2039_v49, 6 }
 0x3b3   :  { %v2027_v23 = vld [vmem:[#allocation2 + $0x69] ss:$2 sm:$0x3f]  ;;  %v1997_v9 = vld [vmem:[#allocation2 + $0x5a] ss:$2 sm:$0x3f] }
 0x3b4   :  { %1781 = vrot.lane.b32.xlu1 %v1780_v17, %s5358_s11  ;;  %v2029_v11 = vrot.slane %v2027_v23, 6  ;;  %v2013_v40 = vrot.slane %v2011_v5, 6  ;;  %v1999_v26 = vrot.slane %v1997_v9, 6  ;;  %v2245_v7 = vld [vmem:[#allocation2 + $0xa7] ss:$2 sm:$0x3f] }
 0x3b5   :  { %1737 = vrot.lane.b32.xlu0 %v1736_v53, %s5356_s28  ;;  %v2215_v15 = vld [vmem:[#allocation2 + $0x98] ss:$2 sm:$0x3f]  ;;  %v2231_v29 = vld [vmem:[#allocation2 + $0xa5] ss:$2 sm:$0x3f] }
 0x3b6   :  { %2031 = vst.msk [vmem:[#allocation3 + $0x48] sm:$0xfc] %vm2001_vm8, %v2029_v11  ;;  %2002 = vst.msk [vmem:[#allocation3 + $0x40] sm:$0xfc] %vm2001_vm8, %v1999_v26  ;;  %v2233_v16 = vrot.slane %v2231_v29, 2  ;;  %v2247_v59 = vrot.slane %v2245_v7, 2 }
 0x3b7   :  { %v2201_v34 = vld [vmem:[#allocation2 + $0x96] ss:$2 sm:$0x3f]  ;;  %v2217_v20 = vrot.slane %v2215_v15, 2 }
 0x3b8   :  { %1916 = vrot.lane.b32.xlu1 %v1915_v18, %s5358_s11  ;;  %v2203_v47 = vrot.slane %v2201_v34, 2  ;;  %v2046_v63 = vld [vmem:[#allocation2 + $0x6c] ss:$2 sm:$0x3f]  ;;  %2235 = vst.msk [vmem:[#allocation3 + $0x68] sm:$0xc0] %vm7475_vm6, %v2233_v16 }
 0x3b9   :  { %1872 = vrot.lane.b32.xlu0 %v1871_v58, %s5356_s28  ;;  %v2019_v10 = vld [vmem:[#allocation2 + $0x5d] ss:$2 sm:$0x3f]  ;;  %2236 = vst.msk [vmem:[#allocation3 + $0x88] sm:$0xf] %vm1732_vm7, %v2233_v16  ;;  %v2048_v48 = vrot.slane %v2046_v63, 6 }
 0x3ba   :  { %2205 = vst.msk [vmem:[#allocation3 + $0x60] sm:$0xc0] %vm7475_vm6, %v2203_v47  ;;  %v2021_v12 = vrot.slane %v2019_v10, 6  ;;  %v2253_v22 = vld [vmem:[#allocation2 + $0xa8] ss:$2 sm:$0x3f] }
 0x3bb   :  { %2206 = vst.msk [vmem:[#allocation3 + $0x80] sm:$0xf] %vm1732_vm7, %v2203_v47  ;;  %v2223_v33 = vld [vmem:[#allocation2 + $0x99] ss:$2 sm:$0x3f]  ;;  %v2255_v17 = vrot.slane %v2253_v22, 2 }
 0x3bc   :  { %1789 = vrot.lane.b32.xlu1 %v1788_v0, %s5357_s0  ;;  %v2225_v53 = vrot.slane %v2223_v33, 2  ;;  %v2371_v44 = vld [vmem:[#allocation2 + $0xf1] ss:$2 sm:$0x3f] }
 0x3bd   :  { %1747 = vrot.lane.b32.xlu0 %v1746_v57, %s5358_s11  ;;  %v2496_v43 = vld [vmem:[#allocation2 + $0x10f] ss:$2 sm:$0x3f]  ;;  %v2364_v18 = vld [vmem:[#allocation2 + $0xf0] ss:$2 sm:$0x3f] }
 0x3be   :  { %v2366_v58 = vrot.slane %v2364_v18, 4  ;;  %v2491_v25 = vld [vmem:[#allocation2 + $0x10e] ss:$2 sm:$0x3f]  ;;  %v2373_v8 = vrot.slane %v2371_v44, 4  ;;  %v2498_v51 = vrot.slane %v2496_v43, 6 }
 0x3bf   :  { %v2493_v28 = vrot.slane %v2491_v25, 6  ;;  %v2337_v57 = vld [vmem:[#allocation2 + $0xe2] ss:$2 sm:$0x3f] }
 0x3c0   :  { %1924 = vrot.lane.b32.xlu1 %v1923_v50, %s5357_s0  ;;  %v2380_v21 = vld [vmem:[#allocation2 + $0xf2] ss:$2 sm:$0x3f]  ;;  %2368 = vst.msk [vmem:[#allocation3 + $0x88] sm:$0xf0] %vm1866_vm5, %v2366_v58  ;;  %v2339_v30 = vrot.slane %v2337_v57, 4 }
 0x3c1   :  { %1882 = vrot.lane.b32.xlu0 %v1881_v52, %s5358_s11  ;;  %2369 = vst.msk [vmem:[#allocation3 + $0xa8] sm:$0x3] %vm7476_vm3, %v2366_v58  ;;  %v2330_v2 = vld [vmem:[#allocation2 + $0xe1] ss:$2 sm:$0x3f]  ;;  %v2382_v32 = vrot.slane %v2380_v21, 4 }
 0x3c2   :  { %2495 = vst.msk [vmem:[#allocation3 + $0xa8] sm:$0xfc] %vm2001_vm8, %v2493_v28  ;;  %v2332_v3 = vrot.slane %v2330_v2, 4  ;;  %v2470_v39 = vld [vmem:[#allocation2 + $0x100] ss:$2 sm:$0x3f] }
 0x3c3   :  { %v2503_v52 = vld [vmem:[#allocation2 + $0x110] ss:$2 sm:$0x3f]  ;;  %v2465_v41 = vld [vmem:[#allocation2 + $0xff] ss:$2 sm:$0x3f] }
 0x3c4   :  { %1757 = vrot.lane.b32.xlu1 %v1756_v54, %s5357_s0  ;;  %2334 = vst.msk [vmem:[#allocation3 + $0x80] sm:$0xf0] %vm1866_vm5, %v2332_v3  ;;  %v2467_v60 = vrot.slane %v2465_v41, 6  ;;  %v2472_v56 = vrot.slane %v2470_v39, 6  ;;  %v2505_v19 = vrot.slane %v2503_v52, 6 }
 0x3c5   :  { %1892 = vrot.lane.b32.xlu0 %v1891_v24, %s5357_s0  ;;  %2335 = vst.msk [vmem:[#allocation3 + $0xa0] sm:$0x3] %vm7476_vm3, %v2332_v3  ;;  %v2346_v54 = vld [vmem:[#allocation2 + $0xe3] ss:$2 sm:$0x3f] }
 0x3c6   :  { %2469 = vst.msk [vmem:[#allocation3 + $0xa0] sm:$0xfc] %vm2001_vm8, %v2467_v60  ;;  %v2389_v24 = vld [vmem:[#allocation2 + $0xf3] ss:$2 sm:$0x3f]  ;;  %v2348_v4 = vrot.slane %v2346_v54, 4 }
 0x3c7   :  { %v2391_v45 = vrot.slane %v2389_v24, 4  ;;  %v2823_v37 = vld [vmem:[#allocation2 + $0x168] ss:$2 sm:$0x3f] }
 0x3c8   :  { %2035 = vrot.lane.b32.xlu1 %v2034_v61, %s5356_s28  ;;  %v2477_v61 = vld [vmem:[#allocation2 + $0x101] ss:$2 sm:$0x3f]  ;;  %v2825_v42 = vrot.slane %v2823_v37, 4 }
 0x3c9   :  { %2006 = vrot.lane.b32.xlu0 %v2005_v55, %s5356_s28  ;;  %v2510_v55 = vld [vmem:[#allocation2 + $0x111] ss:$2 sm:$0x3f]  ;;  %v2355_v9 = vld [vmem:[#allocation2 + $0xe4] ss:$2 sm:$0x3f] }
 0x3ca   :  { %v2512_v49 = vrot.slane %v2510_v55, 6  ;;  %2827 = vst.msk [vmem:[#allocation3 + $0xe8] sm:$0xf0] %vm1866_vm5, %v2825_v42  ;;  %v2357_v7 = vrot.slane %v2355_v9, 4 }
 0x3cb   :  { %2828 = vst.msk [vmem:[#allocation3 + $0x108] sm:$0x3] %vm7476_vm3, %v2825_v42  ;;  %v2829_v34 = vld [vmem:[#allocation2 + $0x169] ss:$2 sm:$0x3f] }
 0x3cc   :  { %2240 = vrot.lane.b32.xlu1 %v2239_v36, %s5356_s28  ;;  %v2695_v36 = vld [vmem:[#allocation2 + $0x14a] ss:$2 sm:$0x3f]  ;;  %v2671_v33 = vld [vmem:[#allocation2 + $0x13c] ss:$2 sm:$0x3f] }
 0x3cd   :  { %2210 = vrot.lane.b32.xlu0 %v2209_v31, %s5356_s28  ;;  %v2479_v31 = vrot.slane %v2477_v61, 6  ;;  %v2697_v5 = vrot.slane %v2695_v36, 2  ;;  %v2709_v22 = vld [vmem:[#allocation2 + $0x14c] ss:$2 sm:$0x3f] }
 0x3ce   :  { %v2837_v44 = vld [vmem:[#allocation2 + $0x16a] ss:$2 sm:$0x3f]  ;;  %v2799_v43 = vld [vmem:[#allocation2 + $0x15a] ss:$2 sm:$0x3f] }
 0x3cf   :  { %2699 = vst.msk [vmem:[#allocation3 + $0xc8] sm:$0xc0] %vm7475_vm6, %v2697_v5  ;;  %v2947_v18 = vld [vmem:[#allocation2 + $0x186] ss:$2 sm:$0x3f] }
 0x3d0   :  { %2042 = vrot.lane.b32.xlu1 %v2041_v13, %s5358_s11  ;;  %v2484_v13 = vld [vmem:[#allocation2 + $0x102] ss:$2 sm:$0x3f]  ;;  %2700 = vst.msk [vmem:[#allocation3 + $0xe8] sm:$0xf] %vm1732_vm7, %v2697_v5  ;;  %v2949_v58 = vrot.slane %v2947_v18, 6 }
 0x3d1   :  { %2014 = vrot.lane.b32.xlu0 %v2013_v40, %s5358_s11  ;;  %v2665_v40 = vld [vmem:[#allocation2 + $0x13b] ss:$2 sm:$0x3f]  ;;  %v2486_v15 = vrot.slane %v2484_v13, 6 }
 0x3d2   :  { %v2667_v26 = vrot.slane %v2665_v40, 2  ;;  %v2921_v25 = vld [vmem:[#allocation2 + $0x177] ss:$2 sm:$0x3f]  ;;  %2951 = vst.msk [vmem:[#allocation3 + $0x108] sm:$0xfc] %vm2001_vm8, %v2949_v58 }
 0x3d3   :  { %v2717_v57 = vld [vmem:[#allocation2 + $0x14d] ss:$2 sm:$0x3f]  ;;  %v2679_v21 = vld [vmem:[#allocation2 + $0x13d] ss:$2 sm:$0x3f] }
 0x3d4   :  { %2248 = vrot.lane.b32.xlu1 %v2247_v59, %s5358_s11  ;;  %2669 = vst.msk [vmem:[#allocation3 + $0xc0] sm:$0xc0] %vm7475_vm6, %v2667_v26  ;;  %v2793_v59 = vld [vmem:[#allocation2 + $0x159] ss:$2 sm:$0x3f]  ;;  %v2719_v60 = vrot.slane %v2717_v57, 2 }
 0x3d5   :  { %2218 = vrot.lane.b32.xlu0 %v2217_v20, %s5358_s11  ;;  %2670 = vst.msk [vmem:[#allocation3 + $0xe0] sm:$0xf] %vm1732_vm7, %v2667_v26  ;;  %v2701_v20 = vld [vmem:[#allocation2 + $0x14b] ss:$2 sm:$0x3f]  ;;  %v2795_v47 = vrot.slane %v2793_v59, 4 }
 0x3d6   :  { %v1964_v2 = vld [vmem:[#allocation2 + $0x69] ss:$2 sm:$0x3f]  ;;  %v2807_v39 = vld [vmem:[#allocation2 + $0x15b] ss:$2 sm:$0x3f] }
 0x3d7   :  { %v1661_v35 = vpop.permute.xlu1 %1660  ;;  %2797 = vst.msk [vmem:[#allocation3 + $0xe0] sm:$0xf0] %vm1866_vm5, %v2795_v47  ;;  %v1966_v3 = vrot.slane %v1964_v2, 4  ;;  %v2084_v54 = vld [vmem:[#allocation2 + $0x87] ss:$2 sm:$0x3f] }
 0x3d8   :  { %2049 = vrot.lane.b32.xlu1 %v2048_v48, %s5357_s0  ;;  %v1634_v46 = vpop.permute.xlu0 %1633  ;;  %1663 = vst.msk [vmem:[#allocation3 + $0x8] sm:$0x3f] %vm1636_vm9, %v1661_v35  ;;  %v2831_v48 = vrot.slane %v2829_v34, 4  ;;  %v2711_v35 = vrot.slane %v2709_v22, 2  ;;  %v2086_v24 = vrot.slane %v2084_v54, 6  ;;  %v2809_v36 = vrot.slane %v2807_v39, 4 }
 0x3d9   :  { %2022 = vrot.lane.b32.xlu0 %v2021_v12, %s5357_s0  ;;  %1637 = vst.msk [vmem:[#allocation3] sm:$0x3f] %vm1636_vm9, %v1634_v46  ;;  %v2703_v12 = vrot.slane %v2701_v20, 2  ;;  %v2673_v46 = vrot.slane %v2671_v33, 2 }
 0x3da   :  { %2798 = vst.msk [vmem:[#allocation3 + $0x100] sm:$0x3] %vm7476_vm3, %v2795_v47  ;;  %1969 = vst.msk [vmem:[#allocation3 + $0x58] sm:$0x3] %vm7476_vm3, %v1966_v3  ;;  %v5265_v47 = vld [vmem:[%s7446_s2 + $0xc0] sm:$0xff]  }
 0x3db   :  { %v1668_v38 = vpop.permute.xlu1 %1667  ;;  %1968 = vst.msk [vmem:[#allocation3 + $0x38] sm:$0xf0] %vm1866_vm5, %v1966_v3  ;;  %v2296_v61 = vld [vmem:[#allocation2 + $0xc3] ss:$2 sm:$0x3f]  ;;  %4990 = vmatprep.subr.bf16.mxu1 %v5265_v47 }
 0x3dc   :  { %2256 = vrot.lane.b32.xlu1 %v2255_v17, %s5357_s0  ;;  %v1642_v0 = vpop.permute.xlu0 %1641  ;;  %1670 = vst.msk [vmem:[#allocation3 + $0x8] sm:$0x3f] %vm1644_vm10, %v1668_v38  ;;  %v2839_v38 = vrot.slane %v2837_v44, 4  ;;  %v2548_v9 = vld [vmem:[#allocation2 + $0x12c] ss:$2 sm:$0x3f] }
 0x3dd   :  { %2226 = vrot.lane.b32.xlu0 %v2225_v53, %s5357_s0  ;;  %1645 = vst.msk [vmem:[#allocation3] sm:$0x3f] %vm1644_vm10, %v1642_v0  ;;  %v2801_v0 = vrot.slane %v2799_v43, 4  ;;  %v2952_v13 = vld [vmem:[#allocation2 + $0x187] ss:$2 sm:$0x3f] }
 0x3de   :  { %2088 = vst.msk [vmem:[#allocation3 + $0x58] sm:$0xfc] %vm2001_vm8, %v2086_v24  ;;  %v2926_v40 = vld [vmem:[#allocation2 + $0x178] ss:$2 sm:$0x3f]  ;;  %v2550_v26 = vrot.slane %v2548_v9, 6 }
 0x3df   :  { %v2518_v20 = vld [vmem:[#allocation2 + $0x11d] ss:$2 sm:$0x3f]  ;;  %v2959_v22 = vld [vmem:[#allocation2 + $0x188] ss:$2 sm:$0x3f] }
 0x3e0   :  { %2374 = vrot.lane.b32.xlu1 %v2373_v8, %s5356_s28  ;;  %v1675_v6 = vpop.permute.xlu1 %1674  ;;  %v1650_v50 = vpop.permute.xlu0 %1649  ;;  %v2923_v8 = vrot.slane %v2921_v25, 6  ;;  %2552 = vst.msk [vmem:[#allocation3 + $0xb8] sm:$0xfc] %vm2001_vm8, %v2550_v26  ;;  %v2933_v33 = vld [vmem:[#allocation2 + $0x179] ss:$2 sm:$0x3f] }
 0x3e1   :  { %2499 = vrot.lane.b32.xlu0 %v2498_v51, %s5356_s28  ;;  %1677 = vst.msk [vmem:[#allocation3 + $0x8] sm:$0x3f] %vm1652_vm11, %v1675_v6  ;;  %1653 = vst.msk [vmem:[#allocation3] sm:$0x3f] %vm1652_vm11, %v1650_v50  ;;  %v2954_v44 = vrot.slane %v2952_v13, 6  ;;  %v2928_v43 = vrot.slane %v2926_v40, 6 }
 0x3e2   :  { %2925 = vst.msk [vmem:[#allocation3 + $0x100] sm:$0xfc] %vm2001_vm8, %v2923_v8  ;;  %v1795_v50 = vld [vmem:[#allocation2 + $0x3c] ss:$2 sm:$0x3f]  ;;  %v2935_v2 = vrot.slane %v2933_v33, 6 }
 0x3e3   :  { %v2854_v58 = vld [vmem:[#allocation2 + $0x177] ss:$2 sm:$0x3f]  ;;  %v3004_v8 = vld [vmem:[#allocation2 + $0x1a4] ss:$2 sm:$0x3f] }
 0x3e4   :  { %2340 = vrot.lane.b32.xlu1 %v2339_v30, %s5356_s28  ;;  %v1829_v30 = vld [vmem:[#allocation2 + $0x4b] ss:$2 sm:$0x3f]  ;;  %v2856_v25 = vrot.slane %v2854_v58, 4 }
 0x3e5   :  { %2383 = vrot.lane.b32.xlu0 %v2382_v32, %s5358_s11  ;;  %v2144_v1 = vpop.permute.xlu1 %2143  ;;  %v2138_v62 = vpop.permute.xlu0 %2137  ;;  %v2845_v32 = vld [vmem:[#allocation2 + $0x16b] ss:$2 sm:$0x3f]  ;;  %v1831_v6 = vrot.slane %v1829_v30, 2 }
 0x3e6   :  { %2140 = vst.msk [vmem:[#allocation3 + $0x68] sm:$0x3f] %vm1636_vm9, %v2138_v62  ;;  %v2847_v42 = vrot.slane %v2845_v32, 4  ;;  %v2966_v3 = vld [vmem:[#allocation2 + $0x189] ss:$2 sm:$0x3f] }
 0x3e7   :  { %2146 = vst.msk [vmem:[#allocation3 + $0x68] sm:$0x3f] %vm1644_vm10, %v2144_v1  ;;  %v1930_v1 = vld [vmem:[#allocation2 + $0x5a] ss:$2 sm:$0x3f] }
 0x3e8   :  { %2473 = vrot.lane.b32.xlu1 %v2472_v56, %s5356_s28  ;;  %v2681_v56 = vrot.slane %v2679_v21, 2  ;;  %1833 = vst.msk [vmem:[#allocation3 + $0x18] sm:$0xc0] %vm7475_vm6, %v1831_v6  ;;  %v1932_v62 = vrot.slane %v1930_v1, 4  ;;  %v2961_v21 = vrot.slane %v2959_v22, 6 }
 0x3e9   :  { %2506 = vrot.lane.b32.xlu0 %v2505_v19, %s5358_s11  ;;  %v2150_v14 = vpop.permute.xlu1 %2149  ;;  %v1797_v19 = vrot.slane %v1795_v50, 2  ;;  %1834 = vst.msk [vmem:[#allocation3 + $0x38] sm:$0xf] %vm1732_vm7, %v1831_v6  ;;  %v2940_v30 = vld [vmem:[#allocation2 + $0x17a] ss:$2 sm:$0x3f] }
 0x3ea   :  { %v2118_v27 = vpop.permute.xlu0 %2117  ;;  %2152 = vst.msk [vmem:[#allocation3 + $0x68] sm:$0x3f] %vm1652_vm11, %v2150_v14  ;;  %v2815_v14 = vld [vmem:[#allocation2 + $0x15c] ss:$2 sm:$0x3f]  ;;  %v2968_v6 = vrot.slane %v2966_v3, 6 }
 0x3eb   :  { %2120 = vst.msk [vmem:[#allocation3 + $0x60] sm:$0x3f] %vm1636_vm9, %v2118_v27  ;;  %v2817_v34 = vrot.slane %v2815_v14, 4  ;;  %v2942_v50 = vrot.slane %v2940_v30, 6 }
 0x3ec   :  { %2349 = vrot.lane.b32.xlu1 %v2348_v4, %s5358_s11  ;;  %1799 = vst.msk [vmem:[#allocation3 + $0x10] sm:$0xc0] %vm7475_vm6, %v1797_v19  ;;  %v2054_v4 = vld [vmem:[#allocation2 + $0x78] ss:$2 sm:$0x3f] }
 0x3ed   :  { %2392 = vrot.lane.b32.xlu0 %v2391_v45, %s5357_s0  ;;  %1800 = vst.msk [vmem:[#allocation3 + $0x30] sm:$0xf] %vm1732_vm7, %v1797_v19  ;;  %v2687_v45 = vld [vmem:[#allocation2 + $0x13e] ss:$2 sm:$0x3f]  ;;  %v2056_v27 = vrot.slane %v2054_v4, 6 }
 0x3ee   :  { %v2130_v23 = vpop.permute.xlu1 %2129  ;;  %v2124_v11 = vpop.permute.xlu0 %2123  ;;  %1934 = vst.msk [vmem:[#allocation3 + $0x30] sm:$0xf0] %vm1866_vm5, %v1932_v62  ;;  %2858 = vst.msk [vmem:[#allocation3 + $0xf0] sm:$0xf0] %vm1866_vm5, %v2856_v25 }
 0x3ef   :  { %2126 = vst.msk [vmem:[#allocation3 + $0x60] sm:$0x3f] %vm1644_vm10, %v2124_v11  ;;  %v1802_v54 = vld [vmem:[#allocation2 + $0x3d] ss:$2 sm:$0x3f] }
 0x3f0   :  { %2132 = vst.msk [vmem:[#allocation3 + $0x60] sm:$0x3f] %vm1652_vm11, %v2130_v23  ;;  %2480 = vrot.lane.b32.xlu1 %v2479_v31, %s5358_s11  ;;  %v2298_v31 = vrot.slane %v2296_v61, 2  ;;  %v2432_v23 = vld [vmem:[#allocation2 + $0x10e] ss:$2 sm:$0x3f] }
 0x3f1   :  { %2513 = vrot.lane.b32.xlu0 %v2512_v49, %s5357_s0  ;;  %1935 = vst.msk [vmem:[#allocation3 + $0x50] sm:$0x3] %vm7476_vm3, %v1932_v62  ;;  %v2262_v49 = vld [vmem:[#allocation2 + $0xb4] ss:$2 sm:$0x3f]  ;;  %v2434_v11 = vrot.slane %v2432_v23, 4 }
 0x3f2   :  { %v2602_v29 = vpop.permute.xlu1 %2601  ;;  %2058 = vst.msk [vmem:[#allocation3 + $0x50] sm:$0xfc] %vm2001_vm8, %v2056_v27  ;;  %v2264_v5 = vrot.slane %v2262_v49, 2  ;;  %v1845_v62 = vld [vmem:[#allocation2 + $0x4d] ss:$2 sm:$0x3f] }
 0x3f3   :  { %v2582_v16 = vpop.permute.xlu0 %2581  ;;  %2604 = vst.msk [vmem:[#allocation3 + $0xc8] sm:$0x3f] %vm1636_vm9, %v2602_v29  ;;  %v1804_v14 = vrot.slane %v1802_v54, 2  ;;  %v1980_v27 = vld [vmem:[#allocation2 + $0x6b] ss:$2 sm:$0x3f] }
 0x3f4   :  { %2584 = vst.msk [vmem:[#allocation3 + $0xc0] sm:$0x3f] %vm1636_vm9, %v2582_v16  ;;  %2358 = vrot.lane.b32.xlu1 %v2357_v7, %s5357_s0  ;;  %v2398_v7 = vld [vmem:[#allocation2 + $0xff] ss:$2 sm:$0x3f]  ;;  %v2689_v16 = vrot.slane %v2687_v45, 2 }
 0x3f5   :  { %2487 = vrot.lane.b32.xlu0 %v2486_v15, %s5357_s0  ;;  %2300 = vst.msk [vmem:[#allocation3 + $0x78] sm:$0xc0] %vm7475_vm6, %v2298_v31  ;;  %2266 = vst.msk [vmem:[#allocation3 + $0x70] sm:$0xc0] %vm7475_vm6, %v2264_v5  ;;  %v2400_v59 = vrot.slane %v2398_v7, 4  ;;  %v1847_v45 = vrot.slane %v1845_v62, 2 }
 0x3f6   :  { %v2608_v63 = vpop.permute.xlu1 %2607  ;;  %2301 = vst.msk [vmem:[#allocation3 + $0x98] sm:$0xf] %vm1732_vm7, %v2298_v31  ;;  %2267 = vst.msk [vmem:[#allocation3 + $0x90] sm:$0xf] %vm1732_vm7, %v2264_v5 }
 0x3f7   :  { %v2588_v10 = vpop.permute.xlu0 %2587  ;;  %2610 = vst.msk [vmem:[#allocation3 + $0xc8] sm:$0x3f] %vm1644_vm10, %v2608_v63  ;;  %v2520_v63 = vrot.slane %v2518_v20, 6  ;;  %v1937_v61 = vld [vmem:[#allocation2 + $0x5b] ss:$2 sm:$0x3f] }
 0x3f8   :  { %2590 = vst.msk [vmem:[#allocation3 + $0xc0] sm:$0x3f] %vm1644_vm10, %v2588_v10  ;;  %2832 = vrot.lane.b32.xlu1 %v2831_v48, %s5356_s28  ;;  %v2888_v10 = vld [vmem:[#allocation2 + $0x186] ss:$2 sm:$0x3f] }
 0x3f9   :  { %2704 = vrot.lane.b32.xlu0 %v2703_v12, %s5356_s28  ;;  %2436 = vst.msk [vmem:[#allocation3 + $0x98] sm:$0xf0] %vm1866_vm5, %v2434_v11  ;;  %2402 = vst.msk [vmem:[#allocation3 + $0x90] sm:$0xf0] %vm1866_vm5, %v2400_v59  ;;  %v2890_v48 = vrot.slane %v2888_v10, 4 }
 0x3fa   :  { %v2614_v17 = vpop.permute.xlu1 %2613  ;;  %2437 = vst.msk [vmem:[#allocation3 + $0xb8] sm:$0x3] %vm7476_vm3, %v2434_v11  ;;  %2403 = vst.msk [vmem:[#allocation3 + $0xb0] sm:$0x3] %vm7476_vm3, %v2400_v59 }
 0x3fb   :  { %v2594_v53 = vpop.permute.xlu0 %2593  ;;  %2616 = vst.msk [vmem:[#allocation3 + $0xc8] sm:$0x3f] %vm1652_vm11, %v2614_v17  ;;  %v2760_v12 = vld [vmem:[#allocation2 + $0x168] ss:$2 sm:$0x3f] }
 0x3fc   :  { %2596 = vst.msk [vmem:[#allocation3 + $0xc0] sm:$0x3f] %vm1652_vm11, %v2594_v53  ;;  %2712 = vrot.lane.b32.xlu1 %v2711_v35, %s5358_s11  ;;  %v2762_v17 = vrot.slane %v2760_v12, 2  ;;  %v2726_v53 = vld [vmem:[#allocation2 + $0x159] ss:$2 sm:$0x3f] }
 0x3fd   :  { %2674 = vrot.lane.b32.xlu0 %v2673_v46, %s5356_s28  ;;  %2522 = vst.msk [vmem:[#allocation3 + $0xb0] sm:$0xfc] %vm2001_vm8, %v2520_v63  ;;  %v2728_v18 = vrot.slane %v2726_v53, 2  ;;  %v1854_v31 = vld [vmem:[#allocation2 + $0x4e] ss:$2 sm:$0x3f] }
 0x3fe   :  { %v1709_v51 = vpop.permute.xlu1 %1708  ;;  %2892 = vst.msk [vmem:[#allocation3 + $0xf8] sm:$0xf0] %vm1866_vm5, %v2890_v48  ;;  %v1811_v49 = vld [vmem:[#allocation2 + $0x3e] ss:$2 sm:$0x3f]  ;;  %vm1752_vm5 = vcmask 781824  }
 0x3ff   :  { %v1685_v28 = vpop.permute.xlu0 %1684  ;;  %1711 = vst.msk [vmem:[#allocation3 + $0x18] sm:$0x3f] %vm1636_vm9, %v1709_v51  ;;  %v3006_v51 = vrot.slane %v3004_v8, 6  ;;  %v1856_v11 = vrot.slane %v1854_v31, 2  ;;  %v1813_v9 = vrot.slane %v1811_v49, 2  ;;  %v5270_v49 = vld [vmem:[%s7446_s2 + $0x90] sm:$0xff]  }
 0x400   :  { %1687 = vst.msk [vmem:[#allocation3 + $0x10] sm:$0x3f] %vm1636_vm9, %v1685_v28  ;;  %2840 = vrot.lane.b32.xlu1 %v2839_v38, %s5358_s11  ;;  %v2974_v28 = vld [vmem:[#allocation2 + $0x195] ss:$2 sm:$0x3f] }
 0x401   :  { %2802 = vrot.lane.b32.xlu0 %v2801_v0, %s5356_s28  ;;  %2893 = vst.msk [vmem:[#allocation3 + $0x118] sm:$0x3] %vm7476_vm3, %v2890_v48  ;;  %2859 = vst.msk [vmem:[#allocation3 + $0x110] sm:$0x3] %vm7476_vm3, %v2856_v25  ;;  %v2976_v38 = vrot.slane %v2974_v28, 6  ;;  %vm2017_vm3 = vcmask 785922  }
 0x402   :  { %v1716_v52 = vpop.permute.xlu1 %1715  ;;  %2764 = vst.msk [vmem:[#allocation3 + $0xd8] sm:$0xc0] %vm7475_vm6, %v2762_v17  ;;  %2730 = vst.msk [vmem:[#allocation3 + $0xd0] sm:$0xc0] %vm7475_vm6, %v2728_v18  ;;  %vm2009_vm6 = vcmask 523522  }
 0x403   :  { %v1692_v41 = vpop.permute.xlu0 %1691  ;;  %1718 = vst.msk [vmem:[#allocation3 + $0x18] sm:$0x3f] %vm1644_vm10, %v1716_v52  ;;  %v1971_v52 = vld [vmem:[#allocation2 + $0x6a] ss:$2 sm:$0x3f] }
 0x404   :  { %1694 = vst.msk [vmem:[#allocation3 + $0x10] sm:$0x3f] %vm1644_vm10, %v1692_v41  ;;  %2720 = vrot.lane.b32.xlu1 %v2719_v60, %s5357_s0  ;;  %v1836_v41 = vld [vmem:[#allocation2 + $0x4c] ss:$2 sm:$0x3f]  ;;  %v1973_v19 = vrot.slane %v1971_v52, 4 }
 0x405   :  { %2682 = vrot.lane.b32.xlu0 %v2681_v56, %s5358_s11  ;;  %2765 = vst.msk [vmem:[#allocation3 + $0xf8] sm:$0xf] %vm1732_vm7, %v2762_v17  ;;  %2731 = vst.msk [vmem:[#allocation3 + $0xf0] sm:$0xf] %vm1732_vm7, %v2728_v18  ;;  %v1838_v1 = vrot.slane %v1836_v41, 2  ;;  %vm1885_vm7 = vcmask 785924  }
 0x406   :  { %v1723_v55 = vpop.permute.xlu1 %1722  ;;  %3008 = vst.msk [vmem:[#allocation3 + $0x118] sm:$0xfc] %vm2001_vm8, %v3006_v51  ;;  %2978 = vst.msk [vmem:[#allocation3 + $0x110] sm:$0xfc] %vm2001_vm8, %v2976_v38  ;;  %vm1887_vm8 = vcmask 779776  }
 0x407   :  { %v1699_v37 = vpop.permute.xlu0 %1698  ;;  %1725 = vst.msk [vmem:[#allocation3 + $0x18] sm:$0x3f] %vm1652_vm11, %v1723_v55  ;;  %v1989_v13 = vld [vmem:[#allocation2 + $0x6c] ss:$2 sm:$0x3f] }
 0x408   :  { %1701 = vst.msk [vmem:[#allocation3 + $0x10] sm:$0x3f] %vm1652_vm11, %v1699_v37  ;;  %2848 = vrot.lane.b32.xlu1 %v2847_v42, %s5357_s0  ;;  %v1982_v42 = vrot.slane %v1980_v27, 4  ;;  %v1946_v40 = vld [vmem:[#allocation2 + $0x5c] ss:$2 sm:$0x3f] }
 0x409   :  { %2810 = vrot.lane.b32.xlu0 %v2809_v36, %s5358_s11  ;;  %v1939_v36 = vrot.slane %v1937_v61, 4  ;;  %v2090_v10 = vld [vmem:[#allocation2 + $0x88] ss:$2 sm:$0x3f] }
 0x40a   :  { %v2191_v15 = vpop.permute.xlu1 %2190  ;;  %v2060_v48 = vld [vmem:[#allocation2 + $0x79] ss:$2 sm:$0x3f]  ;;  %v2092_v33 = vrot.slane %v2090_v10, 6  ;;  %v5269_v61 = vld [vmem:[%s7446_s2 + $0xd0] sm:$0xff]  }
 0x40b   :  { %v2184_v29 = vpop.permute.xlu0 %2183  ;;  %v2062_v17 = vrot.slane %v2060_v48, 6  ;;  %v2303_v53 = vld [vmem:[#allocation2 + $0xc4] ss:$2 sm:$0x3f] }
 0x40c   :  { %2186 = vst.msk [vmem:[#allocation3 + $0x78] sm:$0x3f] %vm1636_vm9, %v2184_v29  ;;  %2690 = vrot.lane.b32.xlu1 %v2689_v16, %s5357_s0  ;;  %v1948_v29 = vrot.slane %v1946_v40, 4  ;;  %v1820_v16 = vld [vmem:[#allocation2 + $0x3f] ss:$2 sm:$0x3f] }
 0x40d   :  { %2193 = vst.msk [vmem:[#allocation3 + $0x78] sm:$0x3f] %vm1644_vm10, %v2191_v15  ;;  %2818 = vrot.lane.b32.xlu0 %v2817_v34, %s5357_s0  ;;  %v1991_v15 = vrot.slane %v1989_v13, 4  ;;  %v1955_v34 = vld [vmem:[#allocation2 + $0x5d] ss:$2 sm:$0x3f] }
 0x40e   :  { %v2198_v35 = vpop.permute.xlu1 %2197  ;;  %v1822_v47 = vrot.slane %v1820_v16, 2  ;;  %v1957_v63 = vrot.slane %v1955_v34, 4  ;;  %v2098_v58 = vld [vmem:[#allocation2 + $0x89] ss:$2 sm:$0x3f] }
 0x40f   :  { %v2160_v46 = vpop.permute.xlu0 %2159  ;;  %2200 = vst.msk [vmem:[#allocation3 + $0x78] sm:$0x3f] %vm1652_vm11, %v2198_v35  ;;  %v2269_v35 = vld [vmem:[#allocation2 + $0xb5] ss:$2 sm:$0x3f]  ;;  %v2100_v28 = vrot.slane %v2098_v58, 6 }
 0x410   :  { %2162 = vst.msk [vmem:[#allocation3 + $0x70] sm:$0x3f] %vm1636_vm9, %v2160_v46  ;;  %2955 = vrot.lane.b32.xlu1 %v2954_v44, %s5356_s28  ;;  %v2271_v18 = vrot.slane %v2269_v35, 2  ;;  %v2068_v25 = vld [vmem:[#allocation2 + $0x7a] ss:$2 sm:$0x3f] }
 0x411   :  { %2929 = vrot.lane.b32.xlu0 %v2928_v43, %s5356_s28  ;;  %v2305_v43 = vrot.slane %v2303_v53, 2  ;;  %v2070_v38 = vrot.slane %v2068_v25, 6  ;;  %v2278_v3 = vld [vmem:[#allocation2 + $0xb6] ss:$2 sm:$0x3f]  ;;  %v5275_v48 = vld [vmem:[%s7446_s2 + $0xe8] sm:$0xff]  }
 0x412   :  { %v2174_v0 = vpop.permute.xlu1 %2173  ;;  %v2106_v30 = vld [vmem:[#allocation2 + $0x8a] ss:$2 sm:$0x3f]  ;;  %v2287_v27 = vld [vmem:[#allocation2 + $0xb7] ss:$2 sm:$0x3f] }
 0x413   :  { %v2167_v57 = vpop.permute.xlu0 %2166  ;;  %v2439_v31 = vld [vmem:[#allocation2 + $0x10f] ss:$2 sm:$0x3f]  ;;  %v2562_v10 = vld [vmem:[#allocation2 + $0x12e] ss:$2 sm:$0x3f] }
 0x414   :  { %2169 = vst.msk [vmem:[#allocation3 + $0x70] sm:$0x3f] %vm1644_vm10, %v2167_v57  ;;  %2962 = vrot.lane.b32.xlu1 %v2961_v21, %s5358_s11  ;;  %v2441_v13 = vrot.slane %v2439_v31, 4  ;;  %v2414_v53 = vld [vmem:[#allocation2 + $0x101] ss:$2 sm:$0x3f] }
 0x415   :  { %2176 = vst.msk [vmem:[#allocation3 + $0x70] sm:$0x3f] %vm1652_vm11, %v2174_v0  ;;  %2936 = vrot.lane.b32.xlu0 %v2935_v2, %s5358_s11  ;;  %v2312_v2 = vld [vmem:[#allocation2 + $0xc5] ss:$2 sm:$0x3f] }
 0x416   :  { %v2648_v32 = vpop.permute.xlu1 %2647  ;;  %v5276_v35 = vld [vmem:[%s7446_s2 + $0xa8] sm:$0xff]  }
 0x417   :  { %v2624_v39 = vpop.permute.xlu0 %2623  ;;  %2650 = vst.msk [vmem:[#allocation3 + $0xd8] sm:$0x3f] %vm1636_vm9, %v2648_v32 }
 0x418   :  { %2626 = vst.msk [vmem:[#allocation3 + $0xd0] sm:$0x3f] %vm1636_vm9, %v2624_v39  ;;  %2969 = vrot.lane.b32.xlu1 %v2968_v6, %s5357_s0  ;;  %vm1760_vm9 = vcmask 1048326   ;;  %v2314_v6 = vrot.slane %v2312_v2, 2 }
 0x419   :  { %2943 = vrot.lane.b32.xlu0 %v2942_v50, %s5357_s0  ;;  %v2280_v50 = vrot.slane %v2278_v3, 2  ;;  %v2570_v2 = vld [vmem:[#allocation2 + $0x12f] ss:$2 sm:$0x3f] }
 0x41a   :  { %v2655_v60 = vpop.permute.xlu1 %2654  ;;  %v5278_v3 = vld [vmem:[%s7446_s2 + $0xb0] sm:$0xff]  }
 0x41b   :  { %v2631_v56 = vpop.permute.xlu0 %2630  ;;  %2657 = vst.msk [vmem:[#allocation3 + $0xd8] sm:$0x3f] %vm1644_vm10, %v2655_v60  ;;  %v5266_v60 = vld [vmem:[%s7446_s2 + $0x80] sm:$0xff]  }
 0x41c   :  { %2633 = vst.msk [vmem:[#allocation3 + $0xd0] sm:$0x3f] %vm1644_vm10, %v2631_v56  ;;  %1974 = vrot.lane.b32.xlu1 %v1973_v19, %s5356_s28  ;;  %vm1762_vm10 = vcmask 1044224   ;;  %v2076_v19 = vld [vmem:[#allocation2 + $0x7b] ss:$2 sm:$0x3f] }
 0x41d   :  { %1839 = vrot.lane.b32.xlu0 %v1838_v1, %s5356_s28  ;;  %v5267_v1 = vld [vmem:[%s7446_s2 + $0xc8] sm:$0xff]  }
 0x41e   :  { %v2662_v24 = vpop.permute.xlu1 %2661 }
 0x41f   :  { %v2638_v4 = vpop.permute.xlu0 %2637  ;;  %2664 = vst.msk [vmem:[#allocation3 + $0xd8] sm:$0x3f] %vm1652_vm11, %v2662_v24  ;;  %v2108_v24 = vrot.slane %v2106_v30, 6  ;;  %v5279_v30 = vld [vmem:[%s7446_s2 + $0xf8] sm:$0xff]  }
 0x420   :  { %2640 = vst.msk [vmem:[#allocation3 + $0xd0] sm:$0x3f] %vm1652_vm11, %v2638_v4  ;;  %1848 = vrot.lane.b32.xlu1 %v1847_v45, %s5358_s11  ;;  %vm1895_vm11 = vcmask 1048324   ;;  %v2078_v4 = vrot.slane %v2076_v19, 6 }
 0x421   :  { %1805 = vrot.lane.b32.xlu0 %v1804_v14, %s5356_s28  ;;  %v2321_v45 = vld [vmem:[#allocation2 + $0xc6] ss:$2 sm:$0x3f] }
 0x422   :  { %v1909_v55 = vpop.permute.xlu1 %1908  ;;  %v5268_v14 = vld [vmem:[%s7446_s2 + $0x88] sm:$0xff]  }
 0x423   :  { %v1774_v37 = vpop.permute.xlu0 %1773  ;;  %1911 = vst.msk [vmem:[#allocation3 + $0x28] sm:$0xf0] %vm1875_vm12, %v1909_v55 }
 0x424   :  { %1912 = vst.msk [vmem:[#allocation3 + $0x48] sm:$0x3] %vm1877_vm13, %v1909_v55  ;;  %1983 = vrot.lane.b32.xlu1 %v1982_v42, %s5358_s11  ;;  %v2323_v42 = vrot.slane %v2321_v45, 2 }
 0x425   :  { %1776 = vst.msk [vmem:[#allocation3 + $0x8] sm:$0xc0] %vm1740_vm14, %v1774_v37  ;;  %1940 = vrot.lane.b32.xlu0 %v1939_v36, %s5356_s28  ;;  %v2289_v36 = vrot.slane %v2287_v27, 2 }
 0x426   :  { %1777 = vst.msk [vmem:[#allocation3 + $0x28] sm:$0xf] %vm1742_vm15, %v1774_v37  ;;  %v1782_v5 = vpop.permute.xlu1 %1781 }
 0x427   :  { %v1738_v23 = vpop.permute.xlu0 %1737  ;;  %1784 = vst.msk [vmem:[#allocation3 + $0x8] sm:$0xc0] %vm1750_vm4, %v1782_v5 }
 0x428   :  { %1785 = vst.msk [vmem:[#allocation3 + $0x28] sm:$0xf] %vm1752_vm5, %v1782_v5  ;;  %1857 = vrot.lane.b32.xlu1 %v1856_v11, %s5357_s0  ;;  %v2554_v5 = vld [vmem:[#allocation2 + $0x12d] ss:$2 sm:$0x3f] }
 0x429   :  { %1741 = vst.msk [vmem:[#allocation3] sm:$0xc0] %vm1740_vm14, %v1738_v23  ;;  %1814 = vrot.lane.b32.xlu0 %v1813_v9, %s5358_s11  ;;  %v2556_v40 = vrot.slane %v2554_v5, 6  ;;  %v2861_v5 = vld [vmem:[#allocation2 + $0x178] ss:$2 sm:$0x3f] }
 0x42a   :  { %1743 = vst.msk [vmem:[#allocation3 + $0x20] sm:$0xf] %vm1742_vm15, %v1738_v23  ;;  %v1917_v26 = vpop.permute.xlu1 %1916  ;;  %v5271_v23 = vld [vmem:[%s7446_s2 + $0xd8] sm:$0xff]  }
 0x42b   :  { %v1873_v7 = vpop.permute.xlu0 %1872  ;;  %1919 = vst.msk [vmem:[#allocation3 + $0x28] sm:$0xf0] %vm1885_vm7, %v1917_v26 }
 0x42c   :  { %1920 = vst.msk [vmem:[#allocation3 + $0x48] sm:$0x3] %vm1887_vm8, %v1917_v26  ;;  %1992 = vrot.lane.b32.xlu1 %v1991_v15, %s5357_s0  ;;  %v2405_v26 = vld [vmem:[#allocation2 + $0x100] ss:$2 sm:$0x3f] }
 0x42d   :  { %1876 = vst.msk [vmem:[#allocation3 + $0x20] sm:$0xf0] %vm1875_vm12, %v1873_v7  ;;  %1949 = vrot.lane.b32.xlu0 %v1948_v29, %s5358_s11  ;;  %v2448_v15 = vld [vmem:[#allocation2 + $0x110] ss:$2 sm:$0x3f]  ;;  %v5273_v29 = vld [vmem:[%s7446_s2 + $0xe0] sm:$0xff]  }
 0x42e   :  { %1878 = vst.msk [vmem:[#allocation3 + $0x40] sm:$0x3] %vm1877_vm13, %v1873_v7  ;;  %v1790_v59 = vpop.permute.xlu1 %1789  ;;  %v5272_v7 = vld [vmem:[%s7446_s2 + $0x98] sm:$0xff]  }
 0x42f   :  { %v1748_v20 = vpop.permute.xlu0 %1747  ;;  %1792 = vst.msk [vmem:[#allocation3 + $0x8] sm:$0xc0] %vm1760_vm9, %v1790_v59 }
 0x430   :  { %1793 = vst.msk [vmem:[#allocation3 + $0x28] sm:$0xf] %vm1762_vm10, %v1790_v59  ;;  %1823 = vrot.lane.b32.xlu1 %v1822_v47, %s5357_s0  ;;  %v2407_v59 = vrot.slane %v2405_v26, 4  ;;  %v2524_v47 = vld [vmem:[#allocation2 + $0x11e] ss:$2 sm:$0x3f] }
 0x431   :  { %1751 = vst.msk [vmem:[#allocation3] sm:$0xc0] %vm1750_vm4, %v1748_v20  ;;  %1958 = vrot.lane.b32.xlu0 %v1957_v63, %s5357_s0  ;;  %v5274_v63 = vld [vmem:[%s7446_s2 + $0xa0] sm:$0xff]  }
 0x432   :  { %1753 = vst.msk [vmem:[#allocation3 + $0x20] sm:$0xf] %vm1752_vm5, %v1748_v20  ;;  %v1925_v12 = vpop.permute.xlu1 %1924  ;;  %v2450_v20 = vrot.slane %v2448_v15, 4  ;;  %v2785_v15 = vld [vmem:[#allocation2 + $0x16b] ss:$2 sm:$0x3f] }
 0x433   :  { %v1883_v22 = vpop.permute.xlu0 %1882  ;;  %1927 = vst.msk [vmem:[#allocation3 + $0x28] sm:$0xf0] %vm1895_vm11, %v1925_v12 }
 0x434   :  { %1928 = vst.msk [vmem:[#allocation3 + $0x48] sm:$0x3] %vm1897_vm2, %v1925_v12  ;;  %2093 = vrot.lane.b32.xlu1 %v2092_v33, %s5356_s28  ;;  %v2526_v33 = vrot.slane %v2524_v47, 6 }
 0x435   :  { %1886 = vst.msk [vmem:[#allocation3 + $0x20] sm:$0xf0] %vm1885_vm7, %v1883_v22  ;;  %2063 = vrot.lane.b32.xlu0 %v2062_v17, %s5356_s28  ;;  %v2564_v17 = vrot.slane %v2562_v10, 6 }
 0x436   :  { %1888 = vst.msk [vmem:[#allocation3 + $0x40] sm:$0x3] %vm1887_vm8, %v1883_v22  ;;  %v1758_v46 = vpop.permute.xlu1 %1757  ;;  %v3034_v0 = vld [vmem:[#allocation3 + $0x8] sm:$0xff] }
 0x437   :  { %v1893_v44 = vpop.permute.xlu0 %1892  ;;  %1761 = vst.msk [vmem:[#allocation3] sm:$0xc0] %vm1760_vm9, %v1758_v46 }
 0x438   :  { %1763 = vst.msk [vmem:[#allocation3 + $0x20] sm:$0xf] %vm1762_vm10, %v1758_v46  ;;  %2306 = vrot.lane.b32.xlu1 %v2305_v43, %s5356_s28  ;;  %v2457_v46 = vld [vmem:[#allocation2 + $0x111] ss:$2 sm:$0x3f] }
 0x439   :  { %1896 = vst.msk [vmem:[#allocation3 + $0x20] sm:$0xf0] %vm1895_vm11, %v1893_v44  ;;  %2272 = vrot.lane.b32.xlu0 %v2271_v18, %s5356_s28  ;;  %v2532_v18 = vld [vmem:[#allocation2 + $0x11f] ss:$2 sm:$0x3f] }
 0x43a   :  { %1898 = vst.msk [vmem:[#allocation3 + $0x40] sm:$0x3] %vm1897_vm2, %v1893_v44  ;;  %v2036_v8 = vpop.permute.xlu1 %2035  ;;  %v3038_v57 = vld [vmem:[#allocation3 + $0x28] sm:$0xff] }
 0x43b   :  { %v2007_v51 = vpop.permute.xlu0 %2006  ;;  %2038 = vst.msk [vmem:[#allocation3 + $0x48] sm:$0xfc] %vm2009_vm6, %v2036_v8  ;;  %v3070_v21 = vpack.c.bf16 %v3038_v57, %v3034_v0  ;;  %v5277_v44 = vld [vmem:[%s7446_s2 + $0xf0] sm:$0xff]   ;;  %v2416_v8 = vrot.slane %v2414_v53, 4 }
 0x43c   :  { %2010 = vst.msk [vmem:[#allocation3 + $0x40] sm:$0xfc] %vm2009_vm6, %v2007_v51  ;;  %2101 = vrot.lane.b32.xlu1 %v2100_v28, %s5358_s11  ;;  %v2459_v51 = vrot.slane %v2457_v46, 4  ;;  %v2879_v46 = vld [vmem:[#allocation2 + $0x17a] ss:$2 sm:$0x3f] }
 0x43d   :  { %2071 = vrot.lane.b32.xlu0 %v2070_v38, %s5358_s11  ;;  %3377 = vmatprep.mubr.bf16.mxu1 %v3070_v21 }
 0x43e   :  { %v2241_v32 = vpop.permute.xlu1 %2240  ;;  %v3033_v52 = vld [vmem:[#allocation3] sm:$0xff] }
 0x43f   :  { %v2211_v39 = vpop.permute.xlu0 %2210  ;;  %2243 = vst.msk [vmem:[#allocation3 + $0x68] sm:$0xc0] %vm1740_vm14, %v2241_v32 }
 0x440   :  { %v3037_v41 = vld [vmem:[#allocation3 + $0x20] sm:$0xff]  ;;  %2244 = vst.msk [vmem:[#allocation3 + $0x88] sm:$0xf] %vm1742_vm15, %v2241_v32  ;;  %2214 = vst.msk [vmem:[#allocation3 + $0x80] sm:$0xf] %vm1742_vm15, %v2211_v39  ;;  %2315 = vrot.lane.b32.xlu1 %v2314_v6, %s5358_s11  ;;  %v2534_v6 = vrot.slane %v2532_v18, 6 }
 0x441   :  { %2213 = vst.msk [vmem:[#allocation3 + $0x60] sm:$0xc0] %vm1740_vm14, %v2211_v39  ;;  %v3069_v56 = vpack.c.bf16 %v3037_v41, %v3033_v52  ;;  %2281 = vrot.lane.b32.xlu0 %v2280_v50, %s5358_s11  ;;  %v2572_v50 = vrot.slane %v2570_v2, 6  ;;  %v2423_v52 = vld [vmem:[#allocation2 + $0x102] ss:$2 sm:$0x3f] }
 0x442   :  { %v2043_v62 = vpop.permute.xlu1 %2042  ;;  %v2540_v41 = vld [vmem:[#allocation2 + $0x120] ss:$2 sm:$0x3f] }
 0x443   :  { %3378 = vmatmul.mubr.bf16.vlgmr.msra.gmra.mrb[16].mxu1 %v3069_v56  ;;  %v2015_v54 = vpop.permute.xlu0 %2014  ;;  %2045 = vst.msk [vmem:[#allocation3 + $0x48] sm:$0xfc] %vm2017_vm3, %v2043_v62  ;;  %v2542_v62 = vrot.slane %v2540_v41, 6 }
 0x444   :  { %4991 = vmatpush3.bf16.msra.mxu1 %v5266_v60  ;;  %2018 = vst.msk [vmem:[#allocation3 + $0x40] sm:$0xfc] %vm2017_vm3, %v2015_v54  ;;  %2109 = vrot.lane.b32.xlu1 %v2108_v24, %s5357_s0  ;;  %v5280_v60 = vld [vmem:[%s7446_s2 + $0xb8] sm:$0xff]   ;;  %v2895_v54 = vld [vmem:[#allocation2 + $0x187] ss:$2 sm:$0x3f] }
 0x445   :  { %4992 = vmatprep.subr.bf16.mxu1 %v5267_v1  ;;  %2079 = vrot.lane.b32.xlu0 %v2078_v4, %s5357_s0  ;;  %v2425_v1 = vrot.slane %v2423_v52, 4  ;;  %v2767_v24 = vld [vmem:[#allocation2 + $0x169] ss:$2 sm:$0x3f] }
 0x446   :  { %v2249_v55 = vpop.permute.xlu1 %2248  ;;  %v2769_v27 = vrot.slane %v2767_v24, 2 }
 0x447   :  { %v2219_v37 = vpop.permute.xlu0 %2218  ;;  %2251 = vst.msk [vmem:[#allocation3 + $0x68] sm:$0xc0] %vm1750_vm4, %v2249_v55 }
 0x448   :  { %4993 = vmatpush3.bf16.msra.mxu1 %v5268_v14  ;;  %2252 = vst.msk [vmem:[#allocation3 + $0x88] sm:$0xf] %vm1752_vm5, %v2249_v55  ;;  %2222 = vst.msk [vmem:[#allocation3 + $0x80] sm:$0xf] %vm1752_vm5, %v2219_v37  ;;  %2324 = vrot.lane.b32.xlu1 %v2323_v42, %s5357_s0  ;;  %v2897_v14 = vrot.slane %v2895_v54, 4 }
 0x449   :  { %2221 = vst.msk [vmem:[#allocation3 + $0x60] sm:$0xc0] %vm1750_vm4, %v2219_v37  ;;  %4994 = vmatprep.subr.bf16.mxu1 %v5269_v61  ;;  %2290 = vrot.lane.b32.xlu0 %v2289_v36, %s5357_s0  ;;  %v2776_v61 = vld [vmem:[#allocation2 + $0x16a] ss:$2 sm:$0x3f] }
 0x44a   :  { %v2050_v11 = vpop.permute.xlu1 %2049  ;;  %v2733_v55 = vld [vmem:[#allocation2 + $0x15a] ss:$2 sm:$0x3f]  ;;  %v2778_v36 = vrot.slane %v2776_v61, 2 }
 0x44b   :  { %v2023_v9 = vpop.permute.xlu0 %2022  ;;  %2052 = vst.msk [vmem:[#allocation3 + $0x48] sm:$0xfc] %vm2025_vm0, %v2050_v11  ;;  %v2735_v31 = vrot.slane %v2733_v55, 2 }
 0x44c   :  { %4995 = vmatpush3.bf16.msra.mxu1 %v5270_v49  ;;  %2026 = vst.msk [vmem:[#allocation3 + $0x40] sm:$0xfc] %vm2025_vm0, %v2023_v9  ;;  %2442 = vrot.lane.b32.xlu1 %v2441_v13, %s5356_s28  ;;  %v2904_v49 = vld [vmem:[#allocation2 + $0x188] ss:$2 sm:$0x3f]  ;;  %v2863_v13 = vrot.slane %v2861_v5, 4 }
 0x44d   :  { %4996 = vmatprep.subr.bf16.mxu1 %v5271_v23  ;;  %2557 = vrot.lane.b32.xlu0 %v2556_v40, %s5356_s28  ;;  %v2906_v9 = vrot.slane %v2904_v49, 4 }
 0x44e   :  { %v2257_v16 = vpop.permute.xlu1 %2256 }
 0x44f   :  { %v2227_v34 = vpop.permute.xlu0 %2226  ;;  %2259 = vst.msk [vmem:[#allocation3 + $0x68] sm:$0xc0] %vm1760_vm9, %v2257_v16 }
 0x450   :  { %4997 = vmatpush3.bf16.msra.mxu1 %v5272_v7  ;;  %2260 = vst.msk [vmem:[#allocation3 + $0x88] sm:$0xf] %vm1762_vm10, %v2257_v16  ;;  %2230 = vst.msk [vmem:[#allocation3 + $0x80] sm:$0xf] %vm1762_vm10, %v2227_v34  ;;  %2408 = vrot.lane.b32.xlu1 %v2407_v59, %s5356_s28  ;;  %v2787_v59 = vrot.slane %v2785_v15, 2 }
 0x451   :  { %2229 = vst.msk [vmem:[#allocation3 + $0x60] sm:$0xc0] %vm1760_vm9, %v2227_v34  ;;  %4998 = vmatprep.subr.bf16.mxu1 %v5273_v29  ;;  %2451 = vrot.lane.b32.xlu0 %v2450_v20, %s5358_s11  ;;  %v2742_v29 = vld [vmem:[#allocation2 + $0x15b] ss:$2 sm:$0x3f] }
 0x452   :  { %v2375_v12 = vpop.permute.xlu1 %2374  ;;  %v3042_v43 = vld [vmem:[#allocation3 + $0x48] sm:$0xff]  ;;  %v2744_v20 = vrot.slane %v2742_v29, 2 }
 0x453   :  { %v2500_v22 = vpop.permute.xlu0 %2499  ;;  %2377 = vst.msk [vmem:[#allocation3 + $0x88] sm:$0xf0] %vm1875_vm12, %v2375_v12  ;;  %v3041_v38 = vld [vmem:[#allocation3 + $0x40] sm:$0xff] }
 0x454   :  { %4999 = vmatpush3.bf16.msra.mxu1 %v5274_v63  ;;  %2378 = vst.msk [vmem:[#allocation3 + $0xa8] sm:$0x3] %vm1877_vm13, %v2375_v12  ;;  %2527 = vrot.lane.b32.xlu1 %v2526_v33, %s5356_s28  ;;  %v2870_v12 = vld [vmem:[#allocation2 + $0x179] ss:$2 sm:$0x3f] }
 0x455   :  { %2502 = vst.msk [vmem:[#allocation3 + $0xa8] sm:$0xfc] %vm2009_vm6, %v2500_v22  ;;  %5000 = vmatprep.subr.bf16.mxu1 %v5275_v48  ;;  %2565 = vrot.lane.b32.xlu0 %v2564_v17, %s5358_s11  ;;  %v2913_v48 = vld [vmem:[#allocation2 + $0x189] ss:$2 sm:$0x3f]  ;;  %v2872_v53 = vrot.slane %v2870_v12, 4 }
 0x456   :  { %v2341_v58 = vpop.permute.xlu1 %2340  ;;  %v3046_v28 = vld [vmem:[#allocation3 + $0x68] sm:$0xff]  ;;  %v2915_v17 = vrot.slane %v2913_v48, 4 }
 0x457   :  { %v2384_v25 = vpop.permute.xlu0 %2383  ;;  %2343 = vst.msk [vmem:[#allocation3 + $0x80] sm:$0xf0] %vm1875_vm12, %v2341_v58  ;;  %v3074_v57 = vpack.c.bf16 %v3046_v28, %v3042_v43 }
 0x458   :  { %v3045_v0 = vld [vmem:[#allocation3 + $0x60] sm:$0xff]  ;;  %5001 = vmatpush3.bf16.msra.mxu1 %v5276_v35  ;;  %2344 = vst.msk [vmem:[#allocation3 + $0xa0] sm:$0x3] %vm1877_vm13, %v2341_v58  ;;  %2417 = vrot.lane.b32.xlu1 %v2416_v8, %s5358_s11  ;;  %v2751_v35 = vld [vmem:[#allocation2 + $0x15c] ss:$2 sm:$0x3f] }
 0x459   :  { %2386 = vst.msk [vmem:[#allocation3 + $0x88] sm:$0xf0] %vm1885_vm7, %v2384_v25  ;;  %v3073_v21 = vpack.c.bf16 %v3045_v0, %v3041_v38  ;;  %5002 = vmatprep.subr.bf16.mxu1 %v5277_v44  ;;  %2460 = vrot.lane.b32.xlu0 %v2459_v51, %s5357_s0  ;;  %v2753_v18 = vrot.slane %v2751_v35, 2  ;;  %v2881_v58 = vrot.slane %v2879_v46, 4 }
 0x45a   :  { %2387 = vst.msk [vmem:[#allocation3 + $0xa8] sm:$0x3] %vm1887_vm8, %v2384_v25  ;;  %3385 = vmatprep.mubr.bf16.mxu1 %v3074_v57  ;;  %v2474_v32 = vpop.permute.xlu1 %2473  ;;  %v3010_v25 = vld [vmem:[#allocation2 + $0x1a5] ss:$2 sm:$0x3f] }
 0x45b   :  { %v2507_v39 = vpop.permute.xlu0 %2506  ;;  %3386 = vmatmul.mubr.bf16.gmra.mrb[20].mxu1 %v3073_v21  ;;  %2476 = vst.msk [vmem:[#allocation3 + $0xa0] sm:$0xfc] %vm2009_vm6, %v2474_v32  ;;  %v2980_v8 = vld [vmem:[#allocation2 + $0x196] ss:$2 sm:$0x3f]  ;;  %v3012_v38 = vrot.slane %v3010_v25, 6 }
 0x45c   :  { %2509 = vst.msk [vmem:[#allocation3 + $0xa8] sm:$0xfc] %vm2017_vm3, %v2507_v39  ;;  %5003 = vmatpush3.bf16.msra.mxu1 %v5278_v3  ;;  %2535 = vrot.lane.b32.xlu1 %v2534_v6, %s5358_s11  ;;  %v2982_v0 = vrot.slane %v2980_v8, 6  ;;  %v3018_v57 = vld [vmem:[#allocation2 + $0x1a6] ss:$2 sm:$0x3f] }
 0x45d   :  { %2573 = vrot.lane.b32.xlu0 %v2572_v50, %s5357_s0  ;;  %5004 = vmatprep.subr.bf16.mxu1 %v5279_v30  ;;  %v2988_v21 = vld [vmem:[#allocation2 + $0x197] ss:$2 sm:$0x3f]  ;;  %v3020_v30 = vrot.slane %v3018_v57, 6 }
 0x45e   :  { %v2350_v56 = vpop.permute.xlu1 %2349  ;;  %v2990_v32 = vrot.slane %v2988_v21, 6  ;;  %v3026_v39 = vld [vmem:[#allocation2 + $0x1a7] ss:$2 sm:$0x3f] }
 0x45f   :  { %v2393_v19 = vpop.permute.xlu0 %2392  ;;  %2352 = vst.msk [vmem:[#allocation3 + $0x80] sm:$0xf0] %vm1885_vm7, %v2350_v56  ;;  %v2996_v6 = vld [vmem:[#allocation2 + $0x198] ss:$2 sm:$0x3f]  ;;  %v3028_v41 = vrot.slane %v3026_v39, 6 }
 0x460   :  { %2353 = vst.msk [vmem:[#allocation3 + $0xa0] sm:$0x3] %vm1887_vm8, %v2350_v56  ;;  %5005 = vmatpush3.bf16.msra.mxu1 %v5280_v60  ;;  %2426 = vrot.lane.b32.xlu1 %v2425_v1, %s5357_s0  ;;  %v2998_v60 = vrot.slane %v2996_v6, 6 }
 0x461   :  { %2395 = vst.msk [vmem:[#allocation3 + $0x88] sm:$0xf0] %vm1895_vm11, %v2393_v19  ;;  %2543 = vrot.lane.b32.xlu0 %v2542_v62, %s5357_s0 }
 0x462   :  { %2396 = vst.msk [vmem:[#allocation3 + $0xa8] sm:$0x3] %vm1897_vm2, %v2393_v19  ;;  %v2481_v4 = vpop.permute.xlu1 %2480 }
 0x463   :  { %v2514_v45 = vpop.permute.xlu0 %2513  ;;  %2483 = vst.msk [vmem:[#allocation3 + $0xa0] sm:$0xfc] %vm2017_vm3, %v2481_v4 }
 0x464   :  { %2516 = vst.msk [vmem:[#allocation3 + $0xa8] sm:$0xfc] %vm2025_vm0, %v2514_v45  ;;  %2898 = vrot.lane.b32.xlu1 %v2897_v14, %s5356_s28 }
 0x465   :  { %2770 = vrot.lane.b32.xlu0 %v2769_v27, %s5356_s28 }
 0x466   :  { %v2359_v37 = vpop.permute.xlu1 %2358 }
 0x467   :  { %v2488_v42 = vpop.permute.xlu0 %2487  ;;  %2361 = vst.msk [vmem:[#allocation3 + $0x80] sm:$0xf0] %vm1895_vm11, %v2359_v37 }
 0x468   :  { %2362 = vst.msk [vmem:[#allocation3 + $0xa0] sm:$0x3] %vm1897_vm2, %v2359_v37  ;;  %2779 = vrot.lane.b32.xlu1 %v2778_v36, %s5358_s11  ;;  %v3050_v40 = vld [vmem:[#allocation3 + $0x88] sm:$0xff] }
 0x469   :  { %2490 = vst.msk [vmem:[#allocation3 + $0xa0] sm:$0xfc] %vm2025_vm0, %v2488_v42  ;;  %2736 = vrot.lane.b32.xlu0 %v2735_v31, %s5356_s28 }
 0x46a   :  { %v2833_v23 = vpop.permute.xlu1 %2832 }
 0x46b   :  { %v2705_v11 = vpop.permute.xlu0 %2704  ;;  %v3054_v26 = vld [vmem:[#allocation3 + $0xa8] sm:$0xff]  ;;  %2835 = vst.msk [vmem:[#allocation3 + $0xe8] sm:$0xf0] %vm1875_vm12, %v2833_v23 }
 0x46c   :  { %2836 = vst.msk [vmem:[#allocation3 + $0x108] sm:$0x3] %vm1877_vm13, %v2833_v23  ;;  %v3078_v7 = vpack.c.bf16 %v3054_v26, %v3050_v40  ;;  %2907 = vrot.lane.b32.xlu1 %v2906_v9, %s5358_s11 }
 0x46d   :  { %2707 = vst.msk [vmem:[#allocation3 + $0xc8] sm:$0xc0] %vm1740_vm14, %v2705_v11  ;;  %2864 = vrot.lane.b32.xlu0 %v2863_v13, %s5356_s28 }
 0x46e   :  { %2708 = vst.msk [vmem:[#allocation3 + $0xe8] sm:$0xf] %vm1742_vm15, %v2705_v11  ;;  %3393 = vmatprep.mubr.bf16.mxu1 %v3078_v7  ;;  %v2713_v16 = vpop.permute.xlu1 %2712  ;;  %v3049_v47 = vld [vmem:[#allocation3 + $0x80] sm:$0xff] }
 0x46f   :  { %v2675_v34 = vpop.permute.xlu0 %2674  ;;  %2715 = vst.msk [vmem:[#allocation3 + $0xc8] sm:$0xc0] %vm1750_vm4, %v2713_v16 }
 0x470   :  { %v3053_v63 = vld [vmem:[#allocation3 + $0xa0] sm:$0xff]  ;;  %2716 = vst.msk [vmem:[#allocation3 + $0xe8] sm:$0xf] %vm1752_vm5, %v2713_v16  ;;  %2788 = vrot.lane.b32.xlu1 %v2787_v59, %s5357_s0 }
 0x471   :  { %2677 = vst.msk [vmem:[#allocation3 + $0xc0] sm:$0xc0] %vm1740_vm14, %v2675_v34  ;;  %v3077_v10 = vpack.c.bf16 %v3053_v63, %v3049_v47  ;;  %2745 = vrot.lane.b32.xlu0 %v2744_v20, %s5358_s11 }
 0x472   :  { %2678 = vst.msk [vmem:[#allocation3 + $0xe0] sm:$0xf] %vm1742_vm15, %v2675_v34  ;;  %v2841_v22 = vpop.permute.xlu1 %2840 }
 0x473   :  { %3394 = vmatmul.mubr.bf16.gmra.mrb[24].mxu1 %v3077_v10  ;;  %v2803_v33 = vpop.permute.xlu0 %2802  ;;  %2843 = vst.msk [vmem:[#allocation3 + $0xe8] sm:$0xf0] %vm1885_vm7, %v2841_v22 }
 0x474   :  { %2844 = vst.msk [vmem:[#allocation3 + $0x108] sm:$0x3] %vm1887_vm8, %v2841_v22  ;;  %2916 = vrot.lane.b32.xlu1 %v2915_v17, %s5357_s0 }
 0x475   :  { %2805 = vst.msk [vmem:[#allocation3 + $0xe0] sm:$0xf0] %vm1875_vm12, %v2803_v33  ;;  %2873 = vrot.lane.b32.xlu0 %v2872_v53, %s5358_s11 }
 0x476   :  { %2806 = vst.msk [vmem:[#allocation3 + $0x100] sm:$0x3] %vm1877_vm13, %v2803_v33  ;;  %v2721_v44 = vpop.permute.xlu1 %2720 }
 0x477   :  { %v2683_v43 = vpop.permute.xlu0 %2682  ;;  %2723 = vst.msk [vmem:[#allocation3 + $0xc8] sm:$0xc0] %vm1760_vm9, %v2721_v44 }
 0x478   :  { %2724 = vst.msk [vmem:[#allocation3 + $0xe8] sm:$0xf] %vm1762_vm10, %v2721_v44  ;;  %2754 = vrot.lane.b32.xlu1 %v2753_v18, %s5357_s0 }
 0x479   :  { %2685 = vst.msk [vmem:[#allocation3 + $0xc0] sm:$0xc0] %vm1750_vm4, %v2683_v43  ;;  %2882 = vrot.lane.b32.xlu0 %v2881_v58, %s5357_s0 }
 0x47a   :  { %2686 = vst.msk [vmem:[#allocation3 + $0xe0] sm:$0xf] %vm1752_vm5, %v2683_v43  ;;  %v2849_v51 = vpop.permute.xlu1 %2848 }
 0x47b   :  { %v2811_v28 = vpop.permute.xlu0 %2810  ;;  %2851 = vst.msk [vmem:[#allocation3 + $0xe8] sm:$0xf0] %vm1895_vm11, %v2849_v51 }
 0x47c   :  { %2852 = vst.msk [vmem:[#allocation3 + $0x108] sm:$0x3] %vm1897_vm2, %v2849_v51  ;;  %3013 = vrot.lane.b32.xlu1 %v3012_v38, %s5356_s28 }
 0x47d   :  { %2813 = vst.msk [vmem:[#allocation3 + $0xe0] sm:$0xf0] %vm1885_vm7, %v2811_v28  ;;  %2983 = vrot.lane.b32.xlu0 %v2982_v0, %s5356_s28 }
 0x47e   :  { %2814 = vst.msk [vmem:[#allocation3 + $0x100] sm:$0x3] %vm1887_vm8, %v2811_v28  ;;  %v2691_v2 = vpop.permute.xlu1 %2690  ;;  %v3058_v56 = vld [vmem:[#allocation3 + $0xc8] sm:$0xff] }
 0x47f   :  { %v2819_v3 = vpop.permute.xlu0 %2818  ;;  %2693 = vst.msk [vmem:[#allocation3 + $0xc0] sm:$0xc0] %vm1760_vm9, %v2691_v2 }
 0x480   :  { %2694 = vst.msk [vmem:[#allocation3 + $0xe0] sm:$0xf] %vm1762_vm10, %v2691_v2  ;;  %3021 = vrot.lane.b32.xlu1 %v3020_v30, %s5358_s11 }
 0x481   :  { %2821 = vst.msk [vmem:[#allocation3 + $0xe0] sm:$0xf0] %vm1895_vm11, %v2819_v3  ;;  %2991 = vrot.lane.b32.xlu0 %v2990_v32, %s5358_s11 }
 0x482   :  { %2822 = vst.msk [vmem:[#allocation3 + $0x100] sm:$0x3] %vm1897_vm2, %v2819_v3  ;;  %v2956_v50 = vpop.permute.xlu1 %2955  ;;  %v3062_v19 = vld [vmem:[#allocation3 + $0xe8] sm:$0xff] }
 0x483   :  { %v2930_v52 = vpop.permute.xlu0 %2929  ;;  %2958 = vst.msk [vmem:[#allocation3 + $0x108] sm:$0xfc] %vm2009_vm6, %v2956_v50  ;;  %v3082_v1 = vpack.c.bf16 %v3062_v19, %v3058_v56 }
 0x484   :  { %2932 = vst.msk [vmem:[#allocation3 + $0x100] sm:$0xfc] %vm2009_vm6, %v2930_v52  ;;  %3029 = vrot.lane.b32.xlu1 %v3028_v41, %s5357_s0 }
 0x485   :  { %2999 = vrot.lane.b32.xlu0 %v2998_v60, %s5357_s0  ;;  %3401 = vmatprep.mubr.bf16.mxu1 %v3082_v1 }
 0x486   :  { %v2963_v62 = vpop.permute.xlu1 %2962  ;;  %v3057_v24 = vld [vmem:[#allocation3 + $0xc0] sm:$0xff] }
 0x487   :  { %v2937_v54 = vpop.permute.xlu0 %2936  ;;  %2965 = vst.msk [vmem:[#allocation3 + $0x108] sm:$0xfc] %vm2017_vm3, %v2963_v62 }
 0x488   :  { %v3061_v4 = vld [vmem:[#allocation3 + $0xe0] sm:$0xff]  ;;  %2939 = vst.msk [vmem:[#allocation3 + $0x100] sm:$0xfc] %vm2017_vm3, %v2937_v54 }
 0x489   :  { %v3081_v45 = vpack.c.bf16 %v3061_v4, %v3057_v24 }
 0x48a   :  { %v2970_v14 = vpop.permute.xlu1 %2969 }
 0x48b   :  { %3402 = vmatmul.mubr.bf16.gmra.mrb[28].mxu1 %v3081_v45  ;;  %v2944_v27 = vpop.permute.xlu0 %2943  ;;  %2972 = vst.msk [vmem:[#allocation3 + $0x108] sm:$0xfc] %vm2025_vm0, %v2970_v14 }
 0x48c   :  { %2946 = vst.msk [vmem:[#allocation3 + $0x100] sm:$0xfc] %vm2025_vm0, %v2944_v27 }
 0x48e   :  { %v1975_v61 = vpop.permute.xlu1 %1974 }
 0x48f   :  { %v1840_v55 = vpop.permute.xlu0 %1839  ;;  %1977 = vst.msk [vmem:[#allocation3 + $0x38] sm:$0xf0] %vm1875_vm12, %v1975_v61 }
 0x490   :  { %1978 = vst.msk [vmem:[#allocation3 + $0x58] sm:$0x3] %vm1877_vm13, %v1975_v61 }
 0x491   :  { %1842 = vst.msk [vmem:[#allocation3 + $0x18] sm:$0xc0] %vm1740_vm14, %v1840_v55 }
 0x492   :  { %1843 = vst.msk [vmem:[#allocation3 + $0x38] sm:$0xf] %vm1742_vm15, %v1840_v55  ;;  %v1849_v37 = vpop.permute.xlu1 %1848  ;;  %v3066_v36 = vld [vmem:[#allocation3 + $0x108] sm:$0xff] }
 0x493   :  { %v1806_v42 = vpop.permute.xlu0 %1805  ;;  %v3065_v31 = vld [vmem:[#allocation3 + $0x100] sm:$0xff]  ;;  %1851 = vst.msk [vmem:[#allocation3 + $0x18] sm:$0xc0] %vm1750_vm4, %v1849_v37  ;;  %v3086_v49 = vpack.c.bf16 %v3066_v36, %v3066_v36 }
 0x494   :  { %1852 = vst.msk [vmem:[#allocation3 + $0x38] sm:$0xf] %vm1752_vm5, %v1849_v37  ;;  %v3085_v5 = vpack.c.bf16 %v3065_v31, %v3065_v31 }
 0x495   :  { %1808 = vst.msk [vmem:[#allocation3 + $0x10] sm:$0xc0] %vm1740_vm14, %v1806_v42  ;;  %3409 = vmatprep.mubr.bf16.mxu1 %v3086_v49 }
 0x496   :  { %1809 = vst.msk [vmem:[#allocation3 + $0x30] sm:$0xf] %vm1742_vm15, %v1806_v42  ;;  %v1984_v23 = vpop.permute.xlu1 %1983  ;;  %3410 = vmatmul.mubr.bf16.gmra.mrb[32].mxu1 %v3085_v5 }
 0x497   :  { %v1941_v11 = vpop.permute.xlu0 %1940  ;;  %1986 = vst.msk [vmem:[#allocation3 + $0x38] sm:$0xf0] %vm1885_vm7, %v1984_v23 }
 0x498   :  { %1987 = vst.msk [vmem:[#allocation3 + $0x58] sm:$0x3] %vm1887_vm8, %v1984_v23 }
 0x499   :  { %1943 = vst.msk [vmem:[#allocation3 + $0x30] sm:$0xf0] %vm1875_vm12, %v1941_v11 }
 0x49a   :  { %1944 = vst.msk [vmem:[#allocation3 + $0x50] sm:$0x3] %vm1877_vm13, %v1941_v11  ;;  %v1858_v9 = vpop.permute.xlu1 %1857 }
 0x49b   :  { %v1815_v13 = vpop.permute.xlu0 %1814  ;;  %1860 = vst.msk [vmem:[#allocation3 + $0x18] sm:$0xc0] %vm1760_vm9, %v1858_v9 }
 0x49c   :  { %1861 = vst.msk [vmem:[#allocation3 + $0x38] sm:$0xf] %vm1762_vm10, %v1858_v9 }
 0x49d   :  { %1817 = vst.msk [vmem:[#allocation3 + $0x10] sm:$0xc0] %vm1750_vm4, %v1815_v13 }
 0x49e   :  { %1818 = vst.msk [vmem:[#allocation3 + $0x30] sm:$0xf] %vm1752_vm5, %v1815_v13  ;;  %v1993_v40 = vpop.permute.xlu1 %1992 }
 0x49f   :  { %v1950_v26 = vpop.permute.xlu0 %1949  ;;  %1995 = vst.msk [vmem:[#allocation3 + $0x38] sm:$0xf0] %vm1895_vm11, %v1993_v40 }
 0x4a0   :  { %1996 = vst.msk [vmem:[#allocation3 + $0x58] sm:$0x3] %vm1897_vm2, %v1993_v40 }
 0x4a1   :  { %1952 = vst.msk [vmem:[#allocation3 + $0x30] sm:$0xf0] %vm1885_vm7, %v1950_v26 }
 0x4a2   :  { %1953 = vst.msk [vmem:[#allocation3 + $0x50] sm:$0x3] %vm1887_vm8, %v1950_v26  ;;  %v1824_v7 = vpop.permute.xlu1 %1823  ;;  %v3036_v34 = vld [vmem:[#allocation3 + $0x18] sm:$0xff] }
 0x4a3   :  { %v1959_v15 = vpop.permute.xlu0 %1958  ;;  %1826 = vst.msk [vmem:[#allocation3 + $0x10] sm:$0xc0] %vm1760_vm9, %v1824_v7 }
 0x4a4   :  { %1827 = vst.msk [vmem:[#allocation3 + $0x30] sm:$0xf] %vm1762_vm10, %v1824_v7 }
 0x4a5   :  { %1961 = vst.msk [vmem:[#allocation3 + $0x30] sm:$0xf0] %vm1895_vm11, %v1959_v15 }
 0x4a6   :  { %1962 = vst.msk [vmem:[#allocation3 + $0x50] sm:$0x3] %vm1897_vm2, %v1959_v15  ;;  %v2094_v29 = vpop.permute.xlu1 %2093  ;;  %v3040_v59 = vld [vmem:[#allocation3 + $0x38] sm:$0xff] }
 0x4a7   :  { %v2064_v16 = vpop.permute.xlu0 %2063  ;;  %2096 = vst.msk [vmem:[#allocation3 + $0x58] sm:$0xfc] %vm2009_vm6, %v2094_v29  ;;  %v3072_v20 = vpack.c.bf16 %v3040_v59, %v3036_v34 }
 0x4a8   :  { %2066 = vst.msk [vmem:[#allocation3 + $0x50] sm:$0xfc] %vm2009_vm6, %v2064_v16 }
 0x4a9   :  { %3449 = vmatprep.mubr.bf16.mxu1 %v3072_v20 }
 0x4aa   :  { %v2307_v47 = vpop.permute.xlu1 %2306  ;;  %v3035_v10 = vld [vmem:[#allocation3 + $0x10] sm:$0xff] }
 0x4ab   :  { %v2273_v63 = vpop.permute.xlu0 %2272  ;;  %2309 = vst.msk [vmem:[#allocation3 + $0x78] sm:$0xc0] %vm1740_vm14, %v2307_v47 }
 0x4ac   :  { %v3039_v48 = vld [vmem:[#allocation3 + $0x30] sm:$0xff]  ;;  %2310 = vst.msk [vmem:[#allocation3 + $0x98] sm:$0xf] %vm1742_vm15, %v2307_v47  ;;  %2276 = vst.msk [vmem:[#allocation3 + $0x90] sm:$0xf] %vm1742_vm15, %v2273_v63 }
 0x4ad   :  { %2275 = vst.msk [vmem:[#allocation3 + $0x70] sm:$0xc0] %vm1740_vm14, %v2273_v63  ;;  %v3071_v12 = vpack.c.bf16 %v3039_v48, %v3035_v10 }
 0x4ae   :  { %v2102_v22 = vpop.permute.xlu1 %2101 }
 0x4af   :  { %3450 = vmatmul.mubr.bf16.vlgmr.msra.gmra.mrb[36].mxu1 %v3071_v12  ;;  %v2072_v33 = vpop.permute.xlu0 %2071  ;;  %2104 = vst.msk [vmem:[#allocation3 + $0x58] sm:$0xfc] %vm2017_vm3, %v2102_v22 }
 0x4b0   :  { %2074 = vst.msk [vmem:[#allocation3 + $0x50] sm:$0xfc] %vm2017_vm3, %v2072_v33 }
 0x4b2   :  { %v2316_v17 = vpop.permute.xlu1 %2315 }
 0x4b3   :  { %v2282_v53 = vpop.permute.xlu0 %2281  ;;  %2318 = vst.msk [vmem:[#allocation3 + $0x78] sm:$0xc0] %vm1750_vm4, %v2316_v17 }
 0x4b4   :  { %2319 = vst.msk [vmem:[#allocation3 + $0x98] sm:$0xf] %vm1752_vm5, %v2316_v17  ;;  %2285 = vst.msk [vmem:[#allocation3 + $0x90] sm:$0xf] %vm1752_vm5, %v2282_v53 }
 0x4b5   :  { %2284 = vst.msk [vmem:[#allocation3 + $0x70] sm:$0xc0] %vm1750_vm4, %v2282_v53 }
 0x4b6   :  { %v2110_v35 = vpop.permute.xlu1 %2109 }
 0x4b7   :  { %v2080_v46 = vpop.permute.xlu0 %2079  ;;  %2112 = vst.msk [vmem:[#allocation3 + $0x58] sm:$0xfc] %vm2025_vm0, %v2110_v35 }
 0x4b8   :  { %2082 = vst.msk [vmem:[#allocation3 + $0x50] sm:$0xfc] %vm2025_vm0, %v2080_v46 }
 0x4ba   :  { %v2325_v44 = vpop.permute.xlu1 %2324 }
 0x4bb   :  { %v2291_v43 = vpop.permute.xlu0 %2290  ;;  %2327 = vst.msk [vmem:[#allocation3 + $0x78] sm:$0xc0] %vm1760_vm9, %v2325_v44 }
 0x4bc   :  { %2328 = vst.msk [vmem:[#allocation3 + $0x98] sm:$0xf] %vm1762_vm10, %v2325_v44  ;;  %2294 = vst.msk [vmem:[#allocation3 + $0x90] sm:$0xf] %vm1762_vm10, %v2291_v43 }
 0x4bd   :  { %2293 = vst.msk [vmem:[#allocation3 + $0x70] sm:$0xc0] %vm1760_vm9, %v2291_v43 }
 0x4be   :  { %v2443_v18 = vpop.permute.xlu1 %2442  ;;  %v3044_v25 = vld [vmem:[#allocation3 + $0x58] sm:$0xff] }
 0x4bf   :  { %v2558_v58 = vpop.permute.xlu0 %2557  ;;  %2445 = vst.msk [vmem:[#allocation3 + $0x98] sm:$0xf0] %vm1875_vm12, %v2443_v18  ;;  %v3043_v38 = vld [vmem:[#allocation3 + $0x50] sm:$0xff] }
 0x4c0   :  { %2446 = vst.msk [vmem:[#allocation3 + $0xb8] sm:$0x3] %vm1877_vm13, %v2443_v18 }
 0x4c1   :  { %2560 = vst.msk [vmem:[#allocation3 + $0xb8] sm:$0xfc] %vm2009_vm6, %v2558_v58 }
 0x4c2   :  { %v2409_v8 = vpop.permute.xlu1 %2408  ;;  %v3048_v28 = vld [vmem:[#allocation3 + $0x78] sm:$0xff] }
 0x4c3   :  { %v2452_v51 = vpop.permute.xlu0 %2451  ;;  %2411 = vst.msk [vmem:[#allocation3 + $0x90] sm:$0xf0] %vm1875_vm12, %v2409_v8  ;;  %v3076_v57 = vpack.c.bf16 %v3048_v28, %v3044_v25 }
 0x4c4   :  { %v3047_v0 = vld [vmem:[#allocation3 + $0x70] sm:$0xff]  ;;  %2412 = vst.msk [vmem:[#allocation3 + $0xb0] sm:$0x3] %vm1877_vm13, %v2409_v8 }
 0x4c5   :  { %2454 = vst.msk [vmem:[#allocation3 + $0x98] sm:$0xf0] %vm1885_vm7, %v2452_v51  ;;  %v3075_v21 = vpack.c.bf16 %v3047_v0, %v3043_v38  ;;  %3457 = vmatprep.mubr.bf16.mxu1 %v3076_v57 }
 0x4c6   :  { %2455 = vst.msk [vmem:[#allocation3 + $0xb8] sm:$0x3] %vm1887_vm8, %v2452_v51  ;;  %v2528_v2 = vpop.permute.xlu1 %2527 }
 0x4c7   :  { %v2566_v3 = vpop.permute.xlu0 %2565  ;;  %3458 = vmatmul.mubr.bf16.gmra.mrb[40].mxu1 %v3075_v21  ;;  %2530 = vst.msk [vmem:[#allocation3 + $0xb0] sm:$0xfc] %vm2009_vm6, %v2528_v2 }
 0x4c8   :  { %2568 = vst.msk [vmem:[#allocation3 + $0xb8] sm:$0xfc] %vm2017_vm3, %v2566_v3 }
 0x4ca   :  { %v2418_v30 = vpop.permute.xlu1 %2417 }
 0x4cb   :  { %v2461_v32 = vpop.permute.xlu0 %2460  ;;  %2420 = vst.msk [vmem:[#allocation3 + $0x90] sm:$0xf0] %vm1885_vm7, %v2418_v30 }
 0x4cc   :  { %2421 = vst.msk [vmem:[#allocation3 + $0xb0] sm:$0x3] %vm1887_vm8, %v2418_v30 }
 0x4cd   :  { %2463 = vst.msk [vmem:[#allocation3 + $0x98] sm:$0xf0] %vm1895_vm11, %v2461_v32 }
 0x4ce   :  { %2464 = vst.msk [vmem:[#allocation3 + $0xb8] sm:$0x3] %vm1897_vm2, %v2461_v32  ;;  %v2536_v39 = vpop.permute.xlu1 %2535 }
 0x4cf   :  { %v2574_v6 = vpop.permute.xlu0 %2573  ;;  %2538 = vst.msk [vmem:[#allocation3 + $0xb0] sm:$0xfc] %vm2017_vm3, %v2536_v39 }
 0x4d0   :  { %2576 = vst.msk [vmem:[#allocation3 + $0xb8] sm:$0xfc] %vm2025_vm0, %v2574_v6 }
 0x4d2   :  { %v2427_v50 = vpop.permute.xlu1 %2426 }
 0x4d3   :  { %v2544_v52 = vpop.permute.xlu0 %2543  ;;  %2429 = vst.msk [vmem:[#allocation3 + $0x90] sm:$0xf0] %vm1895_vm11, %v2427_v50 }
 0x4d4   :  { %2430 = vst.msk [vmem:[#allocation3 + $0xb0] sm:$0x3] %vm1897_vm2, %v2427_v50  ;;  %v3052_v56 = vld [vmem:[#allocation3 + $0x98] sm:$0xff] }
 0x4d5   :  { %2546 = vst.msk [vmem:[#allocation3 + $0xb0] sm:$0xfc] %vm2025_vm0, %v2544_v52 }
 0x4d6   :  { %v2899_v41 = vpop.permute.xlu1 %2898 }
 0x4d7   :  { %v2771_v60 = vpop.permute.xlu0 %2770  ;;  %v3056_v19 = vld [vmem:[#allocation3 + $0xb8] sm:$0xff]  ;;  %2901 = vst.msk [vmem:[#allocation3 + $0xf8] sm:$0xf0] %vm1875_vm12, %v2899_v41 }
 0x4d8   :  { %2902 = vst.msk [vmem:[#allocation3 + $0x118] sm:$0x3] %vm1877_vm13, %v2899_v41  ;;  %v3080_v1 = vpack.c.bf16 %v3056_v19, %v3052_v56 }
 0x4d9   :  { %2773 = vst.msk [vmem:[#allocation3 + $0xd8] sm:$0xc0] %vm1740_vm14, %v2771_v60 }
 0x4da   :  { %2774 = vst.msk [vmem:[#allocation3 + $0xf8] sm:$0xf] %vm1742_vm15, %v2771_v60  ;;  %3465 = vmatprep.mubr.bf16.mxu1 %v3080_v1  ;;  %v2780_v62 = vpop.permute.xlu1 %2779  ;;  %v3051_v24 = vld [vmem:[#allocation3 + $0x90] sm:$0xff] }
 0x4db   :  { %v2737_v54 = vpop.permute.xlu0 %2736  ;;  %2782 = vst.msk [vmem:[#allocation3 + $0xd8] sm:$0xc0] %vm1750_vm4, %v2780_v62 }
 0x4dc   :  { %v3055_v4 = vld [vmem:[#allocation3 + $0xb0] sm:$0xff]  ;;  %2783 = vst.msk [vmem:[#allocation3 + $0xf8] sm:$0xf] %vm1752_vm5, %v2780_v62 }
 0x4dd   :  { %2739 = vst.msk [vmem:[#allocation3 + $0xd0] sm:$0xc0] %vm1740_vm14, %v2737_v54  ;;  %v3079_v45 = vpack.c.bf16 %v3055_v4, %v3051_v24 }
 0x4de   :  { %2740 = vst.msk [vmem:[#allocation3 + $0xf0] sm:$0xf] %vm1742_vm15, %v2737_v54  ;;  %v2908_v14 = vpop.permute.xlu1 %2907 }
 0x4df   :  { %3466 = vmatmul.mubr.bf16.gmra.mrb[44].mxu1 %v3079_v45  ;;  %v2865_v27 = vpop.permute.xlu0 %2864  ;;  %2910 = vst.msk [vmem:[#allocation3 + $0xf8] sm:$0xf0] %vm1885_vm7, %v2908_v14 }
 0x4e0   :  { %2911 = vst.msk [vmem:[#allocation3 + $0x118] sm:$0x3] %vm1887_vm8, %v2908_v14 }
 0x4e1   :  { %2867 = vst.msk [vmem:[#allocation3 + $0xf0] sm:$0xf0] %vm1875_vm12, %v2865_v27 }
 0x4e2   :  { %2868 = vst.msk [vmem:[#allocation3 + $0x110] sm:$0x3] %vm1877_vm13, %v2865_v27  ;;  %v2789_v61 = vpop.permute.xlu1 %2788 }
 0x4e3   :  { %v2746_v55 = vpop.permute.xlu0 %2745  ;;  %2791 = vst.msk [vmem:[#allocation3 + $0xd8] sm:$0xc0] %vm1760_vm9, %v2789_v61 }
 0x4e4   :  { %2792 = vst.msk [vmem:[#allocation3 + $0xf8] sm:$0xf] %vm1762_vm10, %v2789_v61 }
 0x4e5   :  { %2748 = vst.msk [vmem:[#allocation3 + $0xd0] sm:$0xc0] %vm1750_vm4, %v2746_v55 }
 0x4e6   :  { %2749 = vst.msk [vmem:[#allocation3 + $0xf0] sm:$0xf] %vm1752_vm5, %v2746_v55  ;;  %v2917_v37 = vpop.permute.xlu1 %2916 }
 0x4e7   :  { %v2874_v42 = vpop.permute.xlu0 %2873  ;;  %2919 = vst.msk [vmem:[#allocation3 + $0xf8] sm:$0xf0] %vm1895_vm11, %v2917_v37 }
 0x4e8   :  { %2920 = vst.msk [vmem:[#allocation3 + $0x118] sm:$0x3] %vm1897_vm2, %v2917_v37 }
 0x4e9   :  { %2876 = vst.msk [vmem:[#allocation3 + $0xf0] sm:$0xf0] %vm1885_vm7, %v2874_v42 }
 0x4ea   :  { %2877 = vst.msk [vmem:[#allocation3 + $0x110] sm:$0x3] %vm1887_vm8, %v2874_v42  ;;  %v2755_v36 = vpop.permute.xlu1 %2754  ;;  %v3060_v23 = vld [vmem:[#allocation3 + $0xd8] sm:$0xff] }
 0x4eb   :  { %v2883_v31 = vpop.permute.xlu0 %2882  ;;  %2757 = vst.msk [vmem:[#allocation3 + $0xd0] sm:$0xc0] %vm1760_vm9, %v2755_v36 }
 0x4ec   :  { %2758 = vst.msk [vmem:[#allocation3 + $0xf0] sm:$0xf] %vm1762_vm10, %v2755_v36 }
 0x4ed   :  { %2885 = vst.msk [vmem:[#allocation3 + $0xf0] sm:$0xf0] %vm1895_vm11, %v2883_v31 }
 0x4ee   :  { %2886 = vst.msk [vmem:[#allocation3 + $0x110] sm:$0x3] %vm1897_vm2, %v2883_v31  ;;  %v3014_v49 = vpop.permute.xlu1 %3013  ;;  %v3064_v11 = vld [vmem:[#allocation3 + $0xf8] sm:$0xff] }
 0x4ef   :  { %v2984_v5 = vpop.permute.xlu0 %2983  ;;  %3016 = vst.msk [vmem:[#allocation3 + $0x118] sm:$0xfc] %vm2009_vm6, %v3014_v49  ;;  %v3084_v9 = vpack.c.bf16 %v3064_v11, %v3060_v23 }
 0x4f0   :  { %2986 = vst.msk [vmem:[#allocation3 + $0x110] sm:$0xfc] %vm2009_vm6, %v2984_v5 }
 0x4f1   :  { %3473 = vmatprep.mubr.bf16.mxu1 %v3084_v9 }
 0x4f2   :  { %v3022_v13 = vpop.permute.xlu1 %3021  ;;  %v3059_v26 = vld [vmem:[#allocation3 + $0xd0] sm:$0xff] }
 0x4f3   :  { %v2992_v40 = vpop.permute.xlu0 %2991  ;;  %3024 = vst.msk [vmem:[#allocation3 + $0x118] sm:$0xfc] %vm2017_vm3, %v3022_v13 }
 0x4f4   :  { %v3063_v7 = vld [vmem:[#allocation3 + $0xf0] sm:$0xff]  ;;  %2994 = vst.msk [vmem:[#allocation3 + $0x110] sm:$0xfc] %vm2017_vm3, %v2992_v40 }
 0x4f5   :  { %v3083_v15 = vpack.c.bf16 %v3063_v7, %v3059_v26 }
 0x4f6   :  { %v3030_v29 = vpop.permute.xlu1 %3029 }
 0x4f7   :  { %3474 = vmatmul.mubr.bf16.gmra.mrb[48].mxu1 %v3083_v15  ;;  %v3000_v16 = vpop.permute.xlu0 %2999  ;;  %3032 = vst.msk [vmem:[#allocation3 + $0x118] sm:$0xfc] %vm2025_vm0, %v3030_v29 }
 0x4f8   :  { %3002 = vst.msk [vmem:[#allocation3 + $0x110] sm:$0xfc] %vm2025_vm0, %v3000_v16  ;;  %vm7531_vm0 = vcmask 523264  }
 0x4f9   :  { %vm7532_vm3 = vmmov %vm7531_vm0 }
 0x4fa   :  { %vm7533_vm6 = vmmov %vm7531_vm0 }
 0x4fb   :  { %vm7534_vm12 = vmmov %vm7531_vm0 }
 0x4fc   :  { %vm7535_vm15 = vmmov %vm7531_vm0 }
 0x4fd   :  { %vm7536_vm5 = vmmov %vm7531_vm0 }
 0x4fe   :  { %v3068_v34 = vld [vmem:[#allocation3 + $0x118] sm:$0xff]  ;;  %vm7537_vm7 = vmmov %vm7531_vm0 }
 0x4ff   :  { %v3067_v59 = vld [vmem:[#allocation3 + $0x110] sm:$0xff]  ;;  %v3088_v20 = vpack.c.bf16 %v3068_v34, %v3068_v34  ;;  %vm7538_vm10 = vmmov %vm7531_vm0 }
 0x500   :  { %v3087_v47 = vpack.c.bf16 %v3067_v59, %v3067_v59  ;;  %vm7539_vm11 = vmmov %vm7531_vm0 }
 0x501   :  { %3481 = vmatprep.mubr.bf16.mxu1 %v3088_v20 }
 0x502   :  { %3482 = vmatmul.mubr.bf16.gmra.mrb[52].mxu1 %v3087_v47 }
 0x516   :  { %v4960_v63 = vpop.f32.mrb[16].mxu1 }
 0x517   :  { %v4961_v10 = vpop.f32.mrb[17].mxu1 }
 0x518   :  { %v4962_v48 = vadd.f32 %v4961_v10, %v4960_v63  ;;  %v4963_v12 = vpop.f32.mrb[18].mxu1 }
 0x519   :  { %v4964_v22 = vpop.f32.mrb[19].mxu1 }
 0x51a   :  { %v4965_v33 = vadd.f32 %v4964_v22, %v4963_v12 }
 0x52e   :  { %v4966_v17 = vpop.f32.mrb[20].mxu1 }
 0x52f   :  { %v4967_v53 = vpop.f32.mrb[21].mxu1 }
 0x530   :  { %v4968_v35 = vadd.f32 %v4967_v53, %v4966_v17  ;;  %v4969_v46 = vpop.f32.mrb[22].mxu1 }
 0x531   :  { %v4970_v44 = vpop.f32.mrb[23].mxu1 }
 0x532   :  { %v4971_v43 = vadd.f32 %v4970_v44, %v4969_v46 }
 0x546   :  { %v4972_v18 = vpop.f32.mrb[24].mxu1 }
 0x547   :  { %v4973_v58 = vpop.f32.mrb[25].mxu1 }
 0x548   :  { %v4974_v25 = vadd.f32 %v4973_v58, %v4972_v18  ;;  %v4975_v8 = vpop.f32.mrb[26].mxu1 }
 0x549   :  { %v4976_v51 = vpop.f32.mrb[27].mxu1 }
 0x54a   :  { %v4977_v28 = vadd.f32 %v4976_v51, %v4975_v8 }
 0x55e   :  { %v4978_v38 = vpop.f32.mrb[28].mxu1 }
 0x55f   :  { %v4979_v0 = vpop.f32.mrb[29].mxu1 }
 0x560   :  { %v4980_v57 = vadd.f32 %v4979_v0, %v4978_v38  ;;  %v4981_v21 = vpop.f32.mrb[30].mxu1 }
 0x561   :  { %v4982_v2 = vpop.f32.mrb[31].mxu1 }
 0x562   :  { %v4983_v3 = vadd.f32 %v4982_v2, %v4981_v21 }
 0x569   :  { %v4984_v30 = vpop.f32.mrb[32].mxu1 }
 0x56a   :  { %v4985_v32 = vpop.f32.mrb[33].mxu1 }
 0x56b   :  { %v4986_v39 = vadd.f32 %v4985_v32, %v4984_v30  ;;  %v4987_v6 = vpop.f32.mrb[34].mxu1 }
 0x56c   :  { %v4988_v50 = vpop.f32.mrb[35].mxu1 }
 0x582   :  { %v5006_v52 = vpop.f32.mrb[36].mxu1 }
 0x583   :  { %v5007_v41 = vpop.f32.mrb[37].mxu1 }
 0x584   :  { %v5008_v60 = vadd.f32 %v5007_v41, %v5006_v52  ;;  %v5009_v56 = vpop.f32.mrb[38].mxu1 }
 0x585   :  { %v5010_v19 = vpop.f32.mrb[39].mxu1 }
 0x586   :  { %v7045_v1 = vadd.f32 %v5008_v60, %v4962_v48  ;;  %v5011_v62 = vadd.f32 %v5010_v19, %v5009_v56 }
 0x588   :  { %v3491_v54 = vmul.f32 %v7045_v1, %v7045_v1  ;;  %v7049_v24 = vadd.f32 %v5011_v62, %v4965_v33 }
 0x58a   :  { %v3492_v4 = vmul.f32 %v7049_v24, %v7049_v24  ;;  %3509 = vrot.lane.b32.xlu1 %v3491_v54, %s5356_s28 }
 0x58c   :  { %3511 = vrot.lane.b32.xlu0 %v3492_v4, %s5356_s28 }
 0x59a   :  { %v5012_v45 = vpop.f32.mrb[40].mxu1 }
 0x59b   :  { %v5013_v14 = vpop.f32.mrb[41].mxu1 }
 0x59c   :  { %v5014_v27 = vadd.f32 %v5013_v14, %v5012_v45  ;;  %v5015_v61 = vpop.f32.mrb[42].mxu1 }
 0x59d   :  { %v5016_v55 = vpop.f32.mrb[43].mxu1 }
 0x59e   :  { %v7055_v37 = vadd.f32 %v5014_v27, %v4968_v35  ;;  %v5017_v42 = vadd.f32 %v5016_v55, %v5015_v61 }
 0x5a0   :  { %v3493_v36 = vmul.f32 %v7055_v37, %v7055_v37  ;;  %v7059_v31 = vadd.f32 %v5017_v42, %v4971_v43 }
 0x5a2   :  { %v3494_v49 = vmul.f32 %v7059_v31, %v7059_v31  ;;  %3513 = vrot.lane.b32.xlu1 %v3493_v36, %s5356_s28 }
 0x5a4   :  { %3515 = vrot.lane.b32.xlu0 %v3494_v49, %s5356_s28 }
 0x5b2   :  { %v5018_v5 = vpop.f32.mrb[44].mxu1 }
 0x5b3   :  { %v5019_v23 = vpop.f32.mrb[45].mxu1 }
 0x5b4   :  { %v5020_v11 = vadd.f32 %v5019_v23, %v5018_v5  ;;  %v5021_v9 = vpop.f32.mrb[46].mxu1 }
 0x5b5   :  { %v5022_v13 = vpop.f32.mrb[47].mxu1 }
 0x5b6   :  { %v7065_v40 = vadd.f32 %v5020_v11, %v4974_v25  ;;  %v5023_v26 = vadd.f32 %v5022_v13, %v5021_v9 }
 0x5b8   :  { %v3495_v7 = vmul.f32 %v7065_v40, %v7065_v40  ;;  %v7069_v15 = vadd.f32 %v5023_v26, %v4977_v28 }
 0x5ba   :  { %v3496_v29 = vmul.f32 %v7069_v15, %v7069_v15  ;;  %3517 = vrot.lane.b32.xlu1 %v3495_v7, %s5356_s28 }
 0x5bc   :  { %3519 = vrot.lane.b32.xlu0 %v3496_v29, %s5356_s28 }
 0x5ca   :  { %v5024_v16 = vpop.f32.mrb[48].mxu1 }
 0x5cb   :  { %v5025_v34 = vpop.f32.mrb[49].mxu1 }
 0x5cc   :  { %v5026_v59 = vadd.f32 %v5025_v34, %v5024_v16  ;;  %v5027_v20 = vpop.f32.mrb[50].mxu1 }
 0x5cd   :  { %v5028_v47 = vpop.f32.mrb[51].mxu1 }
 0x5ce   :  { %v7075_v63 = vadd.f32 %v5026_v59, %v4980_v57  ;;  %v5029_v10 = vadd.f32 %v5028_v47, %v5027_v20 }
 0x5d0   :  { %v3497_v48 = vmul.f32 %v7075_v63, %v7075_v63  ;;  %v7079_v12 = vadd.f32 %v5029_v10, %v4983_v3 }
 0x5d2   :  { %v3498_v22 = vmul.f32 %v7079_v12, %v7079_v12  ;;  %3521 = vrot.lane.b32.xlu1 %v3497_v48, %s5356_s28  ;;  %v7540_v48 = vld [vmem:[#allocation25_spill] sm:$0xff] }
 0x5d4   :  { %3523 = vrot.lane.b32.xlu0 %v3498_v22, %s5356_s28 }
 0x5d5   :  { %v5030_v33 = vpop.f32.mrb[52].mxu1 }
 0x5d6   :  { %v5031_v17 = vpop.f32.mrb[53].mxu1 }
 0x5d7   :  { %v5032_v53 = vadd.f32 %v5031_v17, %v5030_v33  ;;  %v5033_v35 = vpop.f32.mrb[54].mxu1 }
 0x5d8   :  { %v5034_v46 = vpop.f32.mrb[55].mxu1 }
 0x5d9   :  { %v7085_v44 = vadd.f32 %v5032_v53, %v4986_v39 }
 0x5db   :  { %v3499_v43 = vmul.f32 %v7085_v44, %v7085_v44 }
 0x5dd   :  { %3525 = vrot.lane.b32.xlu1 %v3499_v43, %s5356_s28  ;;  %v4894_v43 = vld [vmem:[%s7449_s5 + $0x2] ss:$0 sm:$0xff] }
 0x5fc   :  { %v3510_v18 = vpop.permute.xlu1 %3509 }
 0x5fd   :  { %v3536_v51 = vsel %vm1081_vm1, %v7045_v1, %v3510_v18 }
 0x5fe   :  { %v3512_v58 = vpop.permute.xlu0 %3511  ;;  %v3545_v57 = vsel %vm7532_vm3, %v3536_v51, 0.0  ;;  %vm7541_vm3 = vcmask 254976  }
 0x5ff   :  { %v3537_v8 = vsel %vm1081_vm1, %v7049_v24, %v3512_v58 }
 0x600   :  { %v3546_v38 = vsel %vm7531_vm0, %v3537_v8, 0.0  ;;  %vm3746_vm0 = vcmask 257026  }
 0x601   :  { %v3547_v3 = vadd.f32 %v3546_v38, %v3545_v57 }
 0x614   :  { %v3514_v25 = vpop.permute.xlu1 %3513 }
 0x615   :  { %v3538_v28 = vsel %vm1081_vm1, %v7055_v37, %v3514_v25 }
 0x616   :  { %v3516_v0 = vpop.permute.xlu0 %3515  ;;  %v3548_v21 = vsel %vm7533_vm6, %v3538_v28, 0.0  ;;  %vm7542_vm6 = vmmov %vm7541_vm3 }
 0x617   :  { %v3539_v30 = vsel %vm1081_vm1, %v7059_v31, %v3516_v0  ;;  %v3549_v32 = vadd.f32 %v3548_v21, %v3547_v3 }
 0x618   :  { %v3550_v6 = vsel %vm7534_vm12, %v3539_v30, 0.0  ;;  %vm7543_vm12 = vmmov %vm7541_vm3 }
 0x619   :  { %v3551_v60 = vadd.f32 %v3550_v6, %v3549_v32 }
 0x62c   :  { %v3518_v2 = vpop.permute.xlu1 %3517 }
 0x62d   :  { %v3540_v39 = vsel %vm1081_vm1, %v7065_v40, %v3518_v2 }
 0x62e   :  { %v3520_v50 = vpop.permute.xlu0 %3519  ;;  %v3552_v52 = vsel %vm7535_vm15, %v3540_v39, 0.0  ;;  %vm7544_vm15 = vmmov %vm7541_vm3 }
 0x62f   :  { %v3541_v56 = vsel %vm1081_vm1, %v7069_v15, %v3520_v50  ;;  %v3553_v19 = vadd.f32 %v3552_v52, %v3551_v60 }
 0x630   :  { %v3554_v54 = vsel %vm7536_vm5, %v3541_v56, 0.0  ;;  %vm3863_vm5 = vcmask 259076  }
 0x631   :  { %v3555_v14 = vadd.f32 %v3554_v54, %v3553_v19 }
 0x644   :  { %v3522_v41 = vpop.permute.xlu1 %3521 }
 0x645   :  { %v3542_v62 = vsel %vm1081_vm1, %v7075_v63, %v3522_v41 }
 0x646   :  { %v3524_v4 = vpop.permute.xlu0 %3523  ;;  %v3556_v45 = vsel %vm7537_vm7, %v3542_v62, 0.0  ;;  %vm7545_vm7 = vcmask 261126  }
 0x647   :  { %v3543_v27 = vsel %vm1081_vm1, %v7079_v12, %v3524_v4  ;;  %v3557_v61 = vadd.f32 %v3556_v45, %v3555_v14 }
 0x648   :  { %v3558_v55 = vsel %vm7538_vm10, %v3543_v27, 0.0  ;;  %vm7546_vm10 = vmmov %vm7545_vm7 }
 0x649   :  { %v3559_v36 = vadd.f32 %v3558_v55, %v3557_v61 }
 0x64f   :  { %v3526_v42 = vpop.permute.xlu1 %3525 }
 0x650   :  { %v3544_v49 = vsel %vm1081_vm1, %v7085_v44, %v3526_v42 }
 0x651   :  { %v3560_v5 = vsel %vm7539_vm11, %v3544_v49, 0.0  ;;  %vm7547_vm11 = vmmov %vm7545_vm7 }
 0x652   :  { %v3561_v23 = vadd.f32 %v3560_v5, %v3559_v36 }
 0x654   :  { %v3562_v11 = vrot.slane %v3561_v23, 4 }
 0x656   :  { %v3563_v9 = vadd.f32 %v3562_v11, %v3561_v23 }
 0x658   :  { %v3564_v13 = vrot.slane %v3563_v9, 2 }
 0x65a   :  { %v3565_v26 = vadd.f32 %v3564_v13, %v3563_v9 }
 0x65c   :  { %v3566_v7 = vrot.slane %v3565_v26, 1 }
 0x65e   :  { %v3567_v29 = vadd.f32 %v3566_v7, %v3565_v26 }
 0x660   :  { %v3568_v16 = vmul.f32 0.013888889, %v3567_v29 }
 0x662   :  { %v3569_v34 = vmul.f32 %v3568_v16, %v3568_v16  ;;  %v3577_v33 = vsub.f32 %v7045_v1, %v3568_v16  ;;  %v3578_v17 = vsub.f32 %v7049_v24, %v3568_v16  ;;  %v3579_v53 = vsub.f32 %v7055_v37, %v3568_v16 }
 0x663   :  { %v3580_v35 = vsub.f32 %v7059_v31, %v3568_v16  ;;  %v3581_v46 = vsub.f32 %v7065_v40, %v3568_v16  ;;  %v3582_v18 = vsub.f32 %v7069_v15, %v3568_v16  ;;  %v3583_v58 = vsub.f32 %v7075_v63, %v3568_v16  ;;  %v4895_v31 = vld [vmem:[%s7449_s5 + $0x3] ss:$0 sm:$0xff] }
 0x664   :  { %3571 = vrot.lane.b32.xlu0 %v3569_v34, %s5356_s28  ;;  %v3584_v25 = vsub.f32 %v7079_v12, %v3568_v16  ;;  %v3585_v1 = vsub.f32 %v7085_v44, %v3568_v16 }
 0x6d6   :  { %v3572_v59 = vpop.permute.xlu0 %3571 }
 0x6d7   :  { %v3574_v20 = vsub.f32 %v3568_v16, %v3572_v59 }
 0x6d9   :  { %v3575_v47 = vadd.f32 1e-05, %v3574_v20 }
 0x6db   :  { %5325 = vrsqrt.f32 %v3575_v47  ;;  %v5281_v47 = vld [vmem:[%s7447_s3 + $0x40] sm:$0xff]  }
 0x6dc   :  { %5036 = vmatprep.subr.bf16.mxu1 %v5281_v47 }
 0x6e5   :  { %v5326_v10 = vpop.eup %5325 }
 0x6e6   :  { %v3589_v22 = vrot.slane %v5326_v10, %v7540_v48  ;;  %v5282_v10 = vld [vmem:[%s7447_s3] sm:$0xff]  }
 0x6e7   :  { %5037 = vmatpush3.bf16.msra.mxu1 %v5282_v10 }
 0x6e8   :  { %3591 = vrot.lane.b32.xlu1 %v3589_v22, %s5357_s0 }
 0x75a   :  { %v3592_v8 = vpop.permute.xlu1 %3591 }
 0x75b   :  { %v3594_v24 = vmul.f32 %v3592_v8, %v3577_v33  ;;  %v3595_v51 = vmul.f32 %v3592_v8, %v3578_v17  ;;  %v3596_v37 = vmul.f32 %v3592_v8, %v3579_v53  ;;  %v3597_v28 = vmul.f32 %v3592_v8, %v3580_v35  ;;  %v5283_v53 = vld [vmem:[%s7447_s3 + $0x48] sm:$0xff]  }
 0x75c   :  { %v3598_v40 = vmul.f32 %v3592_v8, %v3581_v46  ;;  %v3599_v38 = vmul.f32 %v3592_v8, %v3582_v18  ;;  %v3600_v0 = vmul.f32 %v3592_v8, %v3583_v58  ;;  %v3601_v57 = vmul.f32 %v3592_v8, %v3584_v25  ;;  %5038 = vmatprep.subr.bf16.mxu1 %v5283_v53  ;;  %v5284_v18 = vld [vmem:[%s7447_s3 + $0x8] sm:$0xff]  }
 0x75d   :  { %v3602_v15 = vmul.f32 %v3592_v8, %v3585_v1  ;;  %v3607_v21 = vmul.f32 %v4894_v43, %v3594_v24  ;;  %v3608_v63 = vmul.f32 %v4894_v43, %v3595_v51  ;;  %v3609_v2 = vmul.f32 %v4894_v43, %v3596_v37  ;;  %5039 = vmatpush3.bf16.msra.mxu1 %v5284_v18  ;;  %v5285_v24 = vld [vmem:[%s7447_s3 + $0x50] sm:$0xff]   ;;  %v5296_v18 = vld [vmem:[%s7447_s3 + $0x38] sm:$0xff]  }
 0x75e   :  { %v3610_v12 = vmul.f32 %v4894_v43, %v3597_v28  ;;  %v3611_v3 = vmul.f32 %v4894_v43, %v3598_v40  ;;  %v3612_v44 = vmul.f32 %v4894_v43, %v3599_v38  ;;  %v3613_v30 = vmul.f32 %v4894_v43, %v3600_v0  ;;  %v5286_v51 = vld [vmem:[%s7447_s3 + $0x10] sm:$0xff]   ;;  %5040 = vmatprep.subr.bf16.mxu1 %v5285_v24  ;;  %v5287_v38 = vld [vmem:[%s7447_s3 + $0x58] sm:$0xff]  }
 0x75f   :  { %v3614_v32 = vmul.f32 %v4894_v43, %v3601_v57  ;;  %v3615_v39 = vmul.f32 %v4894_v43, %v3602_v15  ;;  %v3620_v6 = vadd.f32 %v4895_v31, %v3607_v21  ;;  %v3621_v50 = vadd.f32 %v4895_v31, %v3608_v63  ;;  %v5288_v0 = vld [vmem:[%s7447_s3 + $0x18] sm:$0xff]  }
 0x760   :  { %v3622_v52 = vadd.f32 %v4895_v31, %v3609_v2  ;;  %v3623_v41 = vadd.f32 %v4895_v31, %v3610_v12  ;;  %v3624_v60 = vadd.f32 %v4895_v31, %v3611_v3  ;;  %v3625_v56 = vadd.f32 %v4895_v31, %v3612_v44  ;;  %v5289_v12 = vld [vmem:[%s7447_s3 + $0x60] sm:$0xff]  }
 0x761   :  { %v3626_v19 = vadd.f32 %v4895_v31, %v3613_v30  ;;  %v3627_v62 = vadd.f32 %v4895_v31, %v3614_v32  ;;  %v3628_v54 = vadd.f32 %v4895_v31, %v3615_v39  ;;  %v3629_v4 = vmax.f32 %v3620_v6, 0.0  ;;  %5041 = vmatpush3.bf16.msra.mxu1 %v5286_v51  ;;  %v5290_v3 = vld [vmem:[%s7447_s3 + $0x20] sm:$0xff]  }
 0x762   :  { %v3630_v45 = vmax.f32 %v3621_v50, 0.0  ;;  %v3631_v14 = vmax.f32 %v3622_v52, 0.0  ;;  %v3632_v27 = vmax.f32 %v3623_v41, 0.0  ;;  %v3633_v61 = vmax.f32 %v3624_v60, 0.0  ;;  %5042 = vmatprep.subr.bf16.mxu1 %v5287_v38 }
 0x763   :  { %v3634_v55 = vmax.f32 %v3625_v56, 0.0  ;;  %v3635_v42 = vmax.f32 %v3626_v19, 0.0  ;;  %v3636_v36 = vmax.f32 %v3627_v62, 0.0  ;;  %v3637_v49 = vmax.f32 %v3628_v54, 0.0  ;;  %3638 = vst.msk [vmem:[#allocation4] sm:$0xff] %vm1081_vm1, %v3629_v4  ;;  %v5291_v54 = vld [vmem:[%s7447_s3 + $0x68] sm:$0xff]  }
 0x764   :  { %3639 = vst.msk [vmem:[#allocation4 + $0x8] sm:$0xff] %vm1081_vm1, %v3630_v45  ;;  %3640 = vst.msk [vmem:[#allocation4 + $0x10] sm:$0xff] %vm1081_vm1, %v3631_v14 }
 0x765   :  { %3641 = vst.msk [vmem:[#allocation4 + $0x18] sm:$0xff] %vm1081_vm1, %v3632_v27  ;;  %3642 = vst.msk [vmem:[#allocation4 + $0x20] sm:$0xff] %vm1081_vm1, %v3633_v61  ;;  %5043 = vmatpush3.bf16.msra.mxu1 %v5288_v0 }
 0x766   :  { %3643 = vst.msk [vmem:[#allocation4 + $0x28] sm:$0xff] %vm1081_vm1, %v3634_v55  ;;  %3644 = vst.msk [vmem:[#allocation4 + $0x30] sm:$0xff] %vm1081_vm1, %v3635_v42  ;;  %5044 = vmatprep.subr.bf16.mxu1 %v5289_v12  ;;  %v5292_v42 = vld [vmem:[%s7447_s3 + $0x28] sm:$0xff]  }
 0x767   :  { %3645 = vst.msk [vmem:[#allocation4 + $0x38] sm:$0xff] %vm1081_vm1, %v3636_v36  ;;  %3646 = vst.msk [vmem:[#allocation4 + $0x40] sm:$0xff] %vm1081_vm1, %v3637_v49 }
 0x769   :  { %5045 = vmatpush3.bf16.msra.mxu1 %v5290_v3 }
 0x76a   :  { %v3650_v9 = vld [vmem:[#allocation4 + $0x1] ss:$2 sm:$0x3]  ;;  %v3657_v26 = vld [vmem:[#allocation4 + $0x2] ss:$2 sm:$0x3]  ;;  %5046 = vmatprep.subr.bf16.mxu1 %v5291_v54 }
 0x76b   :  { %v3681_v5 = vld [vmem:[#allocation4 + $0x8] ss:$2 sm:$0x3]  ;;  %v3674_v23 = vld [vmem:[#allocation4 + $0x7] ss:$2 sm:$0x3] }
 0x76c   :  { %3683 = vrot.lane.b32.xlu1 %v3681_v5, %s5358_s11  ;;  %3676 = vrot.lane.b32.xlu0 %v3674_v23, %s5356_s28  ;;  %v3688_v11 = vld [vmem:[#allocation4 + $0x9] ss:$2 sm:$0x3]  ;;  %v3729_v13 = vld [vmem:[#allocation4 + $0x14] ss:$2 sm:$0x3] }
 0x76d   :  { %v3736_v7 = vld [vmem:[#allocation4 + $0x15] ss:$2 sm:$0x3]  ;;  %v3664_v29 = vld [vmem:[#allocation4 + $0x3] ss:$2 sm:$0x3]  ;;  %5047 = vmatpush3.bf16.msra.mxu1 %v5292_v42 }
 0x76e   :  { %v3777_v16 = vld [vmem:[#allocation4 + $0x13] ss:$2 sm:$0x3]  ;;  %v4013_v20 = vld [vmem:[#allocation4 + $0x37] ss:$2 sm:$0x3] }
 0x76f   :  { %v3779_v34 = vrot.slane %v3777_v16, 6  ;;  %v3722_v59 = vld [vmem:[#allocation4 + $0x13] ss:$2 sm:$0x3]  ;;  %v4015_v22 = vrot.slane %v4013_v20, 2  ;;  %v5293_v16 = vld [vmem:[%s7447_s3 + $0x70] sm:$0xff]  }
 0x770   :  { %3690 = vrot.lane.b32.xlu1 %v3688_v11, %s5357_s0  ;;  %3652 = vrot.lane.b32.xlu0 %v3650_v9, %s5356_s28  ;;  %v3698_v33 = vld [vmem:[#allocation4 + $0xd] ss:$2 sm:$0x3]  ;;  %v3784_v17 = vld [vmem:[#allocation4 + $0x14] ss:$2 sm:$0x3] }
 0x771   :  { %v3786_v35 = vrot.slane %v3784_v17, 6  ;;  %v3907_v46 = vld [vmem:[#allocation4 + $0x2c] ss:$2 sm:$0x3]  ;;  %5048 = vmatprep.subr.bf16.mxu1 %v5293_v16 }
 0x772   :  { %v3705_v43 = vld [vmem:[#allocation4 + $0xe] ss:$2 sm:$0x3]  ;;  %v3909_v58 = vrot.slane %v3907_v46, 4 }
 0x773   :  { %v3712_v25 = vld [vmem:[#allocation4 + $0xf] ss:$2 sm:$0x3]  ;;  %v4020_v1 = vld [vmem:[#allocation4 + $0x38] ss:$2 sm:$0x3] }
 0x774   :  { %3731 = vrot.lane.b32.xlu1 %v3729_v13, %s5358_s11  ;;  %3659 = vrot.lane.b32.xlu0 %v3657_v26, %s5358_s11  ;;  %v3899_v8 = vld [vmem:[#allocation4 + $0x2b] ss:$2 sm:$0x3]  ;;  %v4022_v37 = vrot.slane %v4020_v1, 2 }
 0x775   :  { %v3901_v28 = vrot.slane %v3899_v8, 4  ;;  %v3791_v31 = vld [vmem:[#allocation4 + $0x15] ss:$2 sm:$0x3] }
 0x776   :  { %v3748_v40 = vld [vmem:[#allocation4 + $0xd] ss:$2 sm:$0x3]  ;;  %v3793_v57 = vrot.slane %v3791_v31, 6 }
 0x777   :  { %v3750_v15 = vrot.slane %v3748_v40, 6  ;;  %v3915_v21 = vld [vmem:[#allocation4 + $0x2d] ss:$2 sm:$0x3]  ;;  %v5297_v40 = vld [vmem:[%s7447_s3 + $0xc0] sm:$0xff]  }
 0x778   :  { %3738 = vrot.lane.b32.xlu1 %v3736_v7, %s5357_s0  ;;  %3666 = vrot.lane.b32.xlu0 %v3664_v29, %s5357_s0  ;;  %v3866_v63 = vld [vmem:[#allocation4 + $0x25] ss:$2 sm:$0x3]  ;;  %v4027_v2 = vld [vmem:[#allocation4 + $0x39] ss:$2 sm:$0x3] }
 0x779   :  { %v3917_v44 = vrot.slane %v3915_v21, 4  ;;  %v3868_v30 = vrot.slane %v3866_v63, 4  ;;  %v3987_v32 = vld [vmem:[#allocation4 + $0x31] ss:$2 sm:$0x3]  ;;  %v4029_v39 = vrot.slane %v4027_v2, 2 }
 0x77a   :  { %v3671_v6 = vld [vmem:[#allocation4 + $0x6] ss:$2 sm:$0x3]  ;;  %v3647_v50 = vld [vmem:[#allocation4] ss:$2 sm:$0x3] }
 0x77b   :  { %3672 = vst.msk [vmem:[#allocation5 + $0x8] sm:$0x3] %vm7541_vm3, %v3671_v6  ;;  %v3772_v52 = vld [vmem:[#allocation4 + $0x12] ss:$2 sm:$0x3]  ;;  %v3989_v41 = vrot.slane %v3987_v32, 2  ;;  %vm7548_vm3 = vmmov %vm7545_vm7 }
 0x77c   :  { %3780 = vrot.lane.b32.xlu1 %v3779_v34, %s5356_s28  ;;  %3724 = vrot.lane.b32.xlu0 %v3722_v59, %s5356_s28  ;;  %v3764_v60 = vld [vmem:[#allocation4 + $0xf] ss:$2 sm:$0x3]  ;;  %v3756_v56 = vld [vmem:[#allocation4 + $0xe] ss:$2 sm:$0x3] }
 0x77d   :  { %3648 = vst.msk [vmem:[#allocation5] sm:$0x3] %vm7542_vm6, %v3647_v50  ;;  %v3774_v19 = vrot.slane %v3772_v52, 6  ;;  %v3719_v62 = vld [vmem:[#allocation4 + $0x12] ss:$2 sm:$0x3] }
 0x77e   :  { %3720 = vst.msk [vmem:[#allocation5 + $0x18] sm:$0x3] %vm7543_vm12, %v3719_v62  ;;  %v4008_v4 = vld [vmem:[#allocation4 + $0x36] ss:$2 sm:$0x3]  ;;  %v3766_v11 = vrot.slane %v3764_v60, 6 }
 0x77f   :  { %v3695_v45 = vld [vmem:[#allocation4 + $0xc] ss:$2 sm:$0x3]  ;;  %3776 = vst.msk [vmem:[#allocation5 + $0x8] sm:$0xc] %vm3746_vm0, %v3774_v19  ;;  %v4010_v14 = vrot.slane %v4008_v4, 2 }
 0x780   :  { %4016 = vrot.lane.b32.xlu1 %v4015_v22, %s5356_s28  ;;  %3700 = vrot.lane.b32.xlu0 %v3698_v33, %s5356_s28  ;;  %3696 = vst.msk [vmem:[#allocation5 + $0x10] sm:$0x3] %vm7544_vm15, %v3695_v45  ;;  %v3893_v27 = vld [vmem:[#allocation4 + $0x2a] ss:$2 sm:$0x3]  ;;  %v3758_v9 = vrot.slane %v3756_v56, 6 }
 0x781   :  { %v3895_v61 = vrot.slane %v3893_v27, 4  ;;  %v3742_v55 = vld [vmem:[#allocation4 + $0xc] ss:$2 sm:$0x3]  ;;  %4012 = vst.msk [vmem:[#allocation5 + $0x8] sm:$0xc0] %vm7545_vm7, %v4010_v14 }
 0x782   :  { %v4001_v36 = vld [vmem:[#allocation4 + $0x33] ss:$2 sm:$0x3]  ;;  %v3875_v49 = vld [vmem:[#allocation4 + $0x26] ss:$2 sm:$0x3] }
 0x783   :  { %v3744_v5 = vrot.slane %v3742_v55, 6  ;;  %v3859_v23 = vld [vmem:[#allocation4 + $0x24] ss:$2 sm:$0x3]  ;;  %3897 = vst.msk [vmem:[#allocation5 + $0x8] sm:$0x30] %vm3863_vm5, %v3895_v61 }
 0x784   :  { %3787 = vrot.lane.b32.xlu1 %v3786_v35, %s5358_s11  ;;  %3707 = vrot.lane.b32.xlu0 %v3705_v43, %s5358_s11  ;;  %v3861_v13 = vrot.slane %v3859_v23, 4  ;;  %v3982_v26 = vld [vmem:[#allocation4 + $0x30] ss:$2 sm:$0x3]  ;;  %v5294_v34 = vld [vmem:[%s7447_s3 + $0x30] sm:$0xff]   ;;  %v4003_v17 = vrot.slane %v4001_v36, 2 }
 0x785   :  { %3747 = vst.msk [vmem:[#allocation5] sm:$0xc] %vm3746_vm0, %v3744_v5  ;;  %v3984_v7 = vrot.slane %v3982_v26, 2  ;;  %v3829_v29 = vld [vmem:[#allocation4 + $0x1e] ss:$2 sm:$0x3]  ;;  %5049 = vmatpush3.bf16.msra.mxu1 %v5294_v34 }
 0x786   :  { %3864 = vst.msk [vmem:[#allocation5] sm:$0x30] %vm3863_vm5, %v3861_v13  ;;  %v3831_v59 = vrot.slane %v3829_v29, 6  ;;  %v4065_v20 = vld [vmem:[#allocation4 + $0x42] ss:$2 sm:$0x3] }
 0x787   :  { %v3835_v47 = vld [vmem:[#allocation4 + $0x1f] ss:$2 sm:$0x3]  ;;  %v3994_v10 = vld [vmem:[#allocation4 + $0x32] ss:$2 sm:$0x3] }
 0x788   :  { %3910 = vrot.lane.b32.xlu1 %v3909_v58, %s5358_s11  ;;  %3714 = vrot.lane.b32.xlu0 %v3712_v25, %s5357_s0  ;;  %3986 = vst.msk [vmem:[#allocation5] sm:$0xc0] %vm7546_vm10, %v3984_v7  ;;  %v4067_v22 = vrot.slane %v4065_v20, 2  ;;  %v3953_v33 = vld [vmem:[#allocation4 + $0x36] ss:$2 sm:$0x3] }
 0x789   :  { %v3877_v53 = vrot.slane %v3875_v49, 4  ;;  %3833 = vst.msk [vmem:[#allocation5 + $0x18] sm:$0xc] %vm3746_vm0, %v3831_v59  ;;  %v3955_v35 = vrot.slane %v3953_v33, 4  ;;  %v5295_v43 = vld [vmem:[%s7447_s3 + $0x78] sm:$0xff]   ;;  %v3837_v51 = vrot.slane %v3835_v47, 6 }
 0x78a   :  { %v3799_v46 = vld [vmem:[#allocation4 + $0x18] ss:$2 sm:$0x3]  ;;  %4069 = vst.msk [vmem:[#allocation5 + $0x18] sm:$0xc0] %vm7547_vm11, %v4067_v22  ;;  %5050 = vmatprep.subr.bf16.mxu1 %v5295_v43  ;;  %vm3762_vm6 = vcmask 781826  }
 0x78b   :  { %v3801_v58 = vrot.slane %v3799_v46, 6  ;;  %v3923_v25 = vld [vmem:[#allocation4 + $0x30] ss:$2 sm:$0x3]  ;;  %3957 = vst.msk [vmem:[#allocation5 + $0x18] sm:$0x30] %vm3863_vm5, %v3955_v35  ;;  %5051 = vmatpush3.bf16.msra.mxu1 %v5296_v18 }
 0x78c   :  { %4023 = vrot.lane.b32.xlu1 %v4022_v37, %s5358_s11  ;;  %3902 = vrot.lane.b32.xlu0 %v3901_v28, %s5356_s28  ;;  %v3925_v1 = vrot.slane %v3923_v25, 4  ;;  %v4035_v8 = vld [vmem:[#allocation4 + $0x3c] ss:$2 sm:$0x3]  ;;  %v3996_v37 = vrot.slane %v3994_v10, 2  ;;  %vm3872_vm12 = vcmask 521476  }
 0x78d   :  { %3803 = vst.msk [vmem:[#allocation5 + $0x10] sm:$0xc] %vm3746_vm0, %v3801_v58  ;;  %v4037_v24 = vrot.slane %v4035_v8, 2  ;;  %v4071_v28 = vld [vmem:[#allocation4 + $0x43] ss:$2 sm:$0x3]  ;;  %5058 = vmatprep.subr.bf16.mxu1 %v5297_v40 }
 0x78e   :  { %3927 = vst.msk [vmem:[#allocation5 + $0x10] sm:$0x30] %vm3863_vm5, %v3925_v1  ;;  %v3884_v31 = vld [vmem:[#allocation4 + $0x27] ss:$2 sm:$0x3]  ;;  %v4073_v38 = vrot.slane %v4071_v28, 2 }
 0x78f   :  { %4039 = vst.msk [vmem:[#allocation5 + $0x10] sm:$0xc0] %vm7548_vm3, %v4037_v24  ;;  %v3886_v0 = vrot.slane %v3884_v31, 4  ;;  %v3967_v2 = vld [vmem:[#allocation4 + $0x38] ss:$2 sm:$0x3] }
 0x790   :  { %3794 = vrot.lane.b32.xlu1 %v3793_v57, %s5357_s0  ;;  %3751 = vrot.lane.b32.xlu0 %v3750_v15, %s5356_s28  ;;  %v3843_v57 = vld [vmem:[#allocation4 + $0x20] ss:$2 sm:$0x3]  ;;  %v3959_v15 = vld [vmem:[#allocation4 + $0x37] ss:$2 sm:$0x3] }
 0x791   :  { %v3845_v21 = vrot.slane %v3843_v57, 6  ;;  %v3961_v63 = vrot.slane %v3959_v15, 4  ;;  %v3805_v12 = vld [vmem:[#allocation4 + $0x19] ss:$2 sm:$0x3]  ;;  %v3969_v3 = vrot.slane %v3967_v2, 4 }
 0x792   :  { %v3929_v32 = vld [vmem:[#allocation4 + $0x31] ss:$2 sm:$0x3]  ;;  %v3851_v50 = vld [vmem:[#allocation4 + $0x21] ss:$2 sm:$0x3] }
 0x793   :  { %v3931_v6 = vrot.slane %v3929_v32, 4  ;;  %v4041_v52 = vld [vmem:[#allocation4 + $0x3d] ss:$2 sm:$0x3]  ;;  %vm3754_vm0 = vcmask 519426   ;;  %vm3881_vm15 = vcmask 783876  }
 0x794   :  { %3918 = vrot.lane.b32.xlu1 %v3917_v44, %s5357_s0  ;;  %3869 = vrot.lane.b32.xlu0 %v3868_v30, %s5356_s28  ;;  %v3807_v44 = vrot.slane %v3805_v12, 6  ;;  %v4079_v30 = vld [vmem:[#allocation4 + $0x44] ss:$2 sm:$0x3]  ;;  %v4043_v60 = vrot.slane %v4041_v52, 2  ;;  %vm4499_vm5 = vcmask 778752  }
 0x795   :  { %v3975_v56 = vld [vmem:[#allocation4 + $0x39] ss:$2 sm:$0x3]  ;;  %v3813_v19 = vld [vmem:[#allocation4 + $0x1a] ss:$2 sm:$0x3] }
 0x796   :  { %v3977_v62 = vrot.slane %v3975_v56, 4  ;;  %v3815_v54 = vrot.slane %v3813_v19, 6  ;;  %v4087_v4 = vld [vmem:[#allocation4 + $0x45] ss:$2 sm:$0x3]  ;;  %v5302_v19 = vld [vmem:[%s7447_s3 + $0x90] sm:$0xff]  }
 0x797   :  { %v3937_v45 = vld [vmem:[#allocation4 + $0x32] ss:$2 sm:$0x3]  ;;  %v4089_v14 = vrot.slane %v4087_v4, 2  ;;  %v5300_v52 = vld [vmem:[%s7447_s3 + $0x88] sm:$0xff]   ;;  %vm4506_vm7 = vcmask 1041152  }
 0x798   :  { %4030 = vrot.lane.b32.xlu1 %v4029_v39, %s5357_s0  ;;  %3990 = vrot.lane.b32.xlu0 %v3989_v41, %s5356_s28  ;;  %v4081_v39 = vrot.slane %v4079_v30, 2  ;;  %v3853_v41 = vrot.slane %v3851_v50, 6  ;;  %v3939_v27 = vrot.slane %v3937_v45, 4  ;;  %v3821_v61 = vld [vmem:[#allocation4 + $0x1b] ss:$2 sm:$0x3] }
 0x799   :  { %v4049_v55 = vld [vmem:[#allocation4 + $0x3e] ss:$2 sm:$0x3]  ;;  %v3823_v42 = vrot.slane %v3821_v61, 6  ;;  %v5304_v45 = vld [vmem:[%s7447_s3 + $0x98] sm:$0xff]   ;;  %vm7550_vm10 = vcmask 517120  }
 0x79a   :  { %v4051_v36 = vrot.slane %v4049_v55, 2  ;;  %v4057_v49 = vld [vmem:[#allocation4 + $0x3f] ss:$2 sm:$0x3]  ;;  %vm7551_vm11 = vcmask 254976  }
 0x79b   :  { %v3945_v5 = vld [vmem:[#allocation4 + $0x33] ss:$2 sm:$0x3]  ;;  %v4059_v23 = vrot.slane %v4057_v49, 2  ;;  %v5298_v30 = vld [vmem:[%s7447_s3 + $0x80] sm:$0xff]  }
 0x79c   :  { %3767 = vrot.lane.b32.xlu1 %v3766_v11, %s5357_s0  ;;  %3759 = vrot.lane.b32.xlu0 %v3758_v9, %s5358_s11  ;;  %v3947_v11 = vrot.slane %v3945_v5, 4  ;;  %v5306_v55 = vld [vmem:[%s7447_s3 + $0xa0] sm:$0xff]   ;;  %v5308_v5 = vld [vmem:[%s7447_s3 + $0xa8] sm:$0xff]  }
 0x7a0   :  { %4004 = vrot.lane.b32.xlu1 %v4003_v17, %s5357_s0  ;;  %3878 = vrot.lane.b32.xlu0 %v3877_v53, %s5358_s11 }
 0x7a4   :  { %3838 = vrot.lane.b32.xlu1 %v3837_v51, %s5356_s28  ;;  %3997 = vrot.lane.b32.xlu0 %v3996_v37, %s5358_s11 }
 0x7a8   :  { %4074 = vrot.lane.b32.xlu1 %v4073_v38, %s5356_s28  ;;  %3887 = vrot.lane.b32.xlu0 %v3886_v0, %s5357_s0 }
 0x7ac   :  { %3846 = vrot.lane.b32.xlu1 %v3845_v21, %s5358_s11  ;;  %3962 = vrot.lane.b32.xlu0 %v3961_v63, %s5356_s28 }
 0x7b0   :  { %3970 = vrot.lane.b32.xlu1 %v3969_v3, %s5358_s11  ;;  %3808 = vrot.lane.b32.xlu0 %v3807_v44, %s5356_s28 }
 0x7b4   :  { %4082 = vrot.lane.b32.xlu1 %v4081_v39, %s5358_s11  ;;  %3932 = vrot.lane.b32.xlu0 %v3931_v6, %s5356_s28  ;;  %v5299_v39 = vld [vmem:[%s7447_s3 + $0xc8] sm:$0xff]  }
 0x7b8   :  { %3854 = vrot.lane.b32.xlu1 %v3853_v41, %s5357_s0  ;;  %4044 = vrot.lane.b32.xlu0 %v4043_v60, %s5356_s28  ;;  %v5301_v41 = vld [vmem:[%s7447_s3 + $0xd0] sm:$0xff]  }
 0x7bc   :  { %3978 = vrot.lane.b32.xlu1 %v3977_v62, %s5357_s0  ;;  %3816 = vrot.lane.b32.xlu0 %v3815_v54, %s5358_s11  ;;  %v5303_v62 = vld [vmem:[%s7447_s3 + $0xd8] sm:$0xff]  }
 0x7c0   :  { %4090 = vrot.lane.b32.xlu1 %v4089_v14, %s5357_s0  ;;  %3940 = vrot.lane.b32.xlu0 %v3939_v27, %s5358_s11  ;;  %v5305_v14 = vld [vmem:[%s7447_s3 + $0xe0] sm:$0xff]  }
 0x7c4   :  { %3824 = vrot.lane.b32.xlu1 %v3823_v42, %s5357_s0  ;;  %4052 = vrot.lane.b32.xlu0 %v4051_v36, %s5358_s11  ;;  %v5307_v42 = vld [vmem:[%s7447_s3 + $0xe8] sm:$0xff]  }
 0x7c8   :  { %4060 = vrot.lane.b32.xlu1 %v4059_v23, %s5357_s0  ;;  %3948 = vrot.lane.b32.xlu0 %v3947_v11, %s5357_s0  ;;  %v5309_v23 = vld [vmem:[%s7447_s3 + $0xf0] sm:$0xff]  }
 0x7de   :  { %v3684_v9 = vpop.permute.xlu1 %3683  ;;  %v3677_v13 = vpop.permute.xlu0 %3676 }
 0x7df   :  { %3679 = vst.msk [vmem:[#allocation5 + $0x8] sm:$0x3] %vm1877_vm13, %v3677_v13 }
 0x7e0   :  { %3686 = vst.msk [vmem:[#allocation5 + $0x8] sm:$0x3] %vm1887_vm8, %v3684_v9 }
 0x7e2   :  { %v3691_v26 = vpop.permute.xlu1 %3690  ;;  %v3653_v7 = vpop.permute.xlu0 %3652 }
 0x7e3   :  { %3693 = vst.msk [vmem:[#allocation5 + $0x8] sm:$0x3] %vm1897_vm2, %v3691_v26  ;;  %v5310_v26 = vld [vmem:[%s7447_s3 + $0xb0] sm:$0xff]  }
 0x7e4   :  { %3655 = vst.msk [vmem:[#allocation5] sm:$0x3] %vm1877_vm13, %v3653_v7 }
 0x7e6   :  { %v3732_v29 = vpop.permute.xlu1 %3731  ;;  %v3660_v16 = vpop.permute.xlu0 %3659 }
 0x7e7   :  { %3662 = vst.msk [vmem:[#allocation5] sm:$0x3] %vm1887_vm8, %v3660_v16  ;;  %v5312_v16 = vld [vmem:[%s7447_s3 + $0xb8] sm:$0xff]  }
 0x7ea   :  { %v3739_v34 = vpop.permute.xlu1 %3738  ;;  %v3667_v59 = vpop.permute.xlu0 %3666 }
 0x7eb   :  { %3669 = vst.msk [vmem:[#allocation5] sm:$0x3] %vm1897_vm2, %v3667_v59 }
 0x7ee   :  { %v3781_v20 = vpop.permute.xlu1 %3780  ;;  %v3725_v47 = vpop.permute.xlu0 %3724 }
 0x7ef   :  { %3783 = vst.msk [vmem:[#allocation5 + $0x8] sm:$0xc] %vm3754_vm0, %v3781_v20 }
 0x7f0   :  { %3727 = vst.msk [vmem:[#allocation5 + $0x18] sm:$0x3] %vm1877_vm13, %v3725_v47 }
 0x7f1   :  { %3734 = vst.msk [vmem:[#allocation5 + $0x18] sm:$0x3] %vm1887_vm8, %v3732_v29  ;;  %v5311_v29 = vld [vmem:[%s7447_s3 + $0xf8] sm:$0xff]  }
 0x7f2   :  { %3741 = vst.msk [vmem:[#allocation5 + $0x18] sm:$0x3] %vm1897_vm2, %v3739_v34  ;;  %v4017_v10 = vpop.permute.xlu1 %4016  ;;  %v3701_v22 = vpop.permute.xlu0 %3700 }
 0x7f3   :  { %4019 = vst.msk [vmem:[#allocation5 + $0x8] sm:$0xc0] %vm1740_vm14, %v4017_v10 }
 0x7f4   :  { %3703 = vst.msk [vmem:[#allocation5 + $0x10] sm:$0x3] %vm1877_vm13, %v3701_v22  ;;  %vm3770_vm13 = vcmask 1044226  }
 0x7f6   :  { %v3788_v33 = vpop.permute.xlu1 %3787  ;;  %v3708_v17 = vpop.permute.xlu0 %3707 }
 0x7f7   :  { %3790 = vst.msk [vmem:[#allocation5 + $0x8] sm:$0xc] %vm3762_vm6, %v3788_v33 }
 0x7f8   :  { %3710 = vst.msk [vmem:[#allocation5 + $0x10] sm:$0x3] %vm1887_vm8, %v3708_v17  ;;  %vm3890_vm8 = vcmask 1046276  }
 0x7fa   :  { %v3911_v53 = vpop.permute.xlu1 %3910  ;;  %v3715_v35 = vpop.permute.xlu0 %3714 }
 0x7fb   :  { %3717 = vst.msk [vmem:[#allocation5 + $0x10] sm:$0x3] %vm1897_vm2, %v3715_v35  ;;  %vm7549_vm2 = vcmask 523264  }
 0x7fe   :  { %v4024_v46 = vpop.permute.xlu1 %4023  ;;  %v3903_v43 = vpop.permute.xlu0 %3902 }
 0x7ff   :  { %4026 = vst.msk [vmem:[#allocation5 + $0x8] sm:$0xc0] %vm1750_vm4, %v4024_v46 }
 0x800   :  { %3905 = vst.msk [vmem:[#allocation5 + $0x8] sm:$0x30] %vm3872_vm12, %v3903_v43 }
 0x801   :  { %3913 = vst.msk [vmem:[#allocation5 + $0x8] sm:$0x30] %vm3881_vm15, %v3911_v53 }
 0x802   :  { %v3795_v18 = vpop.permute.xlu1 %3794  ;;  %v3752_v58 = vpop.permute.xlu0 %3751 }
 0x803   :  { %3797 = vst.msk [vmem:[#allocation5 + $0x8] sm:$0xc] %vm3770_vm13, %v3795_v18 }
 0x804   :  { %3755 = vst.msk [vmem:[#allocation5] sm:$0xc] %vm3754_vm0, %v3752_v58 }
 0x806   :  { %v3919_v25 = vpop.permute.xlu1 %3918  ;;  %v3870_v1 = vpop.permute.xlu0 %3869 }
 0x807   :  { %3921 = vst.msk [vmem:[#allocation5 + $0x8] sm:$0x30] %vm3890_vm8, %v3919_v25 }
 0x808   :  { %3873 = vst.msk [vmem:[#allocation5] sm:$0x30] %vm3872_vm12, %v3870_v1 }
 0x80a   :  { %v4031_v8 = vpop.permute.xlu1 %4030  ;;  %v3991_v24 = vpop.permute.xlu0 %3990 }
 0x80b   :  { %4033 = vst.msk [vmem:[#allocation5 + $0x8] sm:$0xc0] %vm1760_vm9, %v4031_v8 }
 0x80c   :  { %3993 = vst.msk [vmem:[#allocation5] sm:$0xc0] %vm1740_vm14, %v3991_v24 }
 0x80e   :  { %v3768_v51 = vpop.permute.xlu1 %3767  ;;  %v3760_v37 = vpop.permute.xlu0 %3759 }
 0x80f   :  { %3763 = vst.msk [vmem:[#allocation5] sm:$0xc] %vm3762_vm6, %v3760_v37 }
 0x810   :  { %3771 = vst.msk [vmem:[#allocation5] sm:$0xc] %vm3770_vm13, %v3768_v51 }
 0x812   :  { %v4005_v28 = vpop.permute.xlu1 %4004  ;;  %v3879_v31 = vpop.permute.xlu0 %3878  ;;  %v4095_v40 = vld [vmem:[#allocation5 + $0x8] sm:$0xff] }
 0x813   :  { %3882 = vst.msk [vmem:[#allocation5] sm:$0x30] %vm3881_vm15, %v3879_v31  ;;  %v4099_v38 = vpack.c.bf16 %v4095_v40, %v4095_v40 }
 0x815   :  { %4390 = vmatprep.mubr.bf16.mxu1 %v4099_v38 }
 0x816   :  { %v3839_v0 = vpop.permute.xlu1 %3838  ;;  %v3998_v57 = vpop.permute.xlu0 %3997 }
 0x817   :  { %3841 = vst.msk [vmem:[#allocation5 + $0x18] sm:$0xc] %vm3754_vm0, %v3839_v0 }
 0x818   :  { %4000 = vst.msk [vmem:[#allocation5] sm:$0xc0] %vm1750_vm4, %v3998_v57 }
 0x819   :  { %4007 = vst.msk [vmem:[#allocation5] sm:$0xc0] %vm1760_vm9, %v4005_v28 }
 0x81a   :  { %v4075_v15 = vpop.permute.xlu1 %4074  ;;  %v3888_v21 = vpop.permute.xlu0 %3887 }
 0x81b   :  { %4077 = vst.msk [vmem:[#allocation5 + $0x18] sm:$0xc0] %vm1740_vm14, %v4075_v15 }
 0x81c   :  { %3891 = vst.msk [vmem:[#allocation5] sm:$0x30] %vm3890_vm8, %v3888_v21 }
 0x81e   :  { %v3847_v63 = vpop.permute.xlu1 %3846  ;;  %v3963_v2 = vpop.permute.xlu0 %3962 }
 0x81f   :  { %3849 = vst.msk [vmem:[#allocation5 + $0x18] sm:$0xc] %vm3762_vm6, %v3847_v63 }
 0x820   :  { %3965 = vst.msk [vmem:[#allocation5 + $0x18] sm:$0x30] %vm3872_vm12, %v3963_v2 }
 0x822   :  { %v3971_v12 = vpop.permute.xlu1 %3970  ;;  %v3809_v3 = vpop.permute.xlu0 %3808 }
 0x823   :  { %v4094_v44 = vld [vmem:[#allocation5] sm:$0xff]  ;;  %3973 = vst.msk [vmem:[#allocation5 + $0x18] sm:$0x30] %vm3881_vm15, %v3971_v12  ;;  %v5313_v12 = vld [vmem:[%s7448_s4] sm:$0xff]  }
 0x824   :  { %3811 = vst.msk [vmem:[#allocation5 + $0x10] sm:$0xc] %vm3754_vm0, %v3809_v3  ;;  %v4098_v32 = vpack.c.bf16 %v4094_v44, %v4094_v44  ;;  %v5359_v3 = vmov 0.0   ;;  %v5314_v44 = vld [vmem:[%s7448_s4 + $0x8] sm:$0xff]  }
 0x826   :  { %4391 = vmatmul.mubr.bf16.vlgmr.msra.gmra.mrb[56].mxu1 %v4098_v32  ;;  %v4083_v6 = vpop.permute.xlu1 %4082  ;;  %v3933_v50 = vpop.permute.xlu0 %3932  ;;  %v5316_v32 = vld [vmem:[%s7448_s4 + $0x18] sm:$0xff]  }
 0x827   :  { %5059 = vmatpush3.bf16.msra.mxu1 %v5298_v30  ;;  %4085 = vst.msk [vmem:[#allocation5 + $0x18] sm:$0xc0] %vm1750_vm4, %v4083_v6  ;;  %v5315_v30 = vld [vmem:[%s7448_s4 + $0x10] sm:$0xff]   ;;  %v4928_v6 = vld [vmem:[%s7449_s5 + $0x4] ss:$0 sm:$0xff] }
 0x828   :  { %3935 = vst.msk [vmem:[#allocation5 + $0x10] sm:$0x30] %vm3872_vm12, %v3933_v50  ;;  %5060 = vmatprep.subr.bf16.mxu1 %v5299_v39 }
 0x82a   :  { %v3855_v60 = vpop.permute.xlu1 %3854  ;;  %v4045_v56 = vpop.permute.xlu0 %4044 }
 0x82b   :  { %5061 = vmatpush3.bf16.msra.mxu1 %v5300_v52  ;;  %3857 = vst.msk [vmem:[#allocation5 + $0x18] sm:$0xc] %vm3770_vm13, %v3855_v60 }
 0x82c   :  { %4047 = vst.msk [vmem:[#allocation5 + $0x10] sm:$0xc0] %vm1740_vm14, %v4045_v56  ;;  %5062 = vmatprep.subr.bf16.mxu1 %v5301_v41  ;;  %v4929_v41 = vld [vmem:[%s7449_s5 + $0x5] ss:$0 sm:$0xff]  ;;  %vm5360_vm14 = vmmov 0  }
 0x82d   :  { %v5317_v56 = vld [vmem:[%s7448_s4 + $0x20] sm:$0xff]  }
 0x82e   :  { %v3979_v54 = vpop.permute.xlu1 %3978  ;;  %v3817_v4 = vpop.permute.xlu0 %3816 }
 0x82f   :  { %5063 = vmatpush3.bf16.msra.mxu1 %v5302_v19  ;;  %3981 = vst.msk [vmem:[#allocation5 + $0x18] sm:$0x30] %vm3890_vm8, %v3979_v54  ;;  %v5318_v54 = vld [vmem:[%s7448_s4 + $0x28] sm:$0xff]  }
 0x830   :  { %3819 = vst.msk [vmem:[#allocation5 + $0x10] sm:$0xc] %vm3762_vm6, %v3817_v4  ;;  %5064 = vmatprep.subr.bf16.mxu1 %v5303_v62  ;;  %v5319_v4 = vld [vmem:[%s7448_s4 + $0x30] sm:$0xff]  }
 0x832   :  { %v4091_v27 = vpop.permute.xlu1 %4090  ;;  %v3941_v61 = vpop.permute.xlu0 %3940 }
 0x833   :  { %5065 = vmatpush3.bf16.msra.mxu1 %v5304_v45  ;;  %4093 = vst.msk [vmem:[#allocation5 + $0x18] sm:$0xc0] %vm1760_vm9, %v4091_v27  ;;  %v5320_v45 = vld [vmem:[%s7448_s4 + $0x38] sm:$0xff]  }
 0x834   :  { %3943 = vst.msk [vmem:[#allocation5 + $0x10] sm:$0x30] %vm3881_vm15, %v3941_v61  ;;  %5066 = vmatprep.subr.bf16.mxu1 %v5305_v14 }
 0x836   :  { %v3825_v36 = vpop.permute.xlu1 %3824  ;;  %v4053_v49 = vpop.permute.xlu0 %4052 }
 0x837   :  { %5067 = vmatpush3.bf16.msra.mxu1 %v5306_v55  ;;  %3827 = vst.msk [vmem:[#allocation5 + $0x10] sm:$0xc] %vm3770_vm13, %v3825_v36 }
 0x838   :  { %4055 = vst.msk [vmem:[#allocation5 + $0x10] sm:$0xc0] %vm1750_vm4, %v4053_v49  ;;  %5068 = vmatprep.subr.bf16.mxu1 %v5307_v42  ;;  %vm4485_vm4 = vcmask 253952  }
 0x83a   :  { %v4061_v11 = vpop.permute.xlu1 %4060  ;;  %v3949_v9 = vpop.permute.xlu0 %3948  ;;  %v4097_v13 = vld [vmem:[#allocation5 + $0x18] sm:$0xff] }
 0x83b   :  { %5069 = vmatpush3.bf16.msra.mxu1 %v5308_v5  ;;  %4063 = vst.msk [vmem:[#allocation5 + $0x10] sm:$0xc0] %vm1760_vm9, %v4061_v11  ;;  %v4101_v7 = vpack.c.bf16 %v4097_v13, %v4097_v13  ;;  %vm4492_vm9 = vcmask 516352  }
 0x83c   :  { %3951 = vst.msk [vmem:[#allocation5 + $0x10] sm:$0x30] %vm3890_vm8, %v3949_v9  ;;  %5070 = vmatprep.subr.bf16.mxu1 %v5309_v23 }
 0x83d   :  { %4430 = vmatprep.mubr.bf16.mxu1 %v4101_v7 }
 0x83f   :  { %5071 = vmatpush3.bf16.msra.mxu1 %v5310_v26 }
 0x840   :  { %5072 = vmatprep.subr.bf16.mxu1 %v5311_v29 }
 0x843   :  { %5073 = vmatpush3.bf16.msra.mxu1 %v5312_v16  ;;  %v4096_v34 = vld [vmem:[#allocation5 + $0x10] sm:$0xff] }
 0x844   :  { %v4100_v59 = vpack.c.bf16 %v4096_v34, %v4096_v34  ;;  %5092 = vmatprep.subr.bf16.mxu1 %v5359_v3 }
 0x846   :  { %4431 = vmatmul.mubr.bf16.vlgmr.msra.gmra.mrb[60].mxu1 %v4100_v59 }
 0x847   :  { %5093 = vmatpush3.bf16.msra.mxu1 %v5313_v12  ;;  %5108 = vmatprep.mubr.msk.bf16.mxu1 %vm5360_vm14, %v5359_v3 }
 0x848   :  { %5094 = vmatprep.subr.bf16.mxu1 %v5359_v3 }
 0x84b   :  { %5095 = vmatpush3.bf16.msra.mxu1 %v5314_v44 }
 0x84c   :  { %5096 = vmatprep.subr.bf16.mxu1 %v5359_v3 }
 0x84f   :  { %5097 = vmatpush3.bf16.msra.mxu1 %v5315_v30 }
 0x850   :  { %5098 = vmatprep.subr.bf16.mxu1 %v5359_v3 }
 0x853   :  { %5099 = vmatpush3.bf16.msra.mxu1 %v5316_v32 }
 0x854   :  { %5100 = vmatprep.subr.bf16.mxu1 %v5359_v3 }
 0x857   :  { %5101 = vmatpush3.bf16.msra.mxu1 %v5317_v56 }
 0x858   :  { %5102 = vmatprep.subr.bf16.mxu1 %v5359_v3 }
 0x85b   :  { %5103 = vmatpush3.bf16.msra.mxu1 %v5318_v54 }
 0x85c   :  { %5104 = vmatprep.subr.bf16.mxu1 %v5359_v3 }
 0x85f   :  { %5105 = vmatpush3.bf16.msra.mxu1 %v5319_v4 }
 0x860   :  { %5106 = vmatprep.subr.bf16.mxu1 %v5359_v3 }
 0x863   :  { %5107 = vmatpush3.bf16.msra.mxu1 %v5320_v45 }
 0x864   :  { %5112 = vmatprep.subr.bf16.mxu1 %v5359_v3 }
 0x8f9   :  { %v5052_v20 = vpop.f32.mrb[56].mxu1 }
 0x8fa   :  { %v5053_v47 = vpop.f32.mrb[57].mxu1 }
 0x8fb   :  { %v5054_v10 = vadd.f32 %v5053_v47, %v5052_v20  ;;  %v5055_v22 = vpop.f32.mrb[58].mxu1 }
 0x8fc   :  { %v5056_v33 = vpop.f32.mrb[59].mxu1 }
 0x919   :  { %v5074_v17 = vpop.f32.mrb[60].mxu1 }
 0x91a   :  { %v5075_v53 = vpop.f32.mrb[61].mxu1 }
 0x91b   :  { %v5076_v35 = vadd.f32 %v5075_v53, %v5074_v17  ;;  %v5077_v46 = vpop.f32.mrb[62].mxu1 }
 0x91c   :  { %v5078_v43 = vpop.f32.mrb[63].mxu1 }
 0x91d   :  { %v4433_v18 = vadd.f32 %v5076_v35, %v5054_v10 }
 0x91f   :  { %v4440_v58 = vmul.f32 %v4433_v18, %v4433_v18 }
 0x921   :  { %4442 = vrot.lane.b32.xlu0 %v4440_v58, %s5356_s28 }
 0x993   :  { %v4443_v25 = vpop.permute.xlu0 %4442 }
 0x994   :  { %v4445_v1 = vsel %vm1081_vm1, %v4433_v18, %v4443_v25 }
 0x995   :  { %v4446_v8 = vsel %vm7549_vm2, %v4445_v1, 0.0 }
 0x996   :  { %v4447_v24 = vrot.slane %v4446_v8, 4 }
 0x998   :  { %v4448_v51 = vadd.f32 %v4447_v24, %v4446_v8 }
 0x99a   :  { %v4449_v37 = vrot.slane %v4448_v51, 2 }
 0x99c   :  { %v4450_v28 = vadd.f32 %v4449_v37, %v4448_v51  ;;  %v5321_v37 = vld [vmem:[%s7450_s6] sm:$0xff]  }
 0x99e   :  { %v4451_v31 = vrot.slane %v4450_v28, 1 }
 0x9a0   :  { %v4452_v40 = vadd.f32 %v4451_v31, %v4450_v28  ;;  %v5322_v31 = vld [vmem:[%s7450_s6 + $0x8] sm:$0xff]  }
 0x9a2   :  { %v4453_v38 = vmul.f32 0.125, %v4452_v40 }
 0x9a4   :  { %v4454_v0 = vmul.f32 %v4453_v38, %v4453_v38  ;;  %v4462_v39 = vsub.f32 %v4433_v18, %v4453_v38 }
 0x9a6   :  { %4456 = vrot.lane.b32.xlu1 %v4454_v0, %s5356_s28  ;;  %v4938_v0 = vld [vmem:[%s7449_s5 + $0x6] ss:$0 sm:$0xff] }
 0xa18   :  { %v4457_v57 = vpop.permute.xlu1 %4456 }
 0xa19   :  { %v4459_v15 = vsub.f32 %v4453_v38, %v4457_v57 }
 0xa1b   :  { %v4460_v21 = vadd.f32 1e-05, %v4459_v15 }
 0xa1d   :  { %5327 = vrsqrt.f32 %v4460_v21  ;;  %v4939_v21 = vld [vmem:[%s7449_s5 + $0x7] ss:$0 sm:$0xff]  ;;  %s5331_s5 = scalar_lea.vmem %s4754_s15, 32 }
 0xa1e   :  { %p5332_p0 = scmp.ne.s32.totalorder %s4754_s15, %s5331_s5  ;;  %p5337_p2 = scmp.lt.s32.totalorder %s5331_s5, %s5331_s5 }
 0xa20   :  { %p5338_p3 = por %p5337_p2, %p5336_p1 }
 0xa22   :  { %p5339_p4 = pnand %p5338_p3, %p5332_p0 }
 0xa27   :  { %v5328_v63 = vpop.eup %5327 }
 0xa28   :  { %v4466_v2 = vrot.slane %v5328_v63, %v7540_v48 }
 0xa2a   :  { %4468 = vrot.lane.b32.xlu0 %v4466_v2, %s5357_s0 }
 0xa9c   :  { %v4469_v50 = vpop.permute.xlu0 %4468 }
 0xa9d   :  { %v4471_v52 = vmul.f32 %v4469_v50, %v4462_v39 }
 0xa9f   :  { %v4476_v60 = vmul.f32 %v4928_v6, %v4471_v52 }
 0xaa1   :  { %v4481_v19 = vadd.f32 %v4929_v41, %v4476_v60 }
 0xaa3   :  { %v4482_v62 = vmax.f32 %v4481_v19, 0.0 }
 0xaa5   :  { %4483 = vst.msk [vmem:[#allocation6] sm:$0xff] %vm1081_vm1, %v4482_v62 }
 0xaac   :  { %v4510_v14 = vld [vmem:[#allocation6 + $0x5] sm:$0x1]  ;;  %v4487_v27 = vld [vmem:[#allocation6 + $0x1] sm:$0x1]  ;;  %v4508_v61 = vld [vmem:[#allocation6 + $0x4] sm:$0x1] }
 0xaad   :  { %4512 = vrot.lane.b32.xlu0 %v4510_v14, %s5356_s28  ;;  %4489 = vrot.lane.b32.xlu1 %v4487_v27, %s5356_s28  ;;  %v4484_v55 = vld [vmem:[#allocation6] sm:$0x1]  ;;  %4509 = vst.msk [vmem:[#allocation7 + $0x1] sm:$0x1] %vm4485_vm4, %v4508_v61  ;;  %v4516_v42 = vld [vmem:[#allocation6 + $0x6] sm:$0x1] }
 0xaae   :  { %4486 = vst.msk [vmem:[#allocation7] sm:$0x1] %vm4485_vm4, %v4484_v55  ;;  %v4494_v36 = vld [vmem:[#allocation6 + $0x2] sm:$0x1]  ;;  %v4522_v49 = vld [vmem:[#allocation6 + $0x7] sm:$0x1] }
 0xaaf   :  { %v4501_v5 = vld [vmem:[#allocation6 + $0x3] sm:$0x1] }
 0xab1   :  { %4518 = vrot.lane.b32.xlu0 %v4516_v42, %s5358_s11  ;;  %4496 = vrot.lane.b32.xlu1 %v4494_v36, %s5358_s11 }
 0xab5   :  { %4524 = vrot.lane.b32.xlu0 %v4522_v49, %s5357_s0  ;;  %4503 = vrot.lane.b32.xlu1 %v4501_v5, %s5357_s0 }
 0xb1f   :  { %v4513_v23 = vpop.permute.xlu0 %4512  ;;  %v4490_v11 = vpop.permute.xlu1 %4489 }
 0xb20   :  { %4515 = vst.msk [vmem:[#allocation7 + $0x1] sm:$0x1] %vm4492_vm9, %v4513_v23  ;;  %4493 = vst.msk [vmem:[#allocation7] sm:$0x1] %vm4492_vm9, %v4490_v11 }
 0xb23   :  { %v4519_v9 = vpop.permute.xlu0 %4518  ;;  %v4497_v13 = vpop.permute.xlu1 %4496 }
 0xb24   :  { %4521 = vst.msk [vmem:[#allocation7 + $0x1] sm:$0x1] %vm4499_vm5, %v4519_v9  ;;  %4500 = vst.msk [vmem:[#allocation7] sm:$0x1] %vm4499_vm5, %v4497_v13 }
 0xb27   :  { %v4525_v26 = vpop.permute.xlu0 %4524  ;;  %v4504_v7 = vpop.permute.xlu1 %4503 }
 0xb28   :  { %4527 = vst.msk [vmem:[#allocation7 + $0x1] sm:$0x1] %vm4506_vm7, %v4525_v26  ;;  %4507 = vst.msk [vmem:[#allocation7] sm:$0x1] %vm4506_vm7, %v4504_v7 }
 0xb2f   :  { %v4528_v29 = vld [vmem:[#allocation7] sm:$0x3] }
 0xb30   :  { %v4529_v16 = vpack.c.bf16 %v4528_v29, %v4528_v29 }
 0xb32   :  { %5109 = vmatmul.mubr.bf16.vlgmr.msra.gmra.mrb[64].mxu1 %v4529_v16 }
 0xb33   :  { %5116 = vmatprep.mubr.msk.bf16.mxu1 %vm5360_vm14, %v5359_v3  ;;  %5113 = vmatpush3.bf16.msra.mxu1 %v5321_v37 }
 0xb34   :  { %5114 = vmatprep.subr.bf16.mxu1 %v5359_v3  ;;  %v4940_v3 = vld [vmem:[%s7451_s7] ss:$0 sm:$0xff] }
 0xb37   :  { %5115 = vmatpush3.bf16.msra.mxu1 %v5322_v31 }
 0xc05   :  { %v4628_v34 = vpop.f32.mrb[64].mxu1 }
 0xc06   :  { %v4636_v59 = vmul.f32 %v4628_v34, %v4628_v34  ;;  %v5110_v20 = vpop.f32.mrb[65].mxu1 }
 0xc07   :  { %v4631_v47 = vpop.f32.mrb[66].mxu1 }
 0xc08   :  { %4638 = vrot.lane.b32.xlu1 %v4636_v59, %s5356_s28  ;;  %v5111_v10 = vpop.f32.mrb[67].mxu1 }
 0xc7a   :  { %v4639_v22 = vpop.permute.xlu1 %4638 }
 0xc7b   :  { %v4641_v33 = vsel %vm1081_vm1, %v4628_v34, %v4639_v22 }
 0xc7c   :  { %v4642_v17 = vsel %vm7550_vm10, %v4641_v33, 0.0 }
 0xc7d   :  { %v4643_v53 = vrot.slane %v4642_v17, 4 }
 0xc7f   :  { %v4644_v35 = vadd.f32 %v4643_v53, %v4642_v17 }
 0xc81   :  { %v4645_v46 = vrot.slane %v4644_v35, 2 }
 0xc83   :  { %v4646_v43 = vadd.f32 %v4645_v46, %v4644_v35 }
 0xc85   :  { %v4647_v18 = vrot.slane %v4646_v43, 1 }
 0xc87   :  { %v4648_v58 = vadd.f32 %v4647_v18, %v4646_v43 }
 0xc89   :  { %v4649_v25 = vmul.f32 0.5, %v4648_v58 }
 0xc8b   :  { %v4650_v1 = vmul.f32 %v4649_v25, %v4649_v25  ;;  %v4658_v38 = vsub.f32 %v4628_v34, %v4649_v25 }
 0xc8d   :  { %4652 = vrot.lane.b32.xlu0 %v4650_v1, %s5356_s28 }
 0xcff   :  { %v4653_v8 = vpop.permute.xlu0 %4652 }
 0xd00   :  { %v4655_v24 = vsub.f32 %v4649_v25, %v4653_v8 }
 0xd02   :  { %v4656_v51 = vadd.f32 1e-05, %v4655_v24 }
 0xd04   :  { %5329 = vrsqrt.f32 %v4656_v51 }
 0xd0e   :  { %v5330_v28 = vpop.eup %5329 }
 0xd0f   :  { %v4662_v40 = vrot.slane %v5330_v28, %v7540_v48 }
 0xd11   :  { %4664 = vrot.lane.b32.xlu1 %v4662_v40, %s5357_s0 }
 0xd83   :  { %v4665_v57 = vpop.permute.xlu1 %4664 }
 0xd84   :  { %v4667_v15 = vmul.f32 %v4665_v57, %v4658_v38 }
 0xd86   :  { %v4672_v63 = vmul.f32 %v4938_v0, %v4667_v15 }
 0xd88   :  { %v4677_v2 = vadd.f32 %v4939_v21, %v4672_v63 }
 0xd8a   :  { %v4678_v12 = vmax.f32 %v4677_v2, 0.0 }
 0xd8c   :  { %v4679_v48 = vpack.c.bf16 %v4678_v12, %v4678_v12 }
 0xd8e   :  { %5117 = vmatmul.mubr.msk.bf16.vlgmr.msra.gmra.mrb[68].mxu1 %vm1081_vm1, %v4679_v48 }
 0xe61   :  { %v4740_v44 = vpop.f32.mrb[68].mxu1 }
 0xe62   :  { %v4741_v30 = vadd.f32 %v4940_v3, %v4740_v44  ;;  %v5118_v32 = vpop.f32.mrb[69].mxu1 }
 0xe63   :  { %v4743_v39 = vpop.f32.mrb[70].mxu1 }
 0xe64   :  { %4746 = vst.msk [vmem:[#allocation8] sm:$0x3] %vm7551_vm11, %v4741_v30  ;;  %v5119_v6 = vpop.f32.mrb[71].mxu1 }
 0xe65   :  { %5342 = shalt.err (!%p5339_p4)
}
 0xe66   :  { %s5343_s7 = scalar_lea.hbm %s7452_s8, 32 }
 0xe67   :  { %p5344_p5 = scmp.ne.s32.totalorder %s7452_s8, %s5343_s7  ;;  %p5347_p6 = scmp.lt.u32.totalorder %s5343_s7, %s7452_s8 }
 0xe69   :  { %p5349_p7 = pnand %p5347_p6, %p5344_p5 }
 0xe6b   :  { %5352 = shalt.err (!%p5349_p7)
}
 0xe6c   :  { %4756 = dma.vmem_to_hbm [thread:$0]  %s4754_s15, 32, %s7452_s8, [#allocation9]  }
 0xe6d   :  { %5353 = dma.done.wait [#allocation9], 32  }
 0xe6e   :  { %5354 = vsyncadd [#allocation9], 4294967264 }
 0xe6f   :  { %4760 = vsyncpa [#allocation9], 1 }

</bundles_post_ra>
